<compile_context>
chip_gen: v5e
topology: v5e:2x2
jax: 0.10.0
libtpu: 0.0.40
codegen_flags: <defaults>
</compile_context>

<pallas_src>
import functools

import jax
import jax.numpy as jnp
import numpy as np
from jax import lax
from jax.experimental import pallas as pl
from jax.experimental.pallas import tpu as pltpu

G = 8          # sources handled per vreg transpose (static unroll)
GA = 32        # aligned source block: matches int8 sublane packing (32 rows per vreg)
TD = 128       # feature slab width (lanes) per accumulator read-modify-write
NEG = float("-inf")


def _round_up(x, m):
    return (x + m - 1) // m * m


def _max_pool_kernel(adj_t_ref, h_ref, out_ref, acc_ref, *, tk, resident_h):
    """One (dst-tile i, src-chunk k) grid step.

    adj_t_ref : [tk, TN]       int8  adjacency chunk, transposed (src rows, dst cols)
    h_ref     : [N_pad, D_pad] (resident) or [tk, D_pad] (streamed) node features
    out_ref   : [TN, D_pad]    pooled output tile (resident across the k axis)
    acc_ref   : [TN, D_pad] f32 scratch: running max accumulator (-inf = "no edge seen")
    """
    k = pl.program_id(1)
    _, d_pad = acc_ref.shape
    n_slabs = d_pad // TD
    n_blocks = tk // GA

    @pl.when(k == 0)
    def _init():
        acc_ref[...] = jnp.full(acc_ref.shape, NEG, acc_ref.dtype)

    for sl in range(n_slabs):
        def block_body(blk, acc, sl=sl):
            base = pl.multiple_of(blk * GA, GA)
            row = pl.multiple_of(k * tk + blk * GA, GA) if resident_h else base
            # [GA, TN] int8 edge chunk; pack-aligned dynamic sublane slice, converted to a
            # 0/1 f32 mask once per 32 sources (no per-chunk bias scratch round-trip).
            e = adj_t_ref[pl.ds(base, GA), :]
            m = (e != 0).astype(jnp.float32)                                   # [GA, TN]
            hh = h_ref[pl.ds(row, GA), pl.ds(sl * TD, TD)].astype(jnp.float32)  # [GA, TD]
            for s in range(GA // G):
                # One vreg transpose per G sources; compare hoisted per sub-group.
                m_t = m[s * G:(s + 1) * G, :].T != 0.0                         # [TN, G]
                for j in range(G):
                    src = s * G + j
                    # mask-then-max: exact even for +/-inf features (no -inf + inf = NaN)
                    cand = jnp.where(m_t[:, j:j + 1], hh[src:src + 1, :], NEG)
                    acc = jnp.maximum(acc, cand)
            return acc

        lo, hi = sl * TD, (sl + 1) * TD
        acc_ref[:, lo:hi] = lax.fori_loop(0, n_blocks, block_body, acc_ref[:, lo:hi])

    @pl.when(k == pl.num_programs(1) - 1)
    def _finalize():
        a = acc_ref[...]
        # Rows that never saw an edge stay -inf -> DGL zero-in-degree semantics: 0.
        out_ref[...] = jnp.where(a == NEG, 0.0, a).astype(out_ref.dtype)


def graph_max_pool(adj_pool, h):
    """adj_pool: [P, N] dst-x-src adjacency rows of the pooled nodes; h: [N, D]."""
    P, N = adj_pool.shape
    N2, D = h.shape
    assert N == N2
    h_itemsize = jnp.dtype(h.dtype).itemsize

    D_pad = _round_up(D, TD)

    # Reduction chunk: big enough to amortise the grid-step overhead, clamped to the graph
    # size, multiple of GA so int8 sublane slices stay pack-aligned.
    TK = min(1024, _round_up(N, GA))
    N_pad = _round_up(N, TK)

    # Keep the whole feature table resident in VMEM when it comfortably fits (conservative
    # budget incl. possible 2x buffering, sized for v7x's 64 MiB); otherwise stream chunks.
    resident_h = 2 * N_pad * D_pad * h_itemsize <= 20 * 1024 * 1024
    if not resident_h:
        while TK > GA and 2 * TK * D_pad * h_itemsize > 16 * 1024 * 1024:
            TK //= 2
        N_pad = _round_up(N, TK)

    # Destination tile: 128 keeps adjacency blocks lane-dense and gives >=2 "parallel"
    # tiles for v7x's two TensorCores at realistic P; for small P use the full 8-padded
    # extent (block == full array dim, no wasted padded rows).
    TN = 128 if P > 128 else max(8, _round_up(P, 8))
    P_pad = _round_up(P, TN)

    # Glue (one-off per graph; for a static graph cache adj_t across calls): int8
    # adjacency (4x less HBM traffic than f32), transposed so per-source kernel reads are
    # sublane slices; zero padding == "no edge".  h stays in its native dtype; pads are
    # skipped entirely when shapes already align.
    adj_t = (adj_pool != 0).astype(jnp.int8).T
    if N_pad != N or P_pad != P:
        adj_t = jnp.pad(adj_t, ((0, N_pad - N), (0, P_pad - P)))
    h_p = h if (N_pad == N and D_pad == D) else jnp.pad(h, ((0, N_pad - N), (0, D_pad - D)))

    if resident_h:
        h_spec = pl.BlockSpec((N_pad, D_pad), lambda i, k: (0, 0))   # single DMA, resident
    else:
        h_spec = pl.BlockSpec((TK, D_pad), lambda i, k: (k, 0))      # streamed per chunk

    kernel = functools.partial(_max_pool_kernel, tk=TK, resident_h=resident_h)

    out = pl.pallas_call(
        kernel,
        out_shape=jax.ShapeDtypeStruct((P_pad, D_pad), h.dtype),
        grid_spec=pltpu.PrefetchScalarGridSpec(
            num_scalar_prefetch=0,
            grid=(P_pad // TN, N_pad // TK),                      # (dst tiles, src chunks)
            in_specs=[
                pl.BlockSpec((TK, TN), lambda i, k: (k, i)),      # adj^T chunk (int8)
                h_spec,
            ],
            out_specs=pl.BlockSpec((TN, D_pad), lambda i, k: (i, 0)),  # resident across k
            scratch_shapes=[
                pltpu.VMEM((TN, D_pad), jnp.float32),             # running max accumulator
            ],
        ),
        compiler_params=pltpu.CompilerParams(
            dimension_semantics=("parallel", "arbitrary"),
            vmem_limit_bytes=32 * 1024 * 1024,
        ),
    )(adj_t, h_p)

    return out[:P, :D]


def reference(adj_pool, h):
    masked = np.where(adj_pool[:, :, None] > 0, h[None, :, :], -np.inf)
    mx = masked.max(axis=1)
    deg = adj_pool.sum(axis=1, keepdims=True)
    return np.where(deg > 0, mx, 0.0).astype(h.dtype)


if __name__ == "__main__":
    N, D, P = 384, 128, 144  # nodes, feature dim, pooled nodes (non-tile-multiple P)
    key = jax.random.PRNGKey(0)
    k_h, k_g = jax.random.split(key)

    # deterministic synthetic inputs
    h = jax.random.normal(k_h, (N, D), dtype=jnp.float32)
    adj = (jax.random.uniform(k_g, (N, N)) < 0.05).astype(jnp.float32)  # adj[v, u]: edge u -> v
    pool = jnp.arange(0, 2 * P, 2, dtype=jnp.int32)                     # pooled node indices
    adj = adj.at[pool[3], :].set(0.0)   # force one zero-in-degree pooled node (DGL -> 0)

    adj_pool = adj[pool]                # glue: gather adjacency rows of pooled nodes -> [P, N]

    out = graph_max_pool(adj_pool, h)
    out = jax.block_until_ready(out)

    ref = reference(np.asarray(adj_pool), np.asarray(h))
    np.testing.assert_allclose(np.asarray(out), ref, rtol=1e-6, atol=1e-6)
    print("KERNEL_OK")
</pallas_src>

<mosaic_0001>
module attributes {stable_mosaic.version = 11 : i64} {
  func.func @_max_pool_kernel(%arg0: i32, %arg1: i32, %arg2: memref<384x128xi8, #tpu.memory_space<vmem>>, %arg3: memref<384x128xf32, #tpu.memory_space<vmem>>, %arg4: memref<128x128xf32, #tpu.memory_space<vmem>>, %arg5: memref<128x128xf32, #tpu.memory_space<vmem>>) attributes {dimension_semantics = [#tpu.dimension_semantics<parallel>, #tpu.dimension_semantics<arbitrary>], iteration_bounds = array<i64: 2, 1>, scalar_prefetch = 0 : i64, scratch_operands = 1 : i64, tpu.core_type = #tpu.core_type<tc>, window_params = [{transform_indices = @transform_0, window_bounds = array<i64: 384, 128>}, {pipeline_mode = #tpu.pipeline_mode<synchronous>, transform_indices = @transform_1, window_bounds = array<i64: 384, 128>}, {transform_indices = @transform_2, window_bounds = array<i64: 128, 128>}]} {
    %c0_i32 = arith.constant 0 : i32
    %0 = arith.cmpi eq, %arg1, %c0_i32 : i32
    %1 = arith.extui %0 : i1 to i32
    %c0_i32_0 = arith.constant 0 : i32
    %2 = arith.cmpi ne, %1, %c0_i32_0 : i32
    scf.if %2 {
      %cst = arith.constant 0xFF800000 : f32
      %10 = vector.broadcast %cst : f32 to vector<128x128xf32>
      %c0_8 = arith.constant 0 : index
      %c0_9 = arith.constant 0 : index
      %11 = vector.load %arg5[%c0_8, %c0_9] : memref<128x128xf32, #tpu.memory_space<vmem>>, vector<128x128xf32>
      tpu.vector_store %arg5[%c0_8, %c0_9], %10 {strides = array<i32>} : memref<128x128xf32, #tpu.memory_space<vmem>>, vector<128x128xf32>,
    } else {
    }
    %c0 = arith.constant 0 : index
    %c0_1 = arith.constant 0 : index
    %3 = vector.load %arg5[%c0, %c0_1] : memref<128x128xf32, #tpu.memory_space<vmem>>, vector<128x128xf32>
    %c0_i32_2 = arith.constant 0 : i32
    %c12_i32 = arith.constant 12 : i32
    %4 = arith.addi %c0_i32_2, %c12_i32 : i32
    %c1_i32 = arith.constant 1 : i32
    %5 = scf.for %arg6 = %c0_i32_2 to %4 step %c1_i32 iter_args(%arg7 = %3) -> (vector<128x128xf32>)  : i32 {
      %c32_i32 = arith.constant 32 : i32
      %10 = arith.muli %arg6, %c32_i32 : i32
      %11 = tpu.assume_multiple %10, 32 : i32
      %c384_i32 = arith.constant 384 : i32
      %12 = arith.muli %arg1, %c384_i32 : i32
      %c32_i32_8 = arith.constant 32 : i32
      %13 = arith.muli %arg6, %c32_i32_8 : i32
      %14 = arith.addi %12, %13 : i32
      %15 = tpu.assume_multiple %14, 32 : i32
      %16 = arith.index_cast %11 : i32 to index
      %c0_9 = arith.constant 0 : index
      %17 = vector.load %arg2[%16, %c0_9] : memref<384x128xi8, #tpu.memory_space<vmem>>, vector<32x128xi8>
      %c0_i8 = arith.constant 0 : i8
      %18 = vector.broadcast %c0_i8 : i8 to vector<32x128xi8>
      %19 = arith.cmpi ne, %17, %18 : vector<32x128xi8>
      %20 = arith.extui %19 : vector<32x128xi1> to vector<32x128xi32>
      %21 = arith.sitofp %20 : vector<32x128xi32> to vector<32x128xf32>
      %22 = arith.index_cast %15 : i32 to index
      %c0_10 = arith.constant 0 : index
      %23 = vector.load %arg3[%22, %c0_10] : memref<384x128xf32, #tpu.memory_space<vmem>>, vector<32x128xf32>
      %24 = vector.extract_strided_slice %21 {offsets = [0, 0], sizes = [8, 128], strides = [1, 1]} : vector<32x128xf32> to vector<8x128xf32>
      %25 = tpu.transpose %24, [1, 0] : vector<8x128xf32> -> vector<128x8xf32>
      %cst = arith.constant 0.000000e+00 : f32
      %26 = vector.broadcast %cst : f32 to vector<128x8xf32>
      %27 = arith.cmpf one, %25, %26 : vector<128x8xf32>
      %28 = vector.extract_strided_slice %27 {offsets = [0, 0], sizes = [128, 1], strides = [1, 1]} : vector<128x8xi1> to vector<128x1xi1>
      %29 = vector.extract_strided_slice %23 {offsets = [0, 0], sizes = [1, 128], strides = [1, 1]} : vector<32x128xf32> to vector<1x128xf32>
      %cst_11 = arith.constant 0xFF800000 : f32
      %30 = vector.shape_cast %28 : vector<128x1xi1> to vector<128x1xi1>
      %31 = vector.broadcast %30 : vector<128x1xi1> to vector<128x128xi1>
      %32 = vector.shape_cast %29 : vector<1x128xf32> to vector<1x128xf32>
      %33 = vector.broadcast %32 : vector<1x128xf32> to vector<128x128xf32>
      %34 = vector.broadcast %cst_11 : f32 to vector<128x128xf32>
      %35 = arith.select %31, %33, %34 : vector<128x128xi1>, vector<128x128xf32>
      %36 = arith.maximumf %arg7, %35 : vector<128x128xf32>
      %37 = vector.extract_strided_slice %27 {offsets = [0, 1], sizes = [128, 1], strides = [1, 1]} : vector<128x8xi1> to vector<128x1xi1>
      %38 = vector.extract_strided_slice %23 {offsets = [1, 0], sizes = [1, 128], strides = [1, 1]} : vector<32x128xf32> to vector<1x128xf32>
      %cst_12 = arith.constant 0xFF800000 : f32
      %39 = vector.shape_cast %37 : vector<128x1xi1> to vector<128x1xi1>
      %40 = vector.broadcast %39 : vector<128x1xi1> to vector<128x128xi1>
      %41 = vector.shape_cast %38 : vector<1x128xf32> to vector<1x128xf32>
      %42 = vector.broadcast %41 : vector<1x128xf32> to vector<128x128xf32>
      %43 = vector.broadcast %cst_12 : f32 to vector<128x128xf32>
      %44 = arith.select %40, %42, %43 : vector<128x128xi1>, vector<128x128xf32>
      %45 = arith.maximumf %36, %44 : vector<128x128xf32>
      %46 = vector.extract_strided_slice %27 {offsets = [0, 2], sizes = [128, 1], strides = [1, 1]} : vector<128x8xi1> to vector<128x1xi1>
      %47 = vector.extract_strided_slice %23 {offsets = [2, 0], sizes = [1, 128], strides = [1, 1]} : vector<32x128xf32> to vector<1x128xf32>
      %cst_13 = arith.constant 0xFF800000 : f32
      %48 = vector.shape_cast %46 : vector<128x1xi1> to vector<128x1xi1>
      %49 = vector.broadcast %48 : vector<128x1xi1> to vector<128x128xi1>
      %50 = vector.shape_cast %47 : vector<1x128xf32> to vector<1x128xf32>
      %51 = vector.broadcast %50 : vector<1x128xf32> to vector<128x128xf32>
      %52 = vector.broadcast %cst_13 : f32 to vector<128x128xf32>
      %53 = arith.select %49, %51, %52 : vector<128x128xi1>, vector<128x128xf32>
      %54 = arith.maximumf %45, %53 : vector<128x128xf32>
      %55 = vector.extract_strided_slice %27 {offsets = [0, 3], sizes = [128, 1], strides = [1, 1]} : vector<128x8xi1> to vector<128x1xi1>
      %56 = vector.extract_strided_slice %23 {offsets = [3, 0], sizes = [1, 128], strides = [1, 1]} : vector<32x128xf32> to vector<1x128xf32>
      %cst_14 = arith.constant 0xFF800000 : f32
      %57 = vector.shape_cast %55 : vector<128x1xi1> to vector<128x1xi1>
      %58 = vector.broadcast %57 : vector<128x1xi1> to vector<128x128xi1>
      %59 = vector.shape_cast %56 : vector<1x128xf32> to vector<1x128xf32>
      %60 = vector.broadcast %59 : vector<1x128xf32> to vector<128x128xf32>
      %61 = vector.broadcast %cst_14 : f32 to vector<128x128xf32>
      %62 = arith.select %58, %60, %61 : vector<128x128xi1>, vector<128x128xf32>
      %63 = arith.maximumf %54, %62 : vector<128x128xf32>
      %64 = vector.extract_strided_slice %27 {offsets = [0, 4], sizes = [128, 1], strides = [1, 1]} : vector<128x8xi1> to vector<128x1xi1>
      %65 = vector.extract_strided_slice %23 {offsets = [4, 0], sizes = [1, 128], strides = [1, 1]} : vector<32x128xf32> to vector<1x128xf32>
      %cst_15 = arith.constant 0xFF800000 : f32
      %66 = vector.shape_cast %64 : vector<128x1xi1> to vector<128x1xi1>
      %67 = vector.broadcast %66 : vector<128x1xi1> to vector<128x128xi1>
      %68 = vector.shape_cast %65 : vector<1x128xf32> to vector<1x128xf32>
      %69 = vector.broadcast %68 : vector<1x128xf32> to vector<128x128xf32>
      %70 = vector.broadcast %cst_15 : f32 to vector<128x128xf32>
      %71 = arith.select %67, %69, %70 : vector<128x128xi1>, vector<128x128xf32>
      %72 = arith.maximumf %63, %71 : vector<128x128xf32>
      %73 = vector.extract_strided_slice %27 {offsets = [0, 5], sizes = [128, 1], strides = [1, 1]} : vector<128x8xi1> to vector<128x1xi1>
      %74 = vector.extract_strided_slice %23 {offsets = [5, 0], sizes = [1, 128], strides = [1, 1]} : vector<32x128xf32> to vector<1x128xf32>
      %cst_16 = arith.constant 0xFF800000 : f32
      %75 = vector.shape_cast %73 : vector<128x1xi1> to vector<128x1xi1>
      %76 = vector.broadcast %75 : vector<128x1xi1> to vector<128x128xi1>
      %77 = vector.shape_cast %74 : vector<1x128xf32> to vector<1x128xf32>
      %78 = vector.broadcast %77 : vector<1x128xf32> to vector<128x128xf32>
      %79 = vector.broadcast %cst_16 : f32 to vector<128x128xf32>
      %80 = arith.select %76, %78, %79 : vector<128x128xi1>, vector<128x128xf32>
      %81 = arith.maximumf %72, %80 : vector<128x128xf32>
      %82 = vector.extract_strided_slice %27 {offsets = [0, 6], sizes = [128, 1], strides = [1, 1]} : vector<128x8xi1> to vector<128x1xi1>
      %83 = vector.extract_strided_slice %23 {offsets = [6, 0], sizes = [1, 128], strides = [1, 1]} : vector<32x128xf32> to vector<1x128xf32>
      %cst_17 = arith.constant 0xFF800000 : f32
      %84 = vector.shape_cast %82 : vector<128x1xi1> to vector<128x1xi1>
      %85 = vector.broadcast %84 : vector<128x1xi1> to vector<128x128xi1>
      %86 = vector.shape_cast %83 : vector<1x128xf32> to vector<1x128xf32>
      %87 = vector.broadcast %86 : vector<1x128xf32> to vector<128x128xf32>
      %88 = vector.broadcast %cst_17 : f32 to vector<128x128xf32>
      %89 = arith.select %85, %87, %88 : vector<128x128xi1>, vector<128x128xf32>
      %90 = arith.maximumf %81, %89 : vector<128x128xf32>
      %91 = vector.extract_strided_slice %27 {offsets = [0, 7], sizes = [128, 1], strides = [1, 1]} : vector<128x8xi1> to vector<128x1xi1>
      %92 = vector.extract_strided_slice %23 {offsets = [7, 0], sizes = [1, 128], strides = [1, 1]} : vector<32x128xf32> to vector<1x128xf32>
      %cst_18 = arith.constant 0xFF800000 : f32
      %93 = vector.shape_cast %91 : vector<128x1xi1> to vector<128x1xi1>
      %94 = vector.broadcast %93 : vector<128x1xi1> to vector<128x128xi1>
      %95 = vector.shape_cast %92 : vector<1x128xf32> to vector<1x128xf32>
      %96 = vector.broadcast %95 : vector<1x128xf32> to vector<128x128xf32>
      %97 = vector.broadcast %cst_18 : f32 to vector<128x128xf32>
      %98 = arith.select %94, %96, %97 : vector<128x128xi1>, vector<128x128xf32>
      %99 = arith.maximumf %90, %98 : vector<128x128xf32>
      %100 = vector.extract_strided_slice %21 {offsets = [8, 0], sizes = [8, 128], strides = [1, 1]} : vector<32x128xf32> to vector<8x128xf32>
      %101 = tpu.transpose %100, [1, 0] : vector<8x128xf32> -> vector<128x8xf32>
      %cst_19 = arith.constant 0.000000e+00 : f32
      %102 = vector.broadcast %cst_19 : f32 to vector<128x8xf32>
      %103 = arith.cmpf one, %101, %102 : vector<128x8xf32>
      %104 = vector.extract_strided_slice %103 {offsets = [0, 0], sizes = [128, 1], strides = [1, 1]} : vector<128x8xi1> to vector<128x1xi1>
      %105 = vector.extract_strided_slice %23 {offsets = [8, 0], sizes = [1, 128], strides = [1, 1]} : vector<32x128xf32> to vector<1x128xf32>
      %cst_20 = arith.constant 0xFF800000 : f32
      %106 = vector.shape_cast %104 : vector<128x1xi1> to vector<128x1xi1>
      %107 = vector.broadcast %106 : vector<128x1xi1> to vector<128x128xi1>
      %108 = vector.shape_cast %105 : vector<1x128xf32> to vector<1x128xf32>
      %109 = vector.broadcast %108 : vector<1x128xf32> to vector<128x128xf32>
      %110 = vector.broadcast %cst_20 : f32 to vector<128x128xf32>
      %111 = arith.select %107, %109, %110 : vector<128x128xi1>, vector<128x128xf32>
      %112 = arith.maximumf %99, %111 : vector<128x128xf32>
      %113 = vector.extract_strided_slice %103 {offsets = [0, 1], sizes = [128, 1], strides = [1, 1]} : vector<128x8xi1> to vector<128x1xi1>
      %114 = vector.extract_strided_slice %23 {offsets = [9, 0], sizes = [1, 128], strides = [1, 1]} : vector<32x128xf32> to vector<1x128xf32>
      %cst_21 = arith.constant 0xFF800000 : f32
      %115 = vector.shape_cast %113 : vector<128x1xi1> to vector<128x1xi1>
      %116 = vector.broadcast %115 : vector<128x1xi1> to vector<128x128xi1>
      %117 = vector.shape_cast %114 : vector<1x128xf32> to vector<1x128xf32>
      %118 = vector.broadcast %117 : vector<1x128xf32> to vector<128x128xf32>
      %119 = vector.broadcast %cst_21 : f32 to vector<128x128xf32>
      %120 = arith.select %116, %118, %119 : vector<128x128xi1>, vector<128x128xf32>
      %121 = arith.maximumf %112, %120 : vector<128x128xf32>
      %122 = vector.extract_strided_slice %103 {offsets = [0, 2], sizes = [128, 1], strides = [1, 1]} : vector<128x8xi1> to vector<128x1xi1>
      %123 = vector.extract_strided_slice %23 {offsets = [10, 0], sizes = [1, 128], strides = [1, 1]} : vector<32x128xf32> to vector<1x128xf32>
      %cst_22 = arith.constant 0xFF800000 : f32
      %124 = vector.shape_cast %122 : vector<128x1xi1> to vector<128x1xi1>
      %125 = vector.broadcast %124 : vector<128x1xi1> to vector<128x128xi1>
      %126 = vector.shape_cast %123 : vector<1x128xf32> to vector<1x128xf32>
      %127 = vector.broadcast %126 : vector<1x128xf32> to vector<128x128xf32>
      %128 = vector.broadcast %cst_22 : f32 to vector<128x128xf32>
      %129 = arith.select %125, %127, %128 : vector<128x128xi1>, vector<128x128xf32>
      %130 = arith.maximumf %121, %129 : vector<128x128xf32>
      %131 = vector.extract_strided_slice %103 {offsets = [0, 3], sizes = [128, 1], strides = [1, 1]} : vector<128x8xi1> to vector<128x1xi1>
      %132 = vector.extract_strided_slice %23 {offsets = [11, 0], sizes = [1, 128], strides = [1, 1]} : vector<32x128xf32> to vector<1x128xf32>
      %cst_23 = arith.constant 0xFF800000 : f32
      %133 = vector.shape_cast %131 : vector<128x1xi1> to vector<128x1xi1>
      %134 = vector.broadcast %133 : vector<128x1xi1> to vector<128x128xi1>
      %135 = vector.shape_cast %132 : vector<1x128xf32> to vector<1x128xf32>
      %136 = vector.broadcast %135 : vector<1x128xf32> to vector<128x128xf32>
      %137 = vector.broadcast %cst_23 : f32 to vector<128x128xf32>
      %138 = arith.select %134, %136, %137 : vector<128x128xi1>, vector<128x128xf32>
      %139 = arith.maximumf %130, %138 : vector<128x128xf32>
      %140 = vector.extract_strided_slice %103 {offsets = [0, 4], sizes = [128, 1], strides = [1, 1]} : vector<128x8xi1> to vector<128x1xi1>
      %141 = vector.extract_strided_slice %23 {offsets = [12, 0], sizes = [1, 128], strides = [1, 1]} : vector<32x128xf32> to vector<1x128xf32>
      %cst_24 = arith.constant 0xFF800000 : f32
      %142 = vector.shape_cast %140 : vector<128x1xi1> to vector<128x1xi1>
      %143 = vector.broadcast %142 : vector<128x1xi1> to vector<128x128xi1>
      %144 = vector.shape_cast %141 : vector<1x128xf32> to vector<1x128xf32>
      %145 = vector.broadcast %144 : vector<1x128xf32> to vector<128x128xf32>
      %146 = vector.broadcast %cst_24 : f32 to vector<128x128xf32>
      %147 = arith.select %143, %145, %146 : vector<128x128xi1>, vector<128x128xf32>
      %148 = arith.maximumf %139, %147 : vector<128x128xf32>
      %149 = vector.extract_strided_slice %103 {offsets = [0, 5], sizes = [128, 1], strides = [1, 1]} : vector<128x8xi1> to vector<128x1xi1>
      %150 = vector.extract_strided_slice %23 {offsets = [13, 0], sizes = [1, 128], strides = [1, 1]} : vector<32x128xf32> to vector<1x128xf32>
      %cst_25 = arith.constant 0xFF800000 : f32
      %151 = vector.shape_cast %149 : vector<128x1xi1> to vector<128x1xi1>
      %152 = vector.broadcast %151 : vector<128x1xi1> to vector<128x128xi1>
      %153 = vector.shape_cast %150 : vector<1x128xf32> to vector<1x128xf32>
      %154 = vector.broadcast %153 : vector<1x128xf32> to vector<128x128xf32>
      %155 = vector.broadcast %cst_25 : f32 to vector<128x128xf32>
      %156 = arith.select %152, %154, %155 : vector<128x128xi1>, vector<128x128xf32>
      %157 = arith.maximumf %148, %156 : vector<128x128xf32>
      %158 = vector.extract_strided_slice %103 {offsets = [0, 6], sizes = [128, 1], strides = [1, 1]} : vector<128x8xi1> to vector<128x1xi1>
      %159 = vector.extract_strided_slice %23 {offsets = [14, 0], sizes = [1, 128], strides = [1, 1]} : vector<32x128xf32> to vector<1x128xf32>
      %cst_26 = arith.constant 0xFF800000 : f32
      %160 = vector.shape_cast %158 : vector<128x1xi1> to vector<128x1xi1>
      %161 = vector.broadcast %160 : vector<128x1xi1> to vector<128x128xi1>
      %162 = vector.shape_cast %159 : vector<1x128xf32> to vector<1x128xf32>
      %163 = vector.broadcast %162 : vector<1x128xf32> to vector<128x128xf32>
      %164 = vector.broadcast %cst_26 : f32 to vector<128x128xf32>
      %165 = arith.select %161, %163, %164 : vector<128x128xi1>, vector<128x128xf32>
      %166 = arith.maximumf %157, %165 : vector<128x128xf32>
      %167 = vector.extract_strided_slice %103 {offsets = [0, 7], sizes = [128, 1], strides = [1, 1]} : vector<128x8xi1> to vector<128x1xi1>
      %168 = vector.extract_strided_slice %23 {offsets = [15, 0], sizes = [1, 128], strides = [1, 1]} : vector<32x128xf32> to vector<1x128xf32>
      %cst_27 = arith.constant 0xFF800000 : f32
      %169 = vector.shape_cast %167 : vector<128x1xi1> to vector<128x1xi1>
      %170 = vector.broadcast %169 : vector<128x1xi1> to vector<128x128xi1>
      %171 = vector.shape_cast %168 : vector<1x128xf32> to vector<1x128xf32>
      %172 = vector.broadcast %171 : vector<1x128xf32> to vector<128x128xf32>
      %173 = vector.broadcast %cst_27 : f32 to vector<128x128xf32>
      %174 = arith.select %170, %172, %173 : vector<128x128xi1>, vector<128x128xf32>
      %175 = arith.maximumf %166, %174 : vector<128x128xf32>
      %176 = vector.extract_strided_slice %21 {offsets = [16, 0], sizes = [8, 128], strides = [1, 1]} : vector<32x128xf32> to vector<8x128xf32>
      %177 = tpu.transpose %176, [1, 0] : vector<8x128xf32> -> vector<128x8xf32>
      %cst_28 = arith.constant 0.000000e+00 : f32
      %178 = vector.broadcast %cst_28 : f32 to vector<128x8xf32>
      %179 = arith.cmpf one, %177, %178 : vector<128x8xf32>
      %180 = vector.extract_strided_slice %179 {offsets = [0, 0], sizes = [128, 1], strides = [1, 1]} : vector<128x8xi1> to vector<128x1xi1>
      %181 = vector.extract_strided_slice %23 {offsets = [16, 0], sizes = [1, 128], strides = [1, 1]} : vector<32x128xf32> to vector<1x128xf32>
      %cst_29 = arith.constant 0xFF800000 : f32
      %182 = vector.shape_cast %180 : vector<128x1xi1> to vector<128x1xi1>
      %183 = vector.broadcast %182 : vector<128x1xi1> to vector<128x128xi1>
      %184 = vector.shape_cast %181 : vector<1x128xf32> to vector<1x128xf32>
      %185 = vector.broadcast %184 : vector<1x128xf32> to vector<128x128xf32>
      %186 = vector.broadcast %cst_29 : f32 to vector<128x128xf32>
      %187 = arith.select %183, %185, %186 : vector<128x128xi1>, vector<128x128xf32>
      %188 = arith.maximumf %175, %187 : vector<128x128xf32>
      %189 = vector.extract_strided_slice %179 {offsets = [0, 1], sizes = [128, 1], strides = [1, 1]} : vector<128x8xi1> to vector<128x1xi1>
      %190 = vector.extract_strided_slice %23 {offsets = [17, 0], sizes = [1, 128], strides = [1, 1]} : vector<32x128xf32> to vector<1x128xf32>
      %cst_30 = arith.constant 0xFF800000 : f32
      %191 = vector.shape_cast %189 : vector<128x1xi1> to vector<128x1xi1>
      %192 = vector.broadcast %191 : vector<128x1xi1> to vector<128x128xi1>
      %193 = vector.shape_cast %190 : vector<1x128xf32> to vector<1x128xf32>
      %194 = vector.broadcast %193 : vector<1x128xf32> to vector<128x128xf32>
      %195 = vector.broadcast %cst_30 : f32 to vector<128x128xf32>
      %196 = arith.select %192, %194, %195 : vector<128x128xi1>, vector<128x128xf32>
      %197 = arith.maximumf %188, %196 : vector<128x128xf32>
      %198 = vector.extract_strided_slice %179 {offsets = [0, 2], sizes = [128, 1], strides = [1, 1]} : vector<128x8xi1> to vector<128x1xi1>
      %199 = vector.extract_strided_slice %23 {offsets = [18, 0], sizes = [1, 128], strides = [1, 1]} : vector<32x128xf32> to vector<1x128xf32>
      %cst_31 = arith.constant 0xFF800000 : f32
      %200 = vector.shape_cast %198 : vector<128x1xi1> to vector<128x1xi1>
      %201 = vector.broadcast %200 : vector<128x1xi1> to vector<128x128xi1>
      %202 = vector.shape_cast %199 : vector<1x128xf32> to vector<1x128xf32>
      %203 = vector.broadcast %202 : vector<1x128xf32> to vector<128x128xf32>
      %204 = vector.broadcast %cst_31 : f32 to vector<128x128xf32>
      %205 = arith.select %201, %203, %204 : vector<128x128xi1>, vector<128x128xf32>
      %206 = arith.maximumf %197, %205 : vector<128x128xf32>
      %207 = vector.extract_strided_slice %179 {offsets = [0, 3], sizes = [128, 1], strides = [1, 1]} : vector<128x8xi1> to vector<128x1xi1>
      %208 = vector.extract_strided_slice %23 {offsets = [19, 0], sizes = [1, 128], strides = [1, 1]} : vector<32x128xf32> to vector<1x128xf32>
      %cst_32 = arith.constant 0xFF800000 : f32
      %209 = vector.shape_cast %207 : vector<128x1xi1> to vector<128x1xi1>
      %210 = vector.broadcast %209 : vector<128x1xi1> to vector<128x128xi1>
      %211 = vector.shape_cast %208 : vector<1x128xf32> to vector<1x128xf32>
      %212 = vector.broadcast %211 : vector<1x128xf32> to vector<128x128xf32>
      %213 = vector.broadcast %cst_32 : f32 to vector<128x128xf32>
      %214 = arith.select %210, %212, %213 : vector<128x128xi1>, vector<128x128xf32>
      %215 = arith.maximumf %206, %214 : vector<128x128xf32>
      %216 = vector.extract_strided_slice %179 {offsets = [0, 4], sizes = [128, 1], strides = [1, 1]} : vector<128x8xi1> to vector<128x1xi1>
      %217 = vector.extract_strided_slice %23 {offsets = [20, 0], sizes = [1, 128], strides = [1, 1]} : vector<32x128xf32> to vector<1x128xf32>
      %cst_33 = arith.constant 0xFF800000 : f32
      %218 = vector.shape_cast %216 : vector<128x1xi1> to vector<128x1xi1>
      %219 = vector.broadcast %218 : vector<128x1xi1> to vector<128x128xi1>
      %220 = vector.shape_cast %217 : vector<1x128xf32> to vector<1x128xf32>
      %221 = vector.broadcast %220 : vector<1x128xf32> to vector<128x128xf32>
      %222 = vector.broadcast %cst_33 : f32 to vector<128x128xf32>
      %223 = arith.select %219, %221, %222 : vector<128x128xi1>, vector<128x128xf32>
      %224 = arith.maximumf %215, %223 : vector<128x128xf32>
      %225 = vector.extract_strided_slice %179 {offsets = [0, 5], sizes = [128, 1], strides = [1, 1]} : vector<128x8xi1> to vector<128x1xi1>
      %226 = vector.extract_strided_slice %23 {offsets = [21, 0], sizes = [1, 128], strides = [1, 1]} : vector<32x128xf32> to vector<1x128xf32>
      %cst_34 = arith.constant 0xFF800000 : f32
      %227 = vector.shape_cast %225 : vector<128x1xi1> to vector<128x1xi1>
      %228 = vector.broadcast %227 : vector<128x1xi1> to vector<128x128xi1>
      %229 = vector.shape_cast %226 : vector<1x128xf32> to vector<1x128xf32>
      %230 = vector.broadcast %229 : vector<1x128xf32> to vector<128x128xf32>
      %231 = vector.broadcast %cst_34 : f32 to vector<128x128xf32>
      %232 = arith.select %228, %230, %231 : vector<128x128xi1>, vector<128x128xf32>
      %233 = arith.maximumf %224, %232 : vector<128x128xf32>
      %234 = vector.extract_strided_slice %179 {offsets = [0, 6], sizes = [128, 1], strides = [1, 1]} : vector<128x8xi1> to vector<128x1xi1>
      %235 = vector.extract_strided_slice %23 {offsets = [22, 0], sizes = [1, 128], strides = [1, 1]} : vector<32x128xf32> to vector<1x128xf32>
      %cst_35 = arith.constant 0xFF800000 : f32
      %236 = vector.shape_cast %234 : vector<128x1xi1> to vector<128x1xi1>
      %237 = vector.broadcast %236 : vector<128x1xi1> to vector<128x128xi1>
      %238 = vector.shape_cast %235 : vector<1x128xf32> to vector<1x128xf32>
      %239 = vector.broadcast %238 : vector<1x128xf32> to vector<128x128xf32>
      %240 = vector.broadcast %cst_35 : f32 to vector<128x128xf32>
      %241 = arith.select %237, %239, %240 : vector<128x128xi1>, vector<128x128xf32>
      %242 = arith.maximumf %233, %241 : vector<128x128xf32>
      %243 = vector.extract_strided_slice %179 {offsets = [0, 7], sizes = [128, 1], strides = [1, 1]} : vector<128x8xi1> to vector<128x1xi1>
      %244 = vector.extract_strided_slice %23 {offsets = [23, 0], sizes = [1, 128], strides = [1, 1]} : vector<32x128xf32> to vector<1x128xf32>
      %cst_36 = arith.constant 0xFF800000 : f32
      %245 = vector.shape_cast %243 : vector<128x1xi1> to vector<128x1xi1>
      %246 = vector.broadcast %245 : vector<128x1xi1> to vector<128x128xi1>
      %247 = vector.shape_cast %244 : vector<1x128xf32> to vector<1x128xf32>
      %248 = vector.broadcast %247 : vector<1x128xf32> to vector<128x128xf32>
      %249 = vector.broadcast %cst_36 : f32 to vector<128x128xf32>
      %250 = arith.select %246, %248, %249 : vector<128x128xi1>, vector<128x128xf32>
      %251 = arith.maximumf %242, %250 : vector<128x128xf32>
      %252 = vector.extract_strided_slice %21 {offsets = [24, 0], sizes = [8, 128], strides = [1, 1]} : vector<32x128xf32> to vector<8x128xf32>
      %253 = tpu.transpose %252, [1, 0] : vector<8x128xf32> -> vector<128x8xf32>
      %cst_37 = arith.constant 0.000000e+00 : f32
      %254 = vector.broadcast %cst_37 : f32 to vector<128x8xf32>
      %255 = arith.cmpf one, %253, %254 : vector<128x8xf32>
      %256 = vector.extract_strided_slice %255 {offsets = [0, 0], sizes = [128, 1], strides = [1, 1]} : vector<128x8xi1> to vector<128x1xi1>
      %257 = vector.extract_strided_slice %23 {offsets = [24, 0], sizes = [1, 128], strides = [1, 1]} : vector<32x128xf32> to vector<1x128xf32>
      %cst_38 = arith.constant 0xFF800000 : f32
      %258 = vector.shape_cast %256 : vector<128x1xi1> to vector<128x1xi1>
      %259 = vector.broadcast %258 : vector<128x1xi1> to vector<128x128xi1>
      %260 = vector.shape_cast %257 : vector<1x128xf32> to vector<1x128xf32>
      %261 = vector.broadcast %260 : vector<1x128xf32> to vector<128x128xf32>
      %262 = vector.broadcast %cst_38 : f32 to vector<128x128xf32>
      %263 = arith.select %259, %261, %262 : vector<128x128xi1>, vector<128x128xf32>
      %264 = arith.maximumf %251, %263 : vector<128x128xf32>
      %265 = vector.extract_strided_slice %255 {offsets = [0, 1], sizes = [128, 1], strides = [1, 1]} : vector<128x8xi1> to vector<128x1xi1>
      %266 = vector.extract_strided_slice %23 {offsets = [25, 0], sizes = [1, 128], strides = [1, 1]} : vector<32x128xf32> to vector<1x128xf32>
      %cst_39 = arith.constant 0xFF800000 : f32
      %267 = vector.shape_cast %265 : vector<128x1xi1> to vector<128x1xi1>
      %268 = vector.broadcast %267 : vector<128x1xi1> to vector<128x128xi1>
      %269 = vector.shape_cast %266 : vector<1x128xf32> to vector<1x128xf32>
      %270 = vector.broadcast %269 : vector<1x128xf32> to vector<128x128xf32>
      %271 = vector.broadcast %cst_39 : f32 to vector<128x128xf32>
      %272 = arith.select %268, %270, %271 : vector<128x128xi1>, vector<128x128xf32>
      %273 = arith.maximumf %264, %272 : vector<128x128xf32>
      %274 = vector.extract_strided_slice %255 {offsets = [0, 2], sizes = [128, 1], strides = [1, 1]} : vector<128x8xi1> to vector<128x1xi1>
      %275 = vector.extract_strided_slice %23 {offsets = [26, 0], sizes = [1, 128], strides = [1, 1]} : vector<32x128xf32> to vector<1x128xf32>
      %cst_40 = arith.constant 0xFF800000 : f32
      %276 = vector.shape_cast %274 : vector<128x1xi1> to vector<128x1xi1>
      %277 = vector.broadcast %276 : vector<128x1xi1> to vector<128x128xi1>
      %278 = vector.shape_cast %275 : vector<1x128xf32> to vector<1x128xf32>
      %279 = vector.broadcast %278 : vector<1x128xf32> to vector<128x128xf32>
      %280 = vector.broadcast %cst_40 : f32 to vector<128x128xf32>
      %281 = arith.select %277, %279, %280 : vector<128x128xi1>, vector<128x128xf32>
      %282 = arith.maximumf %273, %281 : vector<128x128xf32>
      %283 = vector.extract_strided_slice %255 {offsets = [0, 3], sizes = [128, 1], strides = [1, 1]} : vector<128x8xi1> to vector<128x1xi1>
      %284 = vector.extract_strided_slice %23 {offsets = [27, 0], sizes = [1, 128], strides = [1, 1]} : vector<32x128xf32> to vector<1x128xf32>
      %cst_41 = arith.constant 0xFF800000 : f32
      %285 = vector.shape_cast %283 : vector<128x1xi1> to vector<128x1xi1>
      %286 = vector.broadcast %285 : vector<128x1xi1> to vector<128x128xi1>
      %287 = vector.shape_cast %284 : vector<1x128xf32> to vector<1x128xf32>
      %288 = vector.broadcast %287 : vector<1x128xf32> to vector<128x128xf32>
      %289 = vector.broadcast %cst_41 : f32 to vector<128x128xf32>
      %290 = arith.select %286, %288, %289 : vector<128x128xi1>, vector<128x128xf32>
      %291 = arith.maximumf %282, %290 : vector<128x128xf32>
      %292 = vector.extract_strided_slice %255 {offsets = [0, 4], sizes = [128, 1], strides = [1, 1]} : vector<128x8xi1> to vector<128x1xi1>
      %293 = vector.extract_strided_slice %23 {offsets = [28, 0], sizes = [1, 128], strides = [1, 1]} : vector<32x128xf32> to vector<1x128xf32>
      %cst_42 = arith.constant 0xFF800000 : f32
      %294 = vector.shape_cast %292 : vector<128x1xi1> to vector<128x1xi1>
      %295 = vector.broadcast %294 : vector<128x1xi1> to vector<128x128xi1>
      %296 = vector.shape_cast %293 : vector<1x128xf32> to vector<1x128xf32>
      %297 = vector.broadcast %296 : vector<1x128xf32> to vector<128x128xf32>
      %298 = vector.broadcast %cst_42 : f32 to vector<128x128xf32>
      %299 = arith.select %295, %297, %298 : vector<128x128xi1>, vector<128x128xf32>
      %300 = arith.maximumf %291, %299 : vector<128x128xf32>
      %301 = vector.extract_strided_slice %255 {offsets = [0, 5], sizes = [128, 1], strides = [1, 1]} : vector<128x8xi1> to vector<128x1xi1>
      %302 = vector.extract_strided_slice %23 {offsets = [29, 0], sizes = [1, 128], strides = [1, 1]} : vector<32x128xf32> to vector<1x128xf32>
      %cst_43 = arith.constant 0xFF800000 : f32
      %303 = vector.shape_cast %301 : vector<128x1xi1> to vector<128x1xi1>
      %304 = vector.broadcast %303 : vector<128x1xi1> to vector<128x128xi1>
      %305 = vector.shape_cast %302 : vector<1x128xf32> to vector<1x128xf32>
      %306 = vector.broadcast %305 : vector<1x128xf32> to vector<128x128xf32>
      %307 = vector.broadcast %cst_43 : f32 to vector<128x128xf32>
      %308 = arith.select %304, %306, %307 : vector<128x128xi1>, vector<128x128xf32>
      %309 = arith.maximumf %300, %308 : vector<128x128xf32>
      %310 = vector.extract_strided_slice %255 {offsets = [0, 6], sizes = [128, 1], strides = [1, 1]} : vector<128x8xi1> to vector<128x1xi1>
      %311 = vector.extract_strided_slice %23 {offsets = [30, 0], sizes = [1, 128], strides = [1, 1]} : vector<32x128xf32> to vector<1x128xf32>
      %cst_44 = arith.constant 0xFF800000 : f32
      %312 = vector.shape_cast %310 : vector<128x1xi1> to vector<128x1xi1>
      %313 = vector.broadcast %312 : vector<128x1xi1> to vector<128x128xi1>
      %314 = vector.shape_cast %311 : vector<1x128xf32> to vector<1x128xf32>
      %315 = vector.broadcast %314 : vector<1x128xf32> to vector<128x128xf32>
      %316 = vector.broadcast %cst_44 : f32 to vector<128x128xf32>
      %317 = arith.select %313, %315, %316 : vector<128x128xi1>, vector<128x128xf32>
      %318 = arith.maximumf %309, %317 : vector<128x128xf32>
      %319 = vector.extract_strided_slice %255 {offsets = [0, 7], sizes = [128, 1], strides = [1, 1]} : vector<128x8xi1> to vector<128x1xi1>
      %320 = vector.extract_strided_slice %23 {offsets = [31, 0], sizes = [1, 128], strides = [1, 1]} : vector<32x128xf32> to vector<1x128xf32>
      %cst_45 = arith.constant 0xFF800000 : f32
      %321 = vector.shape_cast %319 : vector<128x1xi1> to vector<128x1xi1>
      %322 = vector.broadcast %321 : vector<128x1xi1> to vector<128x128xi1>
      %323 = vector.shape_cast %320 : vector<1x128xf32> to vector<1x128xf32>
      %324 = vector.broadcast %323 : vector<1x128xf32> to vector<128x128xf32>
      %325 = vector.broadcast %cst_45 : f32 to vector<128x128xf32>
      %326 = arith.select %322, %324, %325 : vector<128x128xi1>, vector<128x128xf32>
      %327 = arith.maximumf %318, %326 : vector<128x128xf32>
      scf.yield %327 : vector<128x128xf32>
    }
    %c12_i32_3 = arith.constant 12 : i32
    %c0_4 = arith.constant 0 : index
    %c0_5 = arith.constant 0 : index
    %6 = vector.load %arg5[%c0_4, %c0_5] : memref<128x128xf32, #tpu.memory_space<vmem>>, vector<128x128xf32>
    tpu.vector_store %arg5[%c0_4, %c0_5], %5 {strides = array<i32>} : memref<128x128xf32, #tpu.memory_space<vmem>>, vector<128x128xf32>,
    %c0_i32_6 = arith.constant 0 : i32
    %7 = arith.cmpi eq, %arg1, %c0_i32_6 : i32
    %8 = arith.extui %7 : i1 to i32
    %c0_i32_7 = arith.constant 0 : i32
    %9 = arith.cmpi ne, %8, %c0_i32_7 : i32
    scf.if %9 {
      %c0_8 = arith.constant 0 : index
      %c0_9 = arith.constant 0 : index
      %10 = vector.load %arg5[%c0_8, %c0_9] : memref<128x128xf32, #tpu.memory_space<vmem>>, vector<128x128xf32>
      %cst = arith.constant 0xFF800000 : f32
      %11 = vector.broadcast %cst : f32 to vector<128x128xf32>
      %12 = arith.cmpf oeq, %10, %11 : vector<128x128xf32>
      %cst_10 = arith.constant 0.000000e+00 : f32
      %13 = vector.broadcast %cst_10 : f32 to vector<128x128xf32>
      %14 = arith.select %12, %13, %10 : vector<128x128xi1>, vector<128x128xf32>
      %c0_11 = arith.constant 0 : index
      %c0_12 = arith.constant 0 : index
      %15 = vector.load %arg4[%c0_11, %c0_12] : memref<128x128xf32, #tpu.memory_space<vmem>>, vector<128x128xf32>
      tpu.vector_store %arg4[%c0_11, %c0_12], %14 {strides = array<i32>} : memref<128x128xf32, #tpu.memory_space<vmem>>, vector<128x128xf32>,
    } else {
    }
    return
  }
  func.func @transform_0(%arg0: i32, %arg1: i32) -> (i32, i32) {
    %c0_i32 = arith.constant 0 : i32
    return %arg1, %arg0 : i32, i32
  }
  func.func @transform_1(%arg0: i32, %arg1: i32) -> (i32, i32) {
    %c0_i32 = arith.constant 0 : i32
    %c0_i32_0 = arith.constant 0 : i32
    %c0_i32_1 = arith.constant 0 : i32
    return %c0_i32, %c0_i32_0 : i32, i32
  }
  func.func @transform_2(%arg0: i32, %arg1: i32) -> (i32, i32) {
    %c0_i32 = arith.constant 0 : i32
    %c0_i32_0 = arith.constant 0 : i32
    return %arg0, %c0_i32 : i32, i32
  }
}

</mosaic_0001>

<bundles_post_ra>
// kernel: tpu_custom_call.1
= control target key start
LH: loop header
LB: loop body
LE: loop exit
PB: predicated region body
PF: predicated region fallthrough
CT: control target
= control target key end

     0   :  { %7 = vsyncpa [#allocation4], 0  ;;  %s8540_s0 = inlined_call_operand.hbm [shape: s8[384,256], index: 0, kind: input, shape index: {}]   ;;  %s8541_s1 = inlined_call_operand.hbm [shape: f32[384,128], index: 1, kind: input, shape index: {}]   ;;  %s8542_s2 = inlined_call_operand.hbm [shape: f32[256,128], index: 2, kind: output, shape index: {}]  }
   0x1   :  { %9 = vsyncpa [#allocation4 + $0x1], 0 }
   0x2   :  { %10 = vsyncpa [#allocation7], 0 }
   0x3   :  { %11 = vsyncpa [#allocation5], 0 }
   0x4   :  { %13 = vsyncpa [#allocation5 + $0x1], 0  ;;  %s4740_s9 = smov 0   ;;  %s4742_s10 = smov 0  }
   0x5   :  { %s4744_s11 = smov 0   ;;  %s4746_s12 = smov 0  }
   0x6   :  { %s4748_s13 = smov 0   ;;  %s4750_s14 = smov 0  }
   0x7 LB: > { %s3921_s15 = sadd.s32 4294967295, %s4640_s14   ;;  %s3922_s16 = sadd.s32 4294967294, %s4640_s14   ;;  %s4640_s14 = sphi %s4750_s14, %s19_s14   ;;  %s4636_s13 = sphi %s4748_s13, %s9690_s13   ;;  %s4632_s12 = sphi %s4746_s12, %s9689_s12   ;;  %s4628_s11 = sphi %s4744_s11, %s9688_s11   ;;  %s4624_s10 = sphi %s4742_s10, %s9687_s10   ;;  %s4620_s9 = sphi %s4740_s9, %s9686_s9  }
   0x8   : > { %p53_p0 = scmp.ne.s32.totalorder %s4624_s10, %s4620_s9  ;;  %p4774_p1 = scmp.eq.s32.totalorder %s3921_s15, 0 }
   0x9   : > { %p4778_p2 = scmp.eq.s32.totalorder %s3921_s15, 1  ;;  %p104_p3 = scmp.eq.s32.totalorder %s3922_s16, 1 }
   0xa   : > { %p4784_p4 = por %p4774_p1, %p53_p0  ;;  %p3923_p5 = scmp.ge.s32.totalorder %s4640_s14, 1 }
   0xb   : > { %p4789_p6 = por %p104_p3, %p53_p0  ;;  %p111_p7 = scmp.lt.s32.totalorder %s4640_s14, 3 }
   0xc   : > { %s122_s23 = sshll.u32 %s8541_s1, 4  ;;  %s4710_s25 = smov [#allocation6]   ;;  %s123_s23 = int_to_ptr.hbm [resolvable:$true] %s122_s23 }
   0xd   : > { %p4797_p8 = pnand %p3923_p5, %p111_p7  ;;  %s124_s26 = sshll.u32 %s4710_s25, 4  ;;  %s125_s26 = int_to_ptr.vmem [resolvable:$true] %s124_s26 }
   0xe   : > { %p3925_p11 = scmp.ge.s32.totalorder %s4640_s14, 2  ;;  %s8543_s27 = smov 128  }
   0xf   : > { %p3952_p9 = pneg %p4797_p8  ;;  %s4712_s28 = smov 8  }
  0x10   : > { %s31_s29 = sadd.s32 1, %s4636_s13  ;;  %s40_s30 = sadd.s32 1, %s4628_s11 }
  0x11   : > { %p3953_p10 = pnand %p3952_p9, %p4774_p1  ;;  %p33_p12 = scmp.ge.s32.totalorder %s31_s29, 2 }
  0x12   : > { %p47_p13 = scmp.ne.s32.totalorder %s4628_s11, %s4624_s10  ;;  %p48_p0 = scmp.eq.s32.totalorder %s4640_s14, 0 }
  0x13   : > { %3955 = dma.hbm_to_vmem [thread:$0]  (!%p3953_p10), %s123_s23, 6144, %s125_s26, [#allocation7], %s8543_s27, %s8543_s27, %s4712_s28  }
  0x14   : > { %s9692_s29 = smov (%p33_p12, %s31_s29), 0  ;;  %p4816_p3 = por %p48_p0, %p47_p13 }
  0x15   : > { %p4822_p5 = por %p4778_p2, %p47_p13  ;;  %s36_s5 = ssub.s32 %s4636_s13, %s9692_s29 }
  0x16   : > { %p3965_p7 = scmp.lt.s32.totalorder %s4640_s14, 2  ;;  %p38_p9 = scmp.eq.s32.totalorder %s36_s5, 0 }
  0x17   : > { %s138_s6 = sand.u32 1, %s4628_s11   ;;  %s3926_s15 = sshll.u32 %s4636_s13, 3 }
  0x18   : > { %s3942_s7 = smul.u32 96, %s138_s6  ;;  %s149_s22 = scalar_lea.hbm %s8540_s0, %s3926_s15 }
  0x19   : > { %s4831_s8 = scalar_select %p38_p9, %s4628_s11, %s40_s30  }
  0x1a   : > { %s142_s23 = scalar_lea.vmem [#allocation3], %s3942_s7  ;;  %s150_s18 = sshll.u32 %s149_s22, 4  ;;  %s151_s18 = int_to_ptr.hbm [resolvable:$true] %s150_s18 }
  0x1b   : > { %s152_s25 = sshll.u32 %s142_s23, 4  ;;  %p3957_p2 = pnand %p3965_p7, %p4816_p3  ;;  %s153_s25 = int_to_ptr.vmem [resolvable:$true] %s152_s25 }
  0x1c   : > { %s139_s26 = scalar_lea.sflag [#allocation4], %s138_s6  ;;  %s4713_s27 = smov 256  }
  0x1d   : > { %s8766_s5 = smov 128   ;;  %164 = sbr.rel (%p4797_p8) target bundleno = 1979 (0x7bb), region = 28 }
  0x1e   : > { %3959 = dma.hbm_to_vmem [thread:$0]  (!%p3957_p2), %s151_s18, 1536, %s153_s25, %s139_s26, %s4713_s27, %s8766_s5, %s4712_s28  }
  0x1f   : > { %s4844_s30 = sand.u32 (!%p4797_p8), 1, %s4624_s10  }
  0x20   : > { %s3943_s7 = smul.u32 (!%p4797_p8), 96, %s4844_s30  ;;  %s167_s15 = scalar_lea.sflag (!%p4797_p8), [#allocation4], %s4844_s30 }
  0x22   : > { %s4848_s16 = scalar_lea.vmem [#allocation3], %s3943_s7 }
  0x23   : > { %4607 = dma.done.wait (%p4784_p4), %s167_s15, 1536  }
  0x24   : > { %4609 = vsyncadd (%p4784_p4), %s167_s15, 4294965760 }
  0x25   : > { %4611 = dma.done.wait (%p4774_p1), [#allocation7], 6144  }
  0x26   : > { %4613 = vsyncadd (%p4774_p1), [#allocation7], 4294961152  ;;  %s3929_s24 = sshll.u32 %s4844_s30, 7  ;;  %v4861_v0 = vmov -inf   ;;  %v4863_v1 = vmov -inf   ;;  %v4865_v2 = vmov -inf  }
  0x27   : > { %s4859_s27 = scalar_lea.vmem [#allocation8], %s3929_s24  ;;  %v4867_v3 = vmov -inf   ;;  %v4869_v4 = vmov -inf   ;;  %v4871_v5 = vmov -inf   ;;  %v4873_v6 = vmov -inf   ;;  %s4893_s17 = smov 0  }
  0x28   : > { %v4875_v7 = vmov -inf   ;;  %v4877_v8 = vmov -inf   ;;  %v4879_v9 = vmov -inf   ;;  %v4881_v10 = vmov -inf  }
  0x29   : > { %v4883_v11 = vmov -inf   ;;  %v4885_v12 = vmov -inf   ;;  %v4887_v13 = vmov -inf   ;;  %v4889_v14 = vmov -inf  }
  0x2a   : > { %v4891_v15 = vmov -inf  }
  0x2b LB: >> { %8767 = vst [vmem:[#allocation12_spill] sm:$0xff] %v4644_v0  ;;  %s3930_s19 = sshll.u32 %s4708_s17, 5  ;;  %v8553_v17 = vmov 0   ;;  %v4715_v39 = vmov 0.0   ;;  %v8546_v46 = vmov 1   ;;  %v8544_v53 = vmov 2   ;;  %s4708_s17 = sphi %s4893_s17, %s242_s17   ;;  %v4704_v15 = vphi %v4891_v15, %v9685_v15   ;;  %v4700_v14 = vphi %v4889_v14, %v9684_v14   ;;  %v4696_v13 = vphi %v4887_v13, %v9683_v13   ;;  %v4692_v12 = vphi %v4885_v12, %v9682_v12   ;;  %v4688_v11 = vphi %v4883_v11, %v9681_v11   ;;  %v4684_v10 = vphi %v4881_v10, %v9680_v10   ;;  %v4680_v9 = vphi %v4879_v9, %v9679_v9   ;;  %v4676_v8 = vphi %v4877_v8, %v9678_v8   ;;  %v4672_v7 = vphi %v4875_v7, %v9677_v7   ;;  %v4668_v6 = vphi %v4873_v6, %v9676_v6   ;;  %v4664_v5 = vphi %v4871_v5, %v9675_v5   ;;  %v4660_v4 = vphi %v4869_v4, %v9674_v4   ;;  %v4656_v3 = vphi %v4867_v3, %v9673_v3   ;;  %v4652_v2 = vphi %v4865_v2, %v9672_v2   ;;  %v4648_v1 = vphi %v4863_v1, %v9671_v1   ;;  %v4644_v0 = vphi %v4861_v0, %v9670_v0  }
  0x2c   : >> { %8768 = vst [vmem:[#allocation13_spill] sm:$0xff] %v4648_v1  ;;  %s262_s28 = sshra.s32 %s3930_s19, 5  ;;  %4251 = vset.pattern.permute.xlu2 %v8546_v46  ;;  %s6122_s21 = scalar_lea.vmem [#allocation6], %s3930_s19 }
  0x2d   : >> { %8769 = vst [vmem:[#allocation14_spill] sm:$0xff] %v4652_v2  ;;  %s3931_s3 = sshll.u32 %s262_s28, 3  ;;  %s242_s17 = sadd.s32 1, %s4708_s17  }
  0x2e   : >> { %8770 = vst [vmem:[#allocation15_spill] sm:$0xff] %v4656_v3  ;;  %s265_s6 = scalar_lea.vmem %s4848_s16, %s3931_s3 [#allocation3]  ;;  %v8800_v3 = vmov 2   ;;  %p8409_p1 = scmp.ge.s32.totalorder %s242_s17, 12  }
  0x2f   : >> { %8771 = vst [vmem:[#allocation16_spill] sm:$0xff] %v4660_v4  ;;  %v266_v16 = vld [vmem:[%s265_s6] sm:$0xff]  ;;  %s3941_s23 = sshll.u32 (%p8409_p1), %s4632_s12, 7  ;;  %s3766_s26 = sshll.u32 (%p8409_p1), %s4859_s27, 4  ;;  %s3767_s26 = int_to_ptr.vmem [resolvable:$true] %s3766_s26 }
  0x30   : >> { %8772 = vst [vmem:[#allocation17_spill] sm:$0xff] %v4664_v5  ;;  %vm267_vm0 = vnez %v266_v16  ;;  %s3765_s12 = scalar_lea.hbm (%p8409_p1), %s8542_s2, %s3941_s23  ;;  %s3754_s7 = scalar_lea.sflag (%p8409_p1), [#allocation5], %s4844_s30 }
  0x31   : >> { %8773 = vst [vmem:[#allocation18_spill] sm:$0xff] %v4668_v6  ;;  %v268_v18 = vsel %vm267_vm0, 16843009, %v8553_v17  ;;  %s3768_s5 = sshll.u32 (%p8409_p1), %s3765_s12, 4  ;;  %s4506_s19 = scalar_lea.hbm (%p8409_p1), %s8542_s2, 256  ;;  %s3769_s5 = int_to_ptr.hbm [resolvable:$true] %s3768_s5 }
  0x32   : >> { %8774 = vst [vmem:[#allocation19_spill] sm:$0xff] %v4672_v7  ;;  %v271_v19 = vunpack.c.2.s8 %v268_v18  ;;  %v272_v20 = vunpack.c.3.s8 %v268_v18  ;;  %v269_v21 = vunpack.c.0.s8 %v268_v18  ;;  %v270_v22 = vunpack.c.1.s8 %v268_v18  ;;  %s4500_s15 = sshra.s32 (%p8409_p1), %s3769_s5, 4  ;;  %s4501_s15 = int_to_ptr.hbm [resolvable:$true] %s4500_s15 }
  0x33   : >> { %8775 = vst [vmem:[#allocation20_spill] sm:$0xff] %v4676_v8  ;;  %s4502_s16 = scalar_lea.hbm (%p8409_p1), %s4501_s15, 128  ;;  %p4507_p12 = scmp.lt.s32.totalorder (%p8409_p1), %s4501_s15, %s8542_s2 }
  0x34   : >> { %8776 = vst [vmem:[#allocation21_spill] sm:$0xff] %v4680_v9  ;;  %v277_v23 = vpack.c.b16 %v271_v19, %v271_v19  ;;  %v279_v24 = vpack.c.b16 %v272_v20, %v272_v20  ;;  %v273_v25 = vpack.c.b16 %v269_v21, %v269_v21  ;;  %v275_v26 = vpack.c.b16 %v270_v22, %v270_v22  ;;  %p4503_p4 = scmp.ne.s32.totalorder (%p8409_p1), %s4501_s15, %s4502_s16  ;;  %p4508_p13 = scmp.lt.s32.totalorder (%p8409_p1), %s4506_s19, %s4502_s16 }
  0x35   : >> { %8777 = vst [vmem:[#allocation22_spill] sm:$0xff] %v4684_v10 }
  0x36   : >> { %8778 = vst [vmem:[#allocation23_spill] sm:$0xff] %v4688_v11  ;;  %v278_v27 = vpack.c.b8 %v277_v23, %v277_v23  ;;  %v280_v28 = vpack.c.b8 %v279_v24, %v279_v24  ;;  %v274_v29 = vpack.c.b8 %v273_v25, %v273_v25  ;;  %v276_v30 = vpack.c.b8 %v275_v26, %v275_v26  ;;  %p4504_p8 = pnand (%p8409_p1), %p4503_p4, %p4822_p5  ;;  %p4509_p0 = por (%p8409_p1), %p4508_p13, %p4507_p12 }
  0x37   : >> { %8779 = vst [vmem:[#allocation24_spill] sm:$0xff] %v4692_v12 }
  0x38   : >> { %8780 = vst [vmem:[#allocation25_spill] sm:$0xff] %v4696_v13  ;;  %vm283_vm1 = vnez %v278_v27  ;;  %vm284_vm2 = vnez %v280_v28  ;;  %vm281_vm3 = vnez %v274_v29  ;;  %vm282_vm4 = vnez %v276_v30  ;;  %p4505_p10 = pneg (%p8409_p1), %p4504_p8 }
  0x39   : >> { %8781 = vst [vmem:[#allocation26_spill] sm:$0xff] %v4700_v14  ;;  %v287_v31 = vsel %vm283_vm1, 16843009, %v8553_v17  ;;  %v288_v32 = vsel %vm284_vm2, 16843009, %v8553_v17 }
  0x3a   : >> { %8782 = vst [vmem:[#allocation27_spill] sm:$0xff] %v4704_v15  ;;  %v285_v33 = vsel %vm281_vm3, 16843009, %v8553_v17  ;;  %v291_v34 = vunpack.c.0.s8 %v287_v31  ;;  %v292_v35 = vunpack.c.0.s8 %v288_v32  ;;  %v286_v36 = vsel %vm282_vm4, 16843009, %v8553_v17  ;;  %p4510_p3 = pnand (%p8409_p1), %p4509_p0, %p4505_p10 }
  0x3b   : >> { %v289_v37 = vunpack.c.0.s8 %v285_v33  ;;  %v290_v38 = vunpack.c.0.s8 %v286_v36 }
  0x3c   : >> { %vm295_vm5 = vcmp.ne.s32.totalorder %v291_v34, 0  ;;  %vm296_vm6 = vcmp.ne.s32.totalorder %v292_v35, 0 }
  0x3d   : >> { %vm293_vm7 = vcmp.ne.s32.totalorder %v289_v37, 0  ;;  %v3934_v40 = vsel %vm295_vm5, 1.0, %v4715_v39  ;;  %v3935_v41 = vsel %vm296_vm6, 1.0, %v4715_v39  ;;  %vm294_vm8 = vcmp.ne.s32.totalorder %v290_v38, 0 }
  0x3e   : >> { %v3932_v42 = vsel %vm293_vm7, 1.0, %v4715_v39  ;;  %v4286_v43 = vpack.i.bf16 %v3935_v41, %v3934_v40  ;;  %v3933_v44 = vsel %vm294_vm8, 1.0, %v4715_v39 }
  0x3f   : >> { %v4168_v45 = vpack.i.bf16 %v3933_v44, %v3932_v42 }
  0x40   : >> { %4287 = vxpose.xlu1.b32.start.end [1/1] (short) %v4286_v43, 128 }
  0x41   : >> { %4169 = vxpose.xlu0.b32.start.end [1/1] (short) %v4168_v45, 128 }
  0x93   : >> { %4368 = vset.pattern.permute.xlu1 %v8553_v17 }
  0xa8   : >> { %4250 = vset.pattern.permute.xlu0 %v8553_v17 }
  0xe4   : >> { %v4958_v47 = vpop.trf.xlu1 }
  0xe5   : >> { %v4170_v48 = vpop.trf.xlu0 }
  0xe6   : >> { %v4171_v49 = vunpack.i.l.bf16 %v4170_v48  ;;  %v4174_v32 = vunpack.i.h.bf16 %v4170_v48 }
  0xe8   : >> { %vm342_vm9 = vcmp.ne.f32.partialorder %v4171_v49, 0.0  ;;  %vm1182_vm0 = vcmp.ne.f32.partialorder %v4174_v32, 0.0 }
  0xe9   : >> { %v4961_v50 = vsel %vm342_vm9, 1, %v8553_v17  ;;  %v5035_v35 = vsel %vm1182_vm0, 1, %v8553_v17 }
  0xea   : >> { %472 = vperm.xlu2 %4251, %v4961_v50   ;;  %8789 = vst [vmem:[#allocation34_spill] sm:$0xff] %v5035_v35 }
  0xec   : >> { %v4964_v51 = vpop.trf.xlu1 }
  0xed   : >> { %v4966_v52 = vpop.trf.xlu0  ;;  %v4294_v12 = vunpack.i.l.bf16 %v4964_v51 }
  0xee   : >> { %v4176_v63 = vunpack.i.l.bf16 %v4966_v52 }
  0xf0   : >> { %vm343_vm12 = vcmp.ne.f32.partialorder %v4176_v63, 0.0 }
  0xf1   : >> { %v5001_v21 = vsel %vm343_vm12, 1, %v8553_v17 }
  0xf2   : >> { %4252 = vset.pattern.permute.xlu2 %v8544_v53  ;;  %8787 = vst [vmem:[#allocation32_spill] sm:$0xff] %v5001_v21 }
  0xf3   : >> { %569 = vperm.xlu2 %4252, %v4961_v50  }
  0xf4   : >> { %v4970_v54 = vpop.trf.xlu1 }
  0xf5   : >> { %8783 = vst [vmem:[#allocation28_spill] sm:$0xff] %v4970_v54  ;;  %v4972_v55 = vpop.trf.xlu0 }
  0xf6   : >> { %v4181_v56 = vunpack.i.l.bf16 %v4972_v55 }
  0xf8   : >> { %vm344_vm10 = vcmp.ne.f32.partialorder %v4181_v56, 0.0 }
  0xf9   : >> { %v4976_v57 = vsel %vm344_vm10, 1, %v8553_v17  ;;  %vm2023_vm10 = vcmp.ne.f32.partialorder %v4294_v12, 0.0 }
  0xfa   : >> { %8784 = vst [vmem:[#allocation29_spill] sm:$0xff] %v4976_v57 }
  0xfb   : >> { %4253 = vset.pattern.permute.xlu2 %v8546_v46 }
  0xfc   : >> { %478 = vperm.xlu2 %4253, %v4976_v57   ;;  %v4980_v58 = vpop.trf.xlu1 }
  0xfd   : >> { %8785 = vst [vmem:[#allocation30_spill] sm:$0xff] %v4980_v58  ;;  %v4982_v59 = vpop.trf.xlu0 }
  0xfe   : >> { %v4186_v60 = vunpack.i.l.bf16 %v4982_v59 }
 0x100   : >> { %vm345_vm11 = vcmp.ne.f32.partialorder %v4186_v60, 0.0 }
 0x101   : >> { %v4993_v16 = vsel %vm345_vm11, 1, %v8553_v17 }
 0x104   : >> { %4254 = vset.pattern.permute.xlu2 %v8544_v53  ;;  %v4986_v61 = vpop.trf.xlu1 }
 0x105   : >> { %8786 = vst [vmem:[#allocation31_spill] sm:$0xff] %v4986_v61  ;;  %v4988_v62 = vpop.trf.xlu0  ;;  %575 = vperm.xlu2 %4254, %v4976_v57   ;;  %v4309_v4 = vunpack.i.l.bf16 %v4986_v61  ;;  %v8806_v61 = vmov 1  }
 0x106   : >> { %v4191_v18 = vunpack.i.l.bf16 %v4988_v62 }
 0x108   : >> { %vm346_vm13 = vcmp.ne.f32.partialorder %v4191_v18, 0.0 }
 0x109   : >> { %v5005_v22 = vsel %vm346_vm13, 1, %v8553_v17  ;;  %vm2026_vm13 = vcmp.ne.f32.partialorder %v4309_v4, 0.0 }
 0x10a   : >> { %v5138_v7 = vsel %vm2026_vm13, 1, %v8553_v17 }
 0x10c   : >> { %v4996_v19 = vpop.trf.xlu1 }
 0x10d   : >> { %v4195_v20 = vpop.trf.xlu0  ;;  %4255 = vset.pattern.permute.xlu2 %v8553_v17 }
 0x10e   : >> { %384 = vperm.xlu2 %4255, %v4993_v16   ;;  %v4196_v25 = vunpack.i.l.bf16 %v4195_v20  ;;  %v4199_v40 = vunpack.i.h.bf16 %v4195_v20 }
 0x110   : >> { %vm347_vm14 = vcmp.ne.f32.partialorder %v4196_v25, 0.0  ;;  %vm1187_vm3 = vcmp.ne.f32.partialorder %v4199_v40, 0.0 }
 0x111   : >> { %v5019_v28 = vsel %vm347_vm14, 1, %v8553_v17  ;;  %v5057_v45 = vsel %vm1187_vm3, 1, %v8553_v17 }
 0x112   : >> { %378 = vperm.xlu1 %4368, %v5001_v21   ;;  %8792 = vst [vmem:[#allocation37_spill] sm:$0xff] %v5057_v45 }
 0x114   : >> { %v5007_v23 = vpop.trf.xlu1 }
 0x115   : >> { %v5009_v24 = vpop.trf.xlu0 }
 0x116   : >> { %387 = vperm.xlu2 %4255, %v5005_v22   ;;  %v4201_v33 = vunpack.i.l.bf16 %v5009_v24 }
 0x118   : >> { %vm348_vm1 = vcmp.ne.f32.partialorder %v4201_v33, 0.0 }
 0x119   : >> { %v5042_v38 = vsel %vm348_vm1, 1, %v8553_v17 }
 0x11a   : >> { %381 = vperm.xlu1 %4368, %v4976_v57   ;;  %8790 = vst [vmem:[#allocation35_spill] sm:$0xff] %v5042_v38 }
 0x11c   : >> { %v5013_v26 = vpop.trf.xlu1 }
 0x11d   : >> { %v5015_v27 = vpop.trf.xlu0 }
 0x11e   : >> { %4256 = vset.pattern.permute.xlu2 %v8546_v46  ;;  %v4206_v29 = vunpack.i.l.bf16 %v5015_v27 }
 0x11f   : >> { %484 = vperm.xlu2 %4256, %v5005_v22  }
 0x120   : >> { %vm349_vm15 = vcmp.ne.f32.partialorder %v4206_v29, 0.0 }
 0x121   : >> { %v5028_v34 = vsel %vm349_vm15, 1, %v8553_v17 }
 0x122   : >> { %390 = vperm.xlu1 %4368, %v5019_v28   ;;  %8788 = vst [vmem:[#allocation33_spill] sm:$0xff] %v5028_v34 }
 0x124   : >> { %v5024_v31 = vpop.trf.xlu1 }
 0x125   : >> { %v4210_v30 = vpop.trf.xlu0  ;;  %v4329_v8 = vunpack.i.l.bf16 %v5024_v31 }
 0x126   : >> { %v4214_v42 = vunpack.i.h.bf16 %v4210_v30  ;;  %v4211_v20 = vunpack.i.l.bf16 %v4210_v30 }
 0x127   : >> { %4257 = vset.pattern.permute.xlu2 %v8544_v53  ;;  %375 = vperm.xlu0 %4250, %v4961_v50   ;;  %vm2030_vm15 = vcmp.ne.f32.partialorder %v4329_v8, 0.0 }
 0x128   : >> { %581 = vperm.xlu2 %4257, %v5005_v22   ;;  %vm1190_vm4 = vcmp.ne.f32.partialorder %v4214_v42, 0.0  ;;  %vm350_vm7 = vcmp.ne.f32.partialorder %v4211_v20, 0.0 }
 0x129   : >> { %v5063_v48 = vsel %vm1190_vm4, 1, %v8553_v17  ;;  %v5085_v30 = vsel %vm350_vm7, 1, %v8553_v17 }
 0x12a   : >> { %396 = vperm.xlu1 %4368, %v5028_v34   ;;  %8793 = vst [vmem:[#allocation38_spill] sm:$0xff] %v5063_v48 }
 0x12c   : >> { %v5039_v37 = vpop.trf.xlu1 }
 0x12d   : >> { %v5037_v36 = vpop.trf.xlu0 }
 0x12e   : >> { %v4216_v39 = vunpack.i.l.bf16 %v5037_v36 }
 0x12f   : >> { %1215 = vperm.xlu0 %4250, %v5035_v35  }
 0x130   : >> { %vm351_vm2 = vcmp.ne.f32.partialorder %v4216_v39, 0.0  ;;  %4258 = vset.pattern.permute.xlu2 %v8553_v17 }
 0x131   : >> { %v5048_v41 = vsel %vm351_vm2, 1, %v8553_v17  ;;  %393 = vperm.xlu2 %4258, %v5042_v38  }
 0x132   : >> { %8791 = vst [vmem:[#allocation36_spill] sm:$0xff] %v5048_v41  ;;  %402 = vperm.xlu1 %4368, %v5048_v41  }
 0x134   : >> { %v5054_v44 = vpop.trf.xlu1 }
 0x135   : >> { %v5052_v43 = vpop.trf.xlu0  ;;  %v4339_v15 = vunpack.i.l.bf16 %v5054_v44 }
 0x137   : >> { %1230 = vperm.xlu0 %4250, %v5057_v45   ;;  %vm2032_vm1 = vcmp.ne.f32.partialorder %v4339_v15, 0.0 }
 0x139   : >> { %4259 = vset.pattern.permute.xlu2 %v8546_v46 }
 0x13a   : >> { %490 = vperm.xlu2 %4259, %v5042_v38  }
 0x13c   : >> { %v5065_v56 = vpop.trf.xlu1 }
 0x13d   : >> { %v4225_v49 = vpop.trf.xlu0 }
 0x13e   : >> { %v4229_v60 = vunpack.i.h.bf16 %v4225_v49  ;;  %v4226_v63 = vunpack.i.l.bf16 %v4225_v49 }
 0x13f   : >> { %1239 = vperm.xlu0 %4250, %v5063_v48  }
 0x140   : >> { %vm353_vm5 = vcmp.ne.f32.partialorder %v4226_v63, 0.0  ;;  %vm1193_vm6 = vcmp.ne.f32.partialorder %v4229_v60, 0.0 }
 0x141   : >> { %v5069_v18 = vsel %vm353_vm5, 1, %v8553_v17  ;;  %v5075_v25 = vsel %vm1193_vm6, 1, %v8553_v17 }
 0x142   : >> { %4260 = vset.pattern.permute.xlu2 %v8544_v53  ;;  %408 = vperm.xlu1 %4368, %v5069_v18   ;;  %8794 = vst [vmem:[#allocation39_spill] sm:$0xff] %v5075_v25 }
 0x143   : >> { %587 = vperm.xlu2 %4260, %v5042_v38  }
 0x144   : >> { %v5077_v29 = vpop.permute.xlu2 %472  ;;  %v5081_v33 = vpop.trf.xlu1 }
 0x145   : >> { %8795 = vst [vmem:[#allocation40_spill] sm:$0xff] %v5077_v29  ;;  %v5079_v32 = vpop.trf.xlu0  ;;  %v4342_v29 = vunpack.i.h.bf16 %v5054_v44 }
 0x147   : >> { %1248 = vperm.xlu0 %4250, %v5075_v25   ;;  %vm2872_vm7 = vcmp.ne.f32.partialorder %v4342_v29, 0.0 }
 0x14b   : >> { %4261 = vset.pattern.permute.xlu2 %v8553_v17 }
 0x14c   : >> { %399 = vperm.xlu2 %4261, %v5085_v30   ;;  %v5094_v49 = vpop.trf.xlu1 }
 0x14d   : >> { %v5089_v39 = vpop.trf.xlu0  ;;  %v5091_v40 = vpop.permute.xlu2 %569  ;;  %v4354_v14 = vunpack.i.l.bf16 %v5094_v49 }
 0x14e   : >> { %8796 = vst [vmem:[#allocation41_spill] sm:$0xff] %v5091_v40  ;;  %v4236_v42 = vunpack.i.l.bf16 %v5089_v39  ;;  %v4327_v40 = vunpack.i.h.bf16 %v5013_v26 }
 0x14f   : >> { %vm2035_vm2 = vcmp.ne.f32.partialorder %v4354_v14, 0.0  ;;  %v4302_v14 = vunpack.i.h.bf16 %v4970_v54 }
 0x150   : >> { %vm355_vm8 = vcmp.ne.f32.partialorder %v4236_v42, 0.0  ;;  %v5182_v15 = vsel %vm2035_vm2, 1, %v8553_v17  ;;  %vm2869_vm6 = vcmp.ne.f32.partialorder %v4327_v40, 0.0 }
 0x151   : >> { %v5097_v60 = vsel %vm355_vm8, 1, %v8553_v17  ;;  %8814 = vst [vmem:[#allocation57_spill] sm:$0xff] %v5182_v15  ;;  %vm2864_vm4 = vcmp.ne.f32.partialorder %v4302_v14, 0.0 }
 0x152   : >> { %8797 = vst [vmem:[#allocation42_spill] sm:$0xff] %v5097_v60  ;;  %414 = vperm.xlu1 %4368, %v5097_v60  }
 0x154   : >> { %4262 = vset.pattern.permute.xlu2 %v8546_v46  ;;  %v5107_v11 = vpop.trf.xlu1  ;;  %v4221_v46 = vunpack.i.l.bf16 %v5052_v43 }
 0x155   : >> { %v5101_v63 = vpop.trf.xlu0  ;;  %496 = vperm.xlu2 %4262, %v5085_v30  }
 0x156   : >> { %v4244_v20 = vunpack.i.h.bf16 %v5101_v63  ;;  %v5105_v53 = vpop.permute.xlu2 %478  ;;  %vm352_vm12 = vcmp.ne.f32.partialorder %v4221_v46, 0.0 }
 0x157   : >> { %8798 = vst [vmem:[#allocation43_spill] sm:$0xff] %v5105_v53  ;;  %v5134_v6 = vsel %vm352_vm12, 1, %v8553_v17 }
 0x158   : >> { %vm1196_vm9 = vcmp.ne.f32.partialorder %v4244_v20, 0.0  ;;  %v5123_v20 = vsel %vm2023_vm10, 1, %v8553_v17  ;;  %8804 = vst [vmem:[#allocation48_spill] sm:$0xff] %v5134_v6 }
 0x159   : >> { %v5111_v42 = vsel %vm1196_vm9, 1, %v8553_v17  ;;  %8801 = vst [vmem:[#allocation45_spill] sm:$0xff] %v5123_v20 }
 0x15a   : >> { %8799 = vst [vmem:[#allocation44_spill] sm:$0xff] %v5111_v42  ;;  %1257 = vperm.xlu0 %4250, %v5111_v42  }
 0x15c   : >> { %v5120_v2 = vpop.trf.xlu1 }
 0x15d   : >> { %v5115_v1 = vpop.trf.xlu0  ;;  %4263 = vset.pattern.permute.xlu2 %v8800_v3 }
 0x15e   : >> { %v4246_v0 = vunpack.i.l.bf16 %v5115_v1  ;;  %593 = vperm.xlu2 %4263, %v5085_v30  }
 0x15f   : >> { %v5125_v5 = vpop.permute.xlu2 %575 }
 0x160   : >> { %8802 = vst [vmem:[#allocation46_spill] sm:$0xff] %v5125_v5  ;;  %vm357_vm11 = vcmp.ne.f32.partialorder %v4246_v0, 0.0  ;;  %v4319_v0 = vunpack.i.l.bf16 %v5007_v23  ;;  %v4241_v5 = vunpack.i.l.bf16 %v5101_v63 }
 0x161   : >> { %v5129_v12 = vsel %vm357_vm11, 1, %v8553_v17 }
 0x162   : >> { %8803 = vst [vmem:[#allocation47_spill] sm:$0xff] %v5129_v12  ;;  %420 = vperm.xlu1 %4368, %v5129_v12   ;;  %2058 = vperm.xlu0 %4250, %v5123_v20   ;;  %vm2028_vm14 = vcmp.ne.f32.partialorder %v4319_v0, 0.0  ;;  %v4231_v0 = vunpack.i.l.bf16 %v5079_v32  ;;  %vm356_vm5 = vcmp.ne.f32.partialorder %v4241_v5, 0.0  ;;  %v5222_v5 = vsel %vm2869_vm6, 1, %v8553_v17 }
 0x163   : >> { %v5148_v4 = vsel %vm2028_vm14, 1, %v8553_v17  ;;  %8823 = vst [vmem:[#allocation66_spill] sm:$0xff] %v5222_v5 }
 0x164   : >> { %8807 = vst [vmem:[#allocation50_spill] sm:$0xff] %v5148_v4  ;;  %vm354_vm0 = vcmp.ne.f32.partialorder %v4231_v0, 0.0  ;;  %v4364_v0 = vunpack.i.l.bf16 %v5120_v2 }
 0x165   : >> { %v5169_v8 = vsel %vm354_vm0, 1, %v8553_v17 }
 0x166   : >> { %4264 = vset.pattern.permute.xlu2 %v8553_v17  ;;  %8811 = vst [vmem:[#allocation54_spill] sm:$0xff] %v5169_v8  ;;  %vm2037_vm3 = vcmp.ne.f32.partialorder %v4364_v0, 0.0  ;;  %v5205_v0 = vsel %vm2864_vm4, 1, %v8553_v17 }
 0x167   : >> { %405 = vperm.xlu2 %4264, %v5134_v6   ;;  %8819 = vst [vmem:[#allocation62_spill] sm:$0xff] %v5205_v0 }
 0x168   : >> { %v5142_v46 = vpop.permute.xlu2 %384 }
 0x169   : >> { %8805 = vst [vmem:[#allocation49_spill] sm:$0xff] %v5142_v46  ;;  %v5158_v46 = vsel %vm2030_vm15, 1, %v8553_v17 }
 0x16a   : >> { %4369 = vset.pattern.permute.xlu1 %v8806_v61  ;;  %2067 = vperm.xlu0 %4250, %v5138_v7   ;;  %8809 = vst [vmem:[#allocation52_spill] sm:$0xff] %v5158_v46 }
 0x16b   : >> { %475 = vperm.xlu1 %4369, %v5001_v21  }
 0x16f   : >> { %4265 = vset.pattern.permute.xlu2 %v8806_v61 }
 0x170   : >> { %502 = vperm.xlu2 %4265, %v5134_v6   ;;  %v5153_v10 = vpop.permute.xlu2 %387 }
 0x171   : >> { %8808 = vst [vmem:[#allocation51_spill] sm:$0xff] %v5153_v10  ;;  %v5172_v10 = vsel %vm2032_vm1, 1, %v8553_v17 }
 0x172   : >> { %2073 = vperm.xlu0 %4250, %v5148_v4   ;;  %8812 = vst [vmem:[#allocation55_spill] sm:$0xff] %v5172_v10 }
 0x173   : >> { %481 = vperm.xlu1 %4369, %v4993_v16  }
 0x178   : >> { %4266 = vset.pattern.permute.xlu2 %v8800_v3 }
 0x179   : >> { %599 = vperm.xlu2 %4266, %v5134_v6   ;;  %v5164_v9 = vpop.permute.xlu2 %484 }
 0x17a   : >> { %8810 = vst [vmem:[#allocation53_spill] sm:$0xff] %v5164_v9  ;;  %2079 = vperm.xlu0 %4250, %v5158_v46  }
 0x17b   : >> { %487 = vperm.xlu1 %4369, %v5019_v28  }
 0x181   : >> { %4267 = vset.pattern.permute.xlu2 %v8553_v17 }
 0x182   : >> { %411 = vperm.xlu2 %4267, %v5169_v8   ;;  %v5177_v13 = vpop.permute.xlu2 %581  ;;  %2085 = vperm.xlu0 %4250, %v5172_v10  }
 0x183   : >> { %8813 = vst [vmem:[#allocation56_spill] sm:$0xff] %v5177_v13  ;;  %493 = vperm.xlu1 %4369, %v5028_v34   ;;  %v5192_v13 = vsel %vm2037_vm3, 1, %v8553_v17 }
 0x184   : >> { %8816 = vst [vmem:[#allocation59_spill] sm:$0xff] %v5192_v13  ;;  %v5195_v53 = vpop.permute.xlu1 %378 }
 0x185   : >> { %8817 = vst [vmem:[#allocation60_spill] sm:$0xff] %v5195_v53  ;;  %v5209_v53 = vsel %vm356_vm5, 1, %v8553_v17 }
 0x18a   : >> { %4268 = vset.pattern.permute.xlu2 %v8806_v61  ;;  %2094 = vperm.xlu0 %4250, %v5182_v15  }
 0x18b   : >> { %499 = vperm.xlu1 %4369, %v5048_v41   ;;  %508 = vperm.xlu2 %4268, %v5169_v8   ;;  %v5189_v9 = vpop.permute.xlu2 %393 }
 0x18c   : >> { %8815 = vst [vmem:[#allocation58_spill] sm:$0xff] %v5189_v9  ;;  %v5213_v63 = vpop.permute.xlu1 %381 }
 0x18d   : >> { %8820 = vst [vmem:[#allocation63_spill] sm:$0xff] %v5213_v63 }
 0x192   : >> { %2100 = vperm.xlu0 %4250, %v5192_v13  }
 0x193   : >> { %505 = vperm.xlu1 %4369, %v5069_v18   ;;  %4269 = vset.pattern.permute.xlu2 %v8800_v3 }
 0x194   : >> { %605 = vperm.xlu2 %4269, %v5169_v8   ;;  %v5202_v9 = vpop.permute.xlu2 %490  ;;  %v5227_v40 = vpop.permute.xlu1 %390 }
 0x195   : >> { %8818 = vst [vmem:[#allocation61_spill] sm:$0xff] %v5202_v9 }
 0x196   : >> { %8824 = vst [vmem:[#allocation67_spill] sm:$0xff] %v5227_v40  ;;  %v8834_v40 = vmov 0  }
 0x199   : >> { %v5219_v9 = vpop.permute.xlu0 %375 }
 0x19a   : >> { %2901 = vperm.xlu0 %4250, %v5205_v0   ;;  %8822 = vst [vmem:[#allocation65_spill] sm:$0xff] %v5219_v9  ;;  %v4357_v9 = vunpack.i.h.bf16 %v5094_v49 }
 0x19b   : >> { %511 = vperm.xlu1 %4369, %v5097_v60  }
 0x19c   : >> { %4270 = vset.pattern.permute.xlu2 %v8553_v17  ;;  %vm2875_vm8 = vcmp.ne.f32.partialorder %v4357_v9, 0.0  ;;  %v5242_v44 = vpop.permute.xlu1 %396 }
 0x19d   : >> { %417 = vperm.xlu2 %4270, %v5209_v53   ;;  %v5217_v14 = vpop.permute.xlu2 %587  ;;  %8828 = vst [vmem:[#allocation71_spill] sm:$0xff] %v5242_v44  ;;  %v5246_v29 = vsel %vm2875_vm8, 1, %v8553_v17  ;;  %v8555_v44 = vmov 3  }
 0x19e   : >> { %8821 = vst [vmem:[#allocation64_spill] sm:$0xff] %v5217_v14  ;;  %v5234_v14 = vsel %vm2872_vm7, 1, %v8553_v17 }
 0x19f   : >> { %8826 = vst [vmem:[#allocation69_spill] sm:$0xff] %v5234_v14 }
 0x1a0   : >> { %8829 = vst [vmem:[#allocation72_spill] sm:$0xff] %v5246_v29 }
 0x1a1   : >> { %v5237_v54 = vpop.permute.xlu0 %1215 }
 0x1a2   : >> { %2916 = vperm.xlu0 %4250, %v5222_v5   ;;  %8827 = vst [vmem:[#allocation70_spill] sm:$0xff] %v5237_v54  ;;  %v4179_v54 = vunpack.i.h.bf16 %v4966_v52  ;;  %v4204_v52 = vunpack.i.h.bf16 %v5009_v24  ;;  %v4292_v5 = vunpack.i.h.bf16 %v4958_v47 }
 0x1a3   : >> { %517 = vperm.xlu1 %4369, %v5129_v12  }
 0x1a4   : >> { %v5256_v9 = vpop.permute.xlu1 %402  ;;  %vm1183_vm9 = vcmp.ne.f32.partialorder %v4179_v54, 0.0  ;;  %vm1188_vm10 = vcmp.ne.f32.partialorder %v4204_v52, 0.0  ;;  %vm2862_vm0 = vcmp.ne.f32.partialorder %v4292_v5, 0.0  ;;  %v4332_v5 = vunpack.i.h.bf16 %v5024_v31 }
 0x1a5   : >> { %4271 = vset.pattern.permute.xlu2 %v8806_v61  ;;  %8832 = vst [vmem:[#allocation75_spill] sm:$0xff] %v5256_v9  ;;  %v5277_v9 = vsel %vm1188_vm10, 1, %v8834_v40 }
 0x1a6   : >> { %514 = vperm.xlu2 %4271, %v5209_v53   ;;  %v5231_v63 = vpop.permute.xlu2 %399  ;;  %8839 = vst [vmem:[#allocation81_spill] sm:$0xff] %v5277_v9  ;;  %vm2870_vm2 = vcmp.ne.f32.partialorder %v4332_v5, 0.0 }
 0x1a7   : >> { %8825 = vst [vmem:[#allocation68_spill] sm:$0xff] %v5231_v63  ;;  %v5422_v31 = vsel %vm2870_vm2, 1, %v8834_v40 }
 0x1a8   : >> { %8885 = vst [vmem:[#allocation125_spill] sm:$0xff] %v5422_v31 }
 0x1a9   : >> { %v5251_v49 = vpop.permute.xlu0 %1230 }
 0x1aa   : >> { %2925 = vperm.xlu0 %4250, %v5234_v14   ;;  %8831 = vst [vmem:[#allocation74_spill] sm:$0xff] %v5251_v49  ;;  %v8561_v14 = vmov 4  }
 0x1ab   : >> { %4370 = vset.pattern.permute.xlu1 %v8800_v3 }
 0x1ac   : >> { %572 = vperm.xlu1 %4370, %v5001_v21  }
 0x1ae   : >> { %4272 = vset.pattern.permute.xlu2 %v8800_v3 }
 0x1af   : >> { %611 = vperm.xlu2 %4272, %v5209_v53   ;;  %v5249_v63 = vpop.permute.xlu2 %496 }
 0x1b0   : >> { %8830 = vst [vmem:[#allocation73_spill] sm:$0xff] %v5249_v63  ;;  %v5263_v63 = vsel %vm1183_vm9, 1, %v8834_v40 }
 0x1b1   : >> { %8835 = vst [vmem:[#allocation77_spill] sm:$0xff] %v5263_v63  ;;  %v5266_v49 = vpop.permute.xlu0 %1239 }
 0x1b2   : >> { %2934 = vperm.xlu0 %4250, %v5246_v29   ;;  %8836 = vst [vmem:[#allocation78_spill] sm:$0xff] %v5266_v49  ;;  %v4219_v49 = vunpack.i.h.bf16 %v5037_v36 }
 0x1b4   : >> { %578 = vperm.xlu1 %4370, %v4993_v16   ;;  %v5272_v54 = vpop.permute.xlu1 %408  ;;  %vm1191_vm11 = vcmp.ne.f32.partialorder %v4219_v49, 0.0  ;;  %v4249_v49 = vunpack.i.h.bf16 %v5115_v1 }
 0x1b5   : >> { %8837 = vst [vmem:[#allocation79_spill] sm:$0xff] %v5272_v54  ;;  %v5286_v24 = vsel %vm1191_vm11, 1, %v8834_v40  ;;  %v4234_v54 = vunpack.i.h.bf16 %v5079_v32 }
 0x1b6   : >> { %8841 = vst [vmem:[#allocation83_spill] sm:$0xff] %v5286_v24  ;;  %vm1197_vm13 = vcmp.ne.f32.partialorder %v4249_v49, 0.0 }
 0x1b7   : >> { %4273 = vset.pattern.permute.xlu2 %v8555_v44  ;;  %vm1194_vm12 = vcmp.ne.f32.partialorder %v4234_v54, 0.0  ;;  %v5311_v54 = vsel %vm1197_vm13, 1, %v8834_v40 }
 0x1b8   : >> { %666 = vperm.xlu2 %4273, %v4961_v50   ;;  %v5260_v17 = vpop.permute.xlu2 %593  ;;  %8849 = vst [vmem:[#allocation91_spill] sm:$0xff] %v5311_v54 }
 0x1b9   : >> { %8833 = vst [vmem:[#allocation76_spill] sm:$0xff] %v5260_v17  ;;  %v5279_v17 = vpop.permute.xlu0 %1248 }
 0x1ba   : >> { %4400 = vset.pattern.permute.xlu0 %v8806_v61  ;;  %8840 = vst [vmem:[#allocation82_spill] sm:$0xff] %v5279_v17  ;;  %v5300_v17 = vsel %vm1194_vm12, 1, %v8834_v40 }
 0x1bb   : >> { %1315 = vperm.xlu0 %4400, %v5263_v63   ;;  %8845 = vst [vmem:[#allocation87_spill] sm:$0xff] %v5300_v17 }
 0x1bc   : >> { %584 = vperm.xlu1 %4370, %v5019_v28  }
 0x1c0   : >> { %672 = vperm.xlu2 %4273, %v4976_v57  }
 0x1c1   : >> { %v5274_v44 = vpop.permute.xlu2 %405 }
 0x1c2   : >> { %8838 = vst [vmem:[#allocation80_spill] sm:$0xff] %v5274_v44 }
 0x1c3   : >> { %1330 = vperm.xlu0 %4400, %v5277_v9  }
 0x1c4   : >> { %590 = vperm.xlu1 %4370, %v5028_v34   ;;  %v5290_v44 = vpop.permute.xlu1 %414 }
 0x1c5   : >> { %8843 = vst [vmem:[#allocation85_spill] sm:$0xff] %v5290_v44 }
 0x1c8   : >> { %678 = vperm.xlu2 %4273, %v5005_v22  }
 0x1ca   : >> { %v5288_v52 = vpop.permute.xlu2 %502 }
 0x1cb   : >> { %8842 = vst [vmem:[#allocation84_spill] sm:$0xff] %v5288_v52  ;;  %1339 = vperm.xlu0 %4400, %v5286_v24  }
 0x1cc   : >> { %596 = vperm.xlu1 %4370, %v5048_v41   ;;  %v5295_v36 = vpop.permute.xlu0 %1257 }
 0x1cd   : >> { %8844 = vst [vmem:[#allocation86_spill] sm:$0xff] %v5295_v36 }
 0x1d0   : >> { %684 = vperm.xlu2 %4273, %v5042_v38  }
 0x1d3   : >> { %v5302_v29 = vpop.permute.xlu2 %599  ;;  %1348 = vperm.xlu0 %4400, %v5300_v17  }
 0x1d4   : >> { %8846 = vst [vmem:[#allocation88_spill] sm:$0xff] %v5302_v29  ;;  %602 = vperm.xlu1 %4370, %v5069_v18   ;;  %v5306_v32 = vpop.permute.xlu1 %420  ;;  %v5308_v44 = vpop.permute.xlu0 %2058 }
 0x1d5   : >> { %8847 = vst [vmem:[#allocation89_spill] sm:$0xff] %v5306_v32 }
 0x1d6   : >> { %8848 = vst [vmem:[#allocation90_spill] sm:$0xff] %v5308_v44 }
 0x1d8   : >> { %690 = vperm.xlu2 %4273, %v5085_v30  }
 0x1db   : >> { %1357 = vperm.xlu0 %4400, %v5311_v54  }
 0x1dc   : >> { %608 = vperm.xlu1 %4370, %v5097_v60   ;;  %v5316_v1 = vpop.permute.xlu2 %411  ;;  %v5318_v36 = vpop.permute.xlu0 %2067 }
 0x1dd   : >> { %8850 = vst [vmem:[#allocation92_spill] sm:$0xff] %v5316_v1  ;;  %v5320_v29 = vpop.permute.xlu1 %475  ;;  %v8856_v1 = vmov 3  }
 0x1de   : >> { %8851 = vst [vmem:[#allocation93_spill] sm:$0xff] %v5318_v36 }
 0x1df   : >> { %8852 = vst [vmem:[#allocation94_spill] sm:$0xff] %v5320_v29 }
 0x1e0   : >> { %696 = vperm.xlu2 %4273, %v5134_v6  }
 0x1e3   : >> { %2155 = vperm.xlu0 %4400, %v5123_v20  }
 0x1e4   : >> { %614 = vperm.xlu1 %4370, %v5129_v12   ;;  %v5325_v49 = vpop.permute.xlu0 %2073 }
 0x1e5   : >> { %8853 = vst [vmem:[#allocation95_spill] sm:$0xff] %v5325_v49  ;;  %v5327_v32 = vpop.permute.xlu1 %481  ;;  %v5329_v44 = vpop.permute.xlu2 %508 }
 0x1e6   : >> { %8854 = vst [vmem:[#allocation96_spill] sm:$0xff] %v5327_v32 }
 0x1e7   : >> { %8855 = vst [vmem:[#allocation97_spill] sm:$0xff] %v5329_v44 }
 0x1e8   : >> { %702 = vperm.xlu2 %4273, %v5169_v8  }
 0x1eb   : >> { %2164 = vperm.xlu0 %4400, %v5138_v7  }
 0x1ec   : >> { %4371 = vset.pattern.permute.xlu1 %v8856_v1  ;;  %v5334_v36 = vpop.permute.xlu0 %2079 }
 0x1ed   : >> { %8857 = vst [vmem:[#allocation98_spill] sm:$0xff] %v5334_v36  ;;  %669 = vperm.xlu1 %4371, %v5001_v21   ;;  %v5337_v29 = vpop.permute.xlu1 %487  ;;  %v4349_v36 = vunpack.i.l.bf16 %v5081_v33 }
 0x1ee   : >> { %8858 = vst [vmem:[#allocation99_spill] sm:$0xff] %v5337_v29  ;;  %v5339_v52 = vpop.permute.xlu2 %605 }
 0x1ef   : >> { %8859 = vst [vmem:[#allocation100_spill] sm:$0xff] %v5339_v52  ;;  %vm2034_vm14 = vcmp.ne.f32.partialorder %v4349_v36, 0.0 }
 0x1f0   : >> { %711 = vperm.xlu2 %4273, %v5129_v12  }
 0x1f3   : >> { %2170 = vperm.xlu0 %4400, %v5148_v4  }
 0x1f4   : >> { %v5343_v32 = vpop.permute.xlu0 %2085 }
 0x1f5   : >> { %8860 = vst [vmem:[#allocation101_spill] sm:$0xff] %v5343_v32  ;;  %675 = vperm.xlu1 %4371, %v4993_v16   ;;  %v5346_v44 = vpop.permute.xlu1 %493 }
 0x1f6   : >> { %8861 = vst [vmem:[#allocation102_spill] sm:$0xff] %v5346_v44 }
 0x1f7   : >> { %v5348_v49 = vpop.permute.xlu2 %417 }
 0x1f8   : >> { %8862 = vst [vmem:[#allocation103_spill] sm:$0xff] %v5348_v49  ;;  %4274 = vset.pattern.permute.xlu2 %v8561_v14 }
 0x1f9   : >> { %766 = vperm.xlu2 %4274, %v5001_v21  }
 0x1fb   : >> { %2176 = vperm.xlu0 %4400, %v5158_v46  }
 0x1fc   : >> { %v5353_v29 = vpop.permute.xlu0 %2094 }
 0x1fd   : >> { %8863 = vst [vmem:[#allocation104_spill] sm:$0xff] %v5353_v29  ;;  %681 = vperm.xlu1 %4371, %v5019_v28   ;;  %v5356_v52 = vpop.permute.xlu1 %499  ;;  %v5369_v29 = vsel %vm2034_vm14, 1, %v8834_v40 }
 0x1fe   : >> { %8864 = vst [vmem:[#allocation105_spill] sm:$0xff] %v5356_v52  ;;  %v4359_v52 = vunpack.i.l.bf16 %v5107_v11 }
 0x1ff   : >> { %8868 = vst [vmem:[#allocation109_spill] sm:$0xff] %v5369_v29 }
 0x200   : >> { %v5358_v32 = vpop.permute.xlu2 %514  ;;  %vm2036_vm15 = vcmp.ne.f32.partialorder %v4359_v52, 0.0 }
 0x201   : >> { %8865 = vst [vmem:[#allocation106_spill] sm:$0xff] %v5358_v32  ;;  %775 = vperm.xlu2 %4274, %v5005_v22  }
 0x203   : >> { %2182 = vperm.xlu0 %4400, %v5172_v10  }
 0x204   : >> { %v5363_v49 = vpop.permute.xlu0 %2100 }
 0x205   : >> { %8866 = vst [vmem:[#allocation107_spill] sm:$0xff] %v5363_v49  ;;  %687 = vperm.xlu1 %4371, %v5028_v34   ;;  %v5366_v14 = vpop.permute.xlu1 %505 }
 0x206   : >> { %8867 = vst [vmem:[#allocation108_spill] sm:$0xff] %v5366_v14  ;;  %v5382_v14 = vsel %vm2036_vm15, 1, %v8834_v40 }
 0x207   : >> { %8872 = vst [vmem:[#allocation113_spill] sm:$0xff] %v5382_v14 }
 0x209   : >> { %781 = vperm.xlu2 %4274, %v5042_v38   ;;  %v5373_v32 = vpop.permute.xlu2 %611 }
 0x20a   : >> { %8869 = vst [vmem:[#allocation110_spill] sm:$0xff] %v5373_v32 }
 0x20b   : >> { %2188 = vperm.xlu0 %4400, %v5369_v29  }
 0x20c   : >> { %v5376_v44 = vpop.permute.xlu0 %2901 }
 0x20d   : >> { %8870 = vst [vmem:[#allocation111_spill] sm:$0xff] %v5376_v44  ;;  %693 = vperm.xlu1 %4371, %v5048_v41   ;;  %v5379_v36 = vpop.permute.xlu1 %511 }
 0x20e   : >> { %8871 = vst [vmem:[#allocation112_spill] sm:$0xff] %v5379_v36  ;;  %v5396_v36 = vsel %vm2862_vm0, 1, %v8834_v40 }
 0x20f   : >> { %8876 = vst [vmem:[#allocation117_spill] sm:$0xff] %v5396_v36 }
 0x211   : >> { %790 = vperm.xlu2 %4274, %v5048_v41  }
 0x212   : >> { %v5385_v49 = vpop.permute.xlu2 %666 }
 0x213   : >> { %8873 = vst [vmem:[#allocation114_spill] sm:$0xff] %v5385_v49  ;;  %2194 = vperm.xlu0 %4400, %v5382_v14   ;;  %v4317_v49 = vunpack.i.h.bf16 %v4996_v19 }
 0x214   : >> { %v5389_v32 = vpop.permute.xlu0 %2916 }
 0x215   : >> { %8874 = vst [vmem:[#allocation115_spill] sm:$0xff] %v5389_v32  ;;  %699 = vperm.xlu1 %4371, %v5069_v18   ;;  %v5392_v52 = vpop.permute.xlu1 %517  ;;  %vm2867_vm1 = vcmp.ne.f32.partialorder %v4317_v49, 0.0  ;;  %v4347_v49 = vunpack.i.h.bf16 %v5065_v56 }
 0x216   : >> { %8875 = vst [vmem:[#allocation116_spill] sm:$0xff] %v5392_v52  ;;  %v5410_v52 = vsel %vm2867_vm1, 1, %v8834_v40 }
 0x217   : >> { %8880 = vst [vmem:[#allocation121_spill] sm:$0xff] %v5410_v52  ;;  %vm2873_vm3 = vcmp.ne.f32.partialorder %v4347_v49, 0.0 }
 0x219   : >> { %799 = vperm.xlu2 %4274, %v5169_v8  }
 0x21a   : >> { %v5398_v44 = vpop.permute.xlu2 %672 }
 0x21b   : >> { %8877 = vst [vmem:[#allocation118_spill] sm:$0xff] %v5398_v44  ;;  %2992 = vperm.xlu0 %4400, %v5396_v36  }
 0x21c   : >> { %v5402_v0 = vpop.permute.xlu0 %2925 }
 0x21d   : >> { %8878 = vst [vmem:[#allocation119_spill] sm:$0xff] %v5402_v0  ;;  %708 = vperm.xlu1 %4371, %v5209_v53   ;;  %v8883_v0 = vmov 4  }
 0x21e   : >> { %v5405_v32 = vpop.permute.xlu1 %572 }
 0x21f   : >> { %8879 = vst [vmem:[#allocation120_spill] sm:$0xff] %v5405_v32  ;;  %v8574_v32 = vmov 5  }
 0x221   : >> { %808 = vperm.xlu2 %4274, %v5129_v12  }
 0x222   : >> { %v5412_v14 = vpop.permute.xlu2 %678 }
 0x223   : >> { %8881 = vst [vmem:[#allocation122_spill] sm:$0xff] %v5412_v14  ;;  %3007 = vperm.xlu0 %4400, %v5410_v52   ;;  %v4362_v52 = vunpack.i.h.bf16 %v5107_v11  ;;  %v4184_v11 = vunpack.i.h.bf16 %v4972_v55 }
 0x224   : >> { %v5415_v44 = vpop.permute.xlu0 %2934 }
 0x225   : >> { %8882 = vst [vmem:[#allocation123_spill] sm:$0xff] %v5415_v44  ;;  %4372 = vset.pattern.permute.xlu1 %v8883_v0  ;;  %v5436_v44 = vsel %vm2873_vm3, 1, %v8834_v40  ;;  %vm2876_vm4 = vcmp.ne.f32.partialorder %v4362_v52, 0.0  ;;  %vm1184_vm5 = vcmp.ne.f32.partialorder %v4184_v11, 0.0 }
 0x226   : >> { %v5418_v36 = vpop.permute.xlu1 %578  ;;  %763 = vperm.xlu1 %4372, %v4961_v50   ;;  %8889 = vst [vmem:[#allocation129_spill] sm:$0xff] %v5436_v44 }
 0x227   : >> { %8884 = vst [vmem:[#allocation124_spill] sm:$0xff] %v5418_v36 }
 0x229   : >> { %4275 = vset.pattern.permute.xlu2 %v8574_v32 }
 0x22a   : >> { %866 = vperm.xlu2 %4275, %v4976_v57   ;;  %v5427_v14 = vpop.permute.xlu2 %684 }
 0x22b   : >> { %8886 = vst [vmem:[#allocation126_spill] sm:$0xff] %v5427_v14  ;;  %3016 = vperm.xlu0 %4400, %v5422_v31  }
 0x22d   : >> { %v5430_v5 = vpop.permute.xlu0 %1315 }
 0x22e   : >> { %8887 = vst [vmem:[#allocation127_spill] sm:$0xff] %v5430_v5  ;;  %v5432_v36 = vpop.permute.xlu1 %584  ;;  %772 = vperm.xlu1 %4372, %v4993_v16  }
 0x22f   : >> { %8888 = vst [vmem:[#allocation128_spill] sm:$0xff] %v5432_v36  ;;  %v5449_v36 = vsel %vm2876_vm4, 1, %v8834_v40 }
 0x230   : >> { %8893 = vst [vmem:[#allocation133_spill] sm:$0xff] %v5449_v36 }
 0x232   : >> { %872 = vperm.xlu2 %4275, %v5005_v22   ;;  %v5440_v32 = vpop.permute.xlu2 %690 }
 0x233   : >> { %8890 = vst [vmem:[#allocation130_spill] sm:$0xff] %v5440_v32  ;;  %3025 = vperm.xlu0 %4400, %v5436_v44  }
 0x235   : >> { %v5443_v14 = vpop.permute.xlu0 %1330 }
 0x236   : >> { %8891 = vst [vmem:[#allocation131_spill] sm:$0xff] %v5443_v14  ;;  %v5445_v49 = vpop.permute.xlu1 %590  ;;  %778 = vperm.xlu1 %4372, %v5019_v28   ;;  %v5465_v14 = vsel %vm1184_vm5, 1, %v8834_v40 }
 0x237   : >> { %8892 = vst [vmem:[#allocation132_spill] sm:$0xff] %v5445_v49 }
 0x23a   : >> { %881 = vperm.xlu2 %4275, %v5028_v34   ;;  %v5452_v5 = vpop.permute.xlu2 %696 }
 0x23b   : >> { %8894 = vst [vmem:[#allocation134_spill] sm:$0xff] %v5452_v5  ;;  %3034 = vperm.xlu0 %4400, %v5449_v36   ;;  %v4209_v5 = vunpack.i.h.bf16 %v5015_v27 }
 0x23d   : >> { %v5456_v32 = vpop.permute.xlu0 %1339  ;;  %vm1189_vm6 = vcmp.ne.f32.partialorder %v4209_v5, 0.0 }
 0x23e   : >> { %8895 = vst [vmem:[#allocation135_spill] sm:$0xff] %v5456_v32  ;;  %v5458_v52 = vpop.permute.xlu1 %596  ;;  %787 = vperm.xlu1 %4372, %v5085_v30  }
 0x23f   : >> { %8896 = vst [vmem:[#allocation136_spill] sm:$0xff] %v5458_v52  ;;  %v4224_v52 = vunpack.i.h.bf16 %v5052_v43  ;;  %v4239_v43 = vunpack.i.h.bf16 %v5089_v39  ;;  %v4289_v39 = vunpack.i.l.bf16 %v4958_v47 }
 0x241   : >> { %vm1192_vm7 = vcmp.ne.f32.partialorder %v4224_v52, 0.0  ;;  %vm1195_vm8 = vcmp.ne.f32.partialorder %v4239_v43, 0.0  ;;  %vm2022_vm9 = vcmp.ne.f32.partialorder %v4289_v39, 0.0 }
 0x242   : >> { %890 = vperm.xlu2 %4275, %v5134_v6   ;;  %v5462_v49 = vpop.permute.xlu2 %702  ;;  %v5490_v5 = vsel %vm1192_vm7, 1, %v8834_v40  ;;  %v5504_v52 = vsel %vm1195_vm8, 1, %v8834_v40  ;;  %v5517_v43 = vsel %vm2022_vm9, 1, %v8834_v40 }
 0x243   : >> { %8897 = vst [vmem:[#allocation137_spill] sm:$0xff] %v5462_v49  ;;  %4403 = vset.pattern.permute.xlu0 %v8800_v3  ;;  %v5479_v49 = vsel %vm1189_vm6, 1, %v8834_v40 }
 0x244   : >> { %1415 = vperm.xlu0 %4403, %v5465_v14  }
 0x245   : >> { %v5470_v55 = vpop.permute.xlu0 %1348 }
 0x246   : >> { %8898 = vst [vmem:[#allocation138_spill] sm:$0xff] %v5470_v55  ;;  %v5472_v32 = vpop.permute.xlu1 %602  ;;  %796 = vperm.xlu1 %4372, %v5069_v18  }
 0x247   : >> { %8899 = vst [vmem:[#allocation139_spill] sm:$0xff] %v5472_v32  ;;  %v8580_v32 = vmov 6  }
 0x24a   : >> { %899 = vperm.xlu2 %4275, %v5097_v60   ;;  %v5476_v11 = vpop.permute.xlu2 %711 }
 0x24b   : >> { %8900 = vst [vmem:[#allocation140_spill] sm:$0xff] %v5476_v11  ;;  %v8906_v11 = vmov 5  }
 0x24c   : >> { %1430 = vperm.xlu0 %4403, %v5479_v49  }
 0x24d   : >> { %v5483_v27 = vpop.permute.xlu0 %1357 }
 0x24e   : >> { %8901 = vst [vmem:[#allocation141_spill] sm:$0xff] %v5483_v27  ;;  %v5485_v36 = vpop.permute.xlu1 %608  ;;  %805 = vperm.xlu1 %4372, %v5209_v53  }
 0x24f   : >> { %8902 = vst [vmem:[#allocation142_spill] sm:$0xff] %v5485_v36 }
 0x252   : >> { %4276 = vset.pattern.permute.xlu2 %v8580_v32 }
 0x253   : >> { %957 = vperm.xlu2 %4276, %v4961_v50   ;;  %v5493_v55 = vpop.permute.xlu2 %766 }
 0x254   : >> { %8903 = vst [vmem:[#allocation143_spill] sm:$0xff] %v5493_v55  ;;  %1439 = vperm.xlu0 %4403, %v5490_v5  }
 0x255   : >> { %v5497_v27 = vpop.permute.xlu0 %2155 }
 0x256   : >> { %8904 = vst [vmem:[#allocation144_spill] sm:$0xff] %v5497_v27  ;;  %v5499_v36 = vpop.permute.xlu1 %614  ;;  %4373 = vset.pattern.permute.xlu1 %v8906_v11 }
 0x257   : >> { %8905 = vst [vmem:[#allocation145_spill] sm:$0xff] %v5499_v36  ;;  %863 = vperm.xlu1 %4373, %v5001_v21  }
 0x25b   : >> { %966 = vperm.xlu2 %4276, %v4993_v16   ;;  %v5507_v32 = vpop.permute.xlu2 %775 }
 0x25c   : >> { %8907 = vst [vmem:[#allocation146_spill] sm:$0xff] %v5507_v32  ;;  %1448 = vperm.xlu0 %4403, %v5504_v52   ;;  %v4304_v32 = vunpack.i.l.bf16 %v4980_v58 }
 0x25d   : >> { %v5511_v55 = vpop.permute.xlu0 %2164 }
 0x25e   : >> { %8908 = vst [vmem:[#allocation147_spill] sm:$0xff] %v5511_v55  ;;  %vm2025_vm10 = vcmp.ne.f32.partialorder %v4304_v32, 0.0 }
 0x25f   : >> { %v5513_v27 = vpop.permute.xlu1 %669  ;;  %869 = vperm.xlu1 %4373, %v4993_v16   ;;  %v5530_v39 = vsel %vm2025_vm10, 1, %v8834_v40 }
 0x260   : >> { %8909 = vst [vmem:[#allocation148_spill] sm:$0xff] %v5513_v27  ;;  %v4314_v27 = vunpack.i.l.bf16 %v4996_v19 }
 0x262   : >> { %vm2027_vm11 = vcmp.ne.f32.partialorder %v4314_v27, 0.0 }
 0x263   : >> { %972 = vperm.xlu2 %4276, %v5019_v28   ;;  %v5520_v36 = vpop.permute.xlu2 %781  ;;  %v5543_v32 = vsel %vm2027_vm11, 1, %v8834_v40 }
 0x264   : >> { %8910 = vst [vmem:[#allocation149_spill] sm:$0xff] %v5520_v36  ;;  %2249 = vperm.xlu0 %4403, %v5517_v43  }
 0x265   : >> { %v5524_v47 = vpop.permute.xlu0 %2170  ;;  %8916 = vst [vmem:[#allocation155_spill] sm:$0xff] %v5543_v32 }
 0x266   : >> { %8911 = vst [vmem:[#allocation150_spill] sm:$0xff] %v5524_v47 }
 0x267   : >> { %v5526_v44 = vpop.permute.xlu1 %675  ;;  %878 = vperm.xlu1 %4373, %v5042_v38  }
 0x268   : >> { %8912 = vst [vmem:[#allocation151_spill] sm:$0xff] %v5526_v44 }
 0x26b   : >> { %981 = vperm.xlu2 %4276, %v5085_v30   ;;  %v5533_v55 = vpop.permute.xlu2 %790 }
 0x26c   : >> { %8913 = vst [vmem:[#allocation152_spill] sm:$0xff] %v5533_v55  ;;  %2258 = vperm.xlu0 %4403, %v5530_v39   ;;  %v4324_v55 = vunpack.i.l.bf16 %v5013_v26 }
 0x26d   : >> { %v5537_v36 = vpop.permute.xlu0 %2176 }
 0x26e   : >> { %8914 = vst [vmem:[#allocation153_spill] sm:$0xff] %v5537_v36  ;;  %vm2029_vm12 = vcmp.ne.f32.partialorder %v4324_v55, 0.0  ;;  %v4334_v36 = vunpack.i.l.bf16 %v5039_v37 }
 0x26f   : >> { %v5539_v58 = vpop.permute.xlu1 %681  ;;  %887 = vperm.xlu1 %4373, %v5048_v41   ;;  %v5556_v27 = vsel %vm2029_vm12, 1, %v8834_v40 }
 0x270   : >> { %8915 = vst [vmem:[#allocation154_spill] sm:$0xff] %v5539_v58  ;;  %vm2031_vm13 = vcmp.ne.f32.partialorder %v4334_v36, 0.0 }
 0x271   : >> { %8920 = vst [vmem:[#allocation159_spill] sm:$0xff] %v5556_v27  ;;  %v5569_v55 = vsel %vm2031_vm13, 1, %v8834_v40 }
 0x272   : >> { %8924 = vst [vmem:[#allocation163_spill] sm:$0xff] %v5569_v55 }
 0x273   : >> { %990 = vperm.xlu2 %4276, %v5069_v18   ;;  %v5546_v44 = vpop.permute.xlu2 %799 }
 0x274   : >> { %8917 = vst [vmem:[#allocation156_spill] sm:$0xff] %v5546_v44  ;;  %2264 = vperm.xlu0 %4403, %v5543_v32  }
 0x275   : >> { %v5550_v19 = vpop.permute.xlu0 %2182 }
 0x276   : >> { %8918 = vst [vmem:[#allocation157_spill] sm:$0xff] %v5550_v19  ;;  %v8590_v19 = vmov 7  }
 0x277   : >> { %v5552_v47 = vpop.permute.xlu1 %687  ;;  %896 = vperm.xlu1 %4373, %v5169_v8  }
 0x278   : >> { %8919 = vst [vmem:[#allocation158_spill] sm:$0xff] %v5552_v47  ;;  %v4344_v47 = vunpack.i.l.bf16 %v5065_v56 }
 0x27a   : >> { %vm2033_vm14 = vcmp.ne.f32.partialorder %v4344_v47, 0.0 }
 0x27b   : >> { %999 = vperm.xlu2 %4276, %v5209_v53   ;;  %v5559_v58 = vpop.permute.xlu2 %808  ;;  %v5584_v36 = vsel %vm2033_vm14, 1, %v8834_v40 }
 0x27c   : >> { %8921 = vst [vmem:[#allocation160_spill] sm:$0xff] %v5559_v58  ;;  %2270 = vperm.xlu0 %4403, %v5556_v27   ;;  %v8927_v27 = vmov 6  }
 0x27d   : >> { %v5563_v26 = vpop.permute.xlu0 %2188  ;;  %8928 = vst [vmem:[#allocation166_spill] sm:$0xff] %v5584_v36 }
 0x27e   : >> { %8922 = vst [vmem:[#allocation161_spill] sm:$0xff] %v5563_v26 }
 0x27f   : >> { %v5565_v44 = vpop.permute.xlu1 %693  ;;  %905 = vperm.xlu1 %4373, %v5129_v12  }
 0x280   : >> { %8923 = vst [vmem:[#allocation162_spill] sm:$0xff] %v5565_v44 }
 0x283   : >> { %4277 = vset.pattern.permute.xlu2 %v8590_v19 }
 0x284   : >> { %1057 = vperm.xlu2 %4277, %v5001_v21   ;;  %v5574_v58 = vpop.permute.xlu2 %866  ;;  %2276 = vperm.xlu0 %4403, %v5569_v55  }
 0x285   : >> { %v5577_v26 = vpop.permute.xlu0 %2194 }
 0x286   : >> { %8925 = vst [vmem:[#allocation164_spill] sm:$0xff] %v5577_v26 }
 0x287   : >> { %v5579_v44 = vpop.permute.xlu1 %699  ;;  %4374 = vset.pattern.permute.xlu1 %v8927_v27 }
 0x288   : >> { %8926 = vst [vmem:[#allocation165_spill] sm:$0xff] %v5579_v44  ;;  %963 = vperm.xlu1 %4374, %v4976_v57  }
 0x28c   : >> { %1066 = vperm.xlu2 %4277, %v5005_v22   ;;  %v5587_v56 = vpop.permute.xlu2 %872  ;;  %2282 = vperm.xlu0 %4403, %v5584_v36  }
 0x28d   : >> { %8929 = vst [vmem:[#allocation167_spill] sm:$0xff] %v5587_v56  ;;  %v5590_v19 = vpop.permute.xlu0 %2992  ;;  %v4297_v56 = vunpack.i.h.bf16 %v4964_v51 }
 0x28e   : >> { %8930 = vst [vmem:[#allocation168_spill] sm:$0xff] %v5590_v19 }
 0x28f   : >> { %v5592_v21 = vpop.permute.xlu1 %708  ;;  %vm2863_vm15 = vcmp.ne.f32.partialorder %v4297_v56, 0.0 }
 0x290   : >> { %8931 = vst [vmem:[#allocation169_spill] sm:$0xff] %v5592_v21  ;;  %969 = vperm.xlu1 %4374, %v5005_v22  }
 0x294   : >> { %1072 = vperm.xlu2 %4277, %v5042_v38   ;;  %v5596_v47 = vpop.permute.xlu2 %881  ;;  %2288 = vperm.xlu0 %4403, %v5182_v15  }
 0x295   : >> { %v5599_v44 = vpop.permute.xlu0 %3007 }
 0x296   : >> { %8932 = vst [vmem:[#allocation170_spill] sm:$0xff] %v5599_v44  ;;  %v5615_v44 = vsel %vm2863_vm15, 1, %v8834_v40 }
 0x297   : >> { %8936 = vst [vmem:[#allocation174_spill] sm:$0xff] %v5615_v44 }
 0x298   : >> { %978 = vperm.xlu1 %4374, %v5028_v34   ;;  %v5602_v26 = vpop.permute.xlu1 %763 }
 0x299   : >> { %8933 = vst [vmem:[#allocation171_spill] sm:$0xff] %v5602_v26  ;;  %v4322_v26 = vunpack.i.h.bf16 %v5007_v23 }
 0x29b   : >> { %vm2868_vm0 = vcmp.ne.f32.partialorder %v4322_v26, 0.0 }
 0x29c   : >> { %1081 = vperm.xlu2 %4277, %v5048_v41   ;;  %v5606_v19 = vpop.permute.xlu2 %890  ;;  %2294 = vperm.xlu0 %4403, %v5192_v13  }
 0x29d   : >> { %v5609_v22 = vpop.permute.xlu0 %3016 }
 0x29e   : >> { %8934 = vst [vmem:[#allocation172_spill] sm:$0xff] %v5609_v22  ;;  %v4337_v22 = vunpack.i.h.bf16 %v5039_v37  ;;  %v4352_v37 = vunpack.i.h.bf16 %v5081_v33 }
 0x2a0   : >> { %987 = vperm.xlu1 %4374, %v5134_v6   ;;  %v5612_v21 = vpop.permute.xlu1 %772  ;;  %vm2871_vm1 = vcmp.ne.f32.partialorder %v4337_v22, 0.0  ;;  %vm2874_vm2 = vcmp.ne.f32.partialorder %v4352_v37, 0.0 }
 0x2a1   : >> { %8935 = vst [vmem:[#allocation173_spill] sm:$0xff] %v5612_v21  ;;  %v5628_v21 = vsel %vm2868_vm0, 1, %v8834_v40  ;;  %v5657_v33 = vsel %vm2874_vm2, 1, %v8834_v40 }
 0x2a2   : >> { %8939 = vst [vmem:[#allocation177_spill] sm:$0xff] %v5628_v21 }
 0x2a3   : >> { %8947 = vst [vmem:[#allocation184_spill] sm:$0xff] %v5657_v33 }
 0x2a4   : >> { %1090 = vperm.xlu2 %4277, %v5169_v8   ;;  %v5619_v51 = vpop.permute.xlu2 %899  ;;  %3092 = vperm.xlu0 %4403, %v5615_v44  }
 0x2a5   : >> { %v5622_v41 = vpop.permute.xlu0 %3025 }
 0x2a6   : >> { %8937 = vst [vmem:[#allocation175_spill] sm:$0xff] %v5622_v41  ;;  %v8942_v41 = vmov 7  }
 0x2a8   : >> { %996 = vperm.xlu1 %4374, %v5097_v60   ;;  %v5625_v56 = vpop.permute.xlu1 %778 }
 0x2a9   : >> { %8938 = vst [vmem:[#allocation176_spill] sm:$0xff] %v5625_v56  ;;  %v5642_v56 = vsel %vm2871_vm1, 1, %v8834_v40 }
 0x2aa   : >> { %8944 = vst [vmem:[#allocation181_spill] sm:$0xff] %v5642_v56 }
 0x2ac   : >> { %1099 = vperm.xlu2 %4277, %v5129_v12   ;;  %3107 = vperm.xlu0 %4403, %v5628_v21  }
 0x2ad   : >> { %v5633_v23 = vpop.permute.xlu2 %957  ;;  %v5635_v8 = vpop.permute.xlu0 %3034 }
 0x2ae   : >> { %8940 = vst [vmem:[#allocation178_spill] sm:$0xff] %v5633_v23  ;;  %v4194_v23 = vunpack.i.h.bf16 %v4988_v62  ;;  %v4367_v62 = vunpack.i.h.bf16 %v5120_v2 }
 0x2af   : >> { %8941 = vst [vmem:[#allocation179_spill] sm:$0xff] %v5635_v8 }
 0x2b0   : >> { %4375 = vset.pattern.permute.xlu1 %v8942_v41  ;;  %v5638_v26 = vpop.permute.xlu1 %787  ;;  %vm1186_vm3 = vcmp.ne.f32.partialorder %v4194_v23, 0.0  ;;  %vm2877_vm4 = vcmp.ne.f32.partialorder %v4367_v62, 0.0 }
 0x2b1   : >> { %8943 = vst [vmem:[#allocation180_spill] sm:$0xff] %v5638_v26  ;;  %1054 = vperm.xlu1 %4375, %v4961_v50   ;;  %v5660_v12 = vsel %vm1186_vm3, 1, %v8834_v40 }
 0x2b4   : >> { %4278 = vset.pattern.permute.xlu2 %v8834_v40  ;;  %3116 = vperm.xlu0 %4403, %v5642_v56  }
 0x2b5   : >> { %1221 = vperm.xlu2 %4278, %v5465_v14   ;;  %v5649_v22 = vpop.permute.xlu2 %966 }
 0x2b6   : >> { %8945 = vst [vmem:[#allocation182_spill] sm:$0xff] %v5649_v22  ;;  %v5651_v8 = vpop.permute.xlu0 %1415 }
 0x2b8   : >> { %v5653_v26 = vpop.permute.xlu1 %796 }
 0x2b9   : >> { %8946 = vst [vmem:[#allocation183_spill] sm:$0xff] %v5653_v26  ;;  %1063 = vperm.xlu1 %4375, %v4993_v16   ;;  %v5673_v16 = vsel %vm2877_vm4, 1, %v8834_v40 }
 0x2ba   : >> { %8951 = vst [vmem:[#allocation188_spill] sm:$0xff] %v5673_v16 }
 0x2bc   : >> { %3125 = vperm.xlu0 %4403, %v5657_v33  }
 0x2bd   : >> { %1227 = vperm.xlu2 %4278, %v5660_v12   ;;  %v5665_v22 = vpop.permute.xlu2 %972 }
 0x2be   : >> { %8948 = vst [vmem:[#allocation185_spill] sm:$0xff] %v5665_v22  ;;  %v5667_v37 = vpop.permute.xlu0 %1430 }
 0x2bf   : >> { %8949 = vst [vmem:[#allocation186_spill] sm:$0xff] %v5667_v37 }
 0x2c0   : >> { %v5669_v23 = vpop.permute.xlu1 %805 }
 0x2c1   : >> { %8950 = vst [vmem:[#allocation187_spill] sm:$0xff] %v5669_v23  ;;  %1069 = vperm.xlu1 %4375, %v5019_v28  }
 0x2c4   : >> { %3134 = vperm.xlu0 %4403, %v5673_v16  }
 0x2c5   : >> { %1236 = vperm.xlu2 %4278, %v5479_v49   ;;  %v5677_v2 = vpop.permute.xlu2 %981 }
 0x2c6   : >> { %8952 = vst [vmem:[#allocation189_spill] sm:$0xff] %v5677_v2  ;;  %v5679_v26 = vpop.permute.xlu0 %1439 }
 0x2c7   : >> { %8953 = vst [vmem:[#allocation190_spill] sm:$0xff] %v5679_v26 }
 0x2c9   : >> { %1078 = vperm.xlu1 %4375, %v5085_v30   ;;  %v5682_v22 = vpop.permute.xlu1 %863 }
 0x2ca   : >> { %8954 = vst [vmem:[#allocation191_spill] sm:$0xff] %v5682_v22 }
 0x2cc   : >> { %4406 = vset.pattern.permute.xlu0 %v8856_v1 }
 0x2cd   : >> { %1245 = vperm.xlu2 %4278, %v5490_v5   ;;  %v5686_v62 = vpop.permute.xlu2 %990  ;;  %705 = vperm.xlu0 %4406, %v5097_v60  }
 0x2ce   : >> { %8955 = vst [vmem:[#allocation192_spill] sm:$0xff] %v5686_v62  ;;  %v5689_v23 = vpop.permute.xlu0 %1448  ;;  %v4189_v62 = vunpack.i.h.bf16 %v4982_v59 }
 0x2cf   : >> { %8956 = vst [vmem:[#allocation193_spill] sm:$0xff] %v5689_v23 }
 0x2d0   : >> { %vm1185_vm5 = vcmp.ne.f32.partialorder %v4189_v62, 0.0 }
 0x2d1   : >> { %1087 = vperm.xlu1 %4375, %v5069_v18   ;;  %v5692_v38 = vpop.permute.xlu1 %869 }
 0x2d2   : >> { %8957 = vst [vmem:[#allocation194_spill] sm:$0xff] %v5692_v38 }
 0x2d5   : >> { %1254 = vperm.xlu2 %4278, %v5504_v52   ;;  %v5695_v2 = vpop.permute.xlu2 %999  ;;  %1506 = vperm.xlu0 %4406, %v5035_v35  }
 0x2d6   : >> { %8958 = vst [vmem:[#allocation195_spill] sm:$0xff] %v5695_v2  ;;  %v5698_v22 = vpop.permute.xlu0 %2249 }
 0x2d7   : >> { %8959 = vst [vmem:[#allocation196_spill] sm:$0xff] %v5698_v22  ;;  %v5716_v22 = vsel %vm1185_vm5, 1, %v8834_v40 }
 0x2d9   : >> { %1096 = vperm.xlu1 %4375, %v5209_v53   ;;  %v5701_v26 = vpop.permute.xlu1 %878 }
 0x2da   : >> { %8960 = vst [vmem:[#allocation197_spill] sm:$0xff] %v5701_v26 }
 0x2dd   : >> { %4279 = vset.pattern.permute.xlu2 %v8806_v61  ;;  %1521 = vperm.xlu0 %4406, %v5057_v45  }
 0x2de   : >> { %1312 = vperm.xlu2 %4279, %v5035_v35   ;;  %v5707_v38 = vpop.permute.xlu2 %1057  ;;  %v5709_v23 = vpop.permute.xlu0 %2258 }
 0x2df   : >> { %8961 = vst [vmem:[#allocation198_spill] sm:$0xff] %v5707_v38 }
 0x2e0   : >> { %8962 = vst [vmem:[#allocation199_spill] sm:$0xff] %v5709_v23 }
 0x2e1   : >> { %4376 = vset.pattern.permute.xlu1 %v8834_v40  ;;  %v5712_v2 = vpop.permute.xlu1 %887 }
 0x2e2   : >> { %8963 = vst [vmem:[#allocation200_spill] sm:$0xff] %v5712_v2  ;;  %1218 = vperm.xlu1 %4376, %v5263_v63  }
 0x2e5   : >> { %1530 = vperm.xlu0 %4406, %v5063_v48  }
 0x2e6   : >> { %1321 = vperm.xlu2 %4279, %v5716_v22   ;;  %v5720_v59 = vpop.permute.xlu2 %1066  ;;  %v5722_v26 = vpop.permute.xlu0 %2264 }
 0x2e7   : >> { %8964 = vst [vmem:[#allocation201_spill] sm:$0xff] %v5720_v59 }
 0x2e8   : >> { %8965 = vst [vmem:[#allocation202_spill] sm:$0xff] %v5722_v26 }
 0x2e9   : >> { %v5724_v38 = vpop.permute.xlu1 %896 }
 0x2ea   : >> { %8966 = vst [vmem:[#allocation203_spill] sm:$0xff] %v5724_v38  ;;  %1224 = vperm.xlu1 %4376, %v5716_v22  }
 0x2ed   : >> { %1539 = vperm.xlu0 %4406, %v5075_v25  }
 0x2ee   : >> { %1327 = vperm.xlu2 %4279, %v5057_v45   ;;  %v5729_v62 = vpop.permute.xlu2 %1072  ;;  %v5731_v23 = vpop.permute.xlu0 %2270 }
 0x2ef   : >> { %8967 = vst [vmem:[#allocation204_spill] sm:$0xff] %v5729_v62 }
 0x2f0   : >> { %8968 = vst [vmem:[#allocation205_spill] sm:$0xff] %v5731_v23 }
 0x2f1   : >> { %v5733_v2 = vpop.permute.xlu1 %905 }
 0x2f2   : >> { %8969 = vst [vmem:[#allocation206_spill] sm:$0xff] %v5733_v2  ;;  %1233 = vperm.xlu1 %4376, %v5277_v9  }
 0x2f5   : >> { %1548 = vperm.xlu0 %4406, %v5111_v42  }
 0x2f6   : >> { %1336 = vperm.xlu2 %4279, %v5063_v48   ;;  %v5738_v59 = vpop.permute.xlu2 %1081  ;;  %v5740_v26 = vpop.permute.xlu0 %2276 }
 0x2f7   : >> { %8970 = vst [vmem:[#allocation207_spill] sm:$0xff] %v5738_v59 }
 0x2f8   : >> { %8971 = vst [vmem:[#allocation208_spill] sm:$0xff] %v5740_v26 }
 0x2fa   : >> { %1242 = vperm.xlu1 %4376, %v5286_v24   ;;  %v5743_v38 = vpop.permute.xlu1 %963 }
 0x2fb   : >> { %8972 = vst [vmem:[#allocation209_spill] sm:$0xff] %v5743_v38 }
 0x2fd   : >> { %2349 = vperm.xlu0 %4406, %v5123_v20  }
 0x2fe   : >> { %1345 = vperm.xlu2 %4279, %v5075_v25   ;;  %v5747_v62 = vpop.permute.xlu2 %1090  ;;  %v5749_v2 = vpop.permute.xlu0 %2282 }
 0x2ff   : >> { %8973 = vst [vmem:[#allocation210_spill] sm:$0xff] %v5747_v62 }
 0x300   : >> { %8974 = vst [vmem:[#allocation211_spill] sm:$0xff] %v5749_v2 }
 0x302   : >> { %1251 = vperm.xlu1 %4376, %v5300_v17   ;;  %v5752_v23 = vpop.permute.xlu1 %969 }
 0x303   : >> { %8975 = vst [vmem:[#allocation212_spill] sm:$0xff] %v5752_v23 }
 0x305   : >> { %2358 = vperm.xlu0 %4406, %v5138_v7  }
 0x306   : >> { %1354 = vperm.xlu2 %4279, %v5111_v42   ;;  %v5756_v26 = vpop.permute.xlu2 %1099  ;;  %v5758_v59 = vpop.permute.xlu0 %2288 }
 0x307   : >> { %8976 = vst [vmem:[#allocation213_spill] sm:$0xff] %v5756_v26 }
 0x308   : >> { %8977 = vst [vmem:[#allocation214_spill] sm:$0xff] %v5758_v59 }
 0x30a   : >> { %1260 = vperm.xlu1 %4376, %v5311_v54   ;;  %v5761_v38 = vpop.permute.xlu1 %978 }
 0x30b   : >> { %8978 = vst [vmem:[#allocation215_spill] sm:$0xff] %v5761_v38 }
 0x30d   : >> { %2364 = vperm.xlu0 %4406, %v5148_v4  }
 0x30e   : >> { %4280 = vset.pattern.permute.xlu2 %v8800_v3  ;;  %v5765_v2 = vpop.permute.xlu0 %2294 }
 0x30f   : >> { %8979 = vst [vmem:[#allocation216_spill] sm:$0xff] %v5765_v2  ;;  %1412 = vperm.xlu2 %4280, %v5263_v63   ;;  %v5768_v23 = vpop.permute.xlu2 %1221 }
 0x310   : >> { %8980 = vst [vmem:[#allocation217_spill] sm:$0xff] %v5768_v23 }
 0x312   : >> { %4377 = vset.pattern.permute.xlu1 %v8806_v61  ;;  %v5771_v62 = vpop.permute.xlu1 %987 }
 0x313   : >> { %8981 = vst [vmem:[#allocation218_spill] sm:$0xff] %v5771_v62  ;;  %1318 = vperm.xlu1 %4377, %v5465_v14  }
 0x315   : >> { %2370 = vperm.xlu0 %4406, %v5158_v46  }
 0x316   : >> { %v5775_v26 = vpop.permute.xlu0 %3092 }
 0x317   : >> { %8982 = vst [vmem:[#allocation219_spill] sm:$0xff] %v5775_v26  ;;  %1421 = vperm.xlu2 %4280, %v5660_v12   ;;  %v5778_v38 = vpop.permute.xlu2 %1227 }
 0x318   : >> { %8983 = vst [vmem:[#allocation220_spill] sm:$0xff] %v5778_v38 }
 0x31a   : >> { %v5780_v59 = vpop.permute.xlu1 %996 }
 0x31b   : >> { %8984 = vst [vmem:[#allocation221_spill] sm:$0xff] %v5780_v59  ;;  %1324 = vperm.xlu1 %4377, %v5660_v12  }
 0x31d   : >> { %2376 = vperm.xlu0 %4406, %v5172_v10  }
 0x31e   : >> { %v5784_v2 = vpop.permute.xlu0 %3107 }
 0x31f   : >> { %8985 = vst [vmem:[#allocation222_spill] sm:$0xff] %v5784_v2  ;;  %1427 = vperm.xlu2 %4280, %v5277_v9   ;;  %v5787_v23 = vpop.permute.xlu2 %1236  ;;  %v8991_v2 = vld [vmem:[#allocation113_spill] sm:$0xff] }
 0x320   : >> { %8986 = vst [vmem:[#allocation223_spill] sm:$0xff] %v5787_v23 }
 0x323   : >> { %1333 = vperm.xlu1 %4377, %v5479_v49   ;;  %v5790_v46 = vpop.permute.xlu1 %1054 }
 0x324   : >> { %8987 = vst [vmem:[#allocation224_spill] sm:$0xff] %v5790_v46 }
 0x325   : >> { %2382 = vperm.xlu0 %4406, %v5369_v29  }
 0x326   : >> { %v5793_v26 = vpop.permute.xlu0 %3116 }
 0x327   : >> { %8988 = vst [vmem:[#allocation225_spill] sm:$0xff] %v5793_v26  ;;  %1436 = vperm.xlu2 %4280, %v5286_v24   ;;  %v5796_v38 = vpop.permute.xlu2 %1245  ;;  %v8995_v26 = vld [vmem:[#allocation62_spill] sm:$0xff] }
 0x328   : >> { %8989 = vst [vmem:[#allocation226_spill] sm:$0xff] %v5796_v38 }
 0x32b   : >> { %1342 = vperm.xlu1 %4377, %v5490_v5   ;;  %v5799_v59 = vpop.permute.xlu1 %1063 }
 0x32c   : >> { %8990 = vst [vmem:[#allocation227_spill] sm:$0xff] %v5799_v59 }
 0x32d   : >> { %2388 = vperm.xlu0 %4406, %v8991_v2  }
 0x32e   : >> { %v5802_v62 = vpop.permute.xlu0 %3125 }
 0x32f   : >> { %8992 = vst [vmem:[#allocation228_spill] sm:$0xff] %v5802_v62  ;;  %1445 = vperm.xlu2 %4280, %v5300_v17   ;;  %v5805_v23 = vpop.permute.xlu2 %1254  ;;  %v8999_v62 = vld [vmem:[#allocation66_spill] sm:$0xff] }
 0x330   : >> { %8993 = vst [vmem:[#allocation229_spill] sm:$0xff] %v5805_v23 }
 0x333   : >> { %1351 = vperm.xlu1 %4377, %v5504_v52   ;;  %v5808_v46 = vpop.permute.xlu1 %1069 }
 0x334   : >> { %8994 = vst [vmem:[#allocation230_spill] sm:$0xff] %v5808_v46 }
 0x335   : >> { %3192 = vperm.xlu0 %4406, %v8995_v26  }
 0x336   : >> { %v5811_v37 = vpop.permute.xlu0 %3134 }
 0x337   : >> { %8996 = vst [vmem:[#allocation231_spill] sm:$0xff] %v5811_v37  ;;  %1454 = vperm.xlu2 %4280, %v5311_v54  }
 0x338   : >> { %v5814_v38 = vpop.permute.xlu2 %1312 }
 0x339   : >> { %8997 = vst [vmem:[#allocation232_spill] sm:$0xff] %v5814_v38  ;;  %v9003_v38 = vld [vmem:[#allocation69_spill] sm:$0xff] }
 0x33b   : >> { %4378 = vset.pattern.permute.xlu1 %v8800_v3  ;;  %v5817_v59 = vpop.permute.xlu1 %1078  ;;  %v9007_v3 = vld [vmem:[#allocation72_spill] sm:$0xff] }
 0x33c   : >> { %8998 = vst [vmem:[#allocation233_spill] sm:$0xff] %v5817_v59  ;;  %1409 = vperm.xlu1 %4378, %v5035_v35  }
 0x33d   : >> { %3207 = vperm.xlu0 %4406, %v8999_v62  }
 0x33f   : >> { %4281 = vset.pattern.permute.xlu2 %v8856_v1  ;;  %v5822_v23 = vpop.permute.xlu0 %705 }
 0x340   : >> { %9000 = vst [vmem:[#allocation234_spill] sm:$0xff] %v5822_v23  ;;  %1512 = vperm.xlu2 %4281, %v5465_v14   ;;  %v5825_v46 = vpop.permute.xlu2 %1321 }
 0x341   : >> { %9001 = vst [vmem:[#allocation235_spill] sm:$0xff] %v5825_v46 }
 0x343   : >> { %v5827_v26 = vpop.permute.xlu1 %1087 }
 0x344   : >> { %9002 = vst [vmem:[#allocation236_spill] sm:$0xff] %v5827_v26  ;;  %1418 = vperm.xlu1 %4378, %v5716_v22  }
 0x345   : >> { %3216 = vperm.xlu0 %4406, %v9003_v38  }
 0x347   : >> { %v5831_v37 = vpop.permute.xlu0 %1506 }
 0x348   : >> { %9004 = vst [vmem:[#allocation237_spill] sm:$0xff] %v5831_v37  ;;  %1518 = vperm.xlu2 %4281, %v5660_v12   ;;  %v5834_v59 = vpop.permute.xlu2 %1327 }
 0x349   : >> { %9005 = vst [vmem:[#allocation238_spill] sm:$0xff] %v5834_v59 }
 0x34b   : >> { %v5836_v62 = vpop.permute.xlu1 %1096 }
 0x34c   : >> { %9006 = vst [vmem:[#allocation239_spill] sm:$0xff] %v5836_v62  ;;  %1424 = vperm.xlu1 %4378, %v5057_v45  }
 0x34d   : >> { %3225 = vperm.xlu0 %4406, %v9007_v3  }
 0x34f   : >> { %v5840_v23 = vpop.permute.xlu0 %1521 }
 0x350   : >> { %9008 = vst [vmem:[#allocation240_spill] sm:$0xff] %v5840_v23  ;;  %1527 = vperm.xlu2 %4281, %v5479_v49   ;;  %v5843_v46 = vpop.permute.xlu2 %1336 }
 0x351   : >> { %9009 = vst [vmem:[#allocation241_spill] sm:$0xff] %v5843_v46 }
 0x354   : >> { %1433 = vperm.xlu1 %4378, %v5063_v48   ;;  %v5846_v38 = vpop.permute.xlu1 %1218 }
 0x355   : >> { %9010 = vst [vmem:[#allocation242_spill] sm:$0xff] %v5846_v38  ;;  %4409 = vset.pattern.permute.xlu0 %v8883_v0 }
 0x356   : >> { %769 = vperm.xlu0 %4409, %v4976_v57  }
 0x357   : >> { %v5850_v59 = vpop.permute.xlu0 %1530 }
 0x358   : >> { %9011 = vst [vmem:[#allocation243_spill] sm:$0xff] %v5850_v59  ;;  %1536 = vperm.xlu2 %4281, %v5490_v5   ;;  %v5853_v62 = vpop.permute.xlu2 %1345 }
 0x359   : >> { %9012 = vst [vmem:[#allocation244_spill] sm:$0xff] %v5853_v62 }
 0x35c   : >> { %1442 = vperm.xlu1 %4378, %v5075_v25   ;;  %v5856_v3 = vpop.permute.xlu1 %1224 }
 0x35d   : >> { %9013 = vst [vmem:[#allocation245_spill] sm:$0xff] %v5856_v3 }
 0x35e   : >> { %784 = vperm.xlu0 %4409, %v5028_v34  }
 0x35f   : >> { %v5859_v23 = vpop.permute.xlu0 %1539 }
 0x360   : >> { %9014 = vst [vmem:[#allocation246_spill] sm:$0xff] %v5859_v23  ;;  %1545 = vperm.xlu2 %4281, %v5504_v52   ;;  %v5862_v46 = vpop.permute.xlu2 %1354 }
 0x361   : >> { %9015 = vst [vmem:[#allocation247_spill] sm:$0xff] %v5862_v46 }
 0x364   : >> { %1451 = vperm.xlu1 %4378, %v5111_v42   ;;  %v5865_v57 = vpop.permute.xlu1 %1233 }
 0x365   : >> { %9016 = vst [vmem:[#allocation248_spill] sm:$0xff] %v5865_v57 }
 0x366   : >> { %793 = vperm.xlu0 %4409, %v5134_v6  }
 0x367   : >> { %v5868_v59 = vpop.permute.xlu0 %1548 }
 0x368   : >> { %9017 = vst [vmem:[#allocation249_spill] sm:$0xff] %v5868_v59  ;;  %4282 = vset.pattern.permute.xlu2 %v8883_v0 }
 0x369   : >> { %1603 = vperm.xlu2 %4282, %v5035_v35   ;;  %v5872_v3 = vpop.permute.xlu2 %1412 }
 0x36a   : >> { %9018 = vst [vmem:[#allocation250_spill] sm:$0xff] %v5872_v3 }
 0x36c   : >> { %4379 = vset.pattern.permute.xlu1 %v8856_v1  ;;  %v5875_v34 = vpop.permute.xlu1 %1242 }
 0x36d   : >> { %9019 = vst [vmem:[#allocation251_spill] sm:$0xff] %v5875_v34  ;;  %1509 = vperm.xlu1 %4379, %v5263_v63  }
 0x36e   : >> { %802 = vperm.xlu0 %4409, %v5097_v60  }
 0x36f   : >> { %v5879_v23 = vpop.permute.xlu0 %2349 }
 0x370   : >> { %9020 = vst [vmem:[#allocation252_spill] sm:$0xff] %v5879_v23 }
 0x371   : >> { %1612 = vperm.xlu2 %4282, %v5716_v22   ;;  %v5882_v6 = vpop.permute.xlu2 %1421 }
 0x372   : >> { %9021 = vst [vmem:[#allocation253_spill] sm:$0xff] %v5882_v6 }
 0x374   : >> { %v5884_v59 = vpop.permute.xlu1 %1251 }
 0x375   : >> { %9022 = vst [vmem:[#allocation254_spill] sm:$0xff] %v5884_v59  ;;  %1515 = vperm.xlu1 %4379, %v5716_v22  }
 0x376   : >> { %1606 = vperm.xlu0 %4409, %v5263_v63  }
 0x377   : >> { %v5888_v46 = vpop.permute.xlu0 %2358 }
 0x378   : >> { %9023 = vst [vmem:[#allocation255_spill] sm:$0xff] %v5888_v46 }
 0x379   : >> { %1618 = vperm.xlu2 %4282, %v5057_v45   ;;  %v5891_v62 = vpop.permute.xlu2 %1427 }
 0x37a   : >> { %9024 = vst [vmem:[#allocation256_spill] sm:$0xff] %v5891_v62 }
 0x37c   : >> { %v5893_v37 = vpop.permute.xlu1 %1260 }
 0x37d   : >> { %9025 = vst [vmem:[#allocation257_spill] sm:$0xff] %v5893_v37  ;;  %1524 = vperm.xlu1 %4379, %v5277_v9  }
 0x37e   : >> { %1621 = vperm.xlu0 %4409, %v5277_v9  }
 0x37f   : >> { %v5897_v60 = vpop.permute.xlu0 %2364 }
 0x380   : >> { %9026 = vst [vmem:[#allocation258_spill] sm:$0xff] %v5897_v60 }
 0x381   : >> { %1627 = vperm.xlu2 %4282, %v5063_v48   ;;  %v5900_v6 = vpop.permute.xlu2 %1436 }
 0x382   : >> { %9027 = vst [vmem:[#allocation259_spill] sm:$0xff] %v5900_v6 }
 0x385   : >> { %1533 = vperm.xlu1 %4379, %v5286_v24   ;;  %v5903_v26 = vpop.permute.xlu1 %1318 }
 0x386   : >> { %9028 = vst [vmem:[#allocation260_spill] sm:$0xff] %v5903_v26  ;;  %1630 = vperm.xlu0 %4409, %v5286_v24  }
 0x387   : >> { %v5906_v46 = vpop.permute.xlu0 %2370 }
 0x388   : >> { %9029 = vst [vmem:[#allocation261_spill] sm:$0xff] %v5906_v46 }
 0x389   : >> { %1636 = vperm.xlu2 %4282, %v5075_v25   ;;  %v5909_v37 = vpop.permute.xlu2 %1445 }
 0x38a   : >> { %9030 = vst [vmem:[#allocation262_spill] sm:$0xff] %v5909_v37 }
 0x38d   : >> { %1542 = vperm.xlu1 %4379, %v5300_v17   ;;  %v5912_v59 = vpop.permute.xlu1 %1324 }
 0x38e   : >> { %9031 = vst [vmem:[#allocation263_spill] sm:$0xff] %v5912_v59  ;;  %1639 = vperm.xlu0 %4409, %v5300_v17  }
 0x38f   : >> { %v5915_v60 = vpop.permute.xlu0 %2376 }
 0x391   : >> { %1645 = vperm.xlu2 %4282, %v5111_v42   ;;  %v5918_v6 = vpop.permute.xlu2 %1454 }
 0x392   : >> { %9032 = vst [vmem:[#allocation264_spill] sm:$0xff] %v5918_v6 }
 0x395   : >> { %1551 = vperm.xlu1 %4379, %v5311_v54   ;;  %v5921_v62 = vpop.permute.xlu1 %1333 }
 0x396   : >> { %9033 = vst [vmem:[#allocation265_spill] sm:$0xff] %v5921_v62  ;;  %1648 = vperm.xlu0 %4409, %v5311_v54   ;;  %v9049_v62 = vld [vmem:[#allocation117_spill] sm:$0xff] }
 0x397   : >> { %v5924_v46 = vpop.permute.xlu0 %2382 }
 0x398   : >> { %9034 = vst [vmem:[#allocation266_spill] sm:$0xff] %v5924_v46 }
 0x399   : >> { %4283 = vset.pattern.permute.xlu2 %v8906_v11 }
 0x39a   : >> { %1703 = vperm.xlu2 %4283, %v5263_v63   ;;  %v5928_v59 = vpop.permute.xlu2 %1512 }
 0x39b   : >> { %9035 = vst [vmem:[#allocation267_spill] sm:$0xff] %v5928_v59 }
 0x39d   : >> { %4380 = vset.pattern.permute.xlu1 %v8883_v0  ;;  %v5931_v37 = vpop.permute.xlu1 %1342 }
 0x39e   : >> { %1609 = vperm.xlu1 %4380, %v5465_v14   ;;  %2446 = vperm.xlu0 %4409, %v5123_v20  }
 0x39f   : >> { %v5935_v6 = vpop.permute.xlu0 %2388 }
 0x3a0   : >> { %9036 = vst [vmem:[#allocation268_spill] sm:$0xff] %v5935_v6 }
 0x3a2   : >> { %1712 = vperm.xlu2 %4283, %v5660_v12   ;;  %v5938_v34 = vpop.permute.xlu2 %1518 }
 0x3a3   : >> { %9037 = vst [vmem:[#allocation269_spill] sm:$0xff] %v5938_v34 }
 0x3a5   : >> { %v5940_v46 = vpop.permute.xlu1 %1351 }
 0x3a6   : >> { %9038 = vst [vmem:[#allocation270_spill] sm:$0xff] %v5940_v46  ;;  %1615 = vperm.xlu1 %4380, %v5660_v12   ;;  %2461 = vperm.xlu0 %4409, %v5148_v4   ;;  %v9145_v46 = vld [vmem:[#allocation18_spill] sm:$0xff] }
 0x3a7   : >> { %v5944_v23 = vpop.permute.xlu0 %3192 }
 0x3a8   : >> { %9039 = vst [vmem:[#allocation271_spill] sm:$0xff] %v5944_v23 }
 0x3aa   : >> { %1718 = vperm.xlu2 %4283, %v5277_v9   ;;  %v5947_v57 = vpop.permute.xlu2 %1527 }
 0x3ab   : >> { %9040 = vst [vmem:[#allocation272_spill] sm:$0xff] %v5947_v57 }
 0x3ae   : >> { %1624 = vperm.xlu1 %4380, %v5479_v49   ;;  %v5950_v3 = vpop.permute.xlu1 %1409  ;;  %2470 = vperm.xlu0 %4409, %v5569_v55  }
 0x3af   : >> { %9041 = vst [vmem:[#allocation273_spill] sm:$0xff] %v5950_v3  ;;  %v5953_v6 = vpop.permute.xlu0 %3207 }
 0x3b0   : >> { %9042 = vst [vmem:[#allocation274_spill] sm:$0xff] %v5953_v6 }
 0x3b2   : >> { %1727 = vperm.xlu2 %4283, %v5286_v24   ;;  %v5956_v34 = vpop.permute.xlu2 %1536 }
 0x3b6   : >> { %1633 = vperm.xlu1 %4380, %v5490_v5   ;;  %v5959_v4 = vpop.permute.xlu1 %1418  ;;  %2479 = vperm.xlu0 %4409, %v5369_v29  }
 0x3b7   : >> { %9043 = vst [vmem:[#allocation275_spill] sm:$0xff] %v5959_v4  ;;  %v5962_v38 = vpop.permute.xlu0 %3216 }
 0x3ba   : >> { %1736 = vperm.xlu2 %4283, %v5300_v17   ;;  %v5965_v20 = vpop.permute.xlu2 %1545 }
 0x3bb   : >> { %9044 = vst [vmem:[#allocation276_spill] sm:$0xff] %v5965_v20  ;;  %v9053_v20 = vld [vmem:[#allocation121_spill] sm:$0xff] }
 0x3be   : >> { %1642 = vperm.xlu1 %4380, %v5504_v52   ;;  %v5968_v3 = vpop.permute.xlu1 %1424  ;;  %2488 = vperm.xlu0 %4409, %v5192_v13  }
 0x3bf   : >> { %9045 = vst [vmem:[#allocation277_spill] sm:$0xff] %v5968_v3  ;;  %v5971_v6 = vpop.permute.xlu0 %3225 }
 0x3c0   : >> { %9046 = vst [vmem:[#allocation278_spill] sm:$0xff] %v5971_v6 }
 0x3c2   : >> { %1745 = vperm.xlu2 %4283, %v5311_v54  }
 0x3c3   : >> { %v5974_v57 = vpop.permute.xlu2 %1603 }
 0x3c4   : >> { %9047 = vst [vmem:[#allocation279_spill] sm:$0xff] %v5974_v57 }
 0x3c6   : >> { %4381 = vset.pattern.permute.xlu1 %v8906_v11  ;;  %v5977_v4 = vpop.permute.xlu1 %1433  ;;  %3283 = vperm.xlu0 %4409, %v9049_v62  }
 0x3c7   : >> { %9048 = vst [vmem:[#allocation280_spill] sm:$0xff] %v5977_v4  ;;  %1700 = vperm.xlu1 %4381, %v5035_v35  }
 0x3c8   : >> { %v5981_v23 = vpop.permute.xlu0 %769 }
 0x3c9   : >> { %9050 = vst [vmem:[#allocation281_spill] sm:$0xff] %v5981_v23 }
 0x3ca   : >> { %4284 = vset.pattern.permute.xlu2 %v8927_v27 }
 0x3cb   : >> { %1803 = vperm.xlu2 %4284, %v5465_v14   ;;  %v5985_v3 = vpop.permute.xlu2 %1612 }
 0x3cc   : >> { %9051 = vst [vmem:[#allocation282_spill] sm:$0xff] %v5985_v3 }
 0x3ce   : >> { %v5987_v6 = vpop.permute.xlu1 %1442  ;;  %3298 = vperm.xlu0 %4409, %v9053_v20   ;;  %v9059_v20 = vld [vmem:[#allocation129_spill] sm:$0xff] }
 0x3cf   : >> { %9052 = vst [vmem:[#allocation283_spill] sm:$0xff] %v5987_v6  ;;  %1709 = vperm.xlu1 %4381, %v5716_v22  }
 0x3d0   : >> { %v5991_v57 = vpop.permute.xlu0 %784 }
 0x3d1   : >> { %9054 = vst [vmem:[#allocation284_spill] sm:$0xff] %v5991_v57 }
 0x3d3   : >> { %1809 = vperm.xlu2 %4284, %v5660_v12   ;;  %v5994_v62 = vpop.permute.xlu2 %1618 }
 0x3d4   : >> { %9055 = vst [vmem:[#allocation285_spill] sm:$0xff] %v5994_v62 }
 0x3d6   : >> { %v5996_v4 = vpop.permute.xlu1 %1451  ;;  %3307 = vperm.xlu0 %4409, %v5422_v31   ;;  %v9063_v31 = vld [vmem:[#allocation133_spill] sm:$0xff] }
 0x3d7   : >> { %9056 = vst [vmem:[#allocation286_spill] sm:$0xff] %v5996_v4  ;;  %1715 = vperm.xlu1 %4381, %v5057_v45  }
 0x3d8   : >> { %v6000_v23 = vpop.permute.xlu0 %793 }
 0x3d9   : >> { %9057 = vst [vmem:[#allocation287_spill] sm:$0xff] %v6000_v23  ;;  %v9146_v23 = vld [vmem:[#allocation16_spill] sm:$0xff] }
 0x3db   : >> { %1818 = vperm.xlu2 %4284, %v5479_v49   ;;  %v6003_v3 = vpop.permute.xlu2 %1627 }
 0x3dc   : >> { %9058 = vst [vmem:[#allocation288_spill] sm:$0xff] %v6003_v3 }
 0x3de   : >> { %3316 = vperm.xlu0 %4409, %v9059_v20  }
 0x3df   : >> { %1724 = vperm.xlu1 %4381, %v5063_v48   ;;  %v6007_v6 = vpop.permute.xlu1 %1509 }
 0x3e0   : >> { %9060 = vst [vmem:[#allocation289_spill] sm:$0xff] %v6007_v6  ;;  %v6009_v57 = vpop.permute.xlu0 %802  ;;  %v6165_v6 = vld [vmem:[%s6122_s21 + $0x8] sm:$0xff] }
 0x3e1   : >> { %9061 = vst [vmem:[#allocation290_spill] sm:$0xff] %v6009_v57  ;;  %v9128_v57 = vld [vmem:[#allocation22_spill] sm:$0xff] }
 0x3e3   : >> { %1827 = vperm.xlu2 %4284, %v5490_v5   ;;  %v6012_v4 = vpop.permute.xlu2 %1636 }
 0x3e4   : >> { %9062 = vst [vmem:[#allocation291_spill] sm:$0xff] %v6012_v4 }
 0x3e6   : >> { %3325 = vperm.xlu0 %4409, %v9063_v31  }
 0x3e7   : >> { %1733 = vperm.xlu1 %4381, %v5075_v25   ;;  %v6016_v62 = vpop.permute.xlu1 %1515 }
 0x3e8   : >> { %9064 = vst [vmem:[#allocation292_spill] sm:$0xff] %v6016_v62  ;;  %v6018_v59 = vpop.permute.xlu0 %1606 }
 0x3e9   : >> { %9065 = vst [vmem:[#allocation293_spill] sm:$0xff] %v6018_v59  ;;  %v9115_v59 = vld [vmem:[#allocation65_spill] sm:$0xff] }
 0x3ea   : >> { %vm422_vm15 = vcmp.eq.s32.totalorder %v9115_v59, 1  ;;  %v6179_v59 = vperm.slane %v6165_v6, 0 }
 0x3eb   : >> { %1836 = vperm.xlu2 %4284, %v5504_v52   ;;  %v6021_v20 = vpop.permute.xlu2 %1645 }
 0x3ec   : >> { %9066 = vst [vmem:[#allocation294_spill] sm:$0xff] %v6021_v20 }
 0x3ed   : >> { %9120 = vst [vmem:[#allocation65_spill] sm:$0xff] %v6179_v59 }
 0x3ee   : >> { %4412 = vset.pattern.permute.xlu0 %v8906_v11 }
 0x3ef   : >> { %1742 = vperm.xlu1 %4381, %v5111_v42   ;;  %v6025_v3 = vpop.permute.xlu1 %1524  ;;  %860 = vperm.xlu0 %4412, %v4961_v50  }
 0x3f0   : >> { %9067 = vst [vmem:[#allocation295_spill] sm:$0xff] %v6025_v3  ;;  %v6028_v4 = vpop.permute.xlu0 %1621 }
 0x3f1   : >> { %9068 = vst [vmem:[#allocation296_spill] sm:$0xff] %v6028_v4 }
 0x3f3   : >> { %4285 = vset.pattern.permute.xlu2 %v8942_v41 }
 0x3f4   : >> { %1894 = vperm.xlu2 %4285, %v5035_v35   ;;  %v6032_v62 = vpop.permute.xlu2 %1703  ;;  %v9118_v35 = vld [vmem:[#allocation25_spill] sm:$0xff] }
 0x3f5   : >> { %9069 = vst [vmem:[#allocation297_spill] sm:$0xff] %v6032_v62 }
 0x3f7   : >> { %4382 = vset.pattern.permute.xlu1 %v8927_v27  ;;  %v6035_v31 = vpop.permute.xlu1 %1533  ;;  %875 = vperm.xlu0 %4412, %v5019_v28  }
 0x3f8   : >> { %9070 = vst [vmem:[#allocation298_spill] sm:$0xff] %v6035_v31  ;;  %1800 = vperm.xlu1 %4382, %v5263_v63   ;;  %v6039_v20 = vpop.permute.xlu0 %1630 }
 0x3f9   : >> { %9071 = vst [vmem:[#allocation299_spill] sm:$0xff] %v6039_v20  ;;  %v9105_v20 = vld [vmem:[#allocation46_spill] sm:$0xff] }
 0x3fa   : >> { %vm618_vm10 = vcmp.eq.s32.totalorder %v9105_v20, 1 }
 0x3fc   : >> { %1903 = vperm.xlu2 %4285, %v5716_v22   ;;  %v6042_v50 = vpop.permute.xlu2 %1712 }
 0x3fd   : >> { %9072 = vst [vmem:[#allocation300_spill] sm:$0xff] %v6042_v50 }
 0x3ff   : >> { %v6044_v4 = vpop.permute.xlu1 %1542  ;;  %884 = vperm.xlu0 %4412, %v5085_v30  }
 0x400   : >> { %9073 = vst [vmem:[#allocation301_spill] sm:$0xff] %v6044_v4  ;;  %1806 = vperm.xlu1 %4382, %v5716_v22   ;;  %v6048_v3 = vpop.permute.xlu0 %1639 }
 0x401   : >> { %9074 = vst [vmem:[#allocation302_spill] sm:$0xff] %v6048_v3 }
 0x404   : >> { %1909 = vperm.xlu2 %4285, %v5057_v45   ;;  %v6051_v31 = vpop.permute.xlu2 %1718  ;;  %v9116_v45 = vld [vmem:[#allocation61_spill] sm:$0xff] }
 0x405   : >> { %9075 = vst [vmem:[#allocation303_spill] sm:$0xff] %v6051_v31  ;;  %vm525_vm0 = vcmp.eq.s32.totalorder %v9116_v45, 1  ;;  %v9122_v45 = vld [vmem:[#allocation26_spill] sm:$0xff] }
 0x407   : >> { %v6053_v28 = vpop.permute.xlu1 %1551  ;;  %893 = vperm.xlu0 %4412, %v5069_v18  }
 0x408   : >> { %9076 = vst [vmem:[#allocation304_spill] sm:$0xff] %v6053_v28  ;;  %1815 = vperm.xlu1 %4382, %v5277_v9   ;;  %v6057_v63 = vpop.permute.xlu0 %1648 }
 0x409   : >> { %9077 = vst [vmem:[#allocation305_spill] sm:$0xff] %v6057_v63 }
 0x40c   : >> { %1918 = vperm.xlu2 %4285, %v5063_v48   ;;  %v6060_v50 = vpop.permute.xlu2 %1727 }
 0x40d   : >> { %9078 = vst [vmem:[#allocation306_spill] sm:$0xff] %v6060_v50 }
 0x40f   : >> { %902 = vperm.xlu0 %4412, %v5209_v53  }
 0x410   : >> { %1824 = vperm.xlu1 %4382, %v5286_v24   ;;  %v6064_v30 = vpop.permute.xlu1 %1609  ;;  %v6066_v22 = vpop.permute.xlu0 %2446 }
 0x411   : >> { %9079 = vst [vmem:[#allocation307_spill] sm:$0xff] %v6064_v30 }
 0x412   : >> { %9080 = vst [vmem:[#allocation308_spill] sm:$0xff] %v6066_v22  ;;  %v9110_v22 = vld [vmem:[#allocation63_spill] sm:$0xff] }
 0x413   : >> { %vm424_vm12 = vcmp.eq.s32.totalorder %v9110_v22, 1 }
 0x414   : >> { %1927 = vperm.xlu2 %4285, %v5075_v25   ;;  %v6069_v28 = vpop.permute.xlu2 %1736 }
 0x415   : >> { %9081 = vst [vmem:[#allocation309_spill] sm:$0xff] %v6069_v28  ;;  %v9087_v28 = vld [vmem:[#allocation28_spill] sm:$0xff] }
 0x417   : >> { %1706 = vperm.xlu0 %4412, %v5465_v14  }
 0x418   : >> { %1833 = vperm.xlu1 %4382, %v5300_v17   ;;  %v6073_v18 = vpop.permute.xlu1 %1615  ;;  %v6075_v9 = vpop.permute.xlu0 %2461  ;;  %v4299_v17 = vunpack.i.l.bf16 %v9087_v28 }
 0x419   : >> { %9082 = vst [vmem:[#allocation310_spill] sm:$0xff] %v6073_v18 }
 0x41a   : >> { %9083 = vst [vmem:[#allocation311_spill] sm:$0xff] %v6075_v9  ;;  %vm2024_vm6 = vcmp.ne.f32.partialorder %v4299_v17, 0.0 }
 0x41c   : >> { %1936 = vperm.xlu2 %4285, %v5111_v42   ;;  %v6078_v53 = vpop.permute.xlu2 %1745  ;;  %v9107_v42 = vld [vmem:[#allocation43_spill] sm:$0xff] }
 0x41d   : >> { %9084 = vst [vmem:[#allocation312_spill] sm:$0xff] %v6078_v53  ;;  %vm521_vm11 = vcmp.eq.s32.totalorder %v9107_v42, 1 }
 0x41f   : >> { %1721 = vperm.xlu0 %4412, %v5479_v49  }
 0x420   : >> { %1842 = vperm.xlu1 %4382, %v5311_v54   ;;  %v6082_v24 = vpop.permute.xlu1 %1624  ;;  %v6084_v63 = vpop.permute.xlu0 %2470  ;;  %v6099_v54 = vsel %vm2024_vm6, 1, %v8834_v40 }
 0x421   : >> { %9085 = vst [vmem:[#allocation313_spill] sm:$0xff] %v6082_v24 }
 0x422   : >> { %9086 = vst [vmem:[#allocation314_spill] sm:$0xff] %v6084_v63 }
 0x423   : >> { %9091 = vst [vmem:[#allocation317_spill] sm:$0xff] %v6099_v54 }
 0x424   : >> { %4384 = vset.pattern.permute.xlu2 %v8834_v40 }
 0x425   : >> { %2055 = vperm.xlu2 %4384, %v5517_v43   ;;  %v6089_v18 = vpop.permute.xlu2 %1803 }
 0x426   : >> { %9088 = vst [vmem:[#allocation28_spill] sm:$0xff] %v6089_v18  ;;  %v9126_v18 = vld [vmem:[#allocation68_spill] sm:$0xff] }
 0x427   : >> { %1730 = vperm.xlu0 %4412, %v5490_v5   ;;  %vm430_vm4 = vcmp.eq.s32.totalorder %v9126_v18, 1 }
 0x428   : >> { %4383 = vset.pattern.permute.xlu1 %v8942_v41  ;;  %v6093_v53 = vpop.permute.xlu1 %1633  ;;  %v6095_v3 = vpop.permute.xlu0 %2479 }
 0x429   : >> { %9089 = vst [vmem:[#allocation315_spill] sm:$0xff] %v6093_v53  ;;  %1900 = vperm.xlu1 %4383, %v5465_v14  }
 0x42a   : >> { %9090 = vst [vmem:[#allocation316_spill] sm:$0xff] %v6095_v3 }
 0x42d   : >> { %2061 = vperm.xlu2 %4384, %v6099_v54   ;;  %v6102_v28 = vpop.permute.xlu2 %1809 }
 0x42e   : >> { %9092 = vst [vmem:[#allocation318_spill] sm:$0xff] %v6102_v28  ;;  %v9098_v28 = vld [vmem:[#allocation30_spill] sm:$0xff] }
 0x42f   : >> { %1739 = vperm.xlu0 %4412, %v5504_v52   ;;  %v4307_v4 = vunpack.i.h.bf16 %v9098_v28  ;;  %v9103_v28 = vld [vmem:[#allocation159_spill] sm:$0xff] }
 0x430   : >> { %v6105_v63 = vpop.permute.xlu1 %1642  ;;  %v6107_v41 = vpop.permute.xlu0 %2488 }
 0x431   : >> { %9093 = vst [vmem:[#allocation319_spill] sm:$0xff] %v6105_v63  ;;  %1906 = vperm.xlu1 %4383, %v5660_v12   ;;  %vm2865_vm7 = vcmp.ne.f32.partialorder %v4307_v4, 0.0 }
 0x432   : >> { %9094 = vst [vmem:[#allocation320_spill] sm:$0xff] %v6107_v41  ;;  %v6125_v41 = vld [vmem:[%s6122_s21] sm:$0xff]  ;;  %v6147_v4 = vsel %vm2865_vm7, 1, %v8834_v40 }
 0x433   : >> { %v6131_v50 = vperm.slane %v6125_v41, 1  ;;  %9109 = vst [vmem:[#allocation43_spill] sm:$0xff] %v6147_v4 }
 0x435   : >> { %2064 = vperm.xlu2 %4384, %v5530_v39   ;;  %v6111_v17 = vpop.permute.xlu2 %1818  ;;  %9100 = vst [vmem:[#allocation324_spill] sm:$0xff] %v6131_v50  ;;  %v538_v42 = vsel %vm521_vm11, %v6131_v50, -inf }
 0x436   : >> { %9095 = vst [vmem:[#allocation321_spill] sm:$0xff] %v6111_v17 }
 0x437   : >> { %2546 = vperm.xlu0 %4412, %v6099_v54  }
 0x438   : >> { %v6114_v14 = vpop.permute.xlu0 %3283 }
 0x439   : >> { %9096 = vst [vmem:[#allocation322_spill] sm:$0xff] %v6114_v14  ;;  %1915 = vperm.xlu1 %4383, %v5479_v49   ;;  %v6117_v3 = vpop.permute.xlu1 %1700  ;;  %v9101_v14 = vld [vmem:[#allocation40_spill] sm:$0xff]  ;;  %v6135_v49 = vperm.slane %v6125_v41, 2 }
 0x43a   : >> { %9097 = vst [vmem:[#allocation323_spill] sm:$0xff] %v6117_v3  ;;  %vm519_vm8 = vcmp.eq.s32.totalorder %v9101_v14, 1  ;;  %v9104_v3 = vld [vmem:[#allocation41_spill] sm:$0xff] }
 0x43b   : >> { %9102 = vst [vmem:[#allocation40_spill] sm:$0xff] %v6135_v49  ;;  %vm616_vm9 = vcmp.eq.s32.totalorder %v9104_v3, 1  ;;  %v536_v14 = vsel %vm519_vm8, %v6131_v50, -inf  ;;  %v635_v20 = vsel %vm618_vm10, %v6135_v49, -inf }
 0x43c   : >> { %v633_v3 = vsel %vm616_vm9, %v6135_v49, -inf  ;;  %v554_v62 = vmax.f32 %v635_v20, %v538_v42  ;;  %v542_v42 = vsel %vm525_vm0, %v6131_v50, -inf }
 0x43d   : >> { %2070 = vperm.xlu2 %4384, %v5543_v32   ;;  %v6128_v12 = vpop.permute.xlu2 %1827  ;;  %v552_v22 = vmax.f32 %v633_v3, %v536_v14 }
 0x43e   : >> { %9099 = vst [vmem:[#allocation30_spill] sm:$0xff] %v6128_v12  ;;  %v9129_v12 = vld [vmem:[#allocation73_spill] sm:$0xff] }
 0x43f   : >> { %2561 = vperm.xlu0 %4412, %v9103_v28   ;;  %vm527_vm5 = vcmp.eq.s32.totalorder %v9129_v12, 1 }
 0x440   : >> { %v6140_v9 = vpop.permute.xlu0 %3298 }
 0x441   : >> { %9106 = vst [vmem:[#allocation41_spill] sm:$0xff] %v6140_v9  ;;  %1924 = vperm.xlu1 %4383, %v5490_v5   ;;  %v6144_v31 = vpop.permute.xlu1 %1709  ;;  %v6154_v9 = vperm.slane %v6125_v41, 0  ;;  %v9112_v5 = vld [vmem:[#allocation60_spill] sm:$0xff] }
 0x442   : >> { %9108 = vst [vmem:[#allocation46_spill] sm:$0xff] %v6144_v31  ;;  %vm423_vm13 = vcmp.eq.s32.totalorder %v9112_v5, 1  ;;  %v9113_v31 = vld [vmem:[#allocation58_spill] sm:$0xff]  ;;  %v9117_v5 = vld [vmem:[#allocation67_spill] sm:$0xff] }
 0x443   : >> { %9111 = vst [vmem:[#allocation63_spill] sm:$0xff] %v6154_v9  ;;  %vm428_vm14 = vcmp.eq.s32.totalorder %v9113_v31, 1  ;;  %v441_v25 = vsel %vm424_vm12, %v6154_v9, -inf  ;;  %v6168_v48 = vsel %vm423_vm13, %v6154_v9, -inf  ;;  %vm427_vm1 = vcmp.eq.s32.totalorder %v9117_v5, 1 }
 0x444   : >> { %v445_v31 = vsel %vm428_vm14, %v6154_v9, -inf  ;;  %v457_v17 = vmax.f32 %v9118_v35, %v441_v25  ;;  %v439_v14 = vsel %vm422_vm15, %v6154_v9, -inf  ;;  %v444_v5 = vsel %vm427_vm1, %v6154_v9, -inf  ;;  %v9124_v35 = vld [vmem:[#allocation21_spill] sm:$0xff] }
 0x445   : >> { %2076 = vperm.xlu2 %4384, %v9103_v28   ;;  %v6161_v4 = vpop.permute.xlu2 %1836  ;;  %v461_v25 = vmax.f32 %v9124_v35, %v445_v31  ;;  %v460_v20 = vmax.f32 %v9128_v57, %v444_v5  ;;  %v9133_v31 = vld [vmem:[#allocation75_spill] sm:$0xff]  ;;  %v9137_v5 = vld [vmem:[#allocation20_spill] sm:$0xff] }
 0x446   : >> { %9114 = vst [vmem:[#allocation60_spill] sm:$0xff] %v6161_v4  ;;  %v9123_v4 = vld [vmem:[#allocation71_spill] sm:$0xff]  ;;  %v6192_v63 = vmax.f32 %v554_v62, %v457_v17  ;;  %v447_v62 = vsel %vm430_vm4, %v6154_v9, -inf  ;;  %v9132_v17 = vld [vmem:[#allocation76_spill] sm:$0xff]  ;;  %vm431_vm8 = vcmp.eq.s32.totalorder %v9133_v31, 1 }
 0x447   : >> { %2570 = vperm.xlu0 %4412, %v5172_v10   ;;  %vm429_vm2 = vcmp.eq.s32.totalorder %v9123_v4, 1  ;;  %vm624_vm7 = vcmp.eq.s32.totalorder %v9132_v17, 1  ;;  %v9134_v57 = vld [vmem:[#allocation79_spill] sm:$0xff] }
 0x448   : >> { %v6175_v24 = vpop.permute.xlu0 %3307  ;;  %v6200_v53 = vsel %vm429_vm2, %v6154_v9, -inf  ;;  %vm433_vm9 = vcmp.eq.s32.totalorder %v9134_v57, 1  ;;  %v9140_v17 = vld [vmem:[#allocation19_spill] sm:$0xff]  ;;  %v6233_v57 = vsel %vm431_vm8, %v6154_v9, -inf }
 0x449   : >> { %9119 = vst [vmem:[#allocation58_spill] sm:$0xff] %v6175_v24  ;;  %1933 = vperm.xlu1 %4383, %v5504_v52   ;;  %v6182_v3 = vpop.permute.xlu1 %1715  ;;  %v9125_v24 = vld [vmem:[#allocation64_spill] sm:$0xff]  ;;  %v9127_v52 = vld [vmem:[#allocation27_spill] sm:$0xff]  ;;  %v463_v31 = vmax.f32 %v9140_v17, %v447_v62 }
 0x44a   : >> { %9121 = vst [vmem:[#allocation61_spill] sm:$0xff] %v6182_v3  ;;  %vm622_vm3 = vcmp.eq.s32.totalorder %v9125_v24, 1  ;;  %v455_v30 = vmax.f32 %v9127_v52, %v439_v14  ;;  %v6195_v3 = vmax.f32 %v461_v25, %v542_v42  ;;  %v9130_v24 = vld [vmem:[#allocation70_spill] sm:$0xff]  ;;  %v544_v42 = vsel %vm527_vm5, %v6131_v50, -inf  ;;  %v9144_v17 = vld [vmem:[#allocation80_spill] sm:$0xff] }
 0x44b   : >> { %v6204_v4 = vsel %vm622_vm3, %v6135_v49, -inf  ;;  %vm1262_vm6 = vcmp.eq.s32.totalorder %v9130_v24, 1  ;;  %v9136_v14 = vld [vmem:[#allocation74_spill] sm:$0xff]  ;;  %v560_v52 = vmax.f32 %v463_v31, %v544_v42  ;;  %vm432_vm13 = vcmp.eq.s32.totalorder %v9144_v17, 1  ;;  %v9148_v31 = vld [vmem:[#allocation84_spill] sm:$0xff] }
 0x44c   : >> { %v6214_v12 = vmax.f32 %v552_v22, %v455_v30  ;;  %vm1267_vm10 = vcmp.eq.s32.totalorder %v9136_v14, 1  ;;  %v6225_v24 = vsel %vm1262_vm6, %v6179_v59, -inf  ;;  %v641_v22 = vsel %vm624_vm7, %v6135_v49, -inf }
 0x44d   : >> { %2082 = vperm.xlu2 %4384, %v5569_v55   ;;  %9139 = vst [vmem:[#allocation71_spill] sm:$0xff] %v6225_v24  ;;  %v450_v14 = vsel %vm433_vm9, %v6154_v9, -inf  ;;  %v1284_v35 = vsel %vm1267_vm10, %v6179_v59, -inf  ;;  %vm529_vm14 = vcmp.eq.s32.totalorder %v9148_v31, 1  ;;  %v449_v17 = vsel %vm432_vm13, %v6154_v9, -inf  ;;  %v9158_v24 = vld [vmem:[#allocation17_spill] sm:$0xff] }
 0x44e   : >> { %v6208_v18 = vpop.permute.xlu2 %1894  ;;  %9135 = vst [vmem:[#allocation25_spill] sm:$0xff] %v6214_v12  ;;  %v6250_v42 = vmax.f32 %v460_v20, %v1284_v35  ;;  %v9152_v20 = vld [vmem:[#allocation90_spill] sm:$0xff]  ;;  %v546_v26 = vsel %vm529_vm14, %v6131_v50, -inf  ;;  %v465_v12 = vmax.f32 %v9158_v24, %v449_v17 }
 0x44f   : >> { %9131 = vst [vmem:[#allocation67_spill] sm:$0xff] %v6208_v18  ;;  %2579 = vperm.xlu0 %4412, %v5182_v15   ;;  %v9143_v18 = vld [vmem:[#allocation82_spill] sm:$0xff]  ;;  %vm2103_vm1 = vcmp.eq.s32.totalorder %v9152_v20, 1 }
 0x450   : >> { %v6220_v25 = vpop.permute.xlu0 %3316  ;;  %vm1273_vm12 = vcmp.eq.s32.totalorder %v9143_v18, 1  ;;  %9147 = vst [vmem:[#allocation64_spill] sm:$0xff] %v6250_v42  ;;  %v9160_v20 = vld [vmem:[#allocation94_spill] sm:$0xff]  ;;  %v9170_v42 = vld [vmem:[#allocation100_spill] sm:$0xff] }
 0x451   : >> { %9138 = vst [vmem:[#allocation26_spill] sm:$0xff] %v6220_v25  ;;  %4385 = vset.pattern.permute.xlu1 %v8834_v40  ;;  %v6229_v30 = vpop.permute.xlu1 %1724  ;;  %v9142_v25 = vld [vmem:[#allocation78_spill] sm:$0xff]  ;;  %v657_v40 = vmax.f32 %v560_v52, %v641_v22  ;;  %v1290_v18 = vsel %vm1273_vm12, %v6179_v59, -inf  ;;  %v9150_v52 = vld [vmem:[#allocation85_spill] sm:$0xff]  ;;  %vm520_vm4 = vcmp.eq.s32.totalorder %v9160_v20, 1  ;;  %vm628_vm9 = vcmp.eq.s32.totalorder %v9170_v42, 1 }
 0x452   : >> { %9141 = vst [vmem:[#allocation21_spill] sm:$0xff] %v6229_v30  ;;  %2091 = vperm.xlu1 %4385, %v5369_v29   ;;  %vm1270_vm11 = vcmp.eq.s32.totalorder %v9142_v25, 1  ;;  %v6244_v30 = vld [vmem:[%s6122_s21 + $0x10] sm:$0xff]  ;;  %v466_v29 = vmax.f32 %v9146_v23, %v450_v14  ;;  %vm435_vm15 = vcmp.eq.s32.totalorder %v9150_v52, 1  ;;  %v9151_v23 = vld [vmem:[#allocation88_spill] sm:$0xff]  ;;  %v9176_v42 = vld [vmem:[#allocation103_spill] sm:$0xff] }
 0x453   : >> { %v1287_v25 = vsel %vm1270_vm11, %v6179_v59, -inf  ;;  %v6260_v22 = vperm.slane %v6244_v30, 0  ;;  %vm626_vm0 = vcmp.eq.s32.totalorder %v9151_v23, 1  ;;  %v9159_v23 = vld [vmem:[#allocation92_spill] sm:$0xff]  ;;  %v9163_v17 = vld [vmem:[#allocation14_spill] sm:$0xff]  ;;  %vm436_vm13 = vcmp.eq.s32.totalorder %v9176_v42, 1 }
 0x454   : >> { %v6267_v14 = vmax.f32 %v657_v40, %v1287_v25  ;;  %v6269_v31 = vmax.f32 %v466_v29, %v1290_v18  ;;  %vm434_vm3 = vcmp.eq.s32.totalorder %v9159_v23, 1  ;;  %v9161_v40 = vld [vmem:[#allocation86_spill] sm:$0xff]  ;;  %v643_v29 = vsel %vm626_vm0, %v6135_v49, -inf  ;;  %v9162_v18 = vld [vmem:[#allocation95_spill] sm:$0xff] }
 0x455   : >> { %2088 = vperm.xlu2 %4384, %v5584_v36   ;;  %vm1276_vm5 = vcmp.eq.s32.totalorder %v9161_v40, 1  ;;  %v2120_v25 = vsel %vm2103_vm1, %v6260_v22, -inf  ;;  %vm2108_vm6 = vcmp.eq.s32.totalorder %v9162_v18, 1  ;;  %v451_v20 = vsel %vm434_vm3, %v6154_v9, -inf  ;;  %v9164_v40 = vld [vmem:[#allocation97_spill] sm:$0xff]  ;;  %v9182_v42 = vld [vmem:[#allocation106_spill] sm:$0xff] }
 0x456   : >> { %v6255_v62 = vpop.permute.xlu2 %1903  ;;  %9154 = vst [vmem:[#allocation22_spill] sm:$0xff] %v6267_v14  ;;  %vm531_vm7 = vcmp.eq.s32.totalorder %v9164_v40, 1  ;;  %v9166_v18 = vmax.f32 %v9122_v45, %v6168_v48  ;;  %v2125_v40 = vsel %vm2108_vm6, %v6260_v22, -inf  ;;  %vm533_vm0 = vcmp.eq.s32.totalorder %v9182_v42, 1 }
 0x457   : >> { %9149 = vst [vmem:[#allocation68_spill] sm:$0xff] %v6255_v62  ;;  %3383 = vperm.xlu0 %4412, %v5615_v44   ;;  %v9156_v62 = vld [vmem:[#allocation89_spill] sm:$0xff]  ;;  %v6277_v44 = vsel %vm435_vm15, %v6154_v9, -inf  ;;  %v548_v45 = vsel %vm531_vm7, %v6131_v50, -inf }
 0x458   : >> { %v6265_v35 = vpop.permute.xlu0 %3325  ;;  %9155 = vst [vmem:[#allocation73_spill] sm:$0xff] %v6269_v31  ;;  %vm437_vm2 = vcmp.eq.s32.totalorder %v9156_v62, 1  ;;  %v562_v62 = vmax.f32 %v465_v12, %v546_v26  ;;  %v468_v23 = vmax.f32 %v9163_v17, %v6277_v44  ;;  %v6299_v26 = vsel %vm1276_vm5, %v6179_v59, -inf  ;;  %v9167_v44 = vld [vmem:[#allocation98_spill] sm:$0xff] }
 0x459   : >> { %9153 = vst [vmem:[#allocation27_spill] sm:$0xff] %v6265_v35  ;;  %v6273_v52 = vpop.permute.xlu1 %1733  ;;  %v6287_v24 = vsel %vm437_vm2, %v6154_v9, -inf  ;;  %v6294_v35 = vsel %vm520_vm4, %v6131_v50, -inf  ;;  %vm2110_vm8 = vcmp.eq.s32.totalorder %v9167_v44, 1 }
 0x45a   : >> { %9157 = vst [vmem:[#allocation70_spill] sm:$0xff] %v6273_v52  ;;  %4389 = vset.pattern.permute.xlu1 %v8856_v1  ;;  %v659_v12 = vmax.f32 %v562_v62, %v643_v29  ;;  %v6304_v52 = vmax.f32 %v9166_v18, %v2120_v25  ;;  %v9169_v1 = vld [vmem:[#allocation12_spill] sm:$0xff]  ;;  %v9172_v25 = vld [vmem:[#allocation101_spill] sm:$0xff]  ;;  %v6320_v62 = vld [vmem:[%s6122_s21 + $0x18] sm:$0xff] }
 0x45b   : >> { %2391 = vperm.xlu1 %4389, %v5192_v13   ;;  %9165 = vst [vmem:[#allocation76_spill] sm:$0xff] %v6299_v26  ;;  %v470_v31 = vmax.f32 %v9169_v1, %v6287_v24  ;;  %v9171_v26 = vld [vmem:[#allocation15_spill] sm:$0xff]  ;;  %vm2112_vm10 = vcmp.eq.s32.totalorder %v9172_v25, 1  ;;  %v6324_v1 = vsel %vm2110_vm8, %v6260_v22, -inf  ;;  %v9175_v24 = vld [vmem:[#allocation102_spill] sm:$0xff]  ;;  %v6338_v25 = vsel %vm628_vm9, %v6135_v49, -inf }
 0x45c   : >> { %v467_v29 = vmax.f32 %v9171_v26, %v451_v20  ;;  %v9173_v18 = vld [vmem:[#allocation99_spill] sm:$0xff]  ;;  %9174 = vst [vmem:[#allocation79_spill] sm:$0xff] %v6324_v1  ;;  %vm526_vm12 = vcmp.eq.s32.totalorder %v9175_v24, 1  ;;  %v9179_v26 = vmax.f32 %v6195_v3, %v6204_v4  ;;  %v2129_v24 = vsel %vm2112_vm10, %v6260_v22, -inf }
 0x45d   : >> { %2097 = vperm.xlu2 %4384, %v8991_v2   ;;  %vm524_vm11 = vcmp.eq.s32.totalorder %v9173_v18, 1  ;;  %v9180_v18 = vld [vmem:[#allocation105_spill] sm:$0xff]  ;;  %v6364_v42 = vmax.f32 %v659_v12, %v2129_v24  ;;  %v550_v4 = vsel %vm533_vm0, %v6131_v50, -inf  ;;  %v9191_v12 = vld [vmem:[#allocation108_spill] sm:$0xff]  ;;  %v9192_v24 = vld [vmem:[#allocation111_spill] sm:$0xff] }
 0x45e   : >> { %v6307_v17 = vpop.permute.xlu2 %1909  ;;  %v6335_v48 = vmax.f32 %v9179_v26, %v2125_v40  ;;  %vm528_vm14 = vcmp.eq.s32.totalorder %v9180_v18, 1  ;;  %v6351_v3 = vsel %vm524_vm11, %v6131_v50, -inf  ;;  %v543_v40 = vsel %vm526_vm12, %v6131_v50, -inf  ;;  %v9185_v18 = vld [vmem:[#allocation107_spill] sm:$0xff]  ;;  %v9194_v2 = vld [vmem:[#allocation112_spill] sm:$0xff] }
 0x45f   : >> { %9168 = vst [vmem:[#allocation75_spill] sm:$0xff] %v6307_v17  ;;  %3398 = vperm.xlu0 %4412, %v5628_v21   ;;  %v9181_v21 = vld [vmem:[#allocation104_spill] sm:$0xff]  ;;  %v6342_v17 = vmax.f32 %v467_v29, %v548_v45  ;;  %v545_v45 = vsel %vm528_vm14, %v6131_v50, -inf  ;;  %vm2117_vm1 = vcmp.eq.s32.totalorder %v9185_v18, 1  ;;  %v9190_v18 = vld [vmem:[#allocation13_spill] sm:$0xff]  ;;  %vm530_vm3 = vcmp.eq.s32.totalorder %v9191_v12, 1 }
 0x460   : >> { %vm2115_vm15 = vcmp.eq.s32.totalorder %v9181_v21, 1  ;;  %9184 = vst [vmem:[#allocation78_spill] sm:$0xff] %v6351_v3  ;;  %v453_v21 = vsel %vm436_vm13, %v6154_v9, -inf  ;;  %v6369_v9 = vperm.slane %v6125_v41, 3  ;;  %vm2944_vm4 = vcmp.eq.s32.totalorder %v9192_v24, 1  ;;  %v9207_v12 = vld [vmem:[#allocation127_spill] sm:$0xff] }
 0x461   : >> { %v6328_v44 = vpop.permute.xlu1 %1742  ;;  %v6330_v20 = vpop.permute.xlu0 %860  ;;  %v2132_v26 = vsel %vm2115_vm15, %v6260_v22, -inf  ;;  %vm532_vm5 = vcmp.eq.s32.totalorder %v9194_v2, 1  ;;  %vm1360_vm13 = vcmp.eq.s32.totalorder %v9207_v12, 1  ;;  %v9211_v12 = vld [vmem:[#allocation132_spill] sm:$0xff] }
 0x462   : >> { %9177 = vst [vmem:[#allocation74_spill] sm:$0xff] %v6328_v44  ;;  %v6347_v44 = vperm.slane %v6320_v62, 0  ;;  %v565_v3 = vmax.f32 %v468_v23, %v2132_v26  ;;  %v9201_v23 = vld [vmem:[#allocation118_spill] sm:$0xff]  ;;  %v9203_v26 = vld [vmem:[#allocation120_spill] sm:$0xff]  ;;  %vm623_vm0 = vcmp.eq.s32.totalorder %v9211_v12, 1  ;;  %v6461_v12 = vperm.slane %v6244_v30, 1 }
 0x463   : >> { %9178 = vst [vmem:[#allocation20_spill] sm:$0xff] %v6330_v20  ;;  %4391 = vset.pattern.permute.xlu1 %v8883_v0  ;;  %v9186_v0 = vld [vmem:[#allocation110_spill] sm:$0xff]  ;;  %v9189_v20 = vmax.f32 %v9137_v5, %v6200_v53  ;;  %vm715_vm8 = vcmp.eq.s32.totalorder %v9201_v23, 1  ;;  %vm617_vm10 = vcmp.eq.s32.totalorder %v9203_v26, 1 }
 0x464   : >> { %9183 = vst [vmem:[#allocation19_spill] sm:$0xff] %v6347_v44  ;;  %2449 = vperm.xlu1 %4391, %v6099_v54   ;;  %vm630_vm2 = vcmp.eq.s32.totalorder %v9186_v0, 1  ;;  %v9193_v0 = vmax.f32 %v9145_v46, %v6233_v57  ;;  %v6400_v46 = vsel %vm530_vm3, %v6131_v50, -inf  ;;  %v2961_v57 = vsel %vm2944_vm4, %v6347_v44, -inf  ;;  %v9206_v23 = vld [vmem:[#allocation126_spill] sm:$0xff] }
 0x465   : >> { %4386 = vset.pattern.permute.xlu2 %v8806_v61  ;;  %9187 = vst [vmem:[#allocation82_spill] sm:$0xff] %v6369_v9  ;;  %v6377_v1 = vmax.f32 %v9189_v20, %v543_v40  ;;  %v469_v61 = vmax.f32 %v9190_v18, %v453_v21  ;;  %v6393_v5 = vsel %vm630_vm2, %v6135_v49, -inf  ;;  %v9197_v20 = vld [vmem:[#allocation115_spill] sm:$0xff]  ;;  %v9198_v40 = vld [vmem:[#allocation116_spill] sm:$0xff]  ;;  %vm719_vm12 = vcmp.eq.s32.totalorder %v9206_v23, 1 }
 0x466   : >> { %2152 = vperm.xlu2 %4386, %v5517_v43   ;;  %v6372_v29 = vpop.permute.xlu2 %1918  ;;  %v6386_v14 = vmax.f32 %v9193_v0, %v545_v45  ;;  %9196 = vst [vmem:[#allocation16_spill] sm:$0xff] %v6393_v5  ;;  %vm2949_vm6 = vcmp.eq.s32.totalorder %v9197_v20, 1  ;;  %vm534_vm7 = vcmp.eq.s32.totalorder %v9198_v40, 1  ;;  %v9202_v45 = vld [vmem:[#allocation119_spill] sm:$0xff]  ;;  %v6415_v20 = vperm.slane %v6165_v6, 1  ;;  %v9255_v5 = vld [vmem:[#allocation229_spill] sm:$0xff] }
 0x467   : >> { %9188 = vst [vmem:[#allocation80_spill] sm:$0xff] %v6372_v29  ;;  %3407 = vperm.xlu0 %4412, %v5642_v56   ;;  %v2134_v29 = vsel %vm2117_vm1, %v6260_v22, -inf  ;;  %v6390_v53 = vmax.f32 %v469_v61, %v550_v4  ;;  %vm2952_vm9 = vcmp.eq.s32.totalorder %v9202_v45, 1  ;;  %v549_v4 = vsel %vm532_vm5, %v6131_v50, -inf  ;;  %v9204_v18 = vld [vmem:[#allocation123_spill] sm:$0xff] }
 0x468   : >> { %9200 = vst [vmem:[#allocation85_spill] sm:$0xff] %v6400_v46  ;;  %v567_v2 = vmax.f32 %v470_v31, %v2134_v29  ;;  %vm2955_vm11 = vcmp.eq.s32.totalorder %v9204_v18, 1  ;;  %v2966_v24 = vsel %vm2949_vm6, %v6347_v44, -inf  ;;  %v551_v0 = vsel %vm534_vm7, %v6131_v50, -inf  ;;  %v9275_v46 = vld [vmem:[#allocation281_spill] sm:$0xff] }
 0x469   : >> { %9195 = vst [vmem:[#allocation18_spill] sm:$0xff] %v6390_v53  ;;  %v6397_v21 = vpop.permute.xlu0 %875  ;;  %v748_v31 = vmax.f32 %v6192_v63, %v2961_v57  ;;  %v732_v29 = vsel %vm715_vm8, %v6369_v9, -inf  ;;  %v2969_v40 = vsel %vm2952_vm9, %v6347_v44, -inf  ;;  %v662_v45 = vmax.f32 %v565_v3, %v549_v4  ;;  %v9209_v57 = vld [vmem:[#allocation131_spill] sm:$0xff] }
 0x46a   : >> { %9199 = vst [vmem:[#allocation84_spill] sm:$0xff] %v6397_v21  ;;  %v6405_v61 = vpop.permute.xlu1 %1800  ;;  %v634_v26 = vsel %vm617_vm10, %v6135_v49, -inf  ;;  %v2972_v18 = vsel %vm2955_vm11, %v6347_v44, -inf  ;;  %v656_v50 = vmax.f32 %v6377_v1, %v2966_v24  ;;  %v664_v63 = vmax.f32 %v567_v2, %v551_v0  ;;  %v9210_v21 = vld [vmem:[#allocation135_spill] sm:$0xff]  ;;  %v9213_v24 = vld [vmem:[#allocation140_spill] sm:$0xff] }
 0x46b   : >> { %9205 = vst [vmem:[#allocation88_spill] sm:$0xff] %v6415_v20  ;;  %vm1365_vm14 = vcmp.eq.s32.totalorder %v9209_v57, 1  ;;  %vm1368_vm15 = vcmp.eq.s32.totalorder %v9210_v21, 1  ;;  %v6432_v3 = vmax.f32 %v748_v31, %v732_v29  ;;  %v853_v4 = vmax.f32 %v6364_v42, %v2969_v40  ;;  %v9215_v31 = vld [vmem:[#allocation134_spill] sm:$0xff] }
 0x46c   : >> { %2455 = vperm.xlu1 %4391, %v5138_v7   ;;  %v736_v23 = vsel %vm719_vm12, %v6369_v9, -inf  ;;  %v9212_v44 = vmax.f32 %v6304_v52, %v6294_v35  ;;  %v6440_v1 = vmax.f32 %v662_v45, %v2972_v18  ;;  %v1377_v2 = vsel %vm1360_vm13, %v6415_v20, -inf  ;;  %v9219_v45 = vld [vmem:[#allocation143_spill] sm:$0xff]  ;;  %v9220_v18 = vld [vmem:[#allocation137_spill] sm:$0xff] }
 0x46d   : >> { %vm728_vm1 = vcmp.eq.s32.totalorder %v9213_v24, 1  ;;  %v1382_v0 = vsel %vm1365_vm14, %v6415_v20, -inf  ;;  %vm723_vm2 = vcmp.eq.s32.totalorder %v9215_v31, 1  ;;  %v1385_v42 = vsel %vm1368_vm15, %v6415_v20, -inf }
 0x46e   : >> { %2158 = vperm.xlu2 %4386, %v6099_v54   ;;  %v6426_v56 = vpop.permute.xlu2 %1927  ;;  %v6450_v29 = vperm.slane %v6125_v41, 4  ;;  %v849_v35 = vmax.f32 %v6335_v48, %v736_v23  ;;  %v640_v52 = vsel %vm623_vm0, %v6135_v49, -inf  ;;  %vm811_vm4 = vcmp.eq.s32.totalorder %v9219_v45, 1  ;;  %v9221_v23 = vld [vmem:[#allocation141_spill] sm:$0xff] }
 0x46f   : >> { %9208 = vst [vmem:[#allocation90_spill] sm:$0xff] %v6426_v56  ;;  %3416 = vperm.xlu0 %4412, %v5657_v33   ;;  %v747_v56 = vmax.f32 %v9212_v44, %v634_v26  ;;  %v9218_v44 = vld [vmem:[#allocation136_spill] sm:$0xff]  ;;  %vm725_vm5 = vcmp.eq.s32.totalorder %v9220_v18, 1  ;;  %v745_v57 = vsel %vm728_vm1, %v6369_v9, -inf  ;;  %v740_v31 = vsel %vm723_vm2, %v6369_v9, -inf  ;;  %v9222_v45 = vld [vmem:[#allocation149_spill] sm:$0xff] }
 0x470   : >> { %9216 = vst [vmem:[#allocation17_spill] sm:$0xff] %v6450_v29  ;;  %vm625_vm3 = vcmp.eq.s32.totalorder %v9218_v44, 1  ;;  %v946_v24 = vmax.f32 %v849_v35, %v1382_v0  ;;  %v658_v48 = vmax.f32 %v6386_v14, %v1385_v42  ;;  %vm1374_vm6 = vcmp.eq.s32.totalorder %v9221_v23, 1  ;;  %v9224_v35 = vld [vmem:[#allocation138_spill] sm:$0xff]  ;;  %v9225_v14 = vld [vmem:[#allocation144_spill] sm:$0xff]  ;;  %v9227_v23 = vld [vmem:[#allocation145_spill] sm:$0xff] }
 0x471   : >> { %v6444_v21 = vpop.permute.xlu0 %884  ;;  %v844_v26 = vmax.f32 %v747_v56, %v1377_v2  ;;  %v6467_v44 = vmax.f32 %v656_v50, %v640_v52  ;;  %v642_v56 = vsel %vm625_vm3, %v6135_v49, -inf  ;;  %v828_v2 = vsel %vm811_vm4, %v6450_v29, -inf  ;;  %v9226_v52 = vld [vmem:[#allocation142_spill] sm:$0xff] }
 0x472   : >> { %9214 = vst [vmem:[#allocation89_spill] sm:$0xff] %v6444_v21  ;;  %v6452_v40 = vpop.permute.xlu1 %1806  ;;  %vm816_vm7 = vcmp.eq.s32.totalorder %v9222_v45, 1  ;;  %v742_v0 = vsel %vm725_vm5, %v6369_v9, -inf  ;;  %vm1371_vm8 = vcmp.eq.s32.totalorder %v9224_v35, 1  ;;  %vm2200_vm9 = vcmp.eq.s32.totalorder %v9225_v14, 1 }
 0x473   : >> { %9217 = vst [vmem:[#allocation92_spill] sm:$0xff] %v6452_v40  ;;  %v761_v40 = vmax.f32 %v664_v63, %v745_v57  ;;  %v6479_v50 = vmax.f32 %v853_v4, %v740_v31  ;;  %v1391_v42 = vsel %vm1374_vm6, %v6415_v20, -inf  ;;  %vm629_vm10 = vcmp.eq.s32.totalorder %v9226_v52, 1  ;;  %v9231_v52 = vld [vmem:[#allocation150_spill] sm:$0xff] }
 0x474   : >> { %2464 = vperm.xlu1 %4391, %v9103_v28   ;;  %vm631_vm11 = vcmp.eq.s32.totalorder %v9227_v23, 1  ;;  %v6484_v45 = vmax.f32 %v658_v48, %v642_v56  ;;  %v941_v33 = vmax.f32 %v844_v26, %v828_v2  ;;  %v833_v35 = vsel %vm816_vm7, %v6450_v29, -inf }
 0x475   : >> { %v9230_v57 = vmax.f32 %v6342_v17, %v6338_v25  ;;  %v6496_v31 = vsel %vm1371_vm8, %v6415_v20, -inf  ;;  %v2217_v14 = vsel %vm2200_vm9, %v6461_v12, -inf  ;;  %vm2205_vm13 = vcmp.eq.s32.totalorder %v9231_v52, 1 }
 0x476   : >> { %2161 = vperm.xlu2 %4386, %v5530_v39   ;;  %v6473_v18 = vpop.permute.xlu2 %1936  ;;  %v858_v26 = vmax.f32 %v761_v40, %v1391_v42  ;;  %v646_v56 = vsel %vm629_vm10, %v6135_v49, -inf  ;;  %v648_v2 = vsel %vm631_vm11, %v6135_v49, -inf  ;;  %v1043_v25 = vmax.f32 %v946_v24, %v833_v35  ;;  %v9276_v49 = vld [vmem:[#allocation290_spill] sm:$0xff] }
 0x477   : >> { %9223 = vst [vmem:[#allocation94_spill] sm:$0xff] %v6473_v18  ;;  %3425 = vperm.xlu0 %4412, %v5673_v16   ;;  %v9228_v18 = vld [vmem:[#allocation148_spill] sm:$0xff]  ;;  %v6493_v4 = vmax.f32 %v9230_v57, %v742_v0  ;;  %v9233_v0 = vld [vmem:[#allocation157_spill] sm:$0xff]  ;;  %v6508_v23 = vperm.slane %v6125_v41, 5  ;;  %v1038_v57 = vmax.f32 %v941_v33, %v2217_v14  ;;  %v2222_v52 = vsel %vm2205_vm13, %v6461_v12, -inf }
 0x478   : >> { %vm714_vm12 = vcmp.eq.s32.totalorder %v9228_v18, 1  ;;  %v9232_v18 = vld [vmem:[#allocation158_spill] sm:$0xff]  ;;  %vm2209_vm15 = vcmp.eq.s32.totalorder %v9233_v0, 1  ;;  %vm909_vm0 = vcmp.eq.s32.totalorder %v5574_v58, 1  ;;  %vm914_vm1 = vcmp.eq.s32.totalorder %v5596_v47, 1  ;;  %v9235_v33 = vld [vmem:[#allocation152_spill] sm:$0xff] }
 0x479   : >> { %v6488_v63 = vpop.permute.xlu0 %893  ;;  %vm720_vm14 = vcmp.eq.s32.totalorder %v9232_v18, 1  ;;  %v731_v17 = vsel %vm714_vm12, %v6369_v9, -inf  ;;  %9234 = vst [vmem:[#allocation95_spill] sm:$0xff] %v6508_v23  ;;  %v856_v42 = vmax.f32 %v6440_v1, %v646_v56  ;;  %v6517_v24 = vmax.f32 %v858_v26, %v648_v2  ;;  %v9238_v2 = vld [vmem:[#allocation32_spill] sm:$0xff] }
 0x47a   : >> { %9229 = vst [vmem:[#allocation86_spill] sm:$0xff] %v6488_v63  ;;  %v6500_v48 = vpop.permute.xlu1 %1815  ;;  %v737_v35 = vsel %vm720_vm14, %v6369_v9, -inf  ;;  %v6521_v18 = vmax.f32 %v1038_v57, %v731_v17  ;;  %vm819_vm2 = vcmp.eq.s32.totalorder %v9235_v33, 1  ;;  %v2226_v14 = vsel %vm2209_vm15, %v6461_v12, -inf  ;;  %v9241_v33 = vld [vmem:[#allocation190_spill] sm:$0xff] }
 0x47b   : >> { %vm917_vm3 = vcmp.eq.s32.totalorder %v5606_v19, 1  ;;  %v6529_v47 = vmax.f32 %v1043_v25, %v2222_v52  ;;  %v926_v1 = vsel %vm909_vm0, %v6508_v23, -inf  ;;  %v931_v26 = vsel %vm914_vm1, %v6508_v23, -inf  ;;  %v9239_v19 = vld [vmem:[#allocation186_spill] sm:$0xff] }
 0x47c   : >> { %2473 = vperm.xlu1 %4391, %v5172_v10   ;;  %v6534_v56 = vperm.slane %v6165_v6, 2  ;;  %v850_v17 = vmax.f32 %v6467_v44, %v737_v35  ;;  %vm920_vm4 = vcmp.eq.s32.totalorder %v5619_v51, 1  ;;  %vm1458_vm5 = vcmp.eq.s32.totalorder %v5651_v8, 1  ;;  %v9243_v35 = vld [vmem:[#allocation193_spill] sm:$0xff]  ;;  %v9277_v10 = vld [vmem:[#allocation54_spill] sm:$0xff] }
 0x47d   : >> { %vm1463_vm6 = vcmp.eq.s32.totalorder %v9239_v19, 1  ;;  %v6544_v25 = vsel %vm819_vm2, %v6450_v29, -inf  ;;  %v1047_v57 = vmax.f32 %v6479_v50, %v2226_v14  ;;  %v934_v52 = vsel %vm917_vm3, %v6508_v23, -inf  ;;  %v9244_v14 = vld [vmem:[#allocation218_spill] sm:$0xff] }
 0x47e   : >> { %2167 = vperm.xlu2 %4386, %v5543_v32   ;;  %9237 = vst [vmem:[#allocation97_spill] sm:$0xff] %v6534_v56  ;;  %vm1466_vm7 = vcmp.eq.s32.totalorder %v9241_v33, 1  ;;  %v942_v44 = vmax.f32 %v6432_v3, %v926_v1  ;;  %v947_v51 = vmax.f32 %v850_v17, %v931_v26  ;;  %v6553_v8 = vperm.slane %v6125_v41, 6  ;;  %v9245_v3 = vld [vmem:[#allocation205_spill] sm:$0xff]  ;;  %v9248_v17 = vld [vmem:[#allocation214_spill] sm:$0xff] }
 0x47f   : >> { %v6526_v58 = vpop.permute.xlu2 %2055  ;;  %4415 = vset.pattern.permute.xlu0 %v8927_v27  ;;  %vm1469_vm8 = vcmp.eq.s32.totalorder %v9243_v35, 1  ;;  %v937_v19 = vsel %vm920_vm4, %v6508_v23, -inf  ;;  %v1475_v40 = vsel %vm1458_vm5, %v6534_v56, -inf  ;;  %v1480_v50 = vsel %vm1463_vm6, %v6534_v56, -inf  ;;  %v9246_v1 = vld [vmem:[#allocation209_spill] sm:$0xff]  ;;  %v9249_v35 = vld [vmem:[#allocation226_spill] sm:$0xff] }
 0x480   : >> { %9236 = vst [vmem:[#allocation14_spill] sm:$0xff] %v6526_v58  ;;  %960 = vperm.xlu0 %4415, %v9238_v2   ;;  %vm1014_vm9 = vcmp.eq.s32.totalorder %v9244_v14, 1  ;;  %v1144_v33 = vmax.f32 %v1047_v57, %v934_v52  ;;  %v1483_v16 = vsel %vm1466_vm7, %v6534_v56, -inf  ;;  %vm2303_vm10 = vcmp.eq.s32.totalorder %v9245_v3, 1  ;;  %v9250_v58 = vld [vmem:[#allocation35_spill] sm:$0xff] }
 0x481   : >> { %v6541_v0 = vpop.permute.xlu0 %902  ;;  %9242 = vst [vmem:[#allocation12_spill] sm:$0xff] %v6553_v8  ;;  %vm1006_vm11 = vcmp.eq.s32.totalorder %v9246_v1, 1  ;;  %v1486_v41 = vsel %vm1469_vm8, %v6534_v56, -inf  ;;  %v6566_v26 = vperm.slane %v6244_v30, 2  ;;  %vm2309_vm12 = vcmp.eq.s32.totalorder %v9248_v17, 1 }
 0x482   : >> { %9240 = vst [vmem:[#allocation98_spill] sm:$0xff] %v6541_v0  ;;  %v6549_v2 = vpop.permute.xlu1 %1824  ;;  %vm1272_vm13 = vcmp.eq.s32.totalorder %v9249_v35, 1  ;;  %v953_v14 = vmax.f32 %v856_v42, %v937_v19  ;;  %v1039_v0 = vmax.f32 %v942_v44, %v1475_v40  ;;  %v1044_v57 = vmax.f32 %v947_v51, %v1480_v50  ;;  %v9251_v51 = vld [vmem:[#allocation217_spill] sm:$0xff] }
 0x483   : >> { %9247 = vst [vmem:[#allocation100_spill] sm:$0xff] %v6566_v26  ;;  %v1031_v52 = vsel %vm1014_vm9, %v6553_v8, -inf  ;;  %v1305_v3 = vmax.f32 %v1144_v33, %v1483_v16  ;;  %v2320_v1 = vsel %vm2303_vm10, %v6566_v26, -inf  ;;  %v1023_v21 = vsel %vm1006_vm11, %v6553_v8, -inf  ;;  %v9252_v19 = vld [vmem:[#allocation221_spill] sm:$0xff]  ;;  %v9254_v33 = vld [vmem:[#allocation215_spill] sm:$0xff] }
 0x484   : >> { %2482 = vperm.xlu1 %4391, %v5182_v15   ;;  %vm2403_vm14 = vcmp.eq.s32.totalorder %v5915_v60, 1  ;;  %v1050_v17 = vmax.f32 %v953_v14, %v1486_v41  ;;  %v2326_v35 = vsel %vm2309_vm12, %v6566_v26, -inf  ;;  %v1289_v42 = vsel %vm1272_vm13, %v6179_v59, -inf }
 0x485   : >> { %v6581_v40 = vperm.slane %v6244_v30, 3  ;;  %vm1264_vm15 = vcmp.eq.s32.totalorder %v9251_v51, 1  ;;  %v1402_v16 = vmax.f32 %v1305_v3, %v1031_v52  ;;  %vm1017_vm0 = vcmp.eq.s32.totalorder %v9252_v19, 1  ;;  %v9257_v3 = vld [vmem:[#allocation223_spill] sm:$0xff] }
 0x486   : >> { %2173 = vperm.xlu2 %4386, %v9103_v28   ;;  %vm1369_vm1 = vcmp.eq.s32.totalorder %v5931_v37, 1  ;;  %v1136_v50 = vmax.f32 %v1039_v0, %v1023_v21  ;;  %vm1011_vm2 = vcmp.eq.s32.totalorder %v9254_v33, 1  ;;  %v1147_v14 = vmax.f32 %v1050_v17, %v2326_v35  ;;  %v9261_v33 = vld [vmem:[#allocation287_spill] sm:$0xff] }
 0x487   : >> { %v6572_v63 = vpop.permute.xlu2 %2061  ;;  %v2420_v41 = vsel %vm2403_vm14, %v6581_v40, -inf  ;;  %v1499_v28 = vmax.f32 %v1402_v16, %v1289_v42  ;;  %vm1275_vm3 = vcmp.eq.s32.totalorder %v9255_v5, 1  ;;  %vm1563_vm4 = vcmp.eq.s32.totalorder %v5956_v34, 1 }
 0x488   : >> { %975 = vperm.xlu0 %4415, %v9250_v58   ;;  %v6590_v58 = vmax.f32 %v1044_v57, %v2320_v1  ;;  %v1281_v52 = vsel %vm1264_vm15, %v6179_v59, -inf  ;;  %v1034_v37 = vsel %vm1017_vm0, %v6553_v8, -inf  ;;  %v6600_v57 = vperm.slane %v6165_v6, 3  ;;  %v9258_v1 = vld [vmem:[#allocation234_spill] sm:$0xff] }
 0x489   : >> { %v6583_v44 = vpop.permute.xlu0 %1706  ;;  %v1386_v21 = vsel %vm1369_vm1, %v6415_v20, -inf  ;;  %v6605_v0 = vsel %vm1011_vm2, %v6553_v8, -inf  ;;  %vm1269_vm5 = vcmp.eq.s32.totalorder %v9257_v3, 1  ;;  %v1596_v5 = vmax.f32 %v1499_v28, %v2420_v41  ;;  %v9262_v28 = vld [vmem:[#allocation36_spill] sm:$0xff]  ;;  %v9264_v3 = vld [vmem:[#allocation270_spill] sm:$0xff] }
 0x48a   : >> { %v6588_v60 = vpop.permute.xlu1 %1833  ;;  %9256 = vst [vmem:[#allocation101_spill] sm:$0xff] %v6600_v57  ;;  %vm3243_vm6 = vcmp.eq.s32.totalorder %v5962_v38, 1  ;;  %v1292_v34 = vsel %vm1275_vm3, %v6179_v59, -inf  ;;  %vm726_vm7 = vcmp.eq.s32.totalorder %v9258_v1, 1  ;;  %v6613_v17 = vperm.slane %v6320_v62, 3  ;;  %v9263_v41 = vld [vmem:[#allocation260_spill] sm:$0xff] }
 0x48b   : >> { %9253 = vst [vmem:[#allocation15_spill] sm:$0xff] %v6588_v60  ;;  %v1580_v35 = vsel %vm1563_vm4, %v6600_v57, -inf  ;;  %v1297_v51 = vmax.f32 %v1136_v50, %v1281_v52  ;;  %v1308_v16 = vmax.f32 %v1147_v14, %v1034_v37  ;;  %v1693_v19 = vmax.f32 %v1596_v5, %v1386_v21  ;;  %v9265_v52 = vld [vmem:[#allocation315_spill] sm:$0xff]  ;;  %v9268_v5 = vld [vmem:[#allocation276_spill] sm:$0xff] }
 0x48c   : >> { %4392 = vset.pattern.permute.xlu1 %v8906_v11  ;;  %9259 = vst [vmem:[#allocation99_spill] sm:$0xff] %v6613_v17  ;;  %vm820_vm8 = vcmp.eq.s32.totalorder %v9261_v33, 1  ;;  %v6621_v38 = vsel %vm1269_vm5, %v6179_v59, -inf  ;;  %vm1361_vm9 = vcmp.eq.s32.totalorder %v9263_v41, 1  ;;  %vm1372_vm10 = vcmp.eq.s32.totalorder %v9264_v3, 1  ;;  %v9267_v21 = vld [vmem:[#allocation267_spill] sm:$0xff] }
 0x48d   : >> { %2540 = vperm.xlu1 %4392, %v5517_v43   ;;  %v3260_v1 = vsel %vm3243_vm6, %v6613_v17, -inf  ;;  %v1405_v8 = vmax.f32 %v1308_v16, %v1292_v34  ;;  %v743_v50 = vsel %vm726_vm7, %v6369_v9, -inf  ;;  %v1790_v14 = vmax.f32 %v1693_v19, %v1580_v35  ;;  %v9270_v3 = vld [vmem:[#allocation30_spill] sm:$0xff]  ;;  %v9271_v19 = vld [vmem:[#allocation271_spill] sm:$0xff] }
 0x48e   : >> { %2179 = vperm.xlu2 %4386, %v5569_v55   ;;  %vm1660_vm11 = vcmp.eq.s32.totalorder %v9265_v52, 1  ;;  %vm1555_vm12 = vcmp.eq.s32.totalorder %v9267_v21, 1  ;;  %vm1566_vm13 = vcmp.eq.s32.totalorder %v9268_v5, 1  ;;  %v6635_v33 = vperm.slane %v6165_v6, 4 }
 0x48f   : >> { %v6616_v42 = vpop.permute.xlu2 %2064  ;;  %v1378_v41 = vsel %vm1361_vm9, %v6415_v20, -inf  ;;  %v1389_v34 = vsel %vm1372_vm10, %v6415_v20, -inf  ;;  %v1887_v16 = vmax.f32 %v1790_v14, %v3260_v1  ;;  %vm1854_vm14 = vcmp.eq.s32.totalorder %v9270_v3, 1 }
 0x490   : >> { %9260 = vst [vmem:[#allocation102_spill] sm:$0xff] %v6616_v42  ;;  %984 = vperm.xlu0 %4415, %v9262_v28   ;;  %v837_v28 = vsel %vm820_vm8, %v6450_v29, -inf  ;;  %v1502_v35 = vmax.f32 %v1405_v8, %v743_v50  ;;  %vm3235_vm15 = vcmp.eq.s32.totalorder %v9271_v19, 1  ;;  %v6643_v52 = vperm.slane %v6165_v6, 6  ;;  %v9273_v8 = vld [vmem:[#allocation265_spill] sm:$0xff] }
 0x491   : >> { %v6626_v11 = vpop.permute.xlu0 %1721  ;;  %9269 = vst [vmem:[#allocation105_spill] sm:$0xff] %v6635_v33  ;;  %v1677_v21 = vsel %vm1660_vm11, %v6635_v33, -inf  ;;  %v1572_v5 = vsel %vm1555_vm12, %v6600_v57, -inf  ;;  %v1583_v42 = vsel %vm1566_vm13, %v6600_v57, -inf  ;;  %v1984_v53 = vmax.f32 %v1887_v16, %v837_v28  ;;  %v9278_v16 = vld [vmem:[#allocation307_spill] sm:$0xff] }
 0x492   : >> { %v6630_v37 = vpop.permute.xlu1 %1842  ;;  %v1394_v1 = vmax.f32 %v1297_v51, %v1378_v41  ;;  %vm1366_vm1 = vcmp.eq.s32.totalorder %v9273_v8, 1  ;;  %v1599_v50 = vmax.f32 %v1502_v35, %v1389_v34  ;;  %v1871_v14 = vsel %vm1854_vm14, %v6643_v52, -inf  ;;  %v9279_v35 = vld [vmem:[#allocation319_spill] sm:$0xff] }
 0x493   : >> { %9266 = vst [vmem:[#allocation103_spill] sm:$0xff] %v6630_v37  ;;  %v9272_v37 = vld [vmem:[#allocation278_spill] sm:$0xff]  ;;  %v3252_v19 = vsel %vm3235_vm15, %v6613_v17, -inf  ;;  %vm812_vm2 = vcmp.eq.s32.totalorder %v9275_v46, 1  ;;  %vm823_vm3 = vcmp.eq.s32.totalorder %v9276_v49, 1  ;;  %v2145_v60 = vmax.f32 %v1984_v53, %v1677_v21 }
 0x494   : >> { %vm3246_vm0 = vcmp.eq.s32.totalorder %v9272_v37, 1  ;;  %v1491_v37 = vmax.f32 %v1394_v1, %v1572_v5  ;;  %v1696_v28 = vmax.f32 %v1599_v50, %v1583_v42  ;;  %v6661_v41 = vperm.slane %v6165_v6, 5  ;;  %v9280_v5 = vld [vmem:[#allocation28_spill] sm:$0xff] }
 0x495   : >> { %2549 = vperm.xlu1 %4392, %v5530_v39   ;;  %v3263_v51 = vsel %vm3246_vm0, %v6613_v17, -inf  ;;  %vm1652_vm4 = vcmp.eq.s32.totalorder %v9278_v16, 1  ;;  %vm1663_vm5 = vcmp.eq.s32.totalorder %v9279_v35, 1  ;;  %v829_v49 = vsel %vm812_vm2, %v6450_v29, -inf  ;;  %v9281_v1 = vld [vmem:[#allocation60_spill] sm:$0xff] }
 0x496   : >> { %2185 = vperm.xlu2 %4386, %v5584_v36   ;;  %v1588_v46 = vmax.f32 %v1491_v37, %v3252_v19  ;;  %v1793_v21 = vmax.f32 %v1696_v28, %v3263_v51  ;;  %vm1846_vm7 = vcmp.eq.s32.totalorder %v9280_v5, 1  ;;  %vm1857_vm8 = vcmp.eq.s32.totalorder %v9281_v1, 1  ;;  %v9283_v1 = vld [vmem:[#allocation274_spill] sm:$0xff] }
 0x497   : >> { %v6653_v3 = vpop.permute.xlu2 %2070  ;;  %v1669_v19 = vsel %vm1652_vm4, %v6635_v33, -inf  ;;  %v1680_v37 = vsel %vm1663_vm5, %v6635_v33, -inf  ;;  %v1383_v28 = vsel %vm1366_vm1, %v6415_v20, -inf  ;;  %vm2104_vm10 = vcmp.eq.s32.totalorder %v6572_v63, 1  ;;  %v9284_v63 = vld [vmem:[#allocation47_spill] sm:$0xff] }
 0x498   : >> { %9274 = vst [vmem:[#allocation104_spill] sm:$0xff] %v6653_v3  ;;  %993 = vperm.xlu0 %4415, %v9277_v10   ;;  %v6665_v3 = vmax.f32 %v2145_v60, %v1871_v14  ;;  %v840_v10 = vsel %vm823_vm3, %v6450_v29, -inf  ;;  %v1302_v60 = vmax.f32 %v6590_v58, %v6605_v0  ;;  %v9282_v14 = vld [vmem:[#allocation272_spill] sm:$0xff]  ;;  %v1685_v51 = vmax.f32 %v1588_v46, %v829_v49 }
 0x499   : >> { %v1731_v34 = vpop.permute.xlu0 %1730  ;;  %vm1560_vm9 = vcmp.eq.s32.totalorder %v9282_v14, 1  ;;  %v1863_v16 = vsel %vm1846_vm7, %v6643_v52, -inf  ;;  %v1874_v35 = vsel %vm1857_vm8, %v6643_v52, -inf  ;;  %vm3240_vm11 = vcmp.eq.s32.totalorder %v9283_v1, 1  ;;  %v9286_v14 = vld [vmem:[#allocation284_spill] sm:$0xff] }
 0x49a   : >> { %vm1757_vm6 = vcmp.eq.s32.totalorder %v1731_v34, 1  ;;  %v1890_v34 = vmax.f32 %v1793_v21, %v840_v10  ;;  %v1399_v0 = vmax.f32 %v1302_v60, %v6621_v38  ;;  %v1577_v8 = vsel %vm1560_vm9, %v6600_v57, -inf  ;;  %v9285_v10 = vld [vmem:[#allocation156_spill] sm:$0xff] }
 0x49b   : >> { %v6670_v53 = vsel %vm1757_vm6, %v6661_v41, -inf  ;;  %v1901_v42 = vpop.permute.xlu1 %1900  ;;  %v1782_v46 = vmax.f32 %v1685_v51, %v1669_v19  ;;  %vm822_vm12 = vcmp.eq.s32.totalorder %v9285_v10, 1  ;;  %vm817_vm13 = vcmp.eq.s32.totalorder %v9286_v14, 1 }
 0x49c   : >> { %v1987_v49 = vmax.f32 %v1890_v34, %v1680_v37  ;;  %v1496_v21 = vmax.f32 %v1399_v0, %v1383_v28  ;;  %v2121_v38 = vsel %vm2104_vm10, %v6260_v22, -inf  ;;  %vm1749_vm14 = vcmp.eq.s32.totalorder %v6583_v44, 1  ;;  %v9289_v28 = vld [vmem:[#allocation313_spill] sm:$0xff] }
 0x49d   : >> { %2555 = vperm.xlu1 %4392, %v5543_v32   ;;  %v1879_v50 = vmax.f32 %v1782_v46, %v1863_v16  ;;  %v3257_v19 = vsel %vm3240_vm11, %v6613_v17, -inf  ;;  %vm1657_vm1 = vcmp.eq.s32.totalorder %v9289_v28, 1  ;;  %vm1943_vm2 = vcmp.eq.s32.totalorder %v1901_v42, 1  ;;  %v9290_v16 = vld [vmem:[#allocation162_spill] sm:$0xff]  ;;  %v9292_v46 = vld [vmem:[#allocation321_spill] sm:$0xff]  ;;  %v4421_v28 = vld [vmem:[%s6122_s21] sm:$0xff] }
 0x49e   : >> { %2191 = vperm.xlu2 %4386, %v5182_v15   ;;  %v2148_v58 = vmax.f32 %v1987_v49, %v1874_v35  ;;  %v9287_v15 = vld [vmem:[#allocation160_spill] sm:$0xff]  ;;  %v1593_v1 = vmax.f32 %v1496_v21, %v1577_v8  ;;  %vm722_vm3 = vcmp.eq.s32.totalorder %v9290_v16, 1  ;;  %v834_v44 = vsel %vm817_vm13, %v6450_v29, -inf  ;;  %v9293_v49 = vld [vmem:[#allocation161_spill] sm:$0xff] }
 0x49f   : >> { %v6692_v5 = vpop.permute.xlu2 %2076  ;;  %vm825_vm0 = vcmp.eq.s32.totalorder %v9287_v15, 1  ;;  %v1976_v34 = vmax.f32 %v1879_v50, %v2121_v38  ;;  %v6714_v15 = vperm.slane %v6165_v6, 7  ;;  %v1766_v35 = vsel %vm1749_vm14, %v6661_v41, -inf  ;;  %v9291_v8 = vld [vmem:[#allocation52_spill] sm:$0xff] }
 0x4a0   : >> { %1002 = vperm.xlu0 %4415, %v9284_v63   ;;  %v839_v50 = vsel %vm822_vm12, %v6450_v29, -inf  ;;  %v6722_v42 = vsel %vm825_vm0, %v6450_v29, -inf  ;;  %vm1851_vm4 = vcmp.eq.s32.totalorder %v9292_v46, 1  ;;  %vm2211_vm5 = vcmp.eq.s32.totalorder %v9293_v49, 1 }
 0x4a1   : >> { %v1740_v60 = vpop.permute.xlu0 %1739  ;;  %v1674_v6 = vsel %vm1657_vm1, %v6635_v33, -inf  ;;  %v1960_v63 = vsel %vm1943_vm2, %v6714_v15, -inf  ;;  %v6732_v10 = vperm.slane %v6244_v30, 5  ;;  %v739_v14 = vsel %vm722_vm3, %v6369_v9, -inf }
 0x4a2   : >> { %vm1760_vm15 = vcmp.eq.s32.totalorder %v1740_v60, 1  ;;  %v2137_v60 = vmax.f32 %v1976_v34, %v1766_v35  ;;  %vm1754_vm6 = vcmp.eq.s32.totalorder %v6626_v11, 1  ;;  %v6740_v16 = vperm.slane %v4421_v28, 7  ;;  %v9298_v11 = vld [vmem:[#allocation198_spill] sm:$0xff]  ;;  %v9299_v34 = vld [vmem:[#allocation200_spill] sm:$0xff]  ;;  %v9303_v28 = vld [vmem:[#allocation207_spill] sm:$0xff] }
 0x4a3   : >> { %v1777_v37 = vsel %vm1760_vm15, %v6661_v41, -inf  ;;  %v6704_v51 = vpop.permute.xlu1 %1906  ;;  %9294 = vst [vmem:[#allocation107_spill] sm:$0xff] %v6732_v10  ;;  %v1868_v30 = vsel %vm1851_vm4, %v6643_v52, -inf  ;;  %vm2109_vm9 = vcmp.eq.s32.totalorder %v6692_v5, 1  ;;  %vm1102_vm11 = vcmp.eq.s32.totalorder %v9298_v11, 1  ;;  %v9304_v11 = vld [vmem:[#allocation45_spill] sm:$0xff] }
 0x4a4   : >> { %9288 = vst [vmem:[#allocation106_spill] sm:$0xff] %v6704_v51  ;;  %v6707_v0 = vmax.f32 %v2148_v58, %v1777_v37  ;;  %v1690_v58 = vmax.f32 %v1593_v1, %v3257_v19  ;;  %v9295_v1 = vld [vmem:[#allocation34_spill] sm:$0xff]  ;;  %v9296_v19 = vld [vmem:[#allocation191_spill] sm:$0xff]  ;;  %v9297_v37 = vld [vmem:[#allocation197_spill] sm:$0xff]  ;;  %v2234_v20 = vmax.f32 %v2137_v60, %v1960_v63  ;;  %vm916_vm12 = vcmp.eq.s32.totalorder %v9299_v34, 1 }
 0x4a5   : >> { %2564 = vperm.xlu1 %4392, %v9291_v8   ;;  %vm908_vm7 = vcmp.eq.s32.totalorder %v9296_v19, 1  ;;  %vm913_vm8 = vcmp.eq.s32.totalorder %v9297_v37, 1  ;;  %v9302_v49 = vmax.f32 %v6484_v45, %v6544_v25  ;;  %vm1110_vm14 = vcmp.eq.s32.totalorder %v9303_v28, 1  ;;  %v9314_v28 = vld [vmem:[#allocation242_spill] sm:$0xff] }
 0x4a6   : >> { %2197 = vperm.xlu2 %4386, %v5192_v13   ;;  %v1787_v38 = vmax.f32 %v1690_v58, %v834_v44  ;;  %v1771_v44 = vsel %vm1754_vm6, %v6661_v41, -inf  ;;  %v930_v63 = vsel %vm913_vm8, %v6508_v23, -inf }
 0x4a7   : >> { %v6729_v21 = vpop.permute.xlu2 %2082  ;;  %v949_v60 = vmax.f32 %v9302_v49, %v739_v14  ;;  %v1301_v34 = vmax.f32 %v6529_v47, %v930_v63  ;;  %v9308_v14 = vld [vmem:[#allocation204_spill] sm:$0xff]  ;;  %v9312_v63 = vld [vmem:[#allocation219_spill] sm:$0xff] }
 0x4a8   : >> { %1797 = vperm.xlu0 %4415, %v9295_v1   ;;  %v1884_v51 = vmax.f32 %v1787_v38, %v1674_v6  ;;  %v925_v1 = vsel %vm908_vm7, %v6508_v23, -inf  ;;  %v9300_v6 = vmax.f32 %v6493_v4, %v6496_v31  ;;  %v2126_v38 = vsel %vm2109_vm9, %v6260_v22, -inf }
 0x4a9   : >> { %v2547_v17 = vpop.permute.xlu0 %2546  ;;  %v933_v4 = vsel %vm916_vm12, %v6508_v23, -inf  ;;  %v1296_v37 = vmax.f32 %v6521_v18, %v925_v1  ;;  %vm1107_vm0 = vcmp.eq.s32.totalorder %v9308_v14, 1  ;;  %v9309_v18 = vld [vmem:[#allocation206_spill] sm:$0xff]  ;;  %vm3137_vm4 = vcmp.eq.s32.totalorder %v9312_v63, 1  ;;  %v9320_v63 = vld [vmem:[#allocation225_spill] sm:$0xff] }
 0x4aa   : >> { %vm2589_vm10 = vcmp.eq.s32.totalorder %v2547_v17, 1  ;;  %v1981_v19 = vmax.f32 %v1884_v51, %v1868_v30  ;;  %v952_v5 = vmax.f32 %v9300_v6, %v839_v50  ;;  %v2228_v17 = vsel %vm2211_vm5, %v6461_v12, -inf }
 0x4ab   : >> { %v2606_v35 = vsel %vm2589_vm10, %v6732_v10, -inf  ;;  %v1916_v58 = vpop.permute.xlu1 %1915  ;;  %v1119_v51 = vsel %vm1102_vm11, %v6740_v16, -inf  ;;  %v9301_v50 = vmov 2   ;;  %v1046_v25 = vmax.f32 %v949_v60, %v933_v4 }
 0x4ac   : >> { %v6751_v46 = vmax.f32 %v2234_v20, %v2606_v35  ;;  %vm1948_vm13 = vcmp.eq.s32.totalorder %v1916_v58, 1  ;;  %v1052_v20 = vmax.f32 %v6517_v24, %v6722_v42  ;;  %v2142_v31 = vmax.f32 %v1981_v19, %v1771_v44  ;;  %v9306_v44 = vld [vmem:[#allocation203_spill] sm:$0xff]  ;;  %v9307_v58 = vld [vmem:[#allocation37_spill] sm:$0xff] }
 0x4ad   : >> { %2573 = vperm.xlu1 %4392, %v5584_v36   ;;  %v1965_v30 = vsel %vm1948_vm13, %v6714_v15, -inf  ;;  %v1049_v42 = vmax.f32 %v952_v5, %v2228_v17  ;;  %vm919_vm15 = vcmp.eq.s32.totalorder %v9306_v44, 1  ;;  %v1393_v45 = vmax.f32 %v1296_v37, %v1119_v51  ;;  %v9311_v17 = vld [vmem:[#allocation210_spill] sm:$0xff]  ;;  %v9313_v37 = vld [vmem:[#allocation208_spill] sm:$0xff]  ;;  %v9315_v44 = vld [vmem:[#allocation113_spill] sm:$0xff] }
 0x4ae   : >> { %4387 = vset.pattern.permute.xlu2 %v9301_v50  ;;  %v2239_v35 = vmax.f32 %v2142_v31, %v2126_v38  ;;  %vm922_vm1 = vcmp.eq.s32.totalorder %v9309_v18, 1  ;;  %v1127_v19 = vsel %vm1110_vm14, %v6740_v16, -inf  ;;  %v6785_v6 = vperm.slane %v6320_v62, 2 }
 0x4af   : >> { %2252 = vperm.xlu2 %4387, %v9304_v11   ;;  %v6776_v24 = vpop.permute.xlu2 %2088  ;;  %v936_v47 = vsel %vm919_vm15, %v6508_v23, -inf  ;;  %vm1113_vm3 = vcmp.eq.s32.totalorder %v9311_v17, 1  ;;  %v1124_v4 = vsel %vm1107_vm0, %v6740_v16, -inf  ;;  %v939_v31 = vsel %vm922_vm1, %v6508_v23, -inf  ;;  %v9318_v17 = vld [vmem:[#allocation222_spill] sm:$0xff] }
 0x4b0   : >> { %9305 = vst [vmem:[#allocation110_spill] sm:$0xff] %v6776_v24  ;;  %1812 = vperm.xlu0 %4415, %v9307_v58   ;;  %v2336_v5 = vmax.f32 %v2239_v35, %v1965_v30  ;;  %v1143_v60 = vmax.f32 %v1046_v25, %v1127_v19  ;;  %vm2305_vm6 = vcmp.eq.s32.totalorder %v9313_v37, 1  ;;  %vm1263_vm7 = vcmp.eq.s32.totalorder %v9314_v28, 1 }
 0x4b1   : >> { %v2562_v1 = vpop.permute.xlu0 %2561  ;;  %9310 = vst [vmem:[#allocation13_spill] sm:$0xff] %v6785_v6  ;;  %v6799_v35 = vmax.f32 %v1049_v42, %v936_v47  ;;  %v6802_v58 = vsel %vm1113_vm3, %v6740_v16, -inf  ;;  %v3154_v14 = vsel %vm3137_vm4, %v6785_v6, -inf  ;;  %v9316_v18 = vmax.f32 %v6665_v3, %v6670_v53  ;;  %v9321_v3 = vld [vmem:[#allocation250_spill] sm:$0xff] }
 0x4b2   : >> { %vm2594_vm2 = vcmp.eq.s32.totalorder %v2562_v1, 1  ;;  %v1398_v25 = vmax.f32 %v1301_v34, %v1124_v4  ;;  %v6810_v19 = vmax.f32 %v1052_v20, %v939_v31  ;;  %vm3142_vm9 = vcmp.eq.s32.totalorder %v9318_v17, 1  ;;  %v9322_v53 = vld [vmem:[#allocation38_spill] sm:$0xff]  ;;  %v9323_v4 = vld [vmem:[#allocation248_spill] sm:$0xff] }
 0x4b3   : >> { %v2611_v38 = vsel %vm2594_vm2, %v6732_v10, -inf  ;;  %v1925_v51 = vpop.permute.xlu1 %1924  ;;  %v2322_v47 = vsel %vm2305_vm6, %v6566_v26, -inf  ;;  %vm3145_vm10 = vcmp.eq.s32.totalorder %v9320_v63, 1  ;;  %vm1457_vm11 = vcmp.eq.s32.totalorder %v9321_v3, 1  ;;  %v9332_v63 = vld [vmem:[#allocation39_spill] sm:$0xff] }
 0x4b4   : >> { %v6793_v49 = vmax.f32 %v2336_v5, %v2611_v38  ;;  %vm1951_vm5 = vcmp.eq.s32.totalorder %v1925_v51, 1  ;;  %v9317_v5 = vld [vmem:[#allocation213_spill] sm:$0xff]  ;;  %v1280_v38 = vsel %vm1263_vm7, %v6179_v59, -inf  ;;  %v1304_v20 = vmax.f32 %v1143_v60, %v2322_v47 }
 0x4b5   : >> { %v1968_v30 = vsel %vm1951_vm5, %v6714_v15, -inf  ;;  %2582 = vperm.xlu1 %4392, %v9315_v44   ;;  %vm1116_vm8 = vcmp.eq.s32.totalorder %v9317_v5, 1  ;;  %v1490_v51 = vmax.f32 %v1393_v45, %v3154_v14  ;;  %vm1268_vm12 = vcmp.eq.s32.totalorder %v9323_v4, 1  ;;  %v9325_v47 = vld [vmem:[#allocation289_spill] sm:$0xff] }
 0x4b6   : >> { %v6808_v1 = vmax.f32 %v9316_v18, %v1968_v30  ;;  %v6826_v37 = vsel %vm1116_vm8, %v6740_v16, -inf  ;;  %v3159_v28 = vsel %vm3142_vm9, %v6785_v6, -inf  ;;  %v9324_v30 = vld [vmem:[#allocation252_spill] sm:$0xff]  ;;  %v3162_v18 = vsel %vm3145_vm10, %v6785_v6, -inf }
 0x4b7   : >> { %2255 = vperm.xlu2 %4387, %v6099_v54   ;;  %v6815_v42 = vpop.permute.xlu2 %2097  ;;  %vm2394_vm13 = vcmp.eq.s32.totalorder %v9324_v30, 1  ;;  %v1587_v5 = vmax.f32 %v1490_v51, %v1280_v38  ;;  %v1474_v60 = vsel %vm1457_vm11, %v6534_v56, -inf  ;;  %v1285_v14 = vsel %vm1268_vm12, %v6179_v59, -inf  ;;  %v9328_v30 = vld [vmem:[#allocation293_spill] sm:$0xff] }
 0x4b8   : >> { %9319 = vst [vmem:[#allocation108_spill] sm:$0xff] %v6815_v42  ;;  %1821 = vperm.xlu0 %4415, %v9322_v53   ;;  %vm1554_vm15 = vcmp.eq.s32.totalorder %v9325_v47, 1  ;;  %v1495_v3 = vmax.f32 %v1398_v25, %v3159_v28  ;;  %v9326_v53 = vld [vmem:[#allocation251_spill] sm:$0xff]  ;;  %v2411_v4 = vsel %vm2394_vm13, %v6581_v40, -inf  ;;  %vm1651_vm3 = vcmp.eq.s32.totalorder %v9328_v30, 1  ;;  %v4422_v47 = vld [vmem:[%s6122_s21 + $0x10] sm:$0xff] }
 0x4b9   : >> { %v2571_v31 = vpop.permute.xlu0 %2570  ;;  %vm1271_vm1 = vcmp.eq.s32.totalorder %v9326_v53, 1  ;;  %v1684_v51 = vmax.f32 %v1587_v5, %v1474_v60  ;;  %v1401_v28 = vmax.f32 %v1304_v20, %v3162_v18  ;;  %v1571_v53 = vsel %vm1554_vm15, %v6600_v57, -inf  ;;  %v9333_v18 = vld [vmem:[#allocation259_spill] sm:$0xff]  ;;  %v9337_v25 = vld [vmem:[#allocation228_spill] sm:$0xff] }
 0x4ba   : >> { %vm2597_vm14 = vcmp.eq.s32.totalorder %v2571_v31, 1  ;;  %v9327_v31 = vld [vmem:[#allocation256_spill] sm:$0xff]  ;;  %v1288_v5 = vsel %vm1271_vm1, %v6179_v59, -inf  ;;  %vm1465_vm6 = vcmp.eq.s32.totalorder %v9333_v18, 1  ;;  %vm3148_vm10 = vcmp.eq.s32.totalorder %v9337_v25, 1 }
 0x4bb   : >> { %v6833_v17 = vsel %vm2597_vm14, %v6732_v10, -inf  ;;  %v1934_v45 = vpop.permute.xlu1 %1933  ;;  %vm1462_vm2 = vcmp.eq.s32.totalorder %v9327_v31, 1  ;;  %v1781_v60 = vmax.f32 %v1684_v51, %v2411_v4  ;;  %v9329_v31 = vld [vmem:[#allocation258_spill] sm:$0xff]  ;;  %v9338_v30 = vld [vmem:[#allocation216_spill] sm:$0xff]  ;;  %vm1845_vm12 = vcmp.eq.s32.totalorder %v6405_v61, 1 }
 0x4bc   : >> { %vm1954_vm0 = vcmp.eq.s32.totalorder %v1934_v45, 1  ;;  %v1592_v45 = vmax.f32 %v1495_v3, %v1285_v14  ;;  %vm2399_vm4 = vcmp.eq.s32.totalorder %v9329_v31, 1  ;;  %v1479_v20 = vsel %vm1462_vm2, %v6534_v56, -inf  ;;  %v9335_v31 = vld [vmem:[#allocation295_spill] sm:$0xff] }
 0x4bd   : >> { %v1971_v38 = vsel %vm1954_vm0, %v6714_v15, -inf  ;;  %4394 = vset.pattern.permute.xlu1 %v8927_v27  ;;  %v1668_v14 = vsel %vm1651_vm3, %v6635_v33, -inf  ;;  %v6865_v3 = vperm.slane %v4422_v47, 4  ;;  %v1878_v51 = vmax.f32 %v1781_v60, %v1571_v53 }
 0x4be   : >> { %v2342_v34 = vmax.f32 %v6707_v0, %v1971_v38  ;;  %2640 = vperm.xlu1 %4394, %v9304_v11   ;;  %v9330_v0 = vld [vmem:[#allocation297_spill] sm:$0xff]  ;;  %vm1559_vm7 = vcmp.eq.s32.totalorder %v9335_v31, 1  ;;  %vm2311_vm11 = vcmp.eq.s32.totalorder %v9338_v30, 1  ;;  %v1689_v11 = vmax.f32 %v1592_v45, %v1479_v20  ;;  %v9340_v20 = vld [vmem:[#allocation298_spill] sm:$0xff] }
 0x4bf   : >> { %2261 = vperm.xlu2 %4387, %v5138_v7   ;;  %vm1748_vm5 = vcmp.eq.s32.totalorder %v9330_v0, 1  ;;  %9334 = vst [vmem:[#allocation112_spill] sm:$0xff] %v6865_v3  ;;  %v9336_v0 = vld [vmem:[#allocation308_spill] sm:$0xff]  ;;  %v1975_v47 = vmax.f32 %v1878_v51, %v1668_v14  ;;  %v1498_v31 = vmax.f32 %v1401_v28, %v1288_v5  ;;  %vm1562_vm14 = vcmp.eq.s32.totalorder %v9340_v20, 1  ;;  %v9342_v28 = vld [vmem:[#allocation50_spill] sm:$0xff] }
 0x4c0   : >> { %v6856_v38 = vpop.permute.xlu2 %2152  ;;  %1830 = vperm.xlu0 %4415, %v9332_v63   ;;  %vm2491_vm8 = vcmp.eq.s32.totalorder %v9336_v0, 1  ;;  %v2416_v63 = vsel %vm2399_vm4, %v6581_v40, -inf  ;;  %v1765_v27 = vsel %vm1748_vm5, %v6661_v41, -inf  ;;  %v1576_v0 = vsel %vm1559_vm7, %v6600_v57, -inf  ;;  %v9356_v30 = vld [vmem:[#allocation114_spill] sm:$0xff] }
 0x4c1   : >> { %9331 = vst [vmem:[#allocation111_spill] sm:$0xff] %v6856_v38  ;;  %v2580_v4 = vpop.permute.xlu0 %2579  ;;  %v2508_v42 = vsel %vm2491_vm8, %v6865_v3, -inf  ;;  %v1786_v24 = vmax.f32 %v1689_v11, %v2416_v63  ;;  %v2136_v45 = vmax.f32 %v1975_v47, %v1765_v27  ;;  %v3165_v61 = vsel %vm3148_vm10, %v6785_v6, -inf  ;;  %v9344_v27 = vld [vmem:[#allocation303_spill] sm:$0xff]  ;;  %v9345_v63 = vld [vmem:[#allocation44_spill] sm:$0xff]  ;;  %v9346_v47 = vld [vmem:[#allocation262_spill] sm:$0xff] }
 0x4c2   : >> { %vm2600_vm9 = vcmp.eq.s32.totalorder %v2580_v4, 1  ;;  %v1482_v4 = vsel %vm1465_vm6, %v6534_v56, -inf  ;;  %v6894_v5 = vperm.slane %v6320_v62, 5  ;;  %vm1753_vm0 = vcmp.eq.s32.totalorder %v9344_v27, 1  ;;  %v9347_v62 = vld [vmem:[#allocation311_spill] sm:$0xff] }
 0x4c3   : >> { %v2617_v50 = vsel %vm2600_vm9, %v6732_v10, -inf  ;;  %v9339_v10 = vld [vmem:[#allocation296_spill] sm:$0xff]  ;;  %v1595_v11 = vmax.f32 %v1498_v31, %v1482_v4  ;;  %v1883_v18 = vmax.f32 %v1786_v24, %v1576_v0  ;;  %v2233_v14 = vmax.f32 %v2136_v45, %v2508_v42  ;;  %v9348_v42 = vld [vmem:[#allocation299_spill] sm:$0xff] }
 0x4c4   : >> { %v6875_v53 = vmax.f32 %v2342_v34, %v2617_v50  ;;  %v6877_v60 = vpop.permute.xlu1 %2091  ;;  %vm1656_vm13 = vcmp.eq.s32.totalorder %v9339_v10, 1  ;;  %v9341_v50 = vld [vmem:[#allocation254_spill] sm:$0xff]  ;;  %v1862_v34 = vsel %vm1845_vm12, %v6643_v52, -inf  ;;  %9343 = vst [vmem:[#allocation115_spill] sm:$0xff] %v6894_v5  ;;  %vm1468_vm1 = vcmp.eq.s32.totalorder %v9346_v47, 1  ;;  %v9353_v47 = vld [vmem:[#allocation231_spill] sm:$0xff] }
 0x4c5   : >> { %vm1274_vm15 = vcmp.eq.s32.totalorder %v9341_v50, 1  ;;  %v1673_v25 = vsel %vm1656_vm13, %v6635_v33, -inf  ;;  %v1579_v20 = vsel %vm1562_vm14, %v6600_v57, -inf  ;;  %vm2496_vm3 = vcmp.eq.s32.totalorder %v9347_v62, 1  ;;  %v9358_v0 = vld [vmem:[#allocation128_spill] sm:$0xff] }
 0x4c6   : >> { %2646 = vperm.xlu1 %4394, %v5530_v39   ;;  %v2330_v31 = vmax.f32 %v2233_v14, %v1862_v34  ;;  %vm1659_vm5 = vcmp.eq.s32.totalorder %v9348_v42, 1  ;;  %v1770_v4 = vsel %vm1753_vm0, %v6661_v41, -inf  ;;  %v1291_v45 = vsel %vm1274_vm15, %v6179_v59, -inf }
 0x4c7   : >> { %2267 = vperm.xlu2 %4387, %v9342_v28   ;;  %v1980_v27 = vmax.f32 %v1883_v18, %v1673_v25  ;;  %vm1850_vm6 = vcmp.eq.s32.totalorder %v6500_v48, 1  ;;  %v2513_v62 = vsel %vm2496_vm3, %v6865_v3, -inf  ;;  %v1485_v50 = vsel %vm1468_vm1, %v6534_v56, -inf  ;;  %v9351_v25 = vld [vmem:[#allocation306_spill] sm:$0xff] }
 0x4c8   : >> { %v2159_v51 = vpop.permute.xlu2 %2158  ;;  %1839 = vperm.xlu0 %4415, %v9345_v63   ;;  %v1692_v63 = vmax.f32 %v1595_v11, %v1579_v20  ;;  %v1676_v18 = vsel %vm1659_vm5, %v6635_v33, -inf  ;;  %vm1756_vm8 = vcmp.eq.s32.totalorder %v9351_v25, 1  ;;  %v1867_v11 = vsel %vm1850_vm6, %v6643_v52, -inf }
 0x4c9   : >> { %vm2201_vm2 = vcmp.eq.s32.totalorder %v2159_v51, 1  ;;  %v3384_v38 = vpop.permute.xlu0 %3383  ;;  %v9350_v51 = vld [vmem:[#allocation266_spill] sm:$0xff]  ;;  %v2141_v48 = vmax.f32 %v1980_v27, %v1770_v4  ;;  %vm3151_vm10 = vcmp.eq.s32.totalorder %v9353_v47, 1  ;;  %vm621_vm14 = vcmp.eq.s32.totalorder %v9358_v0, 1 }
 0x4ca   : >> { %v6905_v24 = vsel %vm2201_vm2, %v6461_v12, -inf  ;;  %vm3428_vm4 = vcmp.eq.s32.totalorder %v3384_v38, 1  ;;  %v9349_v38 = vmax.f32 %v6799_v35, %v6802_v58  ;;  %vm2405_vm7 = vcmp.eq.s32.totalorder %v9350_v51, 1  ;;  %v9354_v4 = vld [vmem:[#allocation314_spill] sm:$0xff] }
 0x4cb   : >> { %v3445_v10 = vsel %vm3428_vm4, %v6894_v5, -inf  ;;  %v2328_v35 = vsel %vm2311_vm11, %v6566_v26, -inf  ;;  %v2422_v20 = vsel %vm2405_vm7, %v6581_v40, -inf  ;;  %vm2499_vm12 = vcmp.eq.s32.totalorder %v9354_v4, 1 }
 0x4cc   : >> { %v6916_v34 = vmax.f32 %v2330_v31, %v3445_v10  ;;  %v1404_v14 = vmax.f32 %v9349_v38, %v3165_v61  ;;  %v9352_v61 = vld [vmem:[#allocation301_spill] sm:$0xff]  ;;  %v2238_v31 = vmax.f32 %v2141_v48, %v2513_v62  ;;  %vm713_vm11 = vcmp.eq.s32.totalorder %v9356_v30, 1 }
 0x4cd   : >> { %v6923_v42 = vpop.permute.xlu1 %2391  ;;  %vm1565_vm9 = vcmp.eq.s32.totalorder %v9352_v61, 1  ;;  %v1789_v38 = vmax.f32 %v1692_v63, %v1676_v18  ;;  %vm1853_vm15 = vcmp.eq.s32.totalorder %v6549_v2, 1  ;;  %v2516_v63 = vsel %vm2499_vm12, %v6865_v3, -inf }
 0x4ce   : >> { %2655 = vperm.xlu1 %4394, %v9342_v28   ;;  %v1501_v58 = vmax.f32 %v1404_v14, %v1291_v45  ;;  %v9357_v45 = vld [vmem:[#allocation257_spill] sm:$0xff]  ;;  %v1773_v14 = vsel %vm1756_vm8, %v6661_v41, -inf  ;;  %v1582_v62 = vsel %vm1565_vm9, %v6600_v57, -inf  ;;  %v2335_v48 = vmax.f32 %v2238_v31, %v1867_v11 }
 0x4cf   : >> { %2273 = vperm.xlu2 %4387, %v9291_v8   ;;  %vm1277_vm13 = vcmp.eq.s32.totalorder %v9357_v45, 1  ;;  %v3168_v25 = vsel %vm3151_vm10, %v6785_v6, -inf  ;;  %vm2111_vm3 = vcmp.eq.s32.totalorder %v6729_v21, 1  ;;  %v9361_v61 = vmax.f32 %v6810_v19, %v6826_v37  ;;  %v9364_v19 = vld [vmem:[#allocation304_spill] sm:$0xff] }
 0x4d0   : >> { %v6940_v10 = vpop.permute.xlu2 %2161  ;;  %2637 = vperm.xlu0 %4415, %v5517_v43   ;;  %v1598_v27 = vmax.f32 %v1501_v58, %v1485_v50  ;;  %v9360_v50 = vld [vmem:[#allocation302_spill] sm:$0xff]  ;;  %v1886_v58 = vmax.f32 %v1789_v38, %v1773_v14  ;;  %v1870_v4 = vsel %vm1853_vm15, %v6643_v52, -inf  ;;  %v9363_v38 = vld [vmem:[#allocation309_spill] sm:$0xff]  ;;  %vm1568_vm6 = vcmp.eq.s32.totalorder %v9364_v19, 1  ;;  %v9366_v45 = vld [vmem:[#allocation316_spill] sm:$0xff] }
 0x4d1   : >> { %9355 = vst [vmem:[#allocation116_spill] sm:$0xff] %v6940_v10  ;;  %v3399_v51 = vpop.permute.xlu0 %3398  ;;  %v9359_v10 = vld [vmem:[#allocation130_spill] sm:$0xff]  ;;  %vm1662_vm2 = vcmp.eq.s32.totalorder %v9360_v50, 1  ;;  %v1407_v11 = vmax.f32 %v9361_v61, %v2328_v35  ;;  %vm1759_vm5 = vcmp.eq.s32.totalorder %v9363_v38, 1  ;;  %v2128_v37 = vsel %vm2111_vm3, %v6260_v22, -inf  ;;  %v9372_v19 = vld [vmem:[#allocation64_spill] sm:$0xff] }
 0x4d2   : >> { %vm3433_vm0 = vcmp.eq.s32.totalorder %v3399_v51, 1  ;;  %vm721_vm1 = vcmp.eq.s32.totalorder %v9359_v10, 1  ;;  %v1695_v28 = vmax.f32 %v1598_v27, %v2422_v20  ;;  %v9362_v20 = vld [vmem:[#allocation264_spill] sm:$0xff]  ;;  %v1294_v27 = vsel %vm1277_vm13, %v6179_v59, -inf  ;;  %v9383_v10 = vld [vmem:[#allocation25_spill] sm:$0xff]  ;;  %v9384_v38 = vld [vmem:[#allocation71_spill] sm:$0xff] }
 0x4d3   : >> { %v3450_v18 = vsel %vm3433_vm0, %v6894_v5, -inf  ;;  %vm1471_vm4 = vcmp.eq.s32.totalorder %v9362_v20, 1  ;;  %v1679_v47 = vsel %vm1662_vm2, %v6635_v33, -inf  ;;  %v1983_v21 = vmax.f32 %v1886_v58, %v2516_v63 }
 0x4d4   : >> { %v6963_v2 = vmax.f32 %v2335_v48, %v3450_v18  ;;  %v1792_v31 = vmax.f32 %v1695_v28, %v1582_v62  ;;  %v1504_v51 = vmax.f32 %v1407_v11, %v3168_v25  ;;  %v9365_v28 = vld [vmem:[#allocation55_spill] sm:$0xff]  ;;  %v1488_v35 = vsel %vm1471_vm4, %v6534_v56, -inf }
 0x4d5   : >> { %vm2502_vm8 = vcmp.eq.s32.totalorder %v9366_v45, 1  ;;  %v2144_v62 = vmax.f32 %v1983_v21, %v1870_v4  ;;  %v1776_v25 = vsel %vm1759_vm5, %v6661_v41, -inf  ;;  %v9368_v58 = vmax.f32 %v6751_v46, %v6905_v24  ;;  %v9369_v4 = vld [vmem:[#allocation15_spill] sm:$0xff] }
 0x4d6   : >> { %2664 = vperm.xlu1 %4394, %v5569_v55   ;;  %v2450_v14 = vpop.permute.xlu1 %2449  ;;  %v1601_v63 = vmax.f32 %v1504_v51, %v1294_v27  ;;  %v1889_v18 = vmax.f32 %v1792_v31, %v1679_v47  ;;  %v1585_v20 = vsel %vm1568_vm6, %v6600_v57, -inf  ;;  %vm1856_vm9 = vcmp.eq.s32.totalorder %v9369_v4, 1  ;;  %v9370_v27 = vld [vmem:[#allocation305_spill] sm:$0xff]  ;;  %v9371_v51 = vld [vmem:[#allocation78_spill] sm:$0xff] }
 0x4d7   : >> { %vm2492_vm7 = vcmp.eq.s32.totalorder %v2450_v14, 1  ;;  %2279 = vperm.xlu2 %4387, %v9365_v28   ;;  %v6995_v21 = vmax.f32 %v2144_v62, %v2128_v37  ;;  %vm1665_vm12 = vcmp.eq.s32.totalorder %v9370_v27, 1  ;;  %v2519_v31 = vsel %vm2502_vm8, %v6865_v3, -inf  ;;  %v9378_v4 = vld [vmem:[#allocation73_spill] sm:$0xff]  ;;  %v9379_v27 = vld [vmem:[#allocation76_spill] sm:$0xff] }
 0x4d8   : >> { %v2509_v48 = vsel %vm2492_vm7, %v6865_v3, -inf  ;;  %v6982_v50 = vpop.permute.xlu2 %2167  ;;  %2652 = vperm.xlu0 %4415, %v5543_v32   ;;  %v1698_v14 = vmax.f32 %v1601_v63, %v1488_v35  ;;  %v730_v46 = vsel %vm713_vm11, %v6369_v9, -inf  ;;  %v1986_v24 = vmax.f32 %v1889_v18, %v1776_v25  ;;  %v9373_v35 = vld [vmem:[#allocation40_spill] sm:$0xff]  ;;  %v9375_v25 = vld [vmem:[#allocation109_spill] sm:$0xff] }
 0x4d9   : >> { %9367 = vst [vmem:[#allocation118_spill] sm:$0xff] %v6982_v50  ;;  %v6991_v61 = vmax.f32 %v9368_v58, %v2509_v48  ;;  %v3408_v11 = vpop.permute.xlu0 %3407  ;;  %vm2114_vm13 = vcmp.eq.s32.totalorder %v6877_v60, 1  ;;  %v654_v37 = vmax.f32 %v9372_v19, %v9371_v51  ;;  %v638_v45 = vsel %vm621_vm14, %v9373_v35, -inf  ;;  %v9374_v60 = vld [vmem:[#allocation312_spill] sm:$0xff] }
 0x4da   : >> { %vm3436_vm10 = vcmp.eq.s32.totalorder %v3408_v11, 1  ;;  %v1795_v62 = vmax.f32 %v1698_v14, %v1585_v20  ;;  %v1873_v48 = vsel %vm1856_vm9, %v6643_v52, -inf  ;;  %v738_v30 = vsel %vm721_vm1, %v6369_v9, -inf  ;;  %v9377_v11 = vld [vmem:[#allocation85_spill] sm:$0xff]  ;;  %v9380_v20 = vld [vmem:[#allocation18_spill] sm:$0xff]  ;;  %v9381_v14 = vld [vmem:[#allocation16_spill] sm:$0xff] }
 0x4db   : >> { %v7002_v47 = vsel %vm3436_vm10, %v6894_v5, -inf  ;;  %v1682_v63 = vsel %vm1665_vm12, %v6635_v33, -inf  ;;  %vm1762_vm11 = vcmp.eq.s32.totalorder %v9374_v60, 1  ;;  %v2147_v18 = vmax.f32 %v1986_v24, %v2519_v31 }
 0x4dc   : >> { %v660_v0 = vmax.f32 %v9378_v4, %v9377_v11  ;;  %v9382_v51 = vmax.f32 %v9380_v20, %v9381_v14  ;;  %v9385_v6 = vmax.f32 %v9383_v10, %v9384_v38  ;;  %v2131_v31 = vsel %vm2114_vm13, %v6260_v22, -inf  ;;  %v9387_v11 = vld [vmem:[#allocation320_spill] sm:$0xff]  ;;  %v9389_v20 = vld [vmem:[#allocation79_spill] sm:$0xff]  ;;  %v9393_v10 = vld [vmem:[#allocation154_spill] sm:$0xff] }
 0x4dd   : >> { %v7039_v24 = vmax.f32 %v654_v37, %v638_v45  ;;  %vm2505_vm15 = vcmp.eq.s32.totalorder %v9387_v11, 1  ;;  %v2244_v4 = vmax.f32 %v2147_v18, %v1873_v48  ;;  %v9391_v45 = vld [vmem:[#allocation103_spill] sm:$0xff]  ;;  %vm2408_vm4 = vcmp.eq.s32.totalorder %v6923_v42, 1  ;;  %v9397_v42 = vld [vmem:[#allocation168_spill] sm:$0xff] }
 0x4de   : >> { %2673 = vperm.xlu1 %4394, %v9375_v25   ;;  %v7022_v58 = vpop.permute.xlu1 %2455  ;;  %v7030_v19 = vmax.f32 %v9382_v51, %v9379_v27  ;;  %v7035_v59 = vmax.f32 %v9385_v6, %v730_v46  ;;  %v9388_v27 = vld [vmem:[#allocation22_spill] sm:$0xff]  ;;  %v1892_v6 = vmax.f32 %v1795_v62, %v1682_v63  ;;  %v1779_v46 = vsel %vm1762_vm11, %v6661_v41, -inf  ;;  %v9392_v63 = vld [vmem:[#allocation153_spill] sm:$0xff]  ;;  %v7065_v11 = vld [vmem:[%s6122_s21 + $0x18] sm:$0xff] }
 0x4df   : >> { %9376 = vst [vmem:[#allocation119_spill] sm:$0xff] %v7022_v58  ;;  %2285 = vperm.xlu2 %4387, %v9375_v25   ;;  %v9386_v58 = vld [vmem:[#allocation139_spill] sm:$0xff]  ;;  %v9390_v14 = vmax.f32 %v9388_v27, %v9389_v20  ;;  %vm1859_vm1 = vcmp.eq.s32.totalorder %v9391_v45, 1  ;;  %v2522_v51 = vsel %vm2505_vm15, %v6865_v3, -inf  ;;  %vm2207_vm3 = vcmp.eq.s32.totalorder %v9392_v63, 1  ;;  %v9396_v20 = vld [vmem:[#allocation165_spill] sm:$0xff] }
 0x4e0   : >> { %vm627_vm14 = vcmp.eq.s32.totalorder %v9386_v58, 1  ;;  %v2174_v50 = vpop.permute.xlu2 %2173  ;;  %2661 = vperm.xlu0 %4415, %v9291_v8   ;;  %v2341_v58 = vmax.f32 %v2244_v4, %v2131_v31  ;;  %v1989_v60 = vmax.f32 %v1892_v6, %v1779_v46  ;;  %vm718_vm5 = vcmp.eq.s32.totalorder %v9393_v10, 1  ;;  %v9394_v31 = vld [vmem:[#allocation164_spill] sm:$0xff] }
 0x4e1   : >> { %v7047_v38 = vmax.f32 %v9390_v14, %v738_v30  ;;  %vm2206_vm0 = vcmp.eq.s32.totalorder %v2174_v50, 1  ;;  %v3417_v37 = vpop.permute.xlu0 %3416  ;;  %v644_v18 = vsel %vm627_vm14, %v9373_v35, -inf  ;;  %vm2213_vm6 = vcmp.eq.s32.totalorder %v9394_v31, 1  ;;  %v9414_v25 = vld [vmem:[#allocation12_spill] sm:$0xff] }
 0x4e2   : >> { %v2223_v48 = vsel %vm2206_vm0, %v6461_v12, -inf  ;;  %vm3439_vm2 = vcmp.eq.s32.totalorder %v3417_v37, 1  ;;  %v7068_v4 = vperm.slane %v7065_v11, 1  ;;  %v7073_v27 = vmax.f32 %v660_v0, %v644_v18  ;;  %v9398_v37 = vld [vmem:[#allocation169_spill] sm:$0xff] }
 0x4e3   : >> { %v2530_v30 = vmax.f32 %v6793_v49, %v2223_v48  ;;  %v3456_v62 = vsel %vm3439_vm2, %v6894_v5, -inf  ;;  %v1876_v49 = vsel %vm1859_vm1, %v6643_v52, -inf  ;;  %vm724_vm7 = vcmp.eq.s32.totalorder %v9396_v20, 1 }
 0x4e4   : >> { %v7060_v50 = vmax.f32 %v2341_v58, %v3456_v62  ;;  %9395 = vst [vmem:[#allocation120_spill] sm:$0xff] %v7068_v4  ;;  %vm3039_vm8 = vcmp.eq.s32.totalorder %v9397_v42, 1  ;;  %v2150_v14 = vmax.f32 %v1989_v60, %v2522_v51  ;;  %v2224_v46 = vsel %vm2207_vm3, %v6461_v12, -inf }
 0x4e5   : >> { %vm727_vm9 = vcmp.eq.s32.totalorder %v9398_v37, 1  ;;  %v2425_v58 = vsel %vm2408_vm4, %v6581_v40, -inf  ;;  %v735_v0 = vsel %vm718_vm5, %v6369_v9, -inf  ;;  %v2230_v45 = vsel %vm2213_vm6, %v6461_v12, -inf  ;;  %v9401_v37 = vld [vmem:[#allocation171_spill] sm:$0xff] }
 0x4e6   : >> { %2682 = vperm.xlu1 %4394, %v5192_v13   ;;  %v2465_v6 = vpop.permute.xlu1 %2464  ;;  %v2247_v48 = vmax.f32 %v2150_v14, %v1876_v49  ;;  %v741_v62 = vsel %vm724_vm7, %v6369_v9, -inf  ;;  %v3056_v63 = vsel %vm3039_vm8, %v7068_v4, -inf  ;;  %v744_v31 = vsel %vm727_vm9, %v6369_v9, -inf }
 0x4e7   : >> { %vm2497_vm10 = vcmp.eq.s32.totalorder %v2465_v6, 1  ;;  %2291 = vperm.xlu2 %4387, %v9315_v44   ;;  %v9400_v6 = vld [vmem:[#allocation170_spill] sm:$0xff]  ;;  %vm810_vm14 = vcmp.eq.s32.totalorder %v9401_v37, 1  ;;  %v9402_v20 = vmax.f32 %v6995_v21, %v7002_v47  ;;  %v857_v42 = vmax.f32 %v7030_v19, %v2230_v45  ;;  %v9405_v45 = vld [vmem:[#allocation176_spill] sm:$0xff] }
 0x4e8   : >> { %v2514_v18 = vsel %vm2497_vm10, %v6865_v3, -inf  ;;  %v2180_v51 = vpop.permute.xlu2 %2179  ;;  %2670 = vperm.xlu0 %4415, %v5584_v36   ;;  %v2344_v49 = vmax.f32 %v2247_v48, %v2425_v58  ;;  %vm3044_vm11 = vcmp.eq.s32.totalorder %v9400_v6, 1  ;;  %v1045_v48 = vmax.f32 %v7047_v38, %v2224_v46  ;;  %v9410_v46 = vld [vmem:[#allocation180_spill] sm:$0xff] }
 0x4e9   : >> { %v7096_v60 = vmax.f32 %v2530_v30, %v2514_v18  ;;  %vm2208_vm12 = vcmp.eq.s32.totalorder %v2180_v51, 1  ;;  %v3426_v10 = vpop.permute.xlu0 %3425  ;;  %v9403_v18 = vld [vmem:[#allocation172_spill] sm:$0xff]  ;;  %v9404_v51 = vld [vmem:[#allocation175_spill] sm:$0xff]  ;;  %v854_v6 = vmax.f32 %v7073_v27, %v741_v62  ;;  %v940_v21 = vmax.f32 %v7035_v59, %v3056_v63 }
 0x4ea   : >> { %v2225_v14 = vsel %vm2208_vm12, %v6461_v12, -inf  ;;  %vm3442_vm13 = vcmp.eq.s32.totalorder %v3426_v10, 1  ;;  %vm3047_vm15 = vcmp.eq.s32.totalorder %v9403_v18, 1  ;;  %vm3050_vm0 = vcmp.eq.s32.totalorder %v9404_v51, 1  ;;  %v9409_v27 = vld [vmem:[#allocation179_spill] sm:$0xff] }
 0x4eb   : >> { %9399 = vst [vmem:[#allocation123_spill] sm:$0xff] %v7096_v60  ;;  %v7105_v13 = vmax.f32 %v9402_v20, %v2225_v14  ;;  %v3459_v30 = vsel %vm3442_vm13, %v6894_v5, -inf  ;;  %v848_v10 = vmax.f32 %v7039_v24, %v735_v0  ;;  %v7117_v47 = vmax.f32 %v857_v42, %v744_v31  ;;  %v9407_v24 = vld [vmem:[#allocation178_spill] sm:$0xff]  ;;  %v9411_v0 = vld [vmem:[#allocation183_spill] sm:$0xff]  ;;  %v9412_v42 = vld [vmem:[#allocation185_spill] sm:$0xff] }
 0x4ec   : >> { %v7111_v58 = vmax.f32 %v2344_v49, %v3459_v30  ;;  %v3061_v14 = vsel %vm3044_vm11, %v7068_v4, -inf  ;;  %v827_v19 = vsel %vm810_vm14, %v6450_v29, -inf  ;;  %vm815_vm1 = vcmp.eq.s32.totalorder %v9405_v45, 1  ;;  %v9416_v45 = vld [vmem:[#allocation189_spill] sm:$0xff] }
 0x4ed   : >> { %v9406_v37 = vmov 7   ;;  %v3064_v20 = vsel %vm3047_vm15, %v7068_v4, -inf  ;;  %v3067_v38 = vsel %vm3050_vm0, %v7068_v4, -inf  ;;  %vm1004_vm2 = vcmp.eq.s32.totalorder %v9407_v24, 1 }
 0x4ee   : >> { %4397 = vset.pattern.permute.xlu1 %v9406_v37  ;;  %v2474_v49 = vpop.permute.xlu1 %2473  ;;  %v9408_v59 = vmov 3   ;;  %vm3053_vm4 = vcmp.eq.s32.totalorder %v9409_v27, 1  ;;  %vm818_vm5 = vcmp.eq.s32.totalorder %v9410_v46, 1  ;;  %vm821_vm6 = vcmp.eq.s32.totalorder %v9411_v0, 1  ;;  %v9418_v46 = vld [vmem:[#allocation195_spill] sm:$0xff] }
 0x4ef   : >> { %vm2500_vm3 = vcmp.eq.s32.totalorder %v2474_v49, 1  ;;  %2740 = vperm.xlu1 %4397, %v6099_v54   ;;  %4388 = vset.pattern.permute.xlu2 %v9408_v59  ;;  %v945_v31 = vmax.f32 %v848_v10, %v3061_v14  ;;  %v832_v30 = vsel %vm815_vm1, %v6450_v29, -inf  ;;  %vm1009_vm7 = vcmp.eq.s32.totalorder %v9412_v42, 1 }
 0x4f0   : >> { %v2517_v62 = vsel %vm2500_vm3, %v6865_v3, -inf  ;;  %2346 = vperm.xlu2 %4388, %v5517_v43   ;;  %v7133_v63 = vpop.permute.xlu2 %2185  ;;  %2679 = vperm.xlu0 %4415, %v9315_v44   ;;  %v9413_v18 = vmax.f32 %v6808_v1, %v6833_v17  ;;  %v1037_v49 = vmax.f32 %v940_v21, %v827_v19  ;;  %v1142_v5 = vmax.f32 %v1045_v48, %v3064_v20  ;;  %v9417_v20 = vld [vmem:[#allocation192_spill] sm:$0xff] }
 0x4f1   : >> { %v951_v59 = vmax.f32 %v854_v6, %v3067_v38  ;;  %v1021_v60 = vsel %vm1004_vm2, %v9414_v25, -inf  ;;  %v3070_v10 = vsel %vm3053_vm4, %v7068_v4, -inf  ;;  %v835_v14 = vsel %vm818_vm5, %v6450_v29, -inf  ;;  %v9415_v6 = vld [vmem:[#allocation187_spill] sm:$0xff] }
 0x4f2   : >> { %v7143_v51 = vmax.f32 %v9413_v18, %v2517_v62  ;;  %v961_v9 = vpop.permute.xlu0 %960  ;;  %v838_v1 = vsel %vm821_vm6, %v6450_v29, -inf  ;;  %v1042_v17 = vmax.f32 %v945_v31, %v832_v30  ;;  %v1026_v48 = vsel %vm1009_vm7, %v9414_v25, -inf  ;;  %v9419_v30 = vld [vmem:[#allocation196_spill] sm:$0xff]  ;;  %v9420_v18 = vld [vmem:[#allocation202_spill] sm:$0xff] }
 0x4f3   : >> { %vm1005_vm8 = vcmp.eq.s32.totalorder %v961_v9, 1  ;;  %vm824_vm9 = vcmp.eq.s32.totalorder %v9415_v6, 1  ;;  %v1134_v19 = vmax.f32 %v1037_v49, %v1021_v60  ;;  %vm1012_vm10 = vcmp.eq.s32.totalorder %v9416_v45, 1 }
 0x4f4   : >> { %v7160_v21 = vsel %vm1005_vm8, %v9414_v25, -inf  ;;  %vm1015_vm12 = vcmp.eq.s32.totalorder %v9417_v20, 1  ;;  %v1051_v24 = vmax.f32 %v7117_v47, %v3070_v10  ;;  %v1303_v27 = vmax.f32 %v1142_v5, %v835_v14  ;;  %v9422_v10 = vld [vmem:[#allocation224_spill] sm:$0xff] }
 0x4f5   : >> { %v1048_v9 = vmax.f32 %v951_v59, %v838_v1  ;;  %vm1018_vm13 = vcmp.eq.s32.totalorder %v9418_v46, 1  ;;  %v1139_v62 = vmax.f32 %v1042_v17, %v1026_v48  ;;  %v841_v31 = vsel %vm824_vm9, %v6450_v29, -inf  ;;  %v9421_v59 = vld [vmem:[#allocation62_spill] sm:$0xff]  ;;  %v9423_v17 = vld [vmem:[#allocation211_spill] sm:$0xff]  ;;  %v9425_v46 = vld [vmem:[#allocation232_spill] sm:$0xff] }
 0x4f6   : >> { %v2483_v0 = vpop.permute.xlu1 %2482  ;;  %vm2296_vm11 = vcmp.eq.s32.totalorder %v9419_v30, 1  ;;  %v1029_v60 = vsel %vm1012_vm10, %v9414_v25, -inf  ;;  %v1032_v42 = vsel %vm1015_vm12, %v9414_v25, -inf  ;;  %vm2301_vm15 = vcmp.eq.s32.totalorder %v9420_v18, 1  ;;  %v9424_v48 = vld [vmem:[#allocation230_spill] sm:$0xff]  ;;  %v9428_v18 = vld [vmem:[#allocation236_spill] sm:$0xff] }
 0x4f7   : >> { %vm2503_vm14 = vcmp.eq.s32.totalorder %v2483_v0, 1  ;;  %2746 = vperm.xlu1 %4397, %v5138_v7   ;;  %v7178_v49 = vsel %vm1018_vm13, %v9414_v25, -inf  ;;  %vm1101_vm0 = vcmp.eq.s32.totalorder %v9422_v10, 1  ;;  %v2313_v1 = vsel %vm2296_vm11, %v6566_v26, -inf }
 0x4f8   : >> { %v2520_v5 = vsel %vm2503_vm14, %v6865_v3, -inf  ;;  %2352 = vperm.xlu2 %4388, %v6099_v54   ;;  %v2192_v47 = vpop.permute.xlu2 %2191  ;;  %3483 = vperm.xlu0 %4415, %v9421_v59   ;;  %vm2307_vm2 = vcmp.eq.s32.totalorder %v9423_v17, 1  ;;  %vm1106_vm3 = vcmp.eq.s32.totalorder %v9424_v48, 1  ;;  %v2318_v20 = vsel %vm2301_vm15, %v6566_v26, -inf  ;;  %v9430_v3 = vld [vmem:[#allocation159_spill] sm:$0xff] }
 0x4f9   : >> { %v2536_v14 = vmax.f32 %v6875_v53, %v2520_v5  ;;  %vm2212_vm1 = vcmp.eq.s32.totalorder %v2192_v47, 1  ;;  %vm1359_vm4 = vcmp.eq.s32.totalorder %v9425_v46, 1  ;;  %v1118_v30 = vsel %vm1101_vm0, %v6740_v16, -inf  ;;  %v9427_v53 = vld [vmem:[#allocation233_spill] sm:$0xff]  ;;  %v9429_v46 = vld [vmem:[#allocation88_spill] sm:$0xff] }
 0x4fa   : >> { %v2229_v6 = vsel %vm2212_vm1, %v6461_v12, -inf  ;;  %v976_v45 = vpop.permute.xlu0 %975  ;;  %vm1109_vm6 = vcmp.eq.s32.totalorder %v9427_v53, 1  ;;  %vm1112_vm7 = vcmp.eq.s32.totalorder %v9428_v18, 1  ;;  %v1295_v47 = vmax.f32 %v1134_v19, %v2313_v1 }
 0x4fb   : >> { %v7188_v0 = vmax.f32 %v2536_v14, %v2229_v6  ;;  %vm1010_vm5 = vcmp.eq.s32.totalorder %v976_v45, 1  ;;  %v2324_v10 = vsel %vm2307_vm2, %v6566_v26, -inf  ;;  %v1123_v17 = vsel %vm1106_vm3, %v6740_v16, -inf }
 0x4fc   : >> { %v7194_v5 = vsel %vm1010_vm5, %v9414_v25, -inf  ;;  %v1148_v14 = vmax.f32 %v1051_v24, %v841_v31  ;;  %v1145_v6 = vmax.f32 %v1048_v9, %v1032_v42  ;;  %v1300_v45 = vmax.f32 %v1139_v62, %v2318_v20  ;;  %v9431_v24 = vld [vmem:[#allocation237_spill] sm:$0xff]  ;;  %v9433_v31 = vld [vmem:[#allocation238_spill] sm:$0xff] }
 0x4fd   : >> { %9426 = vst [vmem:[#allocation126_spill] sm:$0xff] %v7188_v0  ;;  %v1376_v38 = vsel %vm1359_vm4, %v9429_v46, -inf  ;;  %v1400_v4 = vmax.f32 %v1303_v27, %v1029_v60  ;;  %v1392_v53 = vmax.f32 %v1295_v47, %v1118_v30  ;;  %v1126_v18 = vsel %vm1109_vm6, %v6740_v16, -inf  ;;  %v9432_v27 = vld [vmem:[#allocation66_spill] sm:$0xff]  ;;  %v9434_v60 = vld [vmem:[#allocation239_spill] sm:$0xff] }
 0x4fe   : >> { %v1129_v54 = vsel %vm1112_vm7, %v6740_v16, -inf  ;;  %v1309_v1 = vmax.f32 %v1148_v14, %v7178_v49  ;;  %v1306_v0 = vmax.f32 %v1145_v6, %v2324_v10  ;;  %v7207_v59 = vmax.f32 %v1300_v45, %v1123_v17  ;;  %v9435_v49 = vld [vmem:[#allocation241_spill] sm:$0xff]  ;;  %v9438_v45 = vld [vmem:[#allocation243_spill] sm:$0xff] }
 0x4ff   : >> { %2755 = vperm.xlu1 %4397, %v9430_v3   ;;  %v7204_v19 = vpop.permute.xlu1 %2540  ;;  %vm1553_vm8 = vcmp.eq.s32.totalorder %v9431_v24, 1  ;;  %v1489_v62 = vmax.f32 %v1392_v53, %v1376_v38  ;;  %vm1364_vm9 = vcmp.eq.s32.totalorder %v9433_v31, 1  ;;  %vm1115_vm10 = vcmp.eq.s32.totalorder %v9434_v60, 1  ;;  %v9436_v17 = vld [vmem:[#allocation273_spill] sm:$0xff]  ;;  %v9439_v53 = vld [vmem:[#allocation279_spill] sm:$0xff]  ;;  %v9440_v24 = vld [vmem:[#allocation244_spill] sm:$0xff] }
 0x500   : >> { %2355 = vperm.xlu2 %4388, %v5530_v39   ;;  %v2198_v9 = vpop.permute.xlu2 %2197  ;;  %3498 = vperm.xlu0 %4415, %v9432_v27   ;;  %v1497_v42 = vmax.f32 %v1400_v4, %v1126_v18  ;;  %v7214_v20 = vmax.f32 %v1306_v0, %v1129_v54  ;;  %vm1367_vm13 = vcmp.eq.s32.totalorder %v9435_v49, 1  ;;  %v1570_v10 = vsel %vm1553_vm8, %v6600_v57, -inf  ;;  %v9437_v54 = vld [vmem:[#allocation240_spill] sm:$0xff]  ;;  %v9449_v27 = vld [vmem:[#allocation323_spill] sm:$0xff] }
 0x501   : >> { %vm2214_vm12 = vcmp.eq.s32.totalorder %v2198_v9, 1  ;;  %vm1456_vm11 = vcmp.eq.s32.totalorder %v9436_v17, 1  ;;  %v1381_v14 = vsel %vm1364_vm9, %v9429_v46, -inf  ;;  %v1132_v4 = vsel %vm1115_vm10, %v6740_v16, -inf  ;;  %v9441_v9 = vld [vmem:[#allocation247_spill] sm:$0xff] }
 0x502   : >> { %v7218_v30 = vsel %vm2214_vm12, %v6461_v12, -inf  ;;  %v985_v47 = vpop.permute.xlu0 %984  ;;  %vm1558_vm15 = vcmp.eq.s32.totalorder %v9437_v54, 1  ;;  %v1384_v6 = vsel %vm1367_vm13, %v9429_v46, -inf  ;;  %vm1561_vm0 = vcmp.eq.s32.totalorder %v9438_v45, 1  ;;  %v9443_v45 = vld [vmem:[#allocation322_spill] sm:$0xff]  ;;  %v9447_v54 = vld [vmem:[#allocation249_spill] sm:$0xff] }
 0x503   : >> { %vm1013_vm14 = vcmp.eq.s32.totalorder %v985_v47, 1  ;;  %vm1650_vm1 = vcmp.eq.s32.totalorder %v9439_v53, 1  ;;  %vm1370_vm2 = vcmp.eq.s32.totalorder %v9440_v24, 1  ;;  %vm1373_vm3 = vcmp.eq.s32.totalorder %v9441_v9, 1  ;;  %v9450_v9 = vld [vmem:[#allocation261_spill] sm:$0xff] }
 0x504   : >> { %v7228_v0 = vsel %vm1013_vm14, %v9414_v25, -inf  ;;  %v1473_v31 = vsel %vm1456_vm11, %v6534_v56, -inf  ;;  %v7239_v60 = vperm.slane %v7065_v11, 4  ;;  %v1586_v49 = vmax.f32 %v1489_v62, %v1570_v10  ;;  %v9446_v10 = vld [vmem:[#allocation246_spill] sm:$0xff] }
 0x505   : >> { %v1494_v47 = vmax.f32 %v7207_v59, %v1381_v14  ;;  %v7242_v17 = vmax.f32 %v1309_v1, %v1132_v4  ;;  %vm3330_vm4 = vcmp.eq.s32.totalorder %v9443_v45, 1  ;;  %v1575_v18 = vsel %vm1558_vm15, %v6600_v57, -inf  ;;  %v9445_v59 = vld [vmem:[#allocation69_spill] sm:$0xff] }
 0x506   : >> { %9442 = vst [vmem:[#allocation127_spill] sm:$0xff] %v7239_v60  ;;  %v7251_v48 = vmax.f32 %v1497_v42, %v1384_v6  ;;  %v7254_v38 = vsel %vm1561_vm0, %v6600_v57, -inf  ;;  %v1667_v62 = vsel %vm1650_vm1, %v6635_v33, -inf  ;;  %v1387_v1 = vsel %vm1370_vm2, %v9429_v46, -inf  ;;  %v9448_v6 = vld [vmem:[#allocation277_spill] sm:$0xff] }
 0x507   : >> { %2764 = vperm.xlu1 %4397, %v9365_v28   ;;  %v7246_v53 = vpop.permute.xlu1 %2549  ;;  %vm1564_vm5 = vcmp.eq.s32.totalorder %v9446_v10, 1  ;;  %v1390_v42 = vsel %vm1373_vm3, %v9429_v46, -inf  ;;  %v1683_v14 = vmax.f32 %v1586_v49, %v1473_v31  ;;  %vm1567_vm6 = vcmp.eq.s32.totalorder %v9447_v54, 1  ;;  %v9451_v31 = vld [vmem:[#allocation285_spill] sm:$0xff] }
 0x508   : >> { %9444 = vst [vmem:[#allocation131_spill] sm:$0xff] %v7246_v53  ;;  %2361 = vperm.xlu2 %4388, %v5543_v32   ;;  %3507 = vperm.xlu0 %4415, %v9445_v59   ;;  %vm1461_vm7 = vcmp.eq.s32.totalorder %v9448_v6, 1  ;;  %v3347_v28 = vsel %vm3330_vm4, %v7239_v60, -inf  ;;  %vm1747_vm9 = vcmp.eq.s32.totalorder %v9449_v27, 1  ;;  %vm2401_vm12 = vcmp.eq.s32.totalorder %v9450_v9, 1 }
 0x509   : >> { %v2253_v4 = vpop.permute.xlu2 %2252  ;;  %v1780_v24 = vmax.f32 %v1683_v14, %v1667_v62  ;;  %vm1655_vm13 = vcmp.eq.s32.totalorder %v9451_v31, 1  ;;  %v9452_v49 = vmax.f32 %v6916_v34, %v7160_v21  ;;  %v9453_v14 = vld [vmem:[#allocation67_spill] sm:$0xff]  ;;  %v1691_v31 = vmax.f32 %v7251_v48, %v7254_v38 }
 0x50a   : >> { %vm2297_vm8 = vcmp.eq.s32.totalorder %v2253_v4, 1  ;;  %v994_v59 = vpop.permute.xlu0 %993  ;;  %v1478_v4 = vsel %vm1461_vm7, %v6534_v56, -inf  ;;  %vm1941_vm11 = vcmp.eq.s32.totalorder %v9453_v14, 1  ;;  %v1500_v46 = vmax.f32 %v7214_v20, %v1387_v1  ;;  %v9457_v1 = vld [vmem:[#allocation280_spill] sm:$0xff]  ;;  %v9459_v14 = vld [vmem:[#allocation14_spill] sm:$0xff] }
 0x50b   : >> { %v2314_v53 = vsel %vm2297_vm8, %v6566_v26, -inf  ;;  %vm1016_vm10 = vcmp.eq.s32.totalorder %v994_v59, 1  ;;  %v1877_v62 = vmax.f32 %v1780_v24, %v3347_v28  ;;  %v1591_v59 = vmax.f32 %v1494_v47, %v1575_v18  ;;  %v9454_v24 = vld [vmem:[#allocation20_spill] sm:$0xff] }
 0x50c   : >> { %v7278_v6 = vmax.f32 %v9452_v49, %v2314_v53  ;;  %v7281_v45 = vsel %vm1016_vm10, %v9414_v25, -inf  ;;  %v1764_v34 = vsel %vm1747_vm9, %v6661_v41, -inf  ;;  %v1581_v21 = vsel %vm1564_vm5, %v6600_v57, -inf  ;;  %v9455_v49 = vld [vmem:[#allocation57_spill] sm:$0xff] }
 0x50d   : >> { %v1503_v53 = vmax.f32 %v7242_v17, %v1390_v42  ;;  %v1672_v28 = vsel %vm1655_vm13, %v6635_v33, -inf  ;;  %vm907_vm14 = vcmp.eq.s32.totalorder %v9454_v24, 1  ;;  %v1584_v48 = vsel %vm1567_vm6, %v6600_v57, -inf  ;;  %v9456_v17 = vld [vmem:[#allocation72_spill] sm:$0xff]  ;;  %v9458_v42 = vld [vmem:[#allocation41_spill] sm:$0xff]  ;;  %v9462_v24 = vld [vmem:[#allocation75_spill] sm:$0xff] }
 0x50e   : >> { %v2418_v20 = vsel %vm2401_vm12, %v6581_v40, -inf  ;;  %v1688_v38 = vmax.f32 %v1591_v59, %v1478_v4  ;;  %v1958_v47 = vsel %vm1941_vm11, %v6714_v15, -inf  ;;  %vm1464_vm15 = vcmp.eq.s32.totalorder %v9457_v1, 1  ;;  %v9460_v57 = vld [vmem:[#allocation61_spill] sm:$0xff] }
 0x50f   : >> { %2773 = vperm.xlu1 %4397, %v9455_v49   ;;  %v7298_v18 = vpop.permute.xlu1 %2555  ;;  %v1974_v10 = vmax.f32 %v1877_v62, %v1764_v34  ;;  %vm3335_vm0 = vcmp.eq.s32.totalorder %v9458_v42, 1  ;;  %vm2102_vm1 = vcmp.eq.s32.totalorder %v9459_v14, 1  ;;  %vm1752_vm2 = vcmp.eq.s32.totalorder %v9460_v57, 1 }
 0x510   : >> { %2367 = vperm.xlu2 %4388, %v9430_v3   ;;  %3516 = vperm.xlu0 %4415, %v9456_v17   ;;  %v1785_v27 = vmax.f32 %v1688_v38, %v1672_v28  ;;  %v924_v9 = vsel %vm907_vm14, %v6508_v23, -inf  ;;  %v9461_v3 = vld [vmem:[#allocation111_spill] sm:$0xff]  ;;  %v3352_v62 = vsel %vm3335_vm0, %v7239_v60, -inf  ;;  %v2119_v34 = vsel %vm2102_vm1, %v6260_v22, -inf }
 0x511   : >> { %v2256_v54 = vpop.permute.xlu2 %2255  ;;  %v2135_v59 = vmax.f32 %v1974_v10, %v1958_v47  ;;  %vm2199_vm4 = vcmp.eq.s32.totalorder %v9461_v3, 1  ;;  %vm1946_vm6 = vcmp.eq.s32.totalorder %v9462_v24, 1  ;;  %vm2587_vm7 = vcmp.eq.s32.totalorder %v7204_v19, 1 }
 0x512   : >> { %vm2298_vm3 = vcmp.eq.s32.totalorder %v2256_v54, 1  ;;  %v1003_v4 = vpop.permute.xlu0 %1002  ;;  %v9463_v3 = vmax.f32 %v7111_v58, %v7218_v30  ;;  %v7332_v10 = vmax.f32 %v1500_v46, %v1581_v21  ;;  %v7334_v14 = vmax.f32 %v1503_v53, %v1584_v48  ;;  %v9467_v53 = vld [vmem:[#allocation283_spill] sm:$0xff] }
 0x513   : >> { %v7318_v17 = vsel %vm2298_vm3, %v6566_v26, -inf  ;;  %vm1019_vm5 = vcmp.eq.s32.totalorder %v1003_v4, 1  ;;  %v2232_v42 = vmax.f32 %v2135_v59, %v924_v9  ;;  %v1769_v54 = vsel %vm1752_vm2, %v6661_v41, -inf  ;;  %v9465_v59 = vld [vmem:[#allocation84_spill] sm:$0xff]  ;;  %v9468_v48 = vld [vmem:[#allocation107_spill] sm:$0xff] }
 0x514   : >> { %v1036_v38 = vsel %vm1019_vm5, %v9414_v25, -inf  ;;  %v2216_v4 = vsel %vm2199_vm4, %v6461_v12, -inf  ;;  %v1481_v9 = vsel %vm1464_vm15, %v6534_v56, -inf  ;;  %v1882_v19 = vmax.f32 %v1785_v27, %v3352_v62  ;;  %v9470_v27 = vld [vmem:[#allocation288_spill] sm:$0xff] }
 0x515   : >> { %v7330_v47 = vmax.f32 %v9463_v3, %v1036_v38  ;;  %vm912_vm8 = vcmp.eq.s32.totalorder %v9465_v59, 1  ;;  %v2329_v58 = vmax.f32 %v2232_v42, %v2119_v34  ;;  %v9466_v30 = vmov 0   ;;  %v9469_v3 = vld [vmem:[#allocation117_spill] sm:$0xff]  ;;  %v9471_v62 = vld [vmem:[#allocation104_spill] sm:$0xff]  ;;  %v9474_v42 = vld [vmem:[#allocation58_spill] sm:$0xff] }
 0x516   : >> { %v1788_v21 = vmax.f32 %v1691_v31, %v2418_v20  ;;  %vm1467_vm9 = vcmp.eq.s32.totalorder %v9467_v53, 1  ;;  %v1963_v57 = vsel %vm1946_vm6, %v6714_v15, -inf  ;;  %v2604_v38 = vsel %vm2587_vm7, %v9468_v48, -inf  ;;  %v9473_v20 = vld [vmem:[#allocation268_spill] sm:$0xff]  ;;  %v9478_v53 = vld [vmem:[#allocation291_spill] sm:$0xff] }
 0x517   : >> { %9464 = vst [vmem:[#allocation135_spill] sm:$0xff] %v7330_v47  ;;  %4398 = vset.pattern.permute.xlu1 %v9466_v30  ;;  %v7345_v46 = vpop.permute.xlu1 %2564  ;;  %vm1658_vm10 = vcmp.eq.s32.totalorder %v9470_v27, 1  ;;  %v1979_v1 = vmax.f32 %v1882_v19, %v1769_v54  ;;  %vm2107_vm12 = vcmp.eq.s32.totalorder %v9471_v62, 1  ;;  %v2426_v34 = vmax.f32 %v2329_v58, %v2216_v4  ;;  %v9476_v19 = vld [vmem:[#allocation118_spill] sm:$0xff]  ;;  %v9479_v27 = vld [vmem:[#allocation21_spill] sm:$0xff] }
 0x518   : >> { %2895 = vperm.xlu1 %4398, %v9469_v3   ;;  %2373 = vperm.xlu2 %4388, %v5569_v55   ;;  %vm2407_vm13 = vcmp.eq.s32.totalorder %v9473_v20, 1  ;;  %v1885_v24 = vmax.f32 %v1788_v21, %v1481_v9  ;;  %vm3338_vm11 = vcmp.eq.s32.totalorder %v9474_v42, 1  ;;  %v929_v28 = vsel %vm912_vm8, %v6508_v23, -inf  ;;  %v9475_v3 = vld [vmem:[#allocation29_spill] sm:$0xff]  ;;  %v9481_v42 = vld [vmem:[#allocation80_spill] sm:$0xff] }
 0x519   : >> { %4418 = vset.pattern.permute.xlu0 %v9406_v37  ;;  %v7357_v31 = vpop.permute.xlu2 %2261  ;;  %v2140_v54 = vmax.f32 %v1979_v1, %v1963_v57  ;;  %vm2204_vm14 = vcmp.eq.s32.totalorder %v9476_v19, 1  ;;  %v7366_v4 = vmax.f32 %v2426_v34, %v2604_v38  ;;  %v1484_v58 = vsel %vm1467_vm9, %v6534_v56, -inf  ;;  %v9477_v57 = vld [vmem:[#allocation286_spill] sm:$0xff] }
 0x51a   : >> { %9472 = vst [vmem:[#allocation132_spill] sm:$0xff] %v7357_v31  ;;  %1060 = vperm.xlu0 %4418, %v9475_v3   ;;  %v1798_v30 = vpop.permute.xlu0 %1797  ;;  %v1675_v9 = vsel %vm1658_vm10, %v6635_v33, -inf  ;;  %v2124_v59 = vsel %vm2107_vm12, %v6260_v22, -inf  ;;  %vm1470_vm0 = vcmp.eq.s32.totalorder %v9477_v57, 1  ;;  %vm2592_vm1 = vcmp.eq.s32.totalorder %v7298_v18, 1  ;;  %v9480_v34 = vld [vmem:[#allocation26_spill] sm:$0xff] }
 0x51b   : >> { %vm1844_vm15 = vcmp.eq.s32.totalorder %v1798_v30, 1  ;;  %v2237_v38 = vmax.f32 %v2140_v54, %v929_v28  ;;  %vm1661_vm2 = vcmp.eq.s32.totalorder %v9478_v53, 1  ;;  %v3355_v3 = vsel %vm3338_vm11, %v7239_v60, -inf }
 0x51c   : >> { %v7378_v21 = vsel %vm1844_vm15, %v6643_v52, -inf  ;;  %vm1755_vm3 = vcmp.eq.s32.totalorder %v9479_v27, 1  ;;  %v2221_v1 = vsel %vm2204_vm14, %v6461_v12, -inf  ;;  %v2424_v62 = vsel %vm2407_vm13, %v6581_v40, -inf  ;;  %v9482_v27 = vld [vmem:[#allocation43_spill] sm:$0xff] }
 0x51d   : >> { %v1982_v28 = vmax.f32 %v1885_v24, %v1675_v9  ;;  %vm3341_vm4 = vcmp.eq.s32.totalorder %v9480_v34, 1  ;;  %v2334_v18 = vmax.f32 %v2237_v38, %v2124_v59  ;;  %v1694_v19 = vmax.f32 %v7332_v10, %v1484_v58  ;;  %v9483_v10 = vld [vmem:[#allocation70_spill] sm:$0xff]  ;;  %v9484_v58 = vld [vmem:[#allocation89_spill] sm:$0xff] }
 0x51e   : >> { %v1487_v57 = vsel %vm1470_vm0, %v6534_v56, -inf  ;;  %vm1949_vm5 = vcmp.eq.s32.totalorder %v9481_v42, 1  ;;  %v2609_v53 = vsel %vm2592_vm1, %v9468_v48, -inf  ;;  %v1678_v20 = vsel %vm1661_vm2, %v6635_v33, -inf  ;;  %v9485_v42 = vld [vmem:[#allocation33_spill] sm:$0xff] }
 0x51f   : >> { %v7394_v54 = vpop.permute.xlu1 %2573  ;;  %v2143_v24 = vmax.f32 %v1982_v28, %v3355_v3  ;;  %v1772_v9 = vsel %vm1755_vm3, %v6661_v41, -inf  ;;  %v2431_v59 = vmax.f32 %v2334_v18, %v2221_v1  ;;  %v3358_v34 = vsel %vm3341_vm4, %v7239_v60, -inf }
 0x520   : >> { %2904 = vperm.xlu1 %4398, %v9482_v27   ;;  %2379 = vperm.xlu2 %4388, %v5584_v36   ;;  %vm1758_vm6 = vcmp.eq.s32.totalorder %v9483_v10, 1  ;;  %vm915_vm7 = vcmp.eq.s32.totalorder %v9484_v58, 1  ;;  %v1966_v31 = vsel %vm1949_vm5, %v6714_v15, -inf  ;;  %vm2595_vm10 = vcmp.eq.s32.totalorder %v7345_v46, 1  ;;  %v9487_v58 = vld [vmem:[#allocation90_spill] sm:$0xff] }
 0x521   : >> { %v2268_v38 = vpop.permute.xlu2 %2267  ;;  %v2528_v37 = vmax.f32 %v2431_v59, %v2609_v53  ;;  %v2240_v3 = vmax.f32 %v2143_v24, %v1772_v9  ;;  %v9486_v1 = vmax.f32 %v6963_v2, %v7194_v5  ;;  %vm1952_vm12 = vcmp.eq.s32.totalorder %v9487_v58, 1  ;;  %v9489_v5 = vld [vmem:[#allocation86_spill] sm:$0xff]  ;;  %v9490_v59 = vld [vmem:[#allocation121_spill] sm:$0xff] }
 0x522   : >> { %vm2302_vm8 = vcmp.eq.s32.totalorder %v2268_v38, 1  ;;  %1075 = vperm.xlu0 %4418, %v9485_v42   ;;  %v1813_v30 = vpop.permute.xlu0 %1812  ;;  %v1791_v38 = vmax.f32 %v1694_v19, %v1678_v20  ;;  %v932_v42 = vsel %vm915_vm7, %v6508_v23, -inf  ;;  %v1697_v53 = vmax.f32 %v7334_v14, %v2424_v62  ;;  %v9491_v62 = vld [vmem:[#allocation27_spill] sm:$0xff] }
 0x523   : >> { %v2319_v56 = vsel %vm2302_vm8, %v6566_v26, -inf  ;;  %vm1849_vm9 = vcmp.eq.s32.totalorder %v1813_v30, 1  ;;  %v9488_v30 = vld [vmem:[#allocation294_spill] sm:$0xff]  ;;  %v1775_v46 = vsel %vm1758_vm6, %v6661_v41, -inf  ;;  %v2337_v2 = vmax.f32 %v2240_v3, %v1966_v31 }
 0x524   : >> { %v7414_v28 = vmax.f32 %v9486_v1, %v2319_v56  ;;  %v1866_v18 = vsel %vm1849_vm9, %v6643_v52, -inf  ;;  %vm1664_vm13 = vcmp.eq.s32.totalorder %v9488_v30, 1  ;;  %v1888_v56 = vmax.f32 %v1791_v38, %v3358_v34  ;;  %v9492_v34 = vld [vmem:[#allocation110_spill] sm:$0xff] }
 0x525   : >> { %v7419_v55 = vmax.f32 %v2528_v37, %v1866_v18  ;;  %vm918_vm11 = vcmp.eq.s32.totalorder %v9489_v5, 1  ;;  %v2612_v19 = vsel %vm2595_vm10, %v9468_v48, -inf  ;;  %v1794_v24 = vmax.f32 %v1697_v53, %v1487_v57  ;;  %v9493_v3 = vld [vmem:[#allocation74_spill] sm:$0xff]  ;;  %v9494_v18 = vld [vmem:[#allocation48_spill] sm:$0xff] }
 0x526   : >> { %v1969_v37 = vsel %vm1952_vm12, %v6714_v15, -inf  ;;  %v2434_v9 = vmax.f32 %v2337_v2, %v932_v42  ;;  %v1681_v14 = vsel %vm1664_vm13, %v6635_v33, -inf  ;;  %vm3344_vm14 = vcmp.eq.s32.totalorder %v9491_v62, 1 }
 0x527   : >> { %v7428_v20 = vpop.permute.xlu1 %2582  ;;  %v1985_v31 = vmax.f32 %v1888_v56, %v1775_v46  ;;  %vm2113_vm15 = vcmp.eq.s32.totalorder %v9492_v34, 1  ;;  %vm1761_vm0 = vcmp.eq.s32.totalorder %v9493_v3, 1  ;;  %v935_v1 = vsel %vm918_vm11, %v6508_v23, -inf  ;;  %v9495_v34 = vld [vmem:[#allocation94_spill] sm:$0xff] }
 0x528   : >> { %2910 = vperm.xlu1 %4398, %v9490_v59   ;;  %2385 = vperm.xlu2 %4388, %v9455_v49   ;;  %v2531_v57 = vmax.f32 %v2434_v9, %v2612_v19  ;;  %vm2210_vm2 = vcmp.eq.s32.totalorder %v7133_v63, 1  ;;  %v3361_v53 = vsel %vm3344_vm14, %v7239_v60, -inf  ;;  %v2130_v30 = vsel %vm2113_vm15, %v6260_v22, -inf  ;;  %v7456_v9 = vld [vmem:[%s6122_s21 + $0x10] sm:$0xff] }
 0x529   : >> { %v2274_v10 = vpop.permute.xlu2 %2273  ;;  %v2146_v58 = vmax.f32 %v1985_v31, %v1969_v37  ;;  %v1891_v56 = vmax.f32 %v1794_v24, %v1681_v14  ;;  %vm2598_vm4 = vcmp.eq.s32.totalorder %v7394_v54, 1  ;;  %v1778_v63 = vsel %vm1761_vm0, %v6661_v41, -inf  ;;  %v9496_v14 = vld [vmem:[#allocation125_spill] sm:$0xff] }
 0x52a   : >> { %vm2304_vm1 = vcmp.eq.s32.totalorder %v2274_v10, 1  ;;  %1084 = vperm.xlu0 %4418, %v9494_v18   ;;  %v1822_v38 = vpop.permute.xlu0 %1821  ;;  %v2227_v19 = vsel %vm2210_vm2, %v6461_v12, -inf  ;;  %v7459_v62 = vperm.slane %v7456_v9, 6  ;;  %vm1955_vm5 = vcmp.eq.s32.totalorder %v9495_v34, 1  ;;  %v9502_v34 = vld [vmem:[#allocation77_spill] sm:$0xff] }
 0x52b   : >> { %v2321_v42 = vsel %vm2304_vm1, %v6566_v26, -inf  ;;  %vm1852_vm3 = vcmp.eq.s32.totalorder %v1822_v38, 1  ;;  %v2243_v5 = vmax.f32 %v2146_v58, %v935_v1  ;;  %v1988_v31 = vmax.f32 %v1891_v56, %v3361_v53 }
 0x52c   : >> { %v7443_v46 = vmax.f32 %v2531_v57, %v2321_v42  ;;  %v7446_v2 = vsel %vm1852_vm3, %v6643_v52, -inf  ;;  %v2615_v54 = vsel %vm2598_vm4, %v9468_v48, -inf  ;;  %v9497_v3 = vmov 4   ;;  %v9498_v57 = vld [vmem:[#allocation98_spill] sm:$0xff]  ;;  %v9499_v42 = vld [vmem:[#allocation108_spill] sm:$0xff] }
 0x52d   : >> { %v2340_v24 = vmax.f32 %v2243_v5, %v2130_v30  ;;  %v2149_v1 = vmax.f32 %v1988_v31, %v1778_v63  ;;  %vm921_vm6 = vcmp.eq.s32.totalorder %v9498_v57, 1  ;;  %v1972_v58 = vsel %vm1955_vm5, %v6714_v15, -inf  ;;  %v9500_v30 = vld [vmem:[#allocation42_spill] sm:$0xff] }
 0x52e   : >> { %vm2116_vm8 = vcmp.eq.s32.totalorder %v9499_v42, 1  ;;  %v938_v31 = vsel %vm921_vm6, %v6508_v23, -inf  ;;  %vm2601_vm12 = vcmp.eq.s32.totalorder %v7428_v20, 1  ;;  %v9501_v42 = vld [vmem:[#allocation129_spill] sm:$0xff]  ;;  %v9510_v37 = vmax.f32 %v7105_v13, %v7228_v0  ;;  %v9511_v0 = vld [vmem:[#allocation87_spill] sm:$0xff] }
 0x52f   : >> { %v2437_v18 = vmax.f32 %v2340_v24, %v2227_v19 }
 0x530   : >> { %2919 = vperm.xlu1 %4398, %v9496_v14   ;;  %v2641_v10 = vpop.permute.xlu1 %2640  ;;  %4390 = vset.pattern.permute.xlu2 %v9497_v3  ;;  %v9526_v3 = vld [vmem:[#allocation45_spill] sm:$0xff] }
 0x531   : >> { %vm2685_vm7 = vcmp.eq.s32.totalorder %v2641_v10, 1  ;;  %2443 = vperm.xlu2 %4390, %v5517_v43   ;;  %v2280_v38 = vpop.permute.xlu2 %2279  ;;  %v2534_v5 = vmax.f32 %v2437_v18, %v2615_v54  ;;  %v2246_v10 = vmax.f32 %v2149_v1, %v1972_v58  ;;  %v2133_v54 = vsel %vm2116_vm8, %v6260_v22, -inf }
 0x532   : >> { %v7470_v53 = vsel %vm2685_vm7, %v7459_v62, -inf  ;;  %vm2306_vm9 = vcmp.eq.s32.totalorder %v2280_v38, 1  ;;  %1093 = vperm.xlu0 %4418, %v9500_v30   ;;  %v1831_v56 = vpop.permute.xlu0 %1830  ;;  %v2618_v38 = vsel %vm2601_vm12, %v9468_v48, -inf }
 0x533   : >> { %v7476_v19 = vsel %vm2306_vm9, %v6566_v26, -inf  ;;  %vm1855_vm10 = vcmp.eq.s32.totalorder %v1831_v56, 1  ;;  %v2343_v18 = vmax.f32 %v2246_v10, %v938_v31 }
 0x534   : >> { %v1872_v24 = vsel %vm1855_vm10, %v6643_v52, -inf }
 0x535   : >> { %v7483_v57 = vmax.f32 %v2534_v5, %v1872_v24  ;;  %v2440_v56 = vmax.f32 %v2343_v18, %v2133_v54  ;;  %v9503_v5 = vmax.f32 %v7060_v50, %v7281_v45  ;;  %v9504_v54 = vld [vmem:[#allocation133_spill] sm:$0xff] }
 0x537   : >> { %v2537_v20 = vmax.f32 %v2440_v56, %v2618_v38  ;;  %v9505_v38 = vld [vmem:[#allocation81_spill] sm:$0xff] }
 0x538   : >> { %2928 = vperm.xlu1 %4398, %v9501_v42   ;;  %v7488_v30 = vpop.permute.xlu1 %2646 }
 0x539   : >> { %2452 = vperm.xlu2 %4390, %v5530_v39   ;;  %v2286_v63 = vpop.permute.xlu2 %2285 }
 0x53a   : >> { %vm2308_vm13 = vcmp.eq.s32.totalorder %v2286_v63, 1  ;;  %1897 = vperm.xlu0 %4418, %v9502_v34   ;;  %v1840_v1 = vpop.permute.xlu0 %1839 }
 0x53b   : >> { %v2325_v58 = vsel %vm2308_vm13, %v6566_v26, -inf  ;;  %vm1858_vm11 = vcmp.eq.s32.totalorder %v1840_v1, 1 }
 0x53c   : >> { %v7496_v31 = vmax.f32 %v9503_v5, %v2325_v58  ;;  %v1875_v24 = vsel %vm1858_vm11, %v6643_v52, -inf  ;;  %v9506_v58 = vmax.f32 %v7366_v4, %v7378_v21 }
 0x53d   : >> { %v7499_v10 = vmax.f32 %v2537_v20, %v1875_v24  ;;  %v9507_v24 = vmov 1  }
 0x540   : >> { %2937 = vperm.xlu1 %4398, %v9504_v54   ;;  %v2656_v18 = vpop.permute.xlu1 %2655 }
 0x541   : >> { %vm2690_vm14 = vcmp.eq.s32.totalorder %v2656_v18, 1  ;;  %2458 = vperm.xlu2 %4390, %v5543_v32   ;;  %v2292_v63 = vpop.permute.xlu2 %2291 }
 0x542   : >> { %v7504_v34 = vsel %vm2690_vm14, %v7459_v62, -inf  ;;  %vm2310_vm15 = vcmp.eq.s32.totalorder %v2292_v63, 1  ;;  %1912 = vperm.xlu0 %4418, %v9505_v38   ;;  %v2638_v50 = vpop.permute.xlu0 %2637  ;;  %v9508_v63 = vld [vmem:[#allocation174_spill] sm:$0xff] }
 0x543   : >> { %v7510_v56 = vsel %vm2310_vm15, %v6566_v26, -inf  ;;  %vm2684_vm0 = vcmp.eq.s32.totalorder %v2638_v50, 1  ;;  %v9509_v50 = vld [vmem:[#allocation83_spill] sm:$0xff] }
 0x544   : >> { %v2701_v20 = vsel %vm2684_vm0, %v7459_v62, -inf }
 0x545   : >> { %v7518_v5 = vmax.f32 %v9506_v58, %v2701_v20  ;;  %v9513_v58 = vmax.f32 %v7443_v46, %v7446_v2  ;;  %v9518_v2 = vld [vmem:[#allocation96_spill] sm:$0xff]  ;;  %v9524_v46 = vmov 5  }
 0x546   : >> { %vm522_vm10 = vcmp.eq.s32.totalorder %v9518_v2, 1 }
 0x548   : >> { %4401 = vset.pattern.permute.xlu1 %v9507_v24  ;;  %v2665_v18 = vpop.permute.xlu1 %2664  ;;  %v9514_v24 = vld [vmem:[#allocation177_spill] sm:$0xff] }
 0x549   : >> { %vm2693_vm1 = vcmp.eq.s32.totalorder %v2665_v18, 1  ;;  %2995 = vperm.xlu1 %4401, %v9508_v63   ;;  %2467 = vperm.xlu2 %4390, %v9291_v8   ;;  %v9525_v63 = vld [vmem:[#allocation151_spill] sm:$0xff] }
 0x54a   : >> { %v2710_v38 = vsel %vm2693_vm1, %v7459_v62, -inf  ;;  %1921 = vperm.xlu0 %4418, %v9509_v50   ;;  %v2347_v45 = vpop.permute.xlu2 %2346  ;;  %v2653_v1 = vpop.permute.xlu0 %2652  ;;  %vm716_vm13 = vcmp.eq.s32.totalorder %v9525_v63, 1 }
 0x54b   : >> { %v7528_v4 = vmax.f32 %v9510_v37, %v2710_v38  ;;  %vm2393_vm2 = vcmp.eq.s32.totalorder %v2347_v45, 1  ;;  %vm2689_vm3 = vcmp.eq.s32.totalorder %v2653_v1, 1  ;;  %v9517_v1 = vld [vmem:[#allocation91_spill] sm:$0xff] }
 0x54c   : >> { %v7531_v21 = vsel %vm2393_vm2, %v6581_v40, -inf  ;;  %v2706_v20 = vsel %vm2689_vm3, %v7459_v62, -inf }
 0x54d   : >> { %v2722_v18 = vmax.f32 %v7419_v55, %v2706_v20  ;;  %v9512_v20 = vmax.f32 %v6991_v61, %v7318_v17 }
 0x550   : >> { %v2674_v50 = vpop.permute.xlu1 %2673 }
 0x551   : >> { %vm2696_vm4 = vcmp.eq.s32.totalorder %v2674_v50, 1  ;;  %3001 = vperm.xlu1 %4401, %v9482_v27   ;;  %2476 = vperm.xlu2 %4390, %v5584_v36   ;;  %v9522_v36 = vld [vmem:[#allocation124_spill] sm:$0xff] }
 0x552   : >> { %v7540_v13 = vsel %vm2696_vm4, %v7459_v62, -inf  ;;  %1930 = vperm.xlu0 %4418, %v9511_v0   ;;  %v2353_v37 = vpop.permute.xlu2 %2352  ;;  %v2662_v45 = vpop.permute.xlu0 %2661  ;;  %vm619_vm12 = vcmp.eq.s32.totalorder %v9522_v36, 1  ;;  %v9527_v36 = vld [vmem:[#allocation173_spill] sm:$0xff] }
 0x553   : >> { %vm2395_vm5 = vcmp.eq.s32.totalorder %v2353_v37, 1  ;;  %vm2692_vm6 = vcmp.eq.s32.totalorder %v2662_v45, 1  ;;  %v9515_v37 = vld [vmem:[#allocation49_spill] sm:$0xff]  ;;  %vm813_vm0 = vcmp.eq.s32.totalorder %v9527_v36, 1 }
 0x554   : >> { %v2412_v55 = vsel %vm2395_vm5, %v6581_v40, -inf  ;;  %v2709_v38 = vsel %vm2692_vm6, %v7459_v62, -inf  ;;  %vm425_vm8 = vcmp.eq.s32.totalorder %v9515_v37, 1 }
 0x555   : >> { %v7550_v50 = vmax.f32 %v9512_v20, %v2412_v55  ;;  %v7555_v0 = vmax.f32 %v9513_v58, %v2709_v38  ;;  %v9519_v58 = vld [vmem:[#allocation63_spill] sm:$0xff]  ;;  %v9520_v20 = vld [vmem:[#allocation324_spill] sm:$0xff] }
 0x556   : >> { %v442_v55 = vsel %vm425_vm8, %v9519_v58, -inf  ;;  %v539_v37 = vsel %vm522_vm10, %v9520_v20, -inf }
 0x558   : >> { %v2683_v60 = vpop.permute.xlu1 %2682 }
 0x559   : >> { %vm2699_vm7 = vcmp.eq.s32.totalorder %v2683_v60, 1  ;;  %3010 = vperm.xlu1 %4401, %v9514_v24   ;;  %2485 = vperm.xlu2 %4390, %v9315_v44   ;;  %v9521_v44 = vld [vmem:[#allocation24_spill] sm:$0xff] }
 0x55a   : >> { %v7561_v45 = vsel %vm2699_vm7, %v7459_v62, -inf  ;;  %1939 = vperm.xlu0 %4418, %v9517_v1   ;;  %v7564_v61 = vpop.permute.xlu2 %2355  ;;  %v2671_v17 = vpop.permute.xlu0 %2670  ;;  %v7577_v1 = vperm.slane %v7456_v9, 7  ;;  %v458_v24 = vmax.f32 %v9521_v44, %v442_v55 }
 0x55b   : >> { %9516 = vst [vmem:[#allocation140_spill] sm:$0xff] %v7561_v45  ;;  %vm2695_vm9 = vcmp.eq.s32.totalorder %v2671_v17, 1  ;;  %v9523_v17 = vld [vmem:[#allocation181_spill] sm:$0xff]  ;;  %v636_v45 = vsel %vm619_vm12, %v9373_v35, -inf }
 0x55c   : >> { %v7570_v60 = vsel %vm2695_vm9, %v7459_v62, -inf  ;;  %v555_v8 = vmax.f32 %v458_v24, %v539_v37  ;;  %v9528_v37 = vld [vmem:[#allocation82_spill] sm:$0xff] }
 0x55e   : >> { %v652_v47 = vmax.f32 %v555_v8, %v636_v45  ;;  %v9536_v8 = vld [vmem:[#allocation50_spill] sm:$0xff] }
 0x561   : >> { %3019 = vperm.xlu1 %4401, %v9523_v17   ;;  %v2741_v2 = vpop.permute.xlu1 %2740  ;;  %4393 = vset.pattern.permute.xlu2 %v9524_v46 }
 0x562   : >> { %vm2783_vm11 = vcmp.eq.s32.totalorder %v2741_v2, 1  ;;  %2737 = vperm.xlu0 %4418, %v9526_v3   ;;  %2543 = vperm.xlu2 %4393, %v9526_v3   ;;  %v2362_v38 = vpop.permute.xlu2 %2361  ;;  %v2680_v9 = vpop.permute.xlu0 %2679  ;;  %v733_v2 = vsel %vm716_vm13, %v9528_v37, -inf  ;;  %v9529_v3 = vmax.f32 %v7499_v10, %v7510_v56  ;;  %v9535_v56 = vld [vmem:[#allocation199_spill] sm:$0xff]  ;;  %v9550_v37 = vld [vmem:[#allocation292_spill] sm:$0xff] }
 0x563   : >> { %v2800_v44 = vsel %vm2783_vm11, %v7577_v1, -inf  ;;  %vm2398_vm14 = vcmp.eq.s32.totalorder %v2362_v38, 1  ;;  %vm2698_vm15 = vcmp.eq.s32.totalorder %v2680_v9, 1  ;;  %v9530_v38 = vld [vmem:[#allocation182_spill] sm:$0xff]  ;;  %v830_v9 = vsel %vm813_vm0, %v6450_v29, -inf }
 0x564   : >> { %v2816_v55 = vmax.f32 %v7550_v50, %v2800_v44  ;;  %v2415_v24 = vsel %vm2398_vm14, %v6581_v40, -inf  ;;  %v2715_v63 = vsel %vm2698_vm15, %v7459_v62, -inf  ;;  %vm1007_vm1 = vcmp.eq.s32.totalorder %v9530_v38, 1  ;;  %v9531_v50 = vld [vmem:[#allocation194_spill] sm:$0xff] }
 0x565   : >> { %v7593_v46 = vmax.f32 %v2722_v18, %v2415_v24  ;;  %v7598_v17 = vmax.f32 %v9529_v3, %v2715_v63  ;;  %v749_v36 = vmax.f32 %v652_v47, %v733_v2  ;;  %vm910_vm2 = vcmp.eq.s32.totalorder %v9531_v50, 1  ;;  %v9533_v18 = vld [vmem:[#allocation184_spill] sm:$0xff]  ;;  %v9537_v2 = vld [vmem:[#allocation227_spill] sm:$0xff] }
 0x566   : >> { %v7604_v44 = vperm.slane %v7065_v11, 6  ;;  %v1024_v32 = vsel %vm1007_vm1, %v9414_v25, -inf  ;;  %vm2299_vm3 = vcmp.eq.s32.totalorder %v9535_v56, 1  ;;  %v927_v63 = vsel %vm910_vm2, %v6508_v23, -inf  ;;  %v9539_v23 = vld [vmem:[#allocation235_spill] sm:$0xff] }
 0x567   : >> { %v846_v10 = vmax.f32 %v749_v36, %v830_v9  ;;  %vm1104_vm6 = vcmp.eq.s32.totalorder %v9537_v2, 1  ;;  %v2316_v9 = vsel %vm2299_vm3, %v6566_v26, -inf  ;;  %v9538_v36 = vld [vmem:[#allocation123_spill] sm:$0xff]  ;;  %vm1362_vm7 = vcmp.eq.s32.totalorder %v9539_v23, 1 }
 0x568   : >> { %9532 = vst [vmem:[#allocation134_spill] sm:$0xff] %v7604_v44  ;;  %v9542_v2 = vld [vmem:[#allocation163_spill] sm:$0xff]  ;;  %vm1556_vm14 = vcmp.eq.s32.totalorder %v9550_v37, 1 }
 0x569   : >> { %3028 = vperm.xlu1 %4401, %v9533_v18   ;;  %v7608_v24 = vpop.permute.xlu1 %2746  ;;  %v943_v11 = vmax.f32 %v846_v10, %v1024_v32  ;;  %v9544_v23 = vld [vmem:[#allocation275_spill] sm:$0xff] }
 0x56a   : >> { %9534 = vst [vmem:[#allocation136_spill] sm:$0xff] %v7608_v24  ;;  %2752 = vperm.xlu0 %4418, %v9536_v8   ;;  %2552 = vperm.xlu2 %4393, %v5138_v7   ;;  %v2368_v45 = vpop.permute.xlu2 %2367  ;;  %v3484_v47 = vpop.permute.xlu0 %3483  ;;  %v1121_v24 = vsel %vm1104_vm6, %v6740_v16, -inf  ;;  %vm1459_vm13 = vcmp.eq.s32.totalorder %v9544_v23, 1  ;;  %v9549_v26 = vld [vmem:[#allocation31_spill] sm:$0xff] }
 0x56b   : >> { %vm2400_vm4 = vcmp.eq.s32.totalorder %v2368_v45, 1  ;;  %vm3526_vm5 = vcmp.eq.s32.totalorder %v3484_v47, 1  ;;  %v1040_v18 = vmax.f32 %v943_v11, %v927_v63  ;;  %v9540_v45 = vld [vmem:[#allocation188_spill] sm:$0xff]  ;;  %v9541_v47 = vld [vmem:[#allocation245_spill] sm:$0xff] }
 0x56c   : >> { %v2417_v3 = vsel %vm2400_vm4, %v6581_v40, -inf  ;;  %v3543_v38 = vsel %vm3526_vm5, %v7604_v44, -inf  ;;  %vm1265_vm8 = vcmp.eq.s32.totalorder %v9541_v47, 1 }
 0x56d   : >> { %v2724_v50 = vmax.f32 %v9538_v36, %v2417_v3  ;;  %v7619_v56 = vmax.f32 %v2816_v55, %v3543_v38  ;;  %v1137_v25 = vmax.f32 %v1040_v18, %v2316_v9  ;;  %v9543_v38 = vld [vmem:[#allocation88_spill] sm:$0xff]  ;;  %v9545_v9 = vld [vmem:[#allocation65_spill] sm:$0xff] }
 0x56e   : >> { %v1379_v63 = vsel %vm1362_vm7, %v9543_v38, -inf  ;;  %v4312_v38 = vunpack.i.h.bf16 %v9549_v26  ;;  %v9554_v26 = vmax.f32 %v7143_v51, %v7476_v19 }
 0x56f   : >> { %v1298_v10 = vmax.f32 %v1137_v25, %v1121_v24 }
 0x570   : >> { %vm2866_vm3 = vcmp.ne.f32.partialorder %v4312_v38, 0.0 }
 0x571   : >> { %3037 = vperm.xlu1 %4401, %v9540_v45   ;;  %v2756_v32 = vpop.permute.xlu1 %2755 }
 0x572   : >> { %vm2788_vm9 = vcmp.eq.s32.totalorder %v2756_v32, 1  ;;  %2761 = vperm.xlu0 %4418, %v9542_v2   ;;  %2558 = vperm.xlu2 %4393, %v9536_v8   ;;  %v2374_v3 = vpop.permute.xlu2 %2373  ;;  %v3499_v55 = vpop.permute.xlu0 %3498  ;;  %v1282_v8 = vsel %vm1265_vm8, %v9545_v9, -inf  ;;  %v1395_v32 = vmax.f32 %v1298_v10, %v1379_v63  ;;  %v9551_v9 = vld [vmem:[#allocation109_spill] sm:$0xff]  ;;  %v9552_v10 = vld [vmem:[#allocation62_spill] sm:$0xff] }
 0x573   : >> { %v2805_v11 = vsel %vm2788_vm9, %v7577_v1, -inf  ;;  %vm2402_vm10 = vcmp.eq.s32.totalorder %v2374_v3, 1  ;;  %vm3531_vm12 = vcmp.eq.s32.totalorder %v3499_v55, 1  ;;  %v9546_v3 = vld [vmem:[#allocation97_spill] sm:$0xff] }
 0x574   : >> { %v7630_v18 = vmax.f32 %v2724_v50, %v2805_v11  ;;  %v7633_v25 = vsel %vm2402_vm10, %v6581_v40, -inf  ;;  %v7636_v24 = vsel %vm3531_vm12, %v7604_v44, -inf  ;;  %v1476_v55 = vsel %vm1459_vm13, %v9546_v3, -inf  ;;  %v9547_v50 = vld [vmem:[#allocation282_spill] sm:$0xff] }
 0x575   : >> { %v1492_v23 = vmax.f32 %v1395_v32, %v1282_v8  ;;  %vm1653_vm11 = vcmp.eq.s32.totalorder %v9547_v50, 1  ;;  %v9548_v11 = vmov 2   ;;  %v9553_v32 = vld [vmem:[#allocation46_spill] sm:$0xff]  ;;  %vm2687_vm13 = vcmp.eq.s32.totalorder %v7488_v30, 1 }
 0x576   : >> { %v1670_v47 = vsel %vm1653_vm11, %v6635_v33, -inf  ;;  %vm1750_vm2 = vcmp.eq.s32.totalorder %v9553_v32, 1  ;;  %v9558_v32 = vmov 0  }
 0x577   : >> { %v1589_v29 = vmax.f32 %v1492_v23, %v1476_v55  ;;  %v9555_v23 = vld [vmem:[#allocation101_spill] sm:$0xff]  ;;  %v1767_v51 = vsel %vm1750_vm2, %v6661_v41, -inf }
 0x578   : >> { %v1573_v50 = vsel %vm1556_vm14, %v9555_v23, -inf  ;;  %v9559_v23 = vld [vmem:[#allocation92_spill] sm:$0xff] }
 0x579   : >> { %4405 = vset.pattern.permute.xlu1 %v9548_v11  ;;  %v2765_v45 = vpop.permute.xlu1 %2764  ;;  %v9556_v11 = vmax.f32 %v7483_v57, %v7570_v60  ;;  %vm1847_vm5 = vcmp.eq.s32.totalorder %v9559_v23, 1  ;;  %v9560_v57 = vld [vmem:[#allocation59_spill] sm:$0xff] }
 0x57a   : >> { %vm2791_vm15 = vcmp.eq.s32.totalorder %v2765_v45, 1  ;;  %2770 = vperm.xlu0 %4418, %v9551_v9   ;;  %3095 = vperm.xlu1 %4405, %v9552_v10   ;;  %v2380_v63 = vpop.permute.xlu2 %2379  ;;  %v3508_v36 = vpop.permute.xlu0 %3507 }
 0x57b   : >> { %v2808_v8 = vsel %vm2791_vm15, %v7577_v1, -inf  ;;  %2567 = vperm.xlu2 %4393, %v9542_v2   ;;  %vm2404_vm0 = vcmp.eq.s32.totalorder %v2380_v63, 1  ;;  %vm3534_vm1 = vcmp.eq.s32.totalorder %v3508_v36, 1  ;;  %v1686_v36 = vmax.f32 %v1589_v29, %v1670_v47  ;;  %v9565_v63 = vld [vmem:[#allocation117_spill] sm:$0xff] }
 0x57c   : >> { %v7657_v37 = vmax.f32 %v9554_v26, %v2808_v8  ;;  %v2421_v45 = vsel %vm2404_vm0, %v6581_v40, -inf  ;;  %v7661_v55 = vsel %vm3534_vm1, %v7604_v44, -inf  ;;  %v9557_v8 = vld [vmem:[#allocation68_spill] sm:$0xff]  ;;  %v7674_v26 = vsel %vm2866_vm3, 1, %v9558_v32 }
 0x57d   : >> { %v7667_v2 = vmax.f32 %v9556_v11, %v2421_v45  ;;  %v1783_v19 = vmax.f32 %v1686_v36, %v1573_v50  ;;  %vm1944_vm4 = vcmp.eq.s32.totalorder %v9557_v8, 1  ;;  %v9561_v11 = vld [vmem:[#allocation102_spill] sm:$0xff]  ;;  %v1864_v36 = vsel %vm1847_vm5, %v6643_v52, -inf }
 0x57e   : >> { %v1961_v38 = vsel %vm1944_vm4, %v6714_v15, -inf  ;;  %vm2105_vm9 = vcmp.eq.s32.totalorder %v9561_v11, 1  ;;  %v9562_v45 = vld [vmem:[#allocation126_spill] sm:$0xff]  ;;  %v9564_v11 = vld [vmem:[#allocation131_spill] sm:$0xff]  ;;  %vm2396_vm15 = vcmp.eq.s32.totalorder %v7564_v61, 1 }
 0x57f   : >> { %v1880_v33 = vmax.f32 %v1783_v19, %v1767_v51  ;;  %v9563_v19 = vld [vmem:[#allocation116_spill] sm:$0xff]  ;;  %vm2590_vm12 = vcmp.eq.s32.totalorder %v9564_v11, 1 }
 0x580   : >> { %vm2202_vm10 = vcmp.eq.s32.totalorder %v9563_v19, 1  ;;  %v9569_v11 = vld [vmem:[#allocation112_spill] sm:$0xff] }
 0x581   : >> { %v2774_v10 = vpop.permute.xlu1 %2773  ;;  %v1977_v51 = vmax.f32 %v1880_v33, %v1961_v38 }
 0x582   : >> { %vm2794_vm6 = vcmp.eq.s32.totalorder %v2774_v10, 1  ;;  %2779 = vperm.xlu0 %4418, %v9560_v57   ;;  %3101 = vperm.xlu1 %4405, %v7674_v26   ;;  %v2386_v29 = vpop.permute.xlu2 %2385  ;;  %v3517_v60 = vpop.permute.xlu0 %3516 }
 0x583   : >> { %v2811_v47 = vsel %vm2794_vm6, %v7577_v1, -inf  ;;  %2576 = vperm.xlu2 %4393, %v9551_v9   ;;  %vm2406_vm7 = vcmp.eq.s32.totalorder %v2386_v29, 1  ;;  %vm3537_vm8 = vcmp.eq.s32.totalorder %v3517_v60, 1  ;;  %v2122_v9 = vsel %vm2105_vm9, %v6260_v22, -inf }
 0x584   : >> { %v2730_v50 = vmax.f32 %v9562_v45, %v2811_v47  ;;  %v2423_v10 = vsel %vm2406_vm7, %v6581_v40, -inf  ;;  %v7686_v23 = vsel %vm3537_vm8, %v7604_v44, -inf  ;;  %v2138_v29 = vmax.f32 %v1977_v51, %v1864_v36  ;;  %v9566_v44 = vld [vmem:[#allocation66_spill] sm:$0xff]  ;;  %v9567_v36 = vld [vmem:[#allocation19_spill] sm:$0xff] }
 0x585   : >> { %v2219_v47 = vsel %vm2202_vm10, %v6461_v12, -inf }
 0x586   : >> { %v7690_v8 = vmax.f32 %v2730_v50, %v2423_v10  ;;  %v2235_v45 = vmax.f32 %v2138_v29, %v2122_v9  ;;  %v2607_v10 = vsel %vm2590_vm12, %v9468_v48, -inf  ;;  %v9568_v9 = vmax.f32 %v7518_v5, %v7531_v21 }
 0x587   : >> { %v2413_v5 = vsel %vm2396_vm15, %v6581_v40, -inf }
 0x588   : >> { %v2332_v50 = vmax.f32 %v2235_v45, %v2219_v47 }
 0x58a   : >> { %3574 = vperm.xlu0 %4418, %v9565_v63   ;;  %3110 = vperm.xlu1 %4405, %v9566_v44   ;;  %v2896_v33 = vpop.permute.xlu1 %2895  ;;  %v2429_v45 = vmax.f32 %v2332_v50, %v2607_v10  ;;  %v9572_v10 = vld [vmem:[#allocation317_spill] sm:$0xff] }
 0x58b   : >> { %vm2942_vm11 = vcmp.eq.s32.totalorder %v2896_v33, 1  ;;  %2585 = vperm.xlu2 %4393, %v9560_v57   ;;  %v2444_v38 = vpop.permute.xlu2 %2443  ;;  %v2704_v57 = vsel %vm2687_vm13, %v7459_v62, -inf }
 0x58c   : >> { %v2959_v51 = vsel %vm2942_vm11, %v9567_v36, -inf  ;;  %vm2490_vm14 = vcmp.eq.s32.totalorder %v2444_v38, 1  ;;  %v1061_v19 = vpop.permute.xlu0 %1060  ;;  %v2526_v21 = vmax.f32 %v2429_v45, %v2704_v57  ;;  %v9570_v38 = vld [vmem:[#allocation69_spill] sm:$0xff] }
 0x58d   : >> { %v7707_v29 = vmax.f32 %v9568_v9, %v2959_v51  ;;  %v7710_v30 = vsel %vm2490_vm14, %v9569_v11, -inf  ;;  %vm1103_vm0 = vcmp.eq.s32.totalorder %v1061_v19, 1  ;;  %v9571_v9 = vmov 6  }
 0x58e   : >> { %v7714_v47 = vsel %vm1103_vm0, %v6740_v16, -inf  ;;  %v2623_v19 = vmax.f32 %v2526_v21, %v2413_v5  ;;  %v9573_v5 = vmax.f32 %v7630_v18, %v7636_v24 }
 0x592   : >> { %3589 = vperm.xlu0 %4418, %v9490_v59   ;;  %3119 = vperm.xlu1 %4405, %v9570_v38   ;;  %v2905_v51 = vpop.permute.xlu1 %2904 }
 0x593   : >> { %vm2945_vm1 = vcmp.eq.s32.totalorder %v2905_v51, 1  ;;  %4395 = vset.pattern.permute.xlu2 %v9571_v9  ;;  %v2453_v60 = vpop.permute.xlu2 %2452  ;;  %v9574_v51 = vld [vmem:[#allocation72_spill] sm:$0xff] }
 0x594   : >> { %v2962_v50 = vsel %vm2945_vm1, %v9567_v36, -inf  ;;  %2643 = vperm.xlu2 %4395, %v9572_v10   ;;  %vm2493_vm2 = vcmp.eq.s32.totalorder %v2453_v60, 1  ;;  %v1076_v33 = vpop.permute.xlu0 %1075 }
 0x595   : >> { %v2720_v61 = vmax.f32 %v2623_v19, %v2962_v50  ;;  %v2510_v44 = vsel %vm2493_vm2, %v9569_v11, -inf  ;;  %vm1108_vm3 = vcmp.eq.s32.totalorder %v1076_v33, 1  ;;  %v9575_v50 = vmax.f32 %v7657_v37, %v7661_v55 }
 0x596   : >> { %v1125_v57 = vsel %vm1108_vm3, %v6740_v16, -inf }
 0x597   : >> { %v7728_v45 = vmax.f32 %v2720_v61, %v2510_v44  ;;  %v7733_v21 = vmax.f32 %v9573_v5, %v1125_v57  ;;  %v9576_v5 = vmov 3  }
 0x59a   : >> { %3598 = vperm.xlu0 %4418, %v9496_v14   ;;  %3128 = vperm.xlu1 %4405, %v9574_v51   ;;  %v2911_v10 = vpop.permute.xlu1 %2910 }
 0x59b   : >> { %vm2947_vm4 = vcmp.eq.s32.totalorder %v2911_v10, 1  ;;  %v2459_v60 = vpop.permute.xlu2 %2458 }
 0x59c   : >> { %v2964_v19 = vsel %vm2947_vm4, %v9567_v36, -inf  ;;  %2649 = vperm.xlu2 %4395, %v5138_v7   ;;  %vm2495_vm5 = vcmp.eq.s32.totalorder %v2459_v60, 1  ;;  %v1085_v33 = vpop.permute.xlu0 %1084  ;;  %v9577_v60 = vld [vmem:[#allocation159_spill] sm:$0xff] }
 0x59d   : >> { %v2980_v44 = vmax.f32 %v7593_v46, %v2964_v19  ;;  %v2512_v61 = vsel %vm2495_vm5, %v9569_v11, -inf  ;;  %vm1111_vm6 = vcmp.eq.s32.totalorder %v1085_v33, 1 }
 0x59e   : >> { %v1128_v18 = vsel %vm1111_vm6, %v6740_v16, -inf }
 0x59f   : >> { %v7742_v24 = vmax.f32 %v2980_v44, %v2512_v61  ;;  %v7747_v57 = vmax.f32 %v9575_v50, %v1128_v18  ;;  %v9578_v61 = vmax.f32 %v7690_v8, %v7686_v23 }
 0x5a2   : >> { %3607 = vperm.xlu0 %4418, %v9501_v42   ;;  %4407 = vset.pattern.permute.xlu1 %v9576_v5  ;;  %v2920_v7 = vpop.permute.xlu1 %2919 }
 0x5a3   : >> { %vm2950_vm7 = vcmp.eq.s32.totalorder %v2920_v7, 1  ;;  %3186 = vperm.xlu1 %4407, %v9565_v63   ;;  %v2468_v46 = vpop.permute.xlu2 %2467 }
 0x5a4   : >> { %v2967_v10 = vsel %vm2950_vm7, %v9567_v36, -inf  ;;  %2658 = vperm.xlu2 %4395, %v9577_v60   ;;  %vm2498_vm8 = vcmp.eq.s32.totalorder %v2468_v46, 1  ;;  %v1094_v19 = vpop.permute.xlu0 %1093  ;;  %v9579_v46 = vld [vmem:[#allocation55_spill] sm:$0xff] }
 0x5a5   : >> { %v2983_v33 = vmax.f32 %v7555_v0, %v2967_v10  ;;  %v2515_v37 = vsel %vm2498_vm8, %v9569_v11, -inf  ;;  %vm1114_vm9 = vcmp.eq.s32.totalorder %v1094_v19, 1 }
 0x5a6   : >> { %v1131_v55 = vsel %vm1114_vm9, %v6740_v16, -inf }
 0x5a7   : >> { %v7757_v44 = vmax.f32 %v2983_v33, %v2515_v37  ;;  %v7762_v18 = vmax.f32 %v9578_v61, %v1131_v55  ;;  %v9580_v33 = vmax.f32 %v7278_v6, %v7470_v53  ;;  %v9581_v53 = vmax.f32 %v7414_v28, %v7504_v34 }
 0x5aa   : >> { %3616 = vperm.xlu0 %4418, %v9504_v54   ;;  %v2929_v50 = vpop.permute.xlu1 %2928 }
 0x5ab   : >> { %vm2953_vm10 = vcmp.eq.s32.totalorder %v2929_v50, 1  ;;  %3195 = vperm.xlu1 %4407, %v9482_v27   ;;  %v2477_v7 = vpop.permute.xlu2 %2476 }
 0x5ac   : >> { %v2970_v0 = vsel %vm2953_vm10, %v9567_v36, -inf  ;;  %2667 = vperm.xlu2 %4395, %v9579_v46   ;;  %vm2501_vm12 = vcmp.eq.s32.totalorder %v2477_v7, 1  ;;  %v1898_v10 = vpop.permute.xlu0 %1897 }
 0x5ad   : >> { %v2986_v60 = vmax.f32 %v7667_v2, %v2970_v0  ;;  %v2518_v19 = vsel %vm2501_vm12, %v9569_v11, -inf  ;;  %vm1942_vm13 = vcmp.eq.s32.totalorder %v1898_v10, 1 }
 0x5ae   : >> { %v1959_v23 = vsel %vm1942_vm13, %v6714_v15, -inf }
 0x5af   : >> { %v7771_v8 = vmax.f32 %v2986_v60, %v2518_v19  ;;  %v2815_v37 = vmax.f32 %v9580_v33, %v1959_v23 }
 0x5b2   : >> { %v2938_v55 = vpop.permute.xlu1 %2937 }
 0x5b3   : >> { %vm2956_vm11 = vcmp.eq.s32.totalorder %v2938_v55, 1  ;;  %3201 = vperm.xlu1 %4407, %v9490_v59   ;;  %v2486_v61 = vpop.permute.xlu2 %2485  ;;  %v9584_v55 = vld [vmem:[#allocation51_spill] sm:$0xff] }
 0x5b4   : >> { %v2973_v50 = vsel %vm2956_vm11, %v9567_v36, -inf  ;;  %2676 = vperm.xlu2 %4395, %v9455_v49   ;;  %vm2504_vm14 = vcmp.eq.s32.totalorder %v2486_v61, 1  ;;  %v1913_v2 = vpop.permute.xlu0 %1912  ;;  %v9582_v49 = vmov 7   ;;  %vm426_vm3 = vcmp.eq.s32.totalorder %v9584_v55, 1 }
 0x5b5   : >> { %v2989_v7 = vmax.f32 %v7598_v17, %v2973_v50  ;;  %v2521_v0 = vsel %vm2504_vm14, %v9569_v11, -inf  ;;  %vm1947_vm15 = vcmp.eq.s32.totalorder %v1913_v2, 1  ;;  %v9583_v17 = vld [vmem:[#allocation120_spill] sm:$0xff]  ;;  %v9585_v50 = vmax.f32 %v7528_v4, %v7633_v25 }
 0x5b6   : >> { %v1964_v46 = vsel %vm1947_vm15, %v6714_v15, -inf }
 0x5b7   : >> { %v7782_v6 = vmax.f32 %v2989_v7, %v2521_v0  ;;  %v2820_v10 = vmax.f32 %v9581_v53, %v1964_v46  ;;  %v9586_v7 = vld [vmem:[#allocation53_spill] sm:$0xff]  ;;  %v443_v46 = vsel %vm426_vm3, %v9519_v58, -inf }
 0x5b8   : >> { %vm523_vm4 = vcmp.eq.s32.totalorder %v9586_v7, 1 }
 0x5b9   : >> { %v540_v53 = vsel %vm523_vm4, %v9520_v20, -inf  ;;  %v9590_v20 = vld [vmem:[#allocation122_spill] sm:$0xff] }
 0x5ba   : >> { %vm717_vm9 = vcmp.eq.s32.totalorder %v9590_v20, 1  ;;  %v9595_v20 = vld [vmem:[#allocation147_spill] sm:$0xff] }
 0x5bb   : >> { %3210 = vperm.xlu1 %4407, %v9496_v14   ;;  %v2996_v60 = vpop.permute.xlu1 %2995  ;;  %vm2203_vm13 = vcmp.eq.s32.totalorder %v9595_v20, 1  ;;  %v9603_v20 = vld [vmem:[#allocation212_spill] sm:$0xff] }
 0x5bc   : >> { %vm3040_vm0 = vcmp.eq.s32.totalorder %v2996_v60, 1  ;;  %4396 = vset.pattern.permute.xlu2 %v9582_v49  ;;  %v1922_v19 = vpop.permute.xlu0 %1921  ;;  %v2544_v23 = vpop.permute.xlu2 %2543  ;;  %v9588_v60 = vld [vmem:[#allocation23_spill] sm:$0xff] }
 0x5bd   : >> { %v3057_v33 = vsel %vm3040_vm0, %v9583_v17, -inf  ;;  %vm1950_vm1 = vcmp.eq.s32.totalorder %v1922_v19, 1  ;;  %2734 = vperm.xlu2 %4396, %v5517_v43   ;;  %vm2588_vm2 = vcmp.eq.s32.totalorder %v2544_v23, 1  ;;  %v9587_v43 = vld [vmem:[#allocation56_spill] sm:$0xff]  ;;  %v459_v19 = vmax.f32 %v9588_v60, %v443_v46  ;;  %v9589_v23 = vld [vmem:[#allocation93_spill] sm:$0xff]  ;;  %v9592_v46 = vld [vmem:[#allocation82_spill] sm:$0xff] }
 0x5be   : >> { %v2976_v61 = vmax.f32 %v2815_v37, %v3057_v33  ;;  %v1967_v28 = vsel %vm1950_vm1, %v6714_v15, -inf  ;;  %v2605_v34 = vsel %vm2588_vm2, %v9468_v48, -inf  ;;  %vm620_vm5 = vcmp.eq.s32.totalorder %v9587_v43, 1 }
 0x5bf   : >> { %v7797_v2 = vmax.f32 %v9585_v50, %v1967_v28  ;;  %vm2106_vm6 = vcmp.eq.s32.totalorder %v9589_v23, 1  ;;  %v637_v33 = vsel %vm620_vm5, %v9373_v35, -inf  ;;  %v556_v58 = vmax.f32 %v459_v19, %v540_v53  ;;  %v9594_v19 = vld [vmem:[#allocation17_spill] sm:$0xff] }
 0x5c0   : >> { %v7800_v0 = vmax.f32 %v2976_v61, %v2605_v34  ;;  %v2123_v34 = vsel %vm2106_vm6, %v6260_v22, -inf  ;;  %v9591_v50 = vmax.f32 %v7496_v31, %v7540_v13  ;;  %v734_v43 = vsel %vm717_vm9, %v9592_v46, -inf  ;;  %v9596_v13 = vld [vmem:[#allocation155_spill] sm:$0xff]  ;;  %v9599_v46 = vld [vmem:[#allocation140_spill] sm:$0xff] }
 0x5c1   : >> { %v653_v7 = vmax.f32 %v556_v58, %v637_v33  ;;  %vm1008_vm1 = vcmp.eq.s32.totalorder %v9603_v20, 1 }
 0x5c3   : >> { %3219 = vperm.xlu1 %4407, %v9501_v42   ;;  %v3002_v37 = vpop.permute.xlu1 %3001 }
 0x5c4   : >> { %vm3042_vm7 = vcmp.eq.s32.totalorder %v3002_v37, 1  ;;  %v1931_v4 = vpop.permute.xlu0 %1930  ;;  %v7808_v25 = vpop.permute.xlu2 %2552  ;;  %v9593_v37 = vld [vmem:[#allocation146_spill] sm:$0xff] }
 0x5c5   : >> { %v7812_v55 = vsel %vm3042_vm7, %v9583_v17, -inf  ;;  %vm1953_vm8 = vcmp.eq.s32.totalorder %v1931_v4, 1  ;;  %2743 = vperm.xlu2 %4396, %v5530_v39   ;;  %vm814_vm10 = vcmp.eq.s32.totalorder %v9593_v37, 1  ;;  %v750_v39 = vmax.f32 %v653_v7, %v2123_v34  ;;  %v9598_v7 = vld [vmem:[#allocation135_spill] sm:$0xff] }
 0x5c6   : >> { %v2978_v61 = vmax.f32 %v7728_v45, %v7812_v55  ;;  %v1970_v28 = vsel %vm1953_vm8, %v6714_v15, -inf  ;;  %v831_v23 = vsel %vm814_vm10, %v9594_v19, -inf  ;;  %v9601_v19 = vld [vmem:[#allocation201_spill] sm:$0xff] }
 0x5c7   : >> { %v7823_v35 = vmax.f32 %v9591_v50, %v1970_v28  ;;  %v847_v60 = vmax.f32 %v750_v39, %v734_v43  ;;  %v9597_v50 = vld [vmem:[#allocation167_spill] sm:$0xff]  ;;  %v9600_v43 = vmax.f32 %v9598_v7, %v9599_v46  ;;  %v2220_v39 = vsel %vm2203_vm13, %v6461_v12, -inf  ;;  %v9606_v12 = vld [vmem:[#allocation220_spill] sm:$0xff] }
 0x5c8   : >> { %vm911_vm15 = vcmp.eq.s32.totalorder %v9597_v50, 1  ;;  %vm1105_vm0 = vcmp.eq.s32.totalorder %v9601_v19, 1  ;;  %vm1266_vm3 = vcmp.eq.s32.totalorder %v9606_v12, 1  ;;  %v9608_v7 = vld [vmem:[#allocation12_spill] sm:$0xff]  ;;  %v9609_v19 = vld [vmem:[#allocation253_spill] sm:$0xff]  ;;  %v9611_v12 = vld [vmem:[#allocation255_spill] sm:$0xff] }
 0x5c9   : >> { %v944_v34 = vmax.f32 %v847_v60, %v831_v23  ;;  %v1122_v23 = vsel %vm1105_vm0, %v6740_v16, -inf  ;;  %v1025_v46 = vsel %vm1008_vm1, %v9608_v7, -inf  ;;  %vm1460_vm6 = vcmp.eq.s32.totalorder %v9609_v19, 1  ;;  %v9613_v19 = vld [vmem:[#allocation269_spill] sm:$0xff] }
 0x5ca   : >> { %vm2397_vm7 = vcmp.eq.s32.totalorder %v9611_v12, 1  ;;  %vm1557_vm10 = vcmp.eq.s32.totalorder %v9613_v19, 1 }
 0x5cb   : >> { %3228 = vperm.xlu1 %4407, %v9504_v54   ;;  %v3011_v53 = vpop.permute.xlu1 %3010 }
 0x5cc   : >> { %vm3045_vm12 = vcmp.eq.s32.totalorder %v3011_v53, 1  ;;  %v1940_v4 = vpop.permute.xlu0 %1939  ;;  %v2559_v22 = vpop.permute.xlu2 %2558 }
 0x5cd   : >> { %v3062_v31 = vsel %vm3045_vm12, %v9583_v17, -inf  ;;  %vm1956_vm11 = vcmp.eq.s32.totalorder %v1940_v4, 1  ;;  %2749 = vperm.xlu2 %4396, %v9596_v13   ;;  %vm2593_vm14 = vcmp.eq.s32.totalorder %v2559_v22, 1  ;;  %v9602_v4 = vld [vmem:[#allocation95_spill] sm:$0xff]  ;;  %v1041_v22 = vmax.f32 %v944_v34, %v2220_v39 }
 0x5ce   : >> { %v2981_v33 = vmax.f32 %v2820_v10, %v3062_v31  ;;  %v1973_v58 = vsel %vm1956_vm11, %v6714_v15, -inf  ;;  %v2610_v28 = vsel %vm2593_vm14, %v9468_v48, -inf  ;;  %v928_v10 = vsel %vm911_vm15, %v9602_v4, -inf }
 0x5cf   : >> { %v7838_v37 = vmax.f32 %v9600_v43, %v1973_v58  ;;  %v9604_v31 = vmov 4   ;;  %v9605_v58 = vld [vmem:[#allocation174_spill] sm:$0xff]  ;;  %v1138_v50 = vmax.f32 %v1041_v22, %v928_v10  ;;  %v9610_v22 = vld [vmem:[#allocation65_spill] sm:$0xff] }
 0x5d0   : >> { %v7841_v53 = vmax.f32 %v2981_v33, %v2610_v28  ;;  %v9607_v28 = vld [vmem:[#allocation52_spill] sm:$0xff]  ;;  %v1283_v20 = vsel %vm1266_vm3, %v9610_v22, -inf }
 0x5d1   : >> { %v1299_v16 = vmax.f32 %v1138_v50, %v1122_v23  ;;  %v2414_v50 = vsel %vm2397_vm7, %v6581_v40, -inf }
 0x5d3   : >> { %4410 = vset.pattern.permute.xlu1 %v9604_v31  ;;  %v3020_v60 = vpop.permute.xlu1 %3019 }
 0x5d4   : >> { %vm3048_vm2 = vcmp.eq.s32.totalorder %v3020_v60, 1  ;;  %v2738_v13 = vpop.permute.xlu0 %2737  ;;  %3286 = vperm.xlu1 %4410, %v9605_v58  }
 0x5d5   : >> { %v3065_v33 = vsel %vm3048_vm2, %v9583_v17, -inf  ;;  %vm2782_vm4 = vcmp.eq.s32.totalorder %v2738_v13, 1  ;;  %2758 = vperm.xlu2 %4396, %v9607_v28   ;;  %v2568_v34 = vpop.permute.xlu2 %2567  ;;  %v1396_v13 = vmax.f32 %v1299_v16, %v1025_v46  ;;  %v9612_v28 = vld [vmem:[#allocation263_spill] sm:$0xff]  ;;  %v9614_v46 = vld [vmem:[#allocation166_spill] sm:$0xff] }
 0x5d6   : >> { %v2984_v43 = vmax.f32 %v7797_v2, %v3065_v33  ;;  %v7855_v39 = vsel %vm2782_vm4, %v7577_v1, -inf  ;;  %vm2596_vm5 = vcmp.eq.s32.totalorder %v2568_v34, 1  ;;  %v1477_v2 = vsel %vm1460_vm6, %v9546_v3, -inf  ;;  %v9615_v3 = vld [vmem:[#allocation88_spill] sm:$0xff] }
 0x5d7   : >> { %v3170_v4 = vmax.f32 %v7800_v0, %v7855_v39  ;;  %v2613_v10 = vsel %vm2596_vm5, %v9468_v48, -inf  ;;  %v1493_v33 = vmax.f32 %v1396_v13, %v1283_v20  ;;  %vm1363_vm8 = vcmp.eq.s32.totalorder %v9612_v28, 1  ;;  %v9616_v13 = vld [vmem:[#allocation300_spill] sm:$0xff] }
 0x5d8   : >> { %v7862_v60 = vmax.f32 %v2984_v43, %v2613_v10  ;;  %v1380_v10 = vsel %vm1363_vm8, %v9615_v3, -inf  ;;  %vm1751_vm11 = vcmp.eq.s32.totalorder %v9616_v13, 1  ;;  %v9621_v13 = vld [vmem:[#allocation105_spill] sm:$0xff] }
 0x5d9   : >> { %v1590_v7 = vmax.f32 %v1493_v33, %v1477_v2  ;;  %v9617_v33 = vld [vmem:[#allocation101_spill] sm:$0xff]  ;;  %v1768_v19 = vsel %vm1751_vm11, %v6661_v41, -inf  ;;  %v9623_v41 = vld [vmem:[#allocation106_spill] sm:$0xff] }
 0x5da   : >> { %v1574_v28 = vsel %vm1557_vm10, %v9617_v33, -inf  ;;  %vm1945_vm2 = vcmp.eq.s32.totalorder %v9623_v41, 1  ;;  %v9627_v41 = vld [vmem:[#allocation136_spill] sm:$0xff] }
 0x5db   : >> { %v3029_v23 = vpop.permute.xlu1 %3028  ;;  %v1687_v40 = vmax.f32 %v1590_v7, %v2414_v50  ;;  %v9620_v7 = vld [vmem:[#allocation177_spill] sm:$0xff]  ;;  %vm2785_vm6 = vcmp.eq.s32.totalorder %v9627_v41, 1 }
 0x5dc   : >> { %vm3051_vm9 = vcmp.eq.s32.totalorder %v3029_v23, 1  ;;  %v2753_v34 = vpop.permute.xlu0 %2752  ;;  %3292 = vperm.xlu1 %4410, %v9482_v27  }
 0x5dd   : >> { %v3068_v43 = vsel %vm3051_vm9, %v9583_v17, -inf  ;;  %vm2787_vm12 = vcmp.eq.s32.totalorder %v2753_v34, 1  ;;  %2767 = vperm.xlu2 %4396, %v9614_v46   ;;  %v2577_v16 = vpop.permute.xlu2 %2576  ;;  %v1784_v34 = vmax.f32 %v1687_v40, %v1380_v10  ;;  %vm2591_vm9 = vcmp.eq.s32.totalorder %v7808_v25, 1 }
 0x5de   : >> { %v2987_v22 = vmax.f32 %v7823_v35, %v3068_v43  ;;  %v7875_v20 = vsel %vm2787_vm12, %v7577_v1, -inf  ;;  %vm2599_vm13 = vcmp.eq.s32.totalorder %v2577_v16, 1  ;;  %v9618_v35 = vld [vmem:[#allocation310_spill] sm:$0xff]  ;;  %v2608_v25 = vsel %vm2591_vm9, %v9468_v48, -inf }
 0x5df   : >> { %v2616_v2 = vsel %vm2599_vm13, %v9468_v48, -inf  ;;  %vm1654_vm14 = vcmp.eq.s32.totalorder %v9618_v35, 1  ;;  %v1881_v43 = vmax.f32 %v1784_v34, %v1574_v28  ;;  %v9619_v16 = vld [vmem:[#allocation318_spill] sm:$0xff] }
 0x5e0   : >> { %v7882_v23 = vmax.f32 %v2987_v22, %v2616_v2  ;;  %vm1848_vm15 = vcmp.eq.s32.totalorder %v9619_v16, 1  ;;  %v1671_v12 = vsel %vm1654_vm14, %v9621_v13, -inf  ;;  %v9622_v22 = vld [vmem:[#allocation113_spill] sm:$0xff]  ;;  %v1962_v16 = vsel %vm1945_vm2, %v6714_v15, -inf  ;;  %v9625_v13 = vld [vmem:[#allocation132_spill] sm:$0xff]  ;;  %v9635_v34 = vld [vmem:[#allocation62_spill] sm:$0xff] }
 0x5e1   : >> { %v1978_v3 = vmax.f32 %v1881_v43, %v1768_v19  ;;  %v1865_v28 = vsel %vm1848_vm15, %v6643_v52, -inf  ;;  %v9624_v43 = vld [vmem:[#allocation119_spill] sm:$0xff]  ;;  %vm2300_vm5 = vcmp.eq.s32.totalorder %v9625_v13, 1  ;;  %v9626_v52 = vld [vmem:[#allocation181_spill] sm:$0xff] }
 0x5e2   : >> { %vm2494_vm4 = vcmp.eq.s32.totalorder %v9624_v43, 1  ;;  %v9630_v43 = vmax.f32 %v7619_v56, %v7714_v47 }
 0x5e3   : >> { %v3038_v46 = vpop.permute.xlu1 %3037  ;;  %v2139_v35 = vmax.f32 %v1978_v3, %v1671_v12  ;;  %v9628_v3 = vld [vmem:[#allocation100_spill] sm:$0xff] }
 0x5e4   : >> { %vm3054_vm0 = vcmp.eq.s32.totalorder %v3038_v46, 1  ;;  %v2762_v50 = vpop.permute.xlu0 %2761  ;;  %3301 = vperm.xlu1 %4410, %v9620_v7  }
 0x5e5   : >> { %v3071_v33 = vsel %vm3054_vm0, %v9583_v17, -inf  ;;  %vm2790_vm1 = vcmp.eq.s32.totalorder %v2762_v50, 1  ;;  %2776 = vperm.xlu2 %4396, %v9622_v22   ;;  %v2586_v10 = vpop.permute.xlu2 %2585  ;;  %v2236_v50 = vmax.f32 %v2139_v35, %v1865_v28 }
 0x5e6   : >> { %v2990_v40 = vmax.f32 %v7838_v37, %v3071_v33  ;;  %v7894_v2 = vsel %vm2790_vm1, %v7577_v1, -inf  ;;  %vm2602_vm3 = vcmp.eq.s32.totalorder %v2586_v10, 1  ;;  %v2511_v37 = vsel %vm2494_vm4, %v9569_v11, -inf  ;;  %v9629_v11 = vld [vmem:[#allocation13_spill] sm:$0xff] }
 0x5e7   : >> { %v2619_v19 = vsel %vm2602_vm3, %v9468_v48, -inf  ;;  %v2333_v33 = vmax.f32 %v2236_v50, %v1962_v16  ;;  %v2802_v16 = vsel %vm2785_vm6, %v7577_v1, -inf }
 0x5e8   : >> { %v7901_v46 = vmax.f32 %v2990_v40, %v2619_v19  ;;  %v2317_v40 = vsel %vm2300_vm5, %v9628_v3, -inf }
 0x5e9   : >> { %v2430_v12 = vmax.f32 %v2333_v33, %v2511_v37 }
 0x5eb   : >> { %v2527_v37 = vmax.f32 %v2430_v12, %v2317_v40 }
 0x5ec   : >> { %v2771_v22 = vpop.permute.xlu0 %2770  ;;  %3310 = vperm.xlu1 %4410, %v9626_v52   ;;  %v3096_v10 = vpop.permute.xlu1 %3095 }
 0x5ed   : >> { %vm2793_vm7 = vcmp.eq.s32.totalorder %v2771_v22, 1  ;;  %vm3138_vm8 = vcmp.eq.s32.totalorder %v3096_v10, 1  ;;  %4399 = vset.pattern.permute.xlu2 %v9558_v32  ;;  %v2624_v33 = vmax.f32 %v2527_v37, %v2802_v16  ;;  %v9631_v10 = vld [vmem:[#allocation184_spill] sm:$0xff] }
 0x5ee   : >> { %v7911_v15 = vsel %vm2793_vm7, %v7577_v1, -inf  ;;  %v3155_v28 = vsel %vm3138_vm8, %v9629_v11, -inf  ;;  %2898 = vperm.xlu2 %4399, %v9605_v58   ;;  %v2644_v19 = vpop.permute.xlu2 %2643 }
 0x5ef   : >> { %v7921_v32 = vmax.f32 %v9630_v43, %v3155_v28  ;;  %vm2686_vm10 = vcmp.eq.s32.totalorder %v2644_v19, 1  ;;  %v2721_v47 = vmax.f32 %v2624_v33, %v2608_v25  ;;  %v4425_v43 = vld [vmem:[%s6122_s21 + $0x18] sm:$0xff]  ;;  %v9632_v25 = vld [vmem:[#allocation188_spill] sm:$0xff] }
 0x5f0   : >> { %v7925_v50 = vsel %vm2686_vm10, %v7459_v62, -inf  ;;  %v7946_v16 = vperm.slane %v4425_v43, 7 }
 0x5f4   : >> { %v2780_v22 = vpop.permute.xlu0 %2779  ;;  %3319 = vperm.xlu1 %4410, %v9631_v10   ;;  %v3102_v56 = vpop.permute.xlu1 %3101 }
 0x5f5   : >> { %vm2796_vm12 = vcmp.eq.s32.totalorder %v2780_v22, 1  ;;  %vm3140_vm13 = vcmp.eq.s32.totalorder %v3102_v56, 1 }
 0x5f6   : >> { %v7932_v41 = vsel %vm2796_vm12, %v7577_v1, -inf  ;;  %v3157_v3 = vsel %vm3140_vm13, %v9629_v11, -inf  ;;  %2907 = vperm.xlu2 %4399, %v7674_v26   ;;  %v2650_v12 = vpop.permute.xlu2 %2649 }
 0x5f7   : >> { %v7938_v40 = vmax.f32 %v2721_v47, %v3157_v3  ;;  %vm2688_vm11 = vcmp.eq.s32.totalorder %v2650_v12, 1  ;;  %v9633_v3 = vmax.f32 %v7707_v29, %v7710_v30 }
 0x5f8   : >> { %v7941_v28 = vsel %vm2688_vm11, %v7459_v62, -inf }
 0x5f9   : >> { %v9641_v39 = vmax.f32 %v7938_v40, %v7941_v28 }
 0x5fc   : >> { %v3575_v37 = vpop.permute.xlu0 %3574  ;;  %3328 = vperm.xlu1 %4410, %v9632_v25   ;;  %v3111_v33 = vpop.permute.xlu1 %3110 }
 0x5fd   : >> { %vm3621_vm14 = vcmp.eq.s32.totalorder %v3575_v37, 1  ;;  %vm3143_vm15 = vcmp.eq.s32.totalorder %v3111_v33, 1  ;;  %v9634_v33 = vmov 5  }
 0x5fe   : >> { %v3638_v22 = vsel %vm3621_vm14, %v7946_v16, -inf  ;;  %v3160_v56 = vsel %vm3143_vm15, %v9629_v11, -inf  ;;  %2913 = vperm.xlu2 %4399, %v9620_v7   ;;  %v2659_v47 = vpop.permute.xlu2 %2658 }
 0x5ff   : >> { %v3169_v12 = vmax.f32 %v9633_v3, %v3638_v22  ;;  %v3176_v43 = vmax.f32 %v7733_v21, %v3160_v56  ;;  %vm2691_vm0 = vcmp.eq.s32.totalorder %v2659_v47, 1 }
 0x600   : >> { %v2708_v13 = vsel %vm2691_vm0, %v7459_v62, -inf }
 0x601   : >> { %v7957_v48 = vmax.f32 %v3176_v43, %v2708_v13 }
 0x604   : >> { %v3590_v37 = vpop.permute.xlu0 %3589  ;;  %4414 = vset.pattern.permute.xlu1 %v9634_v33  ;;  %v3120_v35 = vpop.permute.xlu1 %3119 }
 0x605   : >> { %vm3626_vm1 = vcmp.eq.s32.totalorder %v3590_v37, 1  ;;  %vm3146_vm2 = vcmp.eq.s32.totalorder %v3120_v35, 1  ;;  %3386 = vperm.xlu1 %4414, %v9635_v34  }
 0x606   : >> { %v3643_v19 = vsel %vm3626_vm1, %v7946_v16, -inf  ;;  %v3163_v29 = vsel %vm3146_vm2, %v9629_v11, -inf  ;;  %2922 = vperm.xlu2 %4399, %v9626_v52   ;;  %v2668_v30 = vpop.permute.xlu2 %2667 }
 0x607   : >> { %v3174_v21 = vmax.f32 %v7742_v24, %v3643_v19  ;;  %v3179_v13 = vmax.f32 %v7747_v57, %v3163_v29  ;;  %vm2694_vm3 = vcmp.eq.s32.totalorder %v2668_v30, 1 }
 0x608   : >> { %v2711_v22 = vsel %vm2694_vm3, %v7459_v62, -inf }
 0x609   : >> { %v7967_v56 = vmax.f32 %v3179_v13, %v2711_v22  ;;  %v9636_v13 = vld [vmem:[#allocation66_spill] sm:$0xff] }
 0x60c   : >> { %v3599_v47 = vpop.permute.xlu0 %3598  ;;  %v3129_v35 = vpop.permute.xlu1 %3128 }
 0x60d   : >> { %vm3629_vm4 = vcmp.eq.s32.totalorder %v3599_v47, 1  ;;  %vm3149_vm5 = vcmp.eq.s32.totalorder %v3129_v35, 1  ;;  %3392 = vperm.xlu1 %4414, %v7674_v26  }
 0x60e   : >> { %v3646_v3 = vsel %vm3629_vm4, %v7946_v16, -inf  ;;  %v3166_v43 = vsel %vm3149_vm5, %v9629_v11, -inf  ;;  %2931 = vperm.xlu2 %4399, %v9631_v10   ;;  %v2677_v24 = vpop.permute.xlu2 %2676 }
 0x60f   : >> { %v3177_v57 = vmax.f32 %v7757_v44, %v3646_v3  ;;  %v3182_v19 = vmax.f32 %v7762_v18, %v3166_v43  ;;  %vm2697_vm6 = vcmp.eq.s32.totalorder %v2677_v24, 1  ;;  %v9637_v44 = vld [vmem:[#allocation99_spill] sm:$0xff] }
 0x610   : >> { %v2714_v37 = vsel %vm2697_vm6, %v7459_v62, -inf }
 0x611   : >> { %v7976_v29 = vmax.f32 %v3182_v19, %v2714_v37 }
 0x614   : >> { %v3608_v30 = vpop.permute.xlu0 %3607 }
 0x615   : >> { %vm3632_vm7 = vcmp.eq.s32.totalorder %v3608_v30, 1  ;;  %3401 = vperm.xlu1 %4414, %v9636_v13   ;;  %v3187_v22 = vpop.permute.xlu1 %3186 }
 0x616   : >> { %v3649_v47 = vsel %vm3632_vm7, %v7946_v16, -inf  ;;  %vm3233_vm8 = vcmp.eq.s32.totalorder %v3187_v22, 1  ;;  %2940 = vperm.xlu2 %4399, %v9632_v25   ;;  %v9638_v22 = vmov 1  }
 0x617   : >> { %v3180_v35 = vmax.f32 %v7771_v8, %v3649_v47  ;;  %v3250_v3 = vsel %vm3233_vm8, %v9637_v44, -inf  ;;  %v2735_v18 = vpop.permute.xlu2 %2734 }
 0x618   : >> { %v3266_v43 = vmax.f32 %v3169_v12, %v3250_v3  ;;  %vm2781_vm9 = vcmp.eq.s32.totalorder %v2735_v18, 1 }
 0x619   : >> { %v2798_v62 = vsel %vm2781_vm9, %v7577_v1, -inf }
 0x61a   : >> { %v7984_v24 = vmax.f32 %v3266_v43, %v2798_v62 }
 0x61c   : >> { %v3617_v19 = vpop.permute.xlu0 %3616 }
 0x61d   : >> { %vm3635_vm10 = vcmp.eq.s32.totalorder %v3617_v19, 1  ;;  %3410 = vperm.xlu1 %4414, %v9570_v38   ;;  %v3196_v37 = vpop.permute.xlu1 %3195 }
 0x61e   : >> { %v3652_v30 = vsel %vm3635_vm10, %v7946_v16, -inf  ;;  %vm3236_vm12 = vcmp.eq.s32.totalorder %v3196_v37, 1  ;;  %4402 = vset.pattern.permute.xlu2 %v9638_v22 }
 0x61f   : >> { %v3183_v8 = vmax.f32 %v7782_v6, %v3652_v30  ;;  %v3253_v47 = vsel %vm3236_vm12, %v9637_v44, -inf  ;;  %2998 = vperm.xlu2 %4402, %v9635_v34   ;;  %v2744_v12 = vpop.permute.xlu2 %2743 }
 0x620   : >> { %v7995_v3 = vmax.f32 %v2978_v61, %v3253_v47  ;;  %vm2784_vm13 = vcmp.eq.s32.totalorder %v2744_v12, 1 }
 0x621   : >> { %v2801_v18 = vsel %vm2784_vm13, %v7577_v1, -inf }
 0x622   : >> { %v3172_v43 = vmax.f32 %v7995_v3, %v2801_v18 }
 0x625   : >> { %3419 = vperm.xlu1 %4414, %v9574_v51   ;;  %v3202_v62 = vpop.permute.xlu1 %3201 }
 0x626   : >> { %vm3238_vm11 = vcmp.eq.s32.totalorder %v3202_v62, 1 }
 0x627   : >> { %v3255_v6 = vsel %vm3238_vm11, %v9637_v44, -inf  ;;  %3004 = vperm.xlu2 %4402, %v7674_v26   ;;  %v2750_v19 = vpop.permute.xlu2 %2749 }
 0x628   : >> { %v8002_v37 = vmax.f32 %v3174_v21, %v3255_v6  ;;  %vm2786_vm14 = vcmp.eq.s32.totalorder %v2750_v19, 1  ;;  %v9640_v19 = vld [vmem:[#allocation127_spill] sm:$0xff] }
 0x629   : >> { %v8005_v45 = vsel %vm2786_vm14, %v7577_v1, -inf }
 0x62d   : >> { %4416 = vset.pattern.permute.xlu1 %v9571_v9  ;;  %v3211_v61 = vpop.permute.xlu1 %3210 }
 0x62e   : >> { %vm3241_vm15 = vcmp.eq.s32.totalorder %v3211_v61, 1  ;;  %3477 = vperm.xlu1 %4416, %v9565_v63  }
 0x62f   : >> { %v3258_v30 = vsel %vm3241_vm15, %v9637_v44, -inf  ;;  %3013 = vperm.xlu2 %4402, %v9636_v13   ;;  %v2759_v22 = vpop.permute.xlu2 %2758 }
 0x630   : >> { %v8013_v21 = vmax.f32 %v3177_v57, %v3258_v30  ;;  %vm2789_vm0 = vcmp.eq.s32.totalorder %v2759_v22, 1 }
 0x631   : >> { %v8016_v47 = vsel %vm2789_vm0, %v7577_v1, -inf }
 0x635   : >> { %v3220_v3 = vpop.permute.xlu1 %3219 }
 0x636   : >> { %vm3244_vm1 = vcmp.eq.s32.totalorder %v3220_v3, 1  ;;  %3486 = vperm.xlu1 %4416, %v9482_v27  }
 0x637   : >> { %v3261_v18 = vsel %vm3244_vm1, %v9637_v44, -inf  ;;  %3022 = vperm.xlu2 %4402, %v9570_v38   ;;  %v2768_v62 = vpop.permute.xlu2 %2767 }
 0x638   : >> { %v8023_v6 = vmax.f32 %v3180_v35, %v3261_v18  ;;  %vm2792_vm2 = vcmp.eq.s32.totalorder %v2768_v62, 1 }
 0x639   : >> { %v8026_v57 = vsel %vm2792_vm2, %v7577_v1, -inf }
 0x63d   : >> { %v3229_v61 = vpop.permute.xlu1 %3228 }
 0x63e   : >> { %vm3247_vm3 = vcmp.eq.s32.totalorder %v3229_v61, 1  ;;  %3492 = vperm.xlu1 %4416, %v9490_v59   ;;  %v9639_v61 = vmov 2  }
 0x63f   : >> { %v3264_v30 = vsel %vm3247_vm3, %v9637_v44, -inf  ;;  %3031 = vperm.xlu2 %4402, %v9574_v51   ;;  %v2777_v22 = vpop.permute.xlu2 %2776 }
 0x640   : >> { %v8033_v3 = vmax.f32 %v3183_v8, %v3264_v30  ;;  %vm2795_vm4 = vcmp.eq.s32.totalorder %v2777_v22, 1 }
 0x641   : >> { %v8036_v35 = vsel %vm2795_vm4, %v7577_v1, -inf }
 0x646   : >> { %3501 = vperm.xlu1 %4416, %v9496_v14   ;;  %v3287_v62 = vpop.permute.xlu1 %3286 }
 0x647   : >> { %vm3331_vm5 = vcmp.eq.s32.totalorder %v3287_v62, 1  ;;  %4404 = vset.pattern.permute.xlu2 %v9639_v61 }
 0x648   : >> { %v3348_v12 = vsel %vm3331_vm5, %v9640_v19, -inf  ;;  %3089 = vperm.xlu2 %4404, %v9565_v63   ;;  %v2899_v55 = vpop.permute.xlu2 %2898 }
 0x649   : >> { %v8047_v8 = vmax.f32 %v3170_v4, %v3348_v12  ;;  %vm2943_vm6 = vcmp.eq.s32.totalorder %v2899_v55, 1 }
 0x64a   : >> { %v8050_v1 = vsel %vm2943_vm6, %v9567_v36, -inf }
 0x64e   : >> { %3510 = vperm.xlu1 %4416, %v9501_v42   ;;  %v3293_v22 = vpop.permute.xlu1 %3292 }
 0x64f   : >> { %vm3333_vm7 = vcmp.eq.s32.totalorder %v3293_v22, 1 }
 0x650   : >> { %v3350_v62 = vsel %vm3333_vm7, %v9640_v19, -inf  ;;  %3098 = vperm.xlu2 %4404, %v9482_v27   ;;  %v2908_v61 = vpop.permute.xlu2 %2907 }
 0x651   : >> { %v8057_v18 = vmax.f32 %v3172_v43, %v3350_v62  ;;  %vm2946_vm8 = vcmp.eq.s32.totalorder %v2908_v61, 1  ;;  %v9642_v43 = vmax.f32 %v7841_v53, %v7875_v20  ;;  %v9643_v20 = vmax.f32 %v7862_v60, %v7894_v2 }
 0x652   : >> { %v2963_v0 = vsel %vm2946_vm8, %v9567_v36, -inf  ;;  %v9644_v60 = vmax.f32 %v7882_v23, %v7911_v15  ;;  %v9645_v23 = vmax.f32 %v7901_v46, %v7932_v41  ;;  %v9647_v41 = vmax.f32 %v7921_v32, %v7925_v50 }
 0x653   : >> { %v8063_v4 = vmax.f32 %v9641_v39, %v2963_v0 }
 0x656   : >> { %3519 = vperm.xlu1 %4416, %v9504_v54   ;;  %v3302_v55 = vpop.permute.xlu1 %3301 }
 0x657   : >> { %vm3336_vm9 = vcmp.eq.s32.totalorder %v3302_v55, 1 }
 0x658   : >> { %v3353_v12 = vsel %vm3336_vm9, %v9640_v19, -inf  ;;  %3104 = vperm.xlu2 %4404, %v9490_v59   ;;  %v2914_v22 = vpop.permute.xlu2 %2913 }
 0x659   : >> { %v8071_v62 = vmax.f32 %v9642_v43, %v3353_v12  ;;  %vm2948_vm10 = vcmp.eq.s32.totalorder %v2914_v22, 1 }
 0x65a   : >> { %v8074_v61 = vsel %vm2948_vm10, %v9567_v36, -inf }
 0x65e   : >> { %4419 = vset.pattern.permute.xlu1 %v9582_v49  ;;  %v3311_v28 = vpop.permute.xlu1 %3310 }
 0x65f   : >> { %vm3339_vm12 = vcmp.eq.s32.totalorder %v3311_v28, 1  ;;  %3577 = vperm.xlu1 %4419, %v9605_v58  }
 0x660   : >> { %v3356_v0 = vsel %vm3339_vm12, %v9640_v19, -inf  ;;  %3113 = vperm.xlu2 %4404, %v9496_v14   ;;  %v2923_v53 = vpop.permute.xlu2 %2922 }
 0x661   : >> { %v8085_v39 = vmax.f32 %v9643_v20, %v3356_v0  ;;  %vm2951_vm13 = vcmp.eq.s32.totalorder %v2923_v53, 1 }
 0x662   : >> { %v8088_v55 = vsel %vm2951_vm13, %v9567_v36, -inf }
 0x666   : >> { %v3320_v22 = vpop.permute.xlu1 %3319 }
 0x667   : >> { %vm3342_vm11 = vcmp.eq.s32.totalorder %v3320_v22, 1  ;;  %3583 = vperm.xlu1 %4419, %v9482_v27  }
 0x668   : >> { %v3359_v43 = vsel %vm3342_vm11, %v9640_v19, -inf  ;;  %3122 = vperm.xlu2 %4404, %v9501_v42   ;;  %v2932_v28 = vpop.permute.xlu2 %2931 }
 0x669   : >> { %v8098_v2 = vmax.f32 %v9644_v60, %v3359_v43  ;;  %vm2954_vm14 = vcmp.eq.s32.totalorder %v2932_v28, 1 }
 0x66a   : >> { %v8101_v0 = vsel %vm2954_vm14, %v9567_v36, -inf }
 0x66e   : >> { %v3329_v20 = vpop.permute.xlu1 %3328 }
 0x66f   : >> { %vm3345_vm15 = vcmp.eq.s32.totalorder %v3329_v20, 1  ;;  %3592 = vperm.xlu1 %4419, %v9620_v7   ;;  %v9646_v20 = vld [vmem:[#allocation115_spill] sm:$0xff] }
 0x670   : >> { %v3362_v22 = vsel %vm3345_vm15, %v9640_v19, -inf  ;;  %3131 = vperm.xlu2 %4404, %v9504_v54   ;;  %v2941_v12 = vpop.permute.xlu2 %2940 }
 0x671   : >> { %v8111_v15 = vmax.f32 %v9645_v23, %v3362_v22  ;;  %vm2957_vm0 = vcmp.eq.s32.totalorder %v2941_v12, 1 }
 0x672   : >> { %v8114_v43 = vsel %vm2957_vm0, %v9567_v36, -inf }
 0x677   : >> { %3601 = vperm.xlu1 %4419, %v9626_v52   ;;  %v3387_v60 = vpop.permute.xlu1 %3386 }
 0x678   : >> { %vm3429_vm1 = vcmp.eq.s32.totalorder %v3387_v60, 1  ;;  %4408 = vset.pattern.permute.xlu2 %v9576_v5 }
 0x679   : >> { %v3446_v53 = vsel %vm3429_vm1, %v9646_v20, -inf  ;;  %3189 = vperm.xlu2 %4408, %v9605_v58   ;;  %v2999_v46 = vpop.permute.xlu2 %2998 }
 0x67a   : >> { %v8125_v12 = vmax.f32 %v9647_v41, %v3446_v53  ;;  %vm3041_vm2 = vcmp.eq.s32.totalorder %v2999_v46, 1 }
 0x67b   : >> { %v8128_v36 = vsel %vm3041_vm2, %v9583_v17, -inf }
 0x67f   : >> { %3610 = vperm.xlu1 %4419, %v9631_v10   ;;  %v3393_v5 = vpop.permute.xlu1 %3392 }
 0x680   : >> { %vm3431_vm3 = vcmp.eq.s32.totalorder %v3393_v5, 1 }
 0x681   : >> { %v3448_v23 = vsel %vm3431_vm3, %v9646_v20, -inf  ;;  %3198 = vperm.xlu2 %4408, %v7674_v26   ;;  %v3005_v60 = vpop.permute.xlu2 %3004 }
 0x682   : >> { %v3173_v32 = vmax.f32 %v8063_v4, %v3448_v23  ;;  %vm3043_vm4 = vcmp.eq.s32.totalorder %v3005_v60, 1 }
 0x683   : >> { %v3060_v50 = vsel %vm3043_vm4, %v9583_v17, -inf }
 0x684   : >> { %v8137_v53 = vmax.f32 %v3173_v32, %v3060_v50 }
 0x687   : >> { %3619 = vperm.xlu1 %4419, %v9632_v25   ;;  %v3402_v46 = vpop.permute.xlu1 %3401 }
 0x688   : >> { %vm3434_vm5 = vcmp.eq.s32.totalorder %v3402_v46, 1 }
 0x689   : >> { %v3451_v41 = vsel %vm3434_vm5, %v9646_v20, -inf  ;;  %3204 = vperm.xlu2 %4408, %v9620_v7   ;;  %v3014_v5 = vpop.permute.xlu2 %3013 }
 0x68a   : >> { %v3370_v22 = vmax.f32 %v7957_v48, %v3451_v41  ;;  %vm3046_vm6 = vcmp.eq.s32.totalorder %v3014_v5, 1 }
 0x68b   : >> { %v3063_v28 = vsel %vm3046_vm6, %v9583_v17, -inf }
 0x68c   : >> { %v8144_v4 = vmax.f32 %v3370_v22, %v3063_v28 }
 0x68f   : >> { %v3411_v23 = vpop.permute.xlu1 %3410 }
 0x690   : >> { %vm3437_vm7 = vcmp.eq.s32.totalorder %v3411_v23, 1 }
 0x691   : >> { %v3454_v60 = vsel %vm3437_vm7, %v9646_v20, -inf  ;;  %3213 = vperm.xlu2 %4408, %v9626_v52   ;;  %v3023_v32 = vpop.permute.xlu2 %3022 }
 0x692   : >> { %v3373_v50 = vmax.f32 %v7967_v56, %v3454_v60  ;;  %vm3049_vm8 = vcmp.eq.s32.totalorder %v3023_v32, 1  ;;  %v9648_v60 = vld [vmem:[#allocation134_spill] sm:$0xff] }
 0x693   : >> { %v3066_v46 = vsel %vm3049_vm8, %v9583_v17, -inf }
 0x694   : >> { %v8150_v40 = vmax.f32 %v3373_v50, %v3066_v46 }
 0x697   : >> { %v3420_v48 = vpop.permute.xlu1 %3419 }
 0x698   : >> { %vm3440_vm9 = vcmp.eq.s32.totalorder %v3420_v48, 1 }
 0x699   : >> { %v3457_v41 = vsel %vm3440_vm9, %v9646_v20, -inf  ;;  %3222 = vperm.xlu2 %4408, %v9631_v10   ;;  %v3032_v28 = vpop.permute.xlu2 %3031 }
 0x69a   : >> { %v3376_v22 = vmax.f32 %v7976_v29, %v3457_v41  ;;  %vm3052_vm10 = vcmp.eq.s32.totalorder %v3032_v28, 1 }
 0x69b   : >> { %v3069_v5 = vsel %vm3052_vm10, %v9583_v17, -inf }
 0x69c   : >> { %v8156_v23 = vmax.f32 %v3376_v22, %v3069_v5 }
 0x6a0   : >> { %v3478_v56 = vpop.permute.xlu1 %3477 }
 0x6a1   : >> { %vm3524_vm12 = vcmp.eq.s32.totalorder %v3478_v56, 1  ;;  %3231 = vperm.xlu2 %4408, %v9632_v25  }
 0x6a2   : >> { %v3541_v32 = vsel %vm3524_vm12, %v9648_v60, -inf  ;;  %v3090_v50 = vpop.permute.xlu2 %3089 }
 0x6a3   : >> { %v3460_v46 = vmax.f32 %v7984_v24, %v3541_v32  ;;  %vm3136_vm13 = vcmp.eq.s32.totalorder %v3090_v50, 1 }
 0x6a4   : >> { %v3153_v48 = vsel %vm3136_vm13, %v9629_v11, -inf }
 0x6a5   : >> { %v8162_v30 = vmax.f32 %v3460_v46, %v3153_v48 }
 0x6a8   : >> { %v3487_v29 = vpop.permute.xlu1 %3486 }
 0x6a9   : >> { %vm3527_vm11 = vcmp.eq.s32.totalorder %v3487_v29, 1  ;;  %4411 = vset.pattern.permute.xlu2 %v9604_v31  ;;  %v9649_v31 = vmax.f32 %v8002_v37, %v8005_v45 }
 0x6aa   : >> { %v3544_v17 = vsel %vm3527_vm11, %v9648_v60, -inf  ;;  %3289 = vperm.xlu2 %4411, %v9635_v34   ;;  %v3099_v41 = vpop.permute.xlu2 %3098 }
 0x6ab   : >> { %v3366_v28 = vmax.f32 %v8057_v18, %v3544_v17  ;;  %vm3139_vm14 = vcmp.eq.s32.totalorder %v3099_v41, 1  ;;  %v9650_v41 = vmax.f32 %v8013_v21, %v8016_v47 }
 0x6ac   : >> { %v3156_v22 = vsel %vm3139_vm14, %v9629_v11, -inf }
 0x6ad   : >> { %v8169_v24 = vmax.f32 %v3366_v28, %v3156_v22 }
 0x6b0   : >> { %v3493_v5 = vpop.permute.xlu1 %3492 }
 0x6b1   : >> { %vm3529_vm15 = vcmp.eq.s32.totalorder %v3493_v5, 1 }
 0x6b2   : >> { %v3546_v56 = vsel %vm3529_vm15, %v9648_v60, -inf  ;;  %3295 = vperm.xlu2 %4411, %v7674_v26   ;;  %v3105_v32 = vpop.permute.xlu2 %3104 }
 0x6b3   : >> { %v8176_v50 = vmax.f32 %v9649_v31, %v3546_v56  ;;  %vm3141_vm0 = vcmp.eq.s32.totalorder %v3105_v32, 1  ;;  %v9651_v32 = vmax.f32 %v8023_v6, %v8026_v57 }
 0x6b4   : >> { %v8179_v18 = vsel %vm3141_vm0, %v9629_v11, -inf }
 0x6b5   : >> { %v3562_v46 = vmax.f32 %v8176_v50, %v8179_v18 }
 0x6b8   : >> { %v3502_v48 = vpop.permute.xlu1 %3501 }
 0x6b9   : >> { %vm3532_vm1 = vcmp.eq.s32.totalorder %v3502_v48, 1 }
 0x6ba   : >> { %v3549_v29 = vsel %vm3532_vm1, %v9648_v60, -inf  ;;  %3304 = vperm.xlu2 %4411, %v9636_v13   ;;  %v3114_v17 = vpop.permute.xlu2 %3113 }
 0x6bb   : >> { %v8188_v37 = vmax.f32 %v9650_v41, %v3549_v29  ;;  %vm3144_vm2 = vcmp.eq.s32.totalorder %v3114_v17, 1  ;;  %v9652_v41 = vmax.f32 %v8033_v3, %v8036_v35  ;;  %v9653_v3 = vmax.f32 %v8047_v8, %v8050_v1 }
 0x6bc   : >> { %v8191_v45 = vsel %vm3144_vm2, %v9629_v11, -inf }
 0x6bd   : >> { %v3565_v28 = vmax.f32 %v8188_v37, %v8191_v45 }
 0x6c0   : >> { %v3511_v22 = vpop.permute.xlu1 %3510 }
 0x6c1   : >> { %vm3535_vm3 = vcmp.eq.s32.totalorder %v3511_v22, 1 }
 0x6c2   : >> { %v3552_v5 = vsel %vm3535_vm3, %v9648_v60, -inf  ;;  %3313 = vperm.xlu2 %4411, %v9570_v38   ;;  %v3123_v56 = vpop.permute.xlu2 %3122 }
 0x6c3   : >> { %v8200_v21 = vmax.f32 %v9651_v32, %v3552_v5  ;;  %vm3147_vm4 = vcmp.eq.s32.totalorder %v3123_v56, 1 }
 0x6c4   : >> { %v8203_v47 = vsel %vm3147_vm4, %v9629_v11, -inf }
 0x6c5   : >> { %v3568_v31 = vmax.f32 %v8200_v21, %v8203_v47 }
 0x6c8   : >> { %v3520_v48 = vpop.permute.xlu1 %3519 }
 0x6c9   : >> { %vm3538_vm5 = vcmp.eq.s32.totalorder %v3520_v48, 1 }
 0x6ca   : >> { %v3555_v29 = vsel %vm3538_vm5, %v9648_v60, -inf  ;;  %3322 = vperm.xlu2 %4411, %v9574_v51   ;;  %v3132_v17 = vpop.permute.xlu2 %3131 }
 0x6cb   : >> { %v8212_v6 = vmax.f32 %v9652_v41, %v3555_v29  ;;  %vm3150_vm6 = vcmp.eq.s32.totalorder %v3132_v17, 1 }
 0x6cc   : >> { %v8215_v57 = vsel %vm3150_vm6, %v9629_v11, -inf }
 0x6cd   : >> { %v3571_v22 = vmax.f32 %v8212_v6, %v8215_v57 }
 0x6d1   : >> { %v3578_v5 = vpop.permute.xlu1 %3577 }
 0x6d2   : >> { %vm3622_vm7 = vcmp.eq.s32.totalorder %v3578_v5, 1  ;;  %4413 = vset.pattern.permute.xlu2 %v9634_v33 }
 0x6d3   : >> { %v3639_v56 = vsel %vm3622_vm7, %v7946_v16, -inf  ;;  %3380 = vperm.xlu2 %4413, %v9565_v63   ;;  %v3190_v32 = vpop.permute.xlu2 %3189 }
 0x6d4   : >> { %v8225_v35 = vmax.f32 %v9653_v3, %v3639_v56  ;;  %vm3234_vm8 = vcmp.eq.s32.totalorder %v3190_v32, 1  ;;  %v9654_v32 = vmax.f32 %v8071_v62, %v8074_v61 }
 0x6d5   : >> { %v8228_v11 = vsel %vm3234_vm8, %v9637_v44, -inf }
 0x6d6   : >> { %v3558_v48 = vmax.f32 %v8225_v35, %v8228_v11 }
 0x6d9   : >> { %v3584_v29 = vpop.permute.xlu1 %3583 }
 0x6da   : >> { %vm3624_vm9 = vcmp.eq.s32.totalorder %v3584_v29, 1 }
 0x6db   : >> { %v8233_v33 = vsel %vm3624_vm9, %v7946_v16, -inf  ;;  %3389 = vperm.xlu2 %4413, %v9482_v27   ;;  %v3199_v63 = vpop.permute.xlu2 %3198 }
 0x6dc   : >> { %v3560_v8 = vmax.f32 %v8169_v24, %v8233_v33  ;;  %vm3237_vm10 = vcmp.eq.s32.totalorder %v3199_v63, 1 }
 0x6dd   : >> { %v3254_v1 = vsel %vm3237_vm10, %v9637_v44, -inf }
 0x6de   : >> { %v3367_v17 = vmax.f32 %v8137_v53, %v3254_v1  ;;  %v9655_v1 = vmax.f32 %v8085_v39, %v8088_v55 }
 0x6e1   : >> { %v3593_v41 = vpop.permute.xlu1 %3592 }
 0x6e2   : >> { %vm3627_vm12 = vcmp.eq.s32.totalorder %v3593_v41, 1 }
 0x6e3   : >> { %v3644_v5 = vsel %vm3627_vm12, %v7946_v16, -inf  ;;  %3395 = vperm.xlu2 %4413, %v9490_v59   ;;  %v3205_v56 = vpop.permute.xlu2 %3204 }
 0x6e4   : >> { %v8245_v27 = vmax.f32 %v9654_v32, %v3644_v5  ;;  %vm3239_vm13 = vcmp.eq.s32.totalorder %v3205_v56, 1  ;;  %v9656_v32 = vmax.f32 %v8098_v2, %v8101_v0 }
 0x6e5   : >> { %v8248_v3 = vsel %vm3239_vm13, %v9637_v44, -inf }
 0x6e6   : >> { %v3563_v29 = vmax.f32 %v8245_v27, %v8248_v3 }
 0x6e9   : >> { %v3602_v53 = vpop.permute.xlu1 %3601 }
 0x6ea   : >> { %vm3630_vm11 = vcmp.eq.s32.totalorder %v3602_v53, 1 }
 0x6eb   : >> { %v3647_v63 = vsel %vm3630_vm11, %v7946_v16, -inf  ;;  %3404 = vperm.xlu2 %4413, %v9496_v14   ;;  %v3214_v59 = vpop.permute.xlu2 %3213 }
 0x6ec   : >> { %v8257_v62 = vmax.f32 %v9655_v1, %v3647_v63  ;;  %vm3242_vm14 = vcmp.eq.s32.totalorder %v3214_v59, 1  ;;  %v9657_v1 = vmax.f32 %v8111_v15, %v8114_v43  ;;  %v9658_v15 = vmax.f32 %v8125_v12, %v8128_v36 }
 0x6ed   : >> { %v8260_v61 = vsel %vm3242_vm14, %v9637_v44, -inf }
 0x6ee   : >> { %v3566_v41 = vmax.f32 %v8257_v62, %v8260_v61 }
 0x6f1   : >> { %v3611_v5 = vpop.permute.xlu1 %3610 }
 0x6f2   : >> { %vm3633_vm15 = vcmp.eq.s32.totalorder %v3611_v5, 1 }
 0x6f3   : >> { %v3650_v56 = vsel %vm3633_vm15, %v7946_v16, -inf  ;;  %3413 = vperm.xlu2 %4413, %v9501_v42   ;;  %v3223_v14 = vpop.permute.xlu2 %3222 }
 0x6f4   : >> { %v8269_v39 = vmax.f32 %v9656_v32, %v3650_v56  ;;  %vm3245_vm0 = vcmp.eq.s32.totalorder %v3223_v14, 1 }
 0x6f5   : >> { %v8272_v55 = vsel %vm3245_vm0, %v9637_v44, -inf }
 0x6f6   : >> { %v3569_v53 = vmax.f32 %v8269_v39, %v8272_v55 }
 0x6f9   : >> { %v3620_v63 = vpop.permute.xlu1 %3619 }
 0x6fa   : >> { %vm3636_vm1 = vcmp.eq.s32.totalorder %v3620_v63, 1 }
 0x6fb   : >> { %v3653_v59 = vsel %vm3636_vm1, %v7946_v16, -inf  ;;  %3422 = vperm.xlu2 %4413, %v9504_v54   ;;  %v3232_v42 = vpop.permute.xlu2 %3231 }
 0x6fc   : >> { %v8281_v2 = vmax.f32 %v9657_v1, %v3653_v59  ;;  %vm3248_vm2 = vcmp.eq.s32.totalorder %v3232_v42, 1 }
 0x6fd   : >> { %v8284_v0 = vsel %vm3248_vm2, %v9637_v44, -inf }
 0x6fe   : >> { %v3572_v5 = vmax.f32 %v8281_v2, %v8284_v0 }
 0x703   : >> { %4417 = vset.pattern.permute.xlu2 %v9571_v9 }
 0x704   : >> { %3480 = vperm.xlu2 %4417, %v9605_v58   ;;  %v3290_v56 = vpop.permute.xlu2 %3289 }
 0x705   : >> { %vm3332_vm3 = vcmp.eq.s32.totalorder %v3290_v56, 1 }
 0x706   : >> { %v3349_v54 = vsel %vm3332_vm3, %v9640_v19, -inf }
 0x707   : >> { %v8294_v43 = vmax.f32 %v9658_v15, %v3349_v54 }
 0x70c   : >> { %3489 = vperm.xlu2 %4417, %v7674_v26   ;;  %v3296_v44 = vpop.permute.xlu2 %3295 }
 0x70d   : >> { %vm3334_vm4 = vcmp.eq.s32.totalorder %v3296_v44, 1 }
 0x70e   : >> { %v3351_v14 = vsel %vm3334_vm4, %v9640_v19, -inf }
 0x70f   : >> { %v8298_v32 = vmax.f32 %v3367_v17, %v3351_v14 }
 0x714   : >> { %3495 = vperm.xlu2 %4417, %v9620_v7   ;;  %v3305_v9 = vpop.permute.xlu2 %3304 }
 0x715   : >> { %vm3337_vm5 = vcmp.eq.s32.totalorder %v3305_v9, 1 }
 0x716   : >> { %v8302_v58 = vsel %vm3337_vm5, %v9640_v19, -inf }
 0x717   : >> { %v3564_v12 = vmax.f32 %v8144_v4, %v8302_v58 }
 0x71c   : >> { %3504 = vperm.xlu2 %4417, %v9626_v52   ;;  %v3314_v36 = vpop.permute.xlu2 %3313 }
 0x71d   : >> { %vm3340_vm6 = vcmp.eq.s32.totalorder %v3314_v36, 1 }
 0x71e   : >> { %v8308_v63 = vsel %vm3340_vm6, %v9640_v19, -inf }
 0x71f   : >> { %v3567_v17 = vmax.f32 %v8150_v40, %v8308_v63 }
 0x724   : >> { %3513 = vperm.xlu2 %4417, %v9631_v10   ;;  %v3323_v7 = vpop.permute.xlu2 %3322 }
 0x725   : >> { %vm3343_vm7 = vcmp.eq.s32.totalorder %v3323_v7, 1 }
 0x726   : >> { %v8314_v59 = vsel %vm3343_vm7, %v9640_v19, -inf }
 0x727   : >> { %v3570_v42 = vmax.f32 %v8156_v23, %v8314_v59 }
 0x72c   : >> { %3522 = vperm.xlu2 %4417, %v9632_v25  }
 0x72d   : >> { %v3381_v52 = vpop.permute.xlu2 %3380 }
 0x72e   : >> { %vm3427_vm8 = vcmp.eq.s32.totalorder %v3381_v52, 1 }
 0x72f   : >> { %v3444_v1 = vsel %vm3427_vm8, %v9646_v20, -inf }
 0x730   : >> { %v8321_v15 = vmax.f32 %v8162_v30, %v3444_v1  }
 0x732   : >> { %v9659_v56 = vmov %v8321_v15 }
 0x734   : >> { %4420 = vset.pattern.permute.xlu2 %v9582_v49 }
 0x735   : >> { %3580 = vperm.xlu2 %4420, %v9635_v34   ;;  %v3390_v10 = vpop.permute.xlu2 %3389 }
 0x736   : >> { %vm3430_vm9 = vcmp.eq.s32.totalorder %v3390_v10, 1 }
 0x737   : >> { %v3447_v19 = vsel %vm3430_vm9, %v9646_v20, -inf  ;;  %vm3705_vm9 = vcmp.eq.f32.partialorder (%p8409_p1), %v9659_v56, -inf }
 0x738   : >> { %v8329_v54 = vmax.f32 %v3560_v8, %v3447_v19  }
 0x73d   : >> { %3586 = vperm.xlu2 %4420, %v7674_v26   ;;  %v3396_v25 = vpop.permute.xlu2 %3395 }
 0x73e   : >> { %vm3432_vm10 = vcmp.eq.s32.totalorder %v3396_v25, 1 }
 0x73f   : >> { %v3449_v30 = vsel %vm3432_vm10, %v9646_v20, -inf }
 0x740   : >> { %v8336_v10 = vmax.f32 %v3562_v46, %v3449_v30  }
 0x742   : >> { %v9660_v49 = vmov %v8336_v10 }
 0x743   : >> { %v9680_v10 = vmov %v9660_v49 }
 0x745   : >> { %3595 = vperm.xlu2 %4420, %v9636_v13   ;;  %v3405_v34 = vpop.permute.xlu2 %3404 }
 0x746   : >> { %vm3435_vm12 = vcmp.eq.s32.totalorder %v3405_v34, 1 }
 0x747   : >> { %v3452_v15 = vsel %vm3435_vm12, %v9646_v20, -inf }
 0x748   : >> { %v8343_v7 = vmax.f32 %v3565_v28, %v3452_v15   ;;  %v9685_v15 = vmov %v9659_v56 }
 0x74a   : >> { %v9661_v26 = vmov %v8343_v7 }
 0x74b   : >> { %v9677_v7 = vmov %v9661_v26 }
 0x74d   : >> { %3604 = vperm.xlu2 %4420, %v9570_v38   ;;  %v3414_v24 = vpop.permute.xlu2 %3413 }
 0x74e   : >> { %vm3438_vm13 = vcmp.eq.s32.totalorder %v3414_v24, 1 }
 0x74f   : >> { %v3455_v33 = vsel %vm3438_vm13, %v9646_v20, -inf  ;;  %vm3708_vm13 = vcmp.eq.f32.partialorder (%p8409_p1), %v8329_v54, -inf }
 0x750   : >> { %v8350_v50 = vmax.f32 %v3568_v31, %v3455_v33  }
 0x752   : >> { %v9674_v4 = vmov %v8350_v50 }
 0x753   : > { %v3724_v4 = vsel (%p8409_p1), %vm3708_vm13, 0.0, %v8329_v54 }
 0x754   : > { %3740 = vst [vmem:[%s4859_s27 + $0x18] sm:$0xff] (%p8409_p1), %v3724_v4 }
 0x755   : >> { %3613 = vperm.xlu2 %4420, %v9574_v51   ;;  %v3423_v13 = vpop.permute.xlu2 %3422 }
 0x756   : >> { %vm3441_vm11 = vcmp.eq.s32.totalorder %v3423_v13, 1 }
 0x757   : >> { %v3458_v18 = vsel %vm3441_vm11, %v9646_v20, -inf }
 0x758   : >> { %v8357_v1 = vmax.f32 %v3571_v22, %v3458_v18  }
 0x75a   : >> { %v9662_v38 = vmov %v8357_v1 }
 0x75b   : >> { %v9671_v1 = vmov %v9662_v38 }
 0x75e   : >> { %v3481_v46 = vpop.permute.xlu2 %3480 }
 0x75f   : >> { %vm3525_vm14 = vcmp.eq.s32.totalorder %v3481_v46, 1 }
 0x760   : >> { %v3542_v37 = vsel %vm3525_vm14, %v9648_v60, -inf  ;;  %vm3710_vm14 = vcmp.eq.f32.partialorder (%p8409_p1), %v9660_v49, -inf }
 0x761   : >> { %v8363_v14 = vmax.f32 %v3558_v48, %v3542_v37   ;;  %v3726_v58 = vsel (%p8409_p1), %vm3710_vm14, 0.0, %v9660_v49 }
 0x762   : > { %3742 = vst [vmem:[%s4859_s27 + $0x28] sm:$0xff] (%p8409_p1), %v3726_v58 }
 0x763   : >> { %v9663_v45 = vmov %v8363_v14 }
 0x764   : > { %vm3706_vm10 = vcmp.eq.f32.partialorder (%p8409_p1), %v9663_v45, -inf }
 0x765   : > { %v3722_v40 = vsel (%p8409_p1), %vm3706_vm10, 0.0, %v9663_v45 }
 0x766   : >> { %v3490_v28 = vpop.permute.xlu2 %3489  ;;  %3738 = vst [vmem:[%s4859_s27 + $0x8] sm:$0xff] (%p8409_p1), %v3722_v40 }
 0x767   : >> { %vm3528_vm15 = vcmp.eq.s32.totalorder %v3490_v28, 1 }
 0x768   : >> { %v3545_v51 = vsel %vm3528_vm15, %v9648_v60, -inf }
 0x769   : >> { %v3561_v20 = vmax.f32 %v8298_v32, %v3545_v51 }
 0x76e   : >> { %v3496_v21 = vpop.permute.xlu2 %3495 }
 0x76f   : >> { %vm3530_vm0 = vcmp.eq.s32.totalorder %v3496_v21, 1 }
 0x770   : >> { %v3547_v47 = vsel %vm3530_vm0, %v9648_v60, -inf }
 0x771   : >> { %v8371_v9 = vmax.f32 %v3563_v29, %v3547_v47  }
 0x773   : >> { %v9664_v31 = vmov %v8371_v9 }
 0x774   : >> { %v9679_v9 = vmov %v9664_v31  ;;  %vm3711_vm15 = vcmp.eq.f32.partialorder (%p8409_p1), %v9664_v31, -inf }
 0x776   : >> { %v3505_v6 = vpop.permute.xlu2 %3504 }
 0x777   : >> { %vm3533_vm1 = vcmp.eq.s32.totalorder %v3505_v6, 1 }
 0x778   : >> { %v3550_v57 = vsel %vm3533_vm1, %v9648_v60, -inf  ;;  %vm3713_vm1 = vcmp.eq.f32.partialorder (%p8409_p1), %v9661_v26, -inf }
 0x779   : >> { %v8377_v6 = vmax.f32 %v3566_v41, %v3550_v57   ;;  %v3729_v63 = vsel (%p8409_p1), %vm3713_vm1, 0.0, %v9661_v26 }
 0x77a   : > { %3745 = vst [vmem:[%s4859_s27 + $0x40] sm:$0xff] (%p8409_p1), %v3729_v63 }
 0x77b   : >> { %v9665_v22 = vmov %v8377_v6 }
 0x77c   : >> { %v9676_v6 = vmov %v9665_v22 }
 0x77e   : >> { %v3514_v35 = vpop.permute.xlu2 %3513 }
 0x77f   : >> { %vm3536_vm2 = vcmp.eq.s32.totalorder %v3514_v35, 1 }
 0x780   : >> { %v3553_v11 = vsel %vm3536_vm2, %v9648_v60, -inf  ;;  %vm3714_vm2 = vcmp.eq.f32.partialorder (%p8409_p1), %v9665_v22, -inf }
 0x781   : >> { %v8383_v3 = vmax.f32 %v3569_v53, %v3553_v11  }
 0x783   : >> { %v9666_v48 = vmov %v8383_v3 }
 0x786   : >> { %v3523_v8 = vpop.permute.xlu2 %3522 }
 0x787   : >> { %vm3539_vm3 = vcmp.eq.s32.totalorder %v3523_v8, 1 }
 0x788   : >> { %v3556_v27 = vsel %vm3539_vm3, %v9648_v60, -inf }
 0x789   : >> { %v8389_v0 = vmax.f32 %v3572_v5, %v3556_v27  }
 0x78b   : >> { %v9667_v29 = vmov %v8389_v0 }
 0x78f   : >> { %v3581_v62 = vpop.permute.xlu2 %3580 }
 0x790   : >> { %vm3623_vm4 = vcmp.eq.s32.totalorder %v3581_v62, 1 }
 0x791   : >> { %v3640_v61 = vsel %vm3623_vm4, %v7946_v16, -inf  ;;  %vm3716_vm4 = vcmp.eq.f32.partialorder (%p8409_p1), %v8350_v50, -inf }
 0x792   : >> { %v3656_v41 = vmax.f32 %v8294_v43, %v3640_v61   ;;  %v3732_v59 = vsel (%p8409_p1), %vm3716_vm4, 0.0, %v8350_v50 }
 0x793   : > { %3748 = vst [vmem:[%s4859_s27 + $0x58] sm:$0xff] (%p8409_p1), %v3732_v59 }
 0x794   : >> { %v9683_v13 = vmov %v3656_v41  ;;  %vm3707_vm12 = vcmp.eq.f32.partialorder (%p8409_p1), %v3656_v41, -inf }
 0x795   : > { %v3723_v23 = vsel (%p8409_p1), %vm3707_vm12, 0.0, %v3656_v41 }
 0x796   : > { %3739 = vst [vmem:[%s4859_s27 + $0x10] sm:$0xff] (%p8409_p1), %v3723_v23 }
 0x797   : >> { %v3587_v44 = vpop.permute.xlu2 %3586 }
 0x798   : >> { %vm3625_vm5 = vcmp.eq.s32.totalorder %v3587_v44, 1 }
 0x799   : >> { %v3642_v39 = vsel %vm3625_vm5, %v7946_v16, -inf  ;;  %vm3717_vm5 = vcmp.eq.f32.partialorder (%p8409_p1), %v9666_v48, -inf }
 0x79a   : >> { %v3658_v55 = vmax.f32 %v3561_v20, %v3642_v39  }
 0x79c   : >> { %v9681_v11 = vmov %v3658_v55  ;;  %vm3709_vm11 = vcmp.eq.f32.partialorder (%p8409_p1), %v3658_v55, -inf }
 0x79d   : > { %v3725_v9 = vsel (%p8409_p1), %vm3709_vm11, 0.0, %v3658_v55 }
 0x79e   : > { %3741 = vst [vmem:[%s4859_s27 + $0x20] sm:$0xff] (%p8409_p1), %v3725_v9 }
 0x79f   : >> { %v3596_v3 = vpop.permute.xlu2 %3595 }
 0x7a0   : >> { %vm3628_vm6 = vcmp.eq.s32.totalorder %v3596_v3, 1  ;;  %v9673_v3 = vmov %v9666_v48 }
 0x7a1   : >> { %v3645_v60 = vsel %vm3628_vm6, %v7946_v16, -inf }
 0x7a2   : >> { %v3661_v53 = vmax.f32 %v3564_v12, %v3645_v60   ;;  %v9682_v12 = vmov %v8329_v54 }
 0x7a3   : > { %v3727_v12 = vsel (%p8409_p1), %vm3711_vm15, 0.0, %v9664_v31 }
 0x7a4   : >> { %v9678_v8 = vmov %v3661_v53  ;;  %vm3712_vm0 = vcmp.eq.f32.partialorder (%p8409_p1), %v3661_v53, -inf  ;;  %3743 = vst [vmem:[%s4859_s27 + $0x30] sm:$0xff] (%p8409_p1), %v3727_v12 }
 0x7a5   : > { %v3728_v36 = vsel (%p8409_p1), %vm3712_vm0, 0.0, %v3661_v53 }
 0x7a6   : > { %3744 = vst [vmem:[%s4859_s27 + $0x38] sm:$0xff] (%p8409_p1), %v3728_v36 }
 0x7a7   : >> { %v3605_v2 = vpop.permute.xlu2 %3604 }
 0x7a8   : >> { %vm3631_vm7 = vcmp.eq.s32.totalorder %v3605_v2, 1 }
 0x7a9   : >> { %v3648_v0 = vsel %vm3631_vm7, %v7946_v16, -inf  ;;  %vm3719_vm7 = vcmp.eq.f32.partialorder (%p8409_p1), %v9662_v38, -inf }
 0x7aa   : >> { %v3664_v43 = vmax.f32 %v3567_v17, %v3648_v0   ;;  %v9670_v0 = vmov %v9667_v29  ;;  %v3730_v17 = vsel (%p8409_p1), %vm3714_vm2, 0.0, %v9665_v22  ;;  %v3735_v1 = vsel (%p8409_p1), %vm3719_vm7, 0.0, %v9662_v38 }
 0x7ab   : > { %3746 = vst [vmem:[%s4859_s27 + $0x48] sm:$0xff] (%p8409_p1), %v3730_v17 }
 0x7ac   : > { %vm3715_vm3 = vcmp.eq.f32.partialorder (%p8409_p1), %v3664_v43, -inf  ;;  %3751 = vst [vmem:[%s4859_s27 + $0x70] sm:$0xff] (%p8409_p1), %v3735_v1 }
 0x7ad   : > { %v3731_v7 = vsel (%p8409_p1), %vm3715_vm3, 0.0, %v3664_v43 }
 0x7ae   : > { %3747 = vst [vmem:[%s4859_s27 + $0x50] sm:$0xff] (%p8409_p1), %v3731_v7 }
 0x7af   : >> { %v3614_v5 = vpop.permute.xlu2 %3613 }
 0x7b0   : >> { %vm3634_vm8 = vcmp.eq.s32.totalorder %v3614_v5, 1  ;;  %v9675_v5 = vmov %v3664_v43 }
 0x7b1   : >> { %v3651_v14 = vsel %vm3634_vm8, %v7946_v16, -inf  ;;  %241 = sbr.rel (!%p8409_p1) target bundleno = 43 (0x2b), region = 94  ;;  %v3721_v16 = vsel (%p8409_p1), %vm3705_vm9, 0.0, %v9659_v56  ;;  %vm3720_vm8 = vcmp.eq.f32.partialorder (%p8409_p1), %v9667_v29, -inf }
 0x7b2   : >> { %v8406_v2 = vmax.f32 %v3570_v42, %v3651_v14   ;;  %v9684_v14 = vmov %v9663_v45  ;;  %3737 = vst [vmem:[%s4859_s27] sm:$0xff] (%p8409_p1), %v3721_v16  ;;  %v3733_v42 = vsel (%p8409_p1), %vm3717_vm5, 0.0, %v9666_v48  ;;  %v3736_v56 = vsel (%p8409_p1), %vm3720_vm8, 0.0, %v9667_v29 }
 0x7b3   : > { %3749 = vst [vmem:[%s4859_s27 + $0x60] sm:$0xff] (%p8409_p1), %v3733_v42 }
 0x7b4   : >> { %v9668_v32 = vmov %v8406_v2  ;;  %3752 = vst [vmem:[%s4859_s27 + $0x78] sm:$0xff] (%p8409_p1), %v3736_v56 }
 0x7b5   : >> { %v9672_v2 = vmov %v9668_v32  ;;  %vm3718_vm6 = vcmp.eq.f32.partialorder (%p8409_p1), %v9668_v32, -inf }
 0x7b6   : > { %v3734_v52 = vsel %vm3718_vm6, 0.0, %v9668_v32 }
 0x7b7   : > { %3750 = vst [vmem:[%s4859_s27 + $0x68] sm:$0xff] %v3734_v52 }
 0x7b8   : > { %4513 = shalt.err (!%p4510_p3)
}
 0x7b9   : > { %s4723_s30 = smov 128   ;;  %s4724_s27 = smov 8  }
 0x7ba   : > { %3950 = dma.vmem_to_hbm [thread:$0]  (%p4822_p5), %s3767_s26, 2048, %s3769_s5, %s3754_s7, %s4723_s30, %s4723_s30, %s4724_s27  }
 0x7bb PF: > { %s3783_s6 = sand.u32 1, %s4620_s9   ;;  %p3961_p7 = pnand %p3925_p11, %p4789_p6 }
 0x7bc   : > { %s3784_s21 = scalar_lea.sflag [#allocation5], %s3783_s6 }
 0x7bd   : > { %p3962_p9 = pneg %p3961_p7 }
 0x7bf   : > { %4615 = dma.done.wait (%p3962_p9), %s3784_s21, 2048  }
 0x7c0   : > { %4617 = vsyncadd (%p3962_p9), %s3784_s21, 4294965248  ;;  %s19_s14 = sadd.s32 1, %s4640_s14   ;;  %s9686_s9 = smov %s4624_s10 }
 0x7c1   : > { %p16_p2 = scmp.ge.s32.totalorder %s19_s14, 4   ;;  %s9687_s10 = smov %s4628_s11 }
 0x7c2   : > { %s9688_s11 = smov %s4831_s8  ;;  %s9689_s12 = smov %s4636_s13 }
 0x7c3   : > { %s9690_s13 = smov %s9692_s29  ;;  %18 = sbr.rel (!%p16_p2) target bundleno = 7 (0x7), region = 105 }
 0x7c8   :  { %3790 = vsyncpa [#allocation4], 1 }
 0x7c9   :  { %3792 = vsyncpa [#allocation4 + $0x1], 1 }
 0x7ca   :  { %3793 = vsyncpa [#allocation7], 1 }
 0x7cb   :  { %3794 = vsyncpa [#allocation5], 1 }
 0x7cc   :  { %3796 = vsyncpa [#allocation5 + $0x1], 1 }

</bundles_post_ra>
